<compile_context>
chip_gen: v6e
topology: v6e:2x2x1
jax: 0.10.0
libtpu: 0.0.40
codegen_flags: <defaults>
</compile_context>

<pallas_src>
import functools

import jax
import jax.numpy as jnp
from jax.experimental import pallas as pl
from jax.experimental.pallas import tpu as pltpu


def _make_kernel(p_true, p_pad):
    inv_p = 1.0 / float(p_true)
    eps = 1e-5

    def kernel(x_ref, w1_ref, gb1_ref, w2_ref, gb2_ref, o_ref):
        # --- ReLU6 on (Cin, Ppad); padded columns are 0 and stay 0 ---
        h = jnp.clip(x_ref[...], 0.0, 6.0)

        # --- 1x1 conv #1: (Cmid, Cin) @ (Cin, Ppad) on the MXU ---
        y1 = jnp.dot(w1_ref[...], h, preferred_element_type=jnp.float32)

        # --- BatchNorm2d(Cmid), training mode (biased var), single pass ---
        # Padded columns of y1 are exactly 0, so summing all Ppad lanes and
        # dividing by the true P gives the exact statistics.
        sum1 = jnp.sum(y1, axis=1, keepdims=True)
        sq1 = jnp.sum(y1 * y1, axis=1, keepdims=True)
        mu1 = sum1 * inv_p
        var1 = jnp.maximum(sq1 * inv_p - mu1 * mu1, 0.0)
        g1 = gb1_ref[:, 0:1]
        b1 = gb1_ref[:, 1:2]
        sc1 = g1 * jax.lax.rsqrt(var1 + eps)
        sh1 = b1 - mu1 * sc1

        # Mask the shift on padded lanes so the padded columns of y1n stay 0
        # and do not contaminate BN2 statistics through the second matmul.
        col = jax.lax.broadcasted_iota(jnp.int32, (1, p_pad), 1)
        lane_mask = (col < p_true).astype(jnp.float32)   # (1, Ppad)
        y1n = y1 * sc1 + sh1 * lane_mask

        # --- 1x1 conv #2 (this Cout tile): (Tc, Cmid) @ (Cmid, Ppad) ---
        y2 = jnp.dot(w2_ref[...], y1n, preferred_element_type=jnp.float32)

        # --- BatchNorm2d over this Cout tile (per-channel stats => tiling-safe) ---
        sum2 = jnp.sum(y2, axis=1, keepdims=True)
        sq2 = jnp.sum(y2 * y2, axis=1, keepdims=True)
        mu2 = sum2 * inv_p
        var2 = jnp.maximum(sq2 * inv_p - mu2 * mu2, 0.0)
        g2 = gb2_ref[:, 0:1]
        b2 = gb2_ref[:, 1:2]
        sc2 = g2 * jax.lax.rsqrt(var2 + eps)
        sh2 = b2 - mu2 * sc2

        # Padded output columns hold sh2; they are sliced away in the wrapper.
        o_ref[...] = y2 * sc2 + sh2

    return kernel


def _default_cout_tiles():
    # v7x has two TensorCores per chip: split the Cout axis across them.
    # Single-TC chips (v5e/v6e) run the grid serially, so one step avoids
    # recomputing conv1+BN1 and the per-step grid overhead.
    try:
        kind = jax.devices()[0].device_kind.lower()
    except Exception:
        return 1
    return 2 if "v7" in kind else 1


def mobilenet_block(x_nchw, w1, g1, b1, w2, g2, b2, *, cout_tiles=None):
    """x_nchw: (N, 576, H, W) float32.
    w1: (160, 576)  [= torch conv2d41.weight[:, :, 0, 0]]
    w2: (960, 160)  [= torch conv2d42.weight[:, :, 0, 0]]
    g1, b1: (160,)   g2, b2: (960,)
    Returns (N, 960, H, W).
    """
    N, Cin, H, W = x_nchw.shape
    Cmid = w1.shape[0]
    Cout = w2.shape[0]
    P = N * H * W
    Ppad = ((P + 127) // 128) * 128          # lane-dense spatial axis

    # Channel-major 2D view. Free reshape for N == 1 (the module's case).
    if N == 1:
        x2d = x_nchw.reshape(Cin, P)
    else:
        x2d = jnp.moveaxis(x_nchw, 1, 0).reshape(Cin, P)
    x2d = jnp.pad(x2d, ((0, 0), (0, Ppad - P)))

    if cout_tiles is None:
        cout_tiles = _default_cout_tiles()
    assert Cout % cout_tiles == 0
    tc = Cout // cout_tiles
    assert tc % 8 == 0

    # Pack gamma/beta pairs -> half the number of tiny per-step DMAs.
    gb1 = jnp.stack([g1, b1], axis=1)        # (Cmid, 2)
    gb2 = jnp.stack([g2, b2], axis=1)        # (Cout, 2)

    flops = 2 * P * (Cmid * Cin + Cout * Cmid)
    bytes_accessed = 4 * (Cin * P + Cmid * Cin + Cout * Cmid + Cout * P
                          + 2 * Cmid + 2 * Cout)

    out2d = pl.pallas_call(
        _make_kernel(P, Ppad),
        out_shape=jax.ShapeDtypeStruct((Cout, Ppad), jnp.float32),
        grid_spec=pltpu.PrefetchScalarGridSpec(
            num_scalar_prefetch=0,
            grid=(cout_tiles,),
            in_specs=[
                pl.BlockSpec((Cin, Ppad), lambda j: (0, 0)),    # x (whole, padded)
                pl.BlockSpec((Cmid, Cin), lambda j: (0, 0)),    # w1 (whole)
                pl.BlockSpec((Cmid, 2), lambda j: (0, 0)),      # [gamma1|beta1]
                pl.BlockSpec((tc, Cmid), lambda j: (j, 0)),     # w2 tile
                pl.BlockSpec((tc, 2), lambda j: (j, 0)),        # [gamma2|beta2] tile
            ],
            out_specs=pl.BlockSpec((tc, Ppad), lambda j: (j, 0)),
        ),
        compiler_params=pltpu.CompilerParams(
            dimension_semantics=("parallel",)),
        cost_estimate=pl.CostEstimate(
            flops=flops, transcendentals=Cmid + Cout,
            bytes_accessed=bytes_accessed),
    )(x2d, w1, gb1, w2, gb2)

    out2d = out2d[:, :P]
    if N == 1:
        return out2d.reshape(1, Cout, H, W)
    return jnp.moveaxis(out2d.reshape(Cout, N, H, W), 1, 0)


def _reference(x_nchw, w1, g1, b1, w2, g2, b2):
    eps = 1e-5
    N, C, H, W = x_nchw.shape
    x2d = jnp.transpose(x_nchw, (0, 2, 3, 1)).reshape(-1, C)
    h = jnp.clip(x2d, 0.0, 6.0)
    y1 = h @ w1.T
    mu1 = y1.mean(0, keepdims=True)
    v1 = ((y1 - mu1) ** 2).mean(0, keepdims=True)
    y1 = (y1 - mu1) / jnp.sqrt(v1 + eps) * g1 + b1
    y2 = y1 @ w2.T
    mu2 = y2.mean(0, keepdims=True)
    v2 = ((y2 - mu2) ** 2).mean(0, keepdims=True)
    y2 = (y2 - mu2) / jnp.sqrt(v2 + eps) * g2 + b2
    return jnp.transpose(y2.reshape(N, H, W, -1), (0, 3, 1, 2))


if __name__ == "__main__":
    key = jax.random.PRNGKey(0)
    k_x, k_w1, k_w2, k_g1, k_b1, k_g2, k_b2 = jax.random.split(key, 7)

    N, Cin, H, W = 1, 576, 7, 7   # shapes implied by the module
    Cmid, Cout = 160, 960

    x = jax.random.normal(k_x, (N, Cin, H, W), dtype=jnp.float32)
    # 1x1 conv weights in natural torch layout (Cout, Cin).
    w1 = 0.05 * jax.random.normal(k_w1, (Cmid, Cin), dtype=jnp.float32)
    w2 = 0.05 * jax.random.normal(k_w2, (Cout, Cmid), dtype=jnp.float32)
    # BatchNorm affine params (deterministic, non-trivial).
    g1 = 1.0 + 0.1 * jax.random.normal(k_g1, (Cmid,), dtype=jnp.float32)
    b1 = 0.1 * jax.random.normal(k_b1, (Cmid,), dtype=jnp.float32)
    g2 = 1.0 + 0.1 * jax.random.normal(k_g2, (Cout,), dtype=jnp.float32)
    b2 = 0.1 * jax.random.normal(k_b2, (Cout,), dtype=jnp.float32)

    out = mobilenet_block(x, w1, g1, b1, w2, g2, b2)
    out = jax.block_until_ready(out)

    ref = _reference(x, w1, g1, b1, w2, g2, b2)
    assert out.shape == (N, Cout, H, W), out.shape
    assert jnp.allclose(out, ref, atol=1e-4, rtol=1e-4), \
        float(jnp.max(jnp.abs(out - ref)))

    print("KERNEL_OK")
</pallas_src>

<mosaic_0001>
module attributes {stable_mosaic.version = 11 : i64} {
  func.func @kernel(%arg0: i32, %arg1: memref<576x128xf32, #tpu.memory_space<vmem>>, %arg2: memref<160x576xf32, #tpu.memory_space<vmem>>, %arg3: memref<160x2xf32, #tpu.memory_space<vmem>>, %arg4: memref<960x160xf32, #tpu.memory_space<vmem>>, %arg5: memref<960x2xf32, #tpu.memory_space<vmem>>, %arg6: memref<960x128xf32, #tpu.memory_space<vmem>>) attributes {dimension_semantics = [#tpu.dimension_semantics<parallel>], iteration_bounds = array<i64: 1>, scalar_prefetch = 0 : i64, scratch_operands = 0 : i64, tpu.core_type = #tpu.core_type<tc>, window_params = [{pipeline_mode = #tpu.pipeline_mode<synchronous>, transform_indices = @transform_0, window_bounds = array<i64: 576, 128>}, {pipeline_mode = #tpu.pipeline_mode<synchronous>, transform_indices = @transform_1, window_bounds = array<i64: 160, 576>}, {pipeline_mode = #tpu.pipeline_mode<synchronous>, transform_indices = @transform_2, window_bounds = array<i64: 160, 2>}, {transform_indices = @transform_3, window_bounds = array<i64: 960, 160>}, {transform_indices = @transform_4, window_bounds = array<i64: 960, 2>}, {transform_indices = @transform_5, window_bounds = array<i64: 960, 128>}]} {
    %c0 = arith.constant 0 : index
    %c0_0 = arith.constant 0 : index
    %0 = vector.load %arg1[%c0, %c0_0] : memref<576x128xf32, #tpu.memory_space<vmem>>, vector<576x128xf32>
    %cst = arith.constant 0.000000e+00 : f32
    %cst_1 = arith.constant 6.000000e+00 : f32
    %1 = vector.broadcast %cst : f32 to vector<576x128xf32>
    %2 = arith.maximumf %1, %0 : vector<576x128xf32>
    %3 = vector.broadcast %cst_1 : f32 to vector<576x128xf32>
    %4 = arith.minimumf %3, %2 : vector<576x128xf32>
    %c0_2 = arith.constant 0 : index
    %c0_3 = arith.constant 0 : index
    %5 = vector.load %arg2[%c0_2, %c0_3] : memref<160x576xf32, #tpu.memory_space<vmem>>, vector<160x576xf32>
    %cst_4 = arith.constant dense<0.000000e+00> : vector<160x128xf32>
    %6 = tpu.matmul %5, %4, %cst_4 {dimension_numbers = #tpu.dot_dimension_numbers<[1], [0], [0], [1], [0, 0, 1, 1], [], []>} : vector<160x576xf32>, vector<576x128xf32>, vector<160x128xf32> -> vector<160x128xf32>
    %cst_5 = arith.constant dense<0.000000e+00> : vector<160xf32>
    %7 = vector.multi_reduction <add>, %6, %cst_5 [1] : vector<160x128xf32> to vector<160xf32>
    %8 = vector.shape_cast %7 : vector<160xf32> to vector<160x1xf32>
    %9 = arith.mulf %6, %6 : vector<160x128xf32>
    %cst_6 = arith.constant dense<0.000000e+00> : vector<160xf32>
    %10 = vector.multi_reduction <add>, %9, %cst_6 [1] : vector<160x128xf32> to vector<160xf32>
    %11 = vector.shape_cast %10 : vector<160xf32> to vector<160x1xf32>
    %cst_7 = arith.constant 0.0204081628 : f32
    %12 = vector.broadcast %cst_7 : f32 to vector<160x1xf32>
    %13 = arith.mulf %8, %12 : vector<160x1xf32>
    %cst_8 = arith.constant 0.0204081628 : f32
    %14 = vector.broadcast %cst_8 : f32 to vector<160x1xf32>
    %15 = arith.mulf %11, %14 : vector<160x1xf32>
    %16 = arith.mulf %13, %13 : vector<160x1xf32>
    %17 = arith.subf %15, %16 : vector<160x1xf32>
    %cst_9 = arith.constant 0.000000e+00 : f32
    %18 = vector.broadcast %cst_9 : f32 to vector<160x1xf32>
    %19 = arith.maximumf %17, %18 : vector<160x1xf32>
    %c0_10 = arith.constant 0 : index
    %c0_11 = arith.constant 0 : index
    %20 = vector.load %arg3[%c0_10, %c0_11] : memref<160x2xf32, #tpu.memory_space<vmem>>, vector<160x1xf32>
    %c0_12 = arith.constant 0 : index
    %c1 = arith.constant 1 : index
    %21 = vector.load %arg3[%c0_12, %c1] : memref<160x2xf32, #tpu.memory_space<vmem>>, vector<160x1xf32>
    %cst_13 = arith.constant 9.99999974E-6 : f32
    %22 = vector.broadcast %cst_13 : f32 to vector<160x1xf32>
    %23 = arith.addf %19, %22 : vector<160x1xf32>
    %24 = math.rsqrt %23 : vector<160x1xf32>
    %25 = arith.mulf %20, %24 : vector<160x1xf32>
    %26 = arith.mulf %13, %25 : vector<160x1xf32>
    %27 = arith.subf %21, %26 : vector<160x1xf32>
    %28 = tpu.iota {dimensions = array<i32: 1>} : vector<1x128xi32>
    %c49_i32 = arith.constant 49 : i32
    %29 = vector.broadcast %c49_i32 : i32 to vector<1x128xi32>
    %30 = arith.cmpi slt, %28, %29 : vector<1x128xi32>
    %31 = arith.extui %30 : vector<1x128xi1> to vector<1x128xi32>
    %32 = arith.sitofp %31 : vector<1x128xi32> to vector<1x128xf32>
    %33 = vector.broadcast %25 : vector<160x1xf32> to vector<160x128xf32>
    %34 = arith.mulf %6, %33 : vector<160x128xf32>
    %35 = vector.broadcast %27 : vector<160x1xf32> to vector<160x128xf32>
    %36 = vector.broadcast %32 : vector<1x128xf32> to vector<160x128xf32>
    %37 = arith.mulf %35, %36 : vector<160x128xf32>
    %38 = arith.addf %34, %37 : vector<160x128xf32>
    %c0_14 = arith.constant 0 : index
    %c0_15 = arith.constant 0 : index
    %39 = vector.load %arg4[%c0_14, %c0_15] : memref<960x160xf32, #tpu.memory_space<vmem>>, vector<960x160xf32>
    %cst_16 = arith.constant dense<0.000000e+00> : vector<960x128xf32>
    %40 = tpu.matmul %39, %38, %cst_16 {dimension_numbers = #tpu.dot_dimension_numbers<[1], [0], [0], [1], [0, 0, 1, 1], [], []>} : vector<960x160xf32>, vector<160x128xf32>, vector<960x128xf32> -> vector<960x128xf32>
    %cst_17 = arith.constant dense<0.000000e+00> : vector<960xf32>
    %41 = vector.multi_reduction <add>, %40, %cst_17 [1] : vector<960x128xf32> to vector<960xf32>
    %42 = vector.shape_cast %41 : vector<960xf32> to vector<960x1xf32>
    %43 = arith.mulf %40, %40 : vector<960x128xf32>
    %cst_18 = arith.constant dense<0.000000e+00> : vector<960xf32>
    %44 = vector.multi_reduction <add>, %43, %cst_18 [1] : vector<960x128xf32> to vector<960xf32>
    %45 = vector.shape_cast %44 : vector<960xf32> to vector<960x1xf32>
    %cst_19 = arith.constant 0.0204081628 : f32
    %46 = vector.broadcast %cst_19 : f32 to vector<960x1xf32>
    %47 = arith.mulf %42, %46 : vector<960x1xf32>
    %cst_20 = arith.constant 0.0204081628 : f32
    %48 = vector.broadcast %cst_20 : f32 to vector<960x1xf32>
    %49 = arith.mulf %45, %48 : vector<960x1xf32>
    %50 = arith.mulf %47, %47 : vector<960x1xf32>
    %51 = arith.subf %49, %50 : vector<960x1xf32>
    %cst_21 = arith.constant 0.000000e+00 : f32
    %52 = vector.broadcast %cst_21 : f32 to vector<960x1xf32>
    %53 = arith.maximumf %51, %52 : vector<960x1xf32>
    %c0_22 = arith.constant 0 : index
    %c0_23 = arith.constant 0 : index
    %54 = vector.load %arg5[%c0_22, %c0_23] : memref<960x2xf32, #tpu.memory_space<vmem>>, vector<960x1xf32>
    %c0_24 = arith.constant 0 : index
    %c1_25 = arith.constant 1 : index
    %55 = vector.load %arg5[%c0_24, %c1_25] : memref<960x2xf32, #tpu.memory_space<vmem>>, vector<960x1xf32>
    %cst_26 = arith.constant 9.99999974E-6 : f32
    %56 = vector.broadcast %cst_26 : f32 to vector<960x1xf32>
    %57 = arith.addf %53, %56 : vector<960x1xf32>
    %58 = math.rsqrt %57 : vector<960x1xf32>
    %59 = arith.mulf %54, %58 : vector<960x1xf32>
    %60 = arith.mulf %47, %59 : vector<960x1xf32>
    %61 = arith.subf %55, %60 : vector<960x1xf32>
    %62 = vector.broadcast %59 : vector<960x1xf32> to vector<960x128xf32>
    %63 = arith.mulf %40, %62 : vector<960x128xf32>
    %64 = vector.broadcast %61 : vector<960x1xf32> to vector<960x128xf32>
    %65 = arith.addf %63, %64 : vector<960x128xf32>
    %c0_27 = arith.constant 0 : index
    %c0_28 = arith.constant 0 : index
    %66 = vector.load %arg6[%c0_27, %c0_28] : memref<960x128xf32, #tpu.memory_space<vmem>>, vector<960x128xf32>
    tpu.vector_store %arg6[%c0_27, %c0_28], %65 {strides = array<i32>} : memref<960x128xf32, #tpu.memory_space<vmem>>, vector<960x128xf32>,
    return
  }
  func.func @transform_0(%arg0: i32) -> (i32, i32) {
    %c0_i32 = arith.constant 0 : i32
    %c0_i32_0 = arith.constant 0 : i32
    %c0_i32_1 = arith.constant 0 : i32
    return %c0_i32, %c0_i32_0 : i32, i32
  }
  func.func @transform_1(%arg0: i32) -> (i32, i32) {
    %c0_i32 = arith.constant 0 : i32
    %c0_i32_0 = arith.constant 0 : i32
    %c0_i32_1 = arith.constant 0 : i32
    return %c0_i32, %c0_i32_0 : i32, i32
  }
  func.func @transform_2(%arg0: i32) -> (i32, i32) {
    %c0_i32 = arith.constant 0 : i32
    %c0_i32_0 = arith.constant 0 : i32
    %c0_i32_1 = arith.constant 0 : i32
    return %c0_i32, %c0_i32_0 : i32, i32
  }
  func.func @transform_3(%arg0: i32) -> (i32, i32) {
    %c0_i32 = arith.constant 0 : i32
    %c0_i32_0 = arith.constant 0 : i32
    return %arg0, %c0_i32 : i32, i32
  }
  func.func @transform_4(%arg0: i32) -> (i32, i32) {
    %c0_i32 = arith.constant 0 : i32
    %c0_i32_0 = arith.constant 0 : i32
    return %arg0, %c0_i32 : i32, i32
  }
  func.func @transform_5(%arg0: i32) -> (i32, i32) {
    %c0_i32 = arith.constant 0 : i32
    %c0_i32_0 = arith.constant 0 : i32
    return %arg0, %c0_i32 : i32, i32
  }
}

</mosaic_0001>

<bundles_post_ra>
// kernel: tpu_custom_call.1
= control target key start
LH: loop header
LB: loop body
LE: loop exit
PB: predicated region body
PF: predicated region fallthrough
CT: control target
= control target key end

     0   :  { %v7593_v3 = vmov 0.0   ;;  %s13678_s0 = inlined_call_operand.vmem [shape: f32[576,128], index: 0, kind: input, shape index: {}]   ;;  %s13679_s1 = inlined_call_operand.vmem [shape: f32[160,576], index: 1, kind: input, shape index: {}]   ;;  %s13680_s2 = inlined_call_operand.vmem [shape: f32[160,2], index: 2, kind: input, shape index: {}]   ;;  %s13681_s3 = inlined_call_operand.vmem [shape: f32[960,160], index: 3, kind: input, shape index: {}]   ;;  %s13682_s4 = inlined_call_operand.vmem [shape: f32[960,2], index: 4, kind: input, shape index: {}]   ;;  %s13683_s5 = inlined_call_operand.hbm [shape: f32[960,128], index: 5, kind: output, shape index: {}]  }
   0x1   :  { %v36_v0 = vld [vmem:[%s13678_s0 + $0x78] sm:$0xff]  ;;  %v35_v2 = vld [vmem:[%s13678_s0 + $0x70] sm:$0xff]  ;;  %398 = vmatprep.subr.mxu0 %v7593_v3  ;;  %563 = vmatprep.subr.mxu1 %v7593_v3  ;;  %v34_v8 = vld [vmem:[%s13678_s0 + $0x68] sm:$0xff] }
   0x2   :  { %v68_v1 = vld [vmem:[%s13678_s0 + $0x178] sm:$0xff]  ;;  %v108_v4 = vmax.f32 %v36_v0, 0.0  ;;  %v107_v6 = vmax.f32 %v35_v2, 0.0  ;;  %v67_v7 = vld [vmem:[%s13678_s0 + $0x170] sm:$0xff]  ;;  %v66_v9 = vld [vmem:[%s13678_s0 + $0x168] sm:$0xff]  ;;  %v106_v11 = vmax.f32 %v34_v8, 0.0 }
   0x3   :  { %v140_v5 = vmax.f32 %v68_v1, 0.0  ;;  %v139_v10 = vmax.f32 %v67_v7, 0.0  ;;  %v138_v12 = vmax.f32 %v66_v9, 0.0  ;;  %v33_v13 = vld [vmem:[%s13678_s0 + $0x60] sm:$0xff]  ;;  %v32_v15 = vld [vmem:[%s13678_s0 + $0x58] sm:$0xff]  ;;  %v31_v23 = vld [vmem:[%s13678_s0 + $0x50] sm:$0xff] }
   0x4   :  { %v65_v14 = vld [vmem:[%s13678_s0 + $0x160] sm:$0xff]  ;;  %v180_v16 = vmin.f32 %v108_v4, 6.0  ;;  %v179_v18 = vmin.f32 %v107_v6, 6.0  ;;  %v105_v19 = vmax.f32 %v33_v13, 0.0  ;;  %v64_v20 = vld [vmem:[%s13678_s0 + $0x158] sm:$0xff]  ;;  %v63_v24 = vld [vmem:[%s13678_s0 + $0x150] sm:$0xff] }
   0x5   :  { %v212_v17 = vmin.f32 %v140_v5, 6.0  ;;  %v211_v21 = vmin.f32 %v139_v10, 6.0  ;;  %v137_v22 = vmax.f32 %v65_v14, 0.0  ;;  %v178_v25 = vmin.f32 %v106_v11, 6.0  ;;  %v30_v29 = vld [vmem:[%s13678_s0 + $0x48] sm:$0xff]  ;;  %v29_v35 = vld [vmem:[%s13678_s0 + $0x40] sm:$0xff] }
   0x6   :  { %399 = vmatpush1.msra.mxu0 %v180_v16  ;;  %v210_v26 = vmin.f32 %v138_v12, 6.0  ;;  %v104_v27 = vmax.f32 %v32_v15, 0.0  ;;  %v136_v28 = vmax.f32 %v64_v20, 0.0  ;;  %v62_v30 = vld [vmem:[%s13678_s0 + $0x148] sm:$0xff]  ;;  %v177_v31 = vmin.f32 %v105_v19, 6.0  ;;  %v61_v36 = vld [vmem:[%s13678_s0 + $0x140] sm:$0xff] }
   0x7   :  { %564 = vmatpush1.msra.mxu1 %v212_v17  ;;  %400 = vmatprep.subr.mxu0 %v7593_v3  ;;  %v209_v32 = vmin.f32 %v137_v22, 6.0  ;;  %v103_v33 = vmax.f32 %v31_v23, 0.0  ;;  %v135_v34 = vmax.f32 %v63_v24, 0.0  ;;  %v102_v39 = vmax.f32 %v30_v29, 0.0  ;;  %v28_v41 = vld [vmem:[%s13678_s0 + $0x38] sm:$0xff]  ;;  %v27_v47 = vld [vmem:[%s13678_s0 + $0x30] sm:$0xff] }
   0x8   :  { %565 = vmatprep.subr.mxu1 %v7593_v3  ;;  %401 = vmatpush1.msra.mxu0 %v179_v18  ;;  %v176_v37 = vmin.f32 %v104_v27, 6.0  ;;  %v208_v38 = vmin.f32 %v136_v28, 6.0  ;;  %v134_v40 = vmax.f32 %v62_v30, 0.0  ;;  %v60_v42 = vld [vmem:[%s13678_s0 + $0x138] sm:$0xff]  ;;  %v101_v45 = vmax.f32 %v29_v35, 0.0  ;;  %v59_v48 = vld [vmem:[%s13678_s0 + $0x130] sm:$0xff] }
   0x9   :  { %566 = vmatpush1.msra.mxu1 %v211_v21  ;;  %402 = vmatprep.subr.mxu0 %v7593_v3  ;;  %v175_v43 = vmin.f32 %v103_v33, 6.0  ;;  %v207_v44 = vmin.f32 %v135_v34, 6.0  ;;  %v133_v46 = vmax.f32 %v61_v36, 0.0  ;;  %v174_v49 = vmin.f32 %v102_v39, 6.0  ;;  %v26_v53 = vld [vmem:[%s13678_s0 + $0x28] sm:$0xff]  ;;  %v25_v59 = vld [vmem:[%s13678_s0 + $0x20] sm:$0xff] }
   0xa   :  { %567 = vmatprep.subr.mxu1 %v7593_v3  ;;  %403 = vmatpush1.msra.mxu0 %v178_v25  ;;  %v206_v50 = vmin.f32 %v134_v40, 6.0  ;;  %v100_v51 = vmax.f32 %v28_v41, 0.0  ;;  %v132_v52 = vmax.f32 %v60_v42, 0.0  ;;  %v58_v54 = vld [vmem:[%s13678_s0 + $0x128] sm:$0xff]  ;;  %v173_v55 = vmin.f32 %v101_v45, 6.0  ;;  %v57_v60 = vld [vmem:[%s13678_s0 + $0x120] sm:$0xff] }
   0xb   :  { %568 = vmatpush1.msra.mxu1 %v210_v26  ;;  %404 = vmatprep.subr.mxu0 %v7593_v3  ;;  %v205_v56 = vmin.f32 %v133_v46, 6.0  ;;  %v99_v57 = vmax.f32 %v27_v47, 0.0  ;;  %v131_v58 = vmax.f32 %v59_v48, 0.0  ;;  %v98_v63 = vmax.f32 %v26_v53, 0.0  ;;  %v24_v1 = vld [vmem:[%s13678_s0 + $0x18] sm:$0xff]  ;;  %v23_v8 = vld [vmem:[%s13678_s0 + $0x10] sm:$0xff] }
   0xc   :  { %569 = vmatprep.subr.mxu1 %v7593_v3  ;;  %405 = vmatpush1.msra.mxu0 %v177_v31  ;;  %v172_v61 = vmin.f32 %v100_v51, 6.0  ;;  %v204_v62 = vmin.f32 %v132_v52, 6.0  ;;  %v130_v0 = vmax.f32 %v58_v54, 0.0  ;;  %v56_v2 = vld [vmem:[%s13678_s0 + $0x118] sm:$0xff]  ;;  %v97_v6 = vmax.f32 %v25_v59, 0.0  ;;  %v55_v9 = vld [vmem:[%s13678_s0 + $0x110] sm:$0xff] }
   0xd   :  { %570 = vmatpush1.msra.mxu1 %v209_v32  ;;  %406 = vmatprep.subr.mxu0 %v7593_v3  ;;  %v171_v4 = vmin.f32 %v99_v57, 6.0  ;;  %v203_v5 = vmin.f32 %v131_v58, 6.0  ;;  %v129_v7 = vmax.f32 %v57_v60, 0.0  ;;  %v170_v10 = vmin.f32 %v98_v63, 6.0  ;;  %v22_v14 = vld [vmem:[%s13678_s0 + $0x8] sm:$0xff]  ;;  %v21_v20 = vld [vmem:[%s13678_s0] sm:$0xff] }
   0xe   :  { %571 = vmatprep.subr.mxu1 %v7593_v3  ;;  %407 = vmatpush1.msra.mxu0 %v176_v37  ;;  %v202_v11 = vmin.f32 %v130_v0, 6.0  ;;  %v96_v12 = vmax.f32 %v24_v1, 0.0  ;;  %v128_v13 = vmax.f32 %v56_v2, 0.0  ;;  %v54_v15 = vld [vmem:[%s13678_s0 + $0x108] sm:$0xff]  ;;  %v169_v16 = vmin.f32 %v97_v6, 6.0  ;;  %v53_v21 = vld [vmem:[%s13678_s0 + $0x100] sm:$0xff] }
   0xf   :  { %572 = vmatpush1.msra.mxu1 %v208_v38  ;;  %408 = vmatprep.subr.mxu0 %v7593_v3  ;;  %v201_v17 = vmin.f32 %v129_v7, 6.0  ;;  %v95_v18 = vmax.f32 %v23_v8, 0.0  ;;  %v127_v19 = vmax.f32 %v55_v9, 0.0  ;;  %v94_v24 = vmax.f32 %v22_v14, 0.0  ;;  %v52_v26 = vld [vmem:[%s13678_s0 + $0xf8] sm:$0xff]  ;;  %v51_v32 = vld [vmem:[%s13678_s0 + $0xf0] sm:$0xff] }
  0x10   :  { %573 = vmatprep.subr.mxu1 %v7593_v3  ;;  %409 = vmatpush1.msra.mxu0 %v175_v43  ;;  %v168_v22 = vmin.f32 %v96_v12, 6.0  ;;  %v200_v23 = vmin.f32 %v128_v13, 6.0  ;;  %v126_v25 = vmax.f32 %v54_v15, 0.0  ;;  %v84_v27 = vld [vmem:[%s13678_s0 + $0x1f8] sm:$0xff]  ;;  %v93_v30 = vmax.f32 %v21_v20, 0.0  ;;  %v83_v33 = vld [vmem:[%s13678_s0 + $0x1f0] sm:$0xff] }
  0x11   :  { %574 = vmatpush1.msra.mxu1 %v207_v44  ;;  %410 = vmatprep.subr.mxu0 %v7593_v3  ;;  %v167_v28 = vmin.f32 %v95_v18, 6.0  ;;  %v199_v29 = vmin.f32 %v127_v19, 6.0  ;;  %v125_v31 = vmax.f32 %v53_v21, 0.0  ;;  %v166_v34 = vmin.f32 %v94_v24, 6.0  ;;  %v50_v38 = vld [vmem:[%s13678_s0 + $0xe8] sm:$0xff]  ;;  %v49_v44 = vld [vmem:[%s13678_s0 + $0xe0] sm:$0xff] }
  0x12   :  { %575 = vmatprep.subr.mxu1 %v7593_v3  ;;  %411 = vmatpush1.msra.mxu0 %v174_v49  ;;  %v198_v35 = vmin.f32 %v126_v25, 6.0  ;;  %v124_v36 = vmax.f32 %v52_v26, 0.0  ;;  %v156_v37 = vmax.f32 %v84_v27, 0.0  ;;  %v82_v39 = vld [vmem:[%s13678_s0 + $0x1e8] sm:$0xff]  ;;  %v165_v40 = vmin.f32 %v93_v30, 6.0  ;;  %v81_v45 = vld [vmem:[%s13678_s0 + $0x1e0] sm:$0xff] }
  0x13   :  { %576 = vmatpush1.msra.mxu1 %v206_v50  ;;  %412 = vmatprep.subr.mxu0 %v7593_v3  ;;  %v197_v41 = vmin.f32 %v125_v31, 6.0  ;;  %v123_v42 = vmax.f32 %v51_v32, 0.0  ;;  %v155_v43 = vmax.f32 %v83_v33, 0.0  ;;  %v122_v48 = vmax.f32 %v50_v38, 0.0  ;;  %v48_v50 = vld [vmem:[%s13678_s0 + $0xd8] sm:$0xff]  ;;  %v79_v57 = vld [vmem:[%s13678_s0 + $0x1d0] sm:$0xff] }
  0x14   :  { %577 = vmatprep.subr.mxu1 %v7593_v3  ;;  %413 = vmatpush1.msra.mxu0 %v173_v55  ;;  %v196_v46 = vmin.f32 %v124_v36, 6.0  ;;  %v228_v47 = vmin.f32 %v156_v37, 6.0  ;;  %v154_v49 = vmax.f32 %v82_v39, 0.0  ;;  %v80_v51 = vld [vmem:[%s13678_s0 + $0x1d8] sm:$0xff]  ;;  %v121_v54 = vmax.f32 %v49_v44, 0.0  ;;  %v78_v63 = vld [vmem:[%s13678_s0 + $0x1c8] sm:$0xff] }
  0x15   :  { %578 = vmatpush1.msra.mxu1 %v205_v56  ;;  %414 = vmatprep.subr.mxu0 %v7593_v3  ;;  %v195_v52 = vmin.f32 %v123_v42, 6.0  ;;  %v227_v53 = vmin.f32 %v155_v43, 6.0  ;;  %v153_v55 = vmax.f32 %v81_v45, 0.0  ;;  %v47_v56 = vld [vmem:[%s13678_s0 + $0xd0] sm:$0xff]  ;;  %v194_v58 = vmin.f32 %v122_v48, 6.0  ;;  %v77_v6 = vld [vmem:[%s13678_s0 + $0x1c0] sm:$0xff] }
  0x16   :  { %579 = vmatprep.subr.mxu1 %v7593_v3  ;;  %415 = vmatpush1.msra.mxu0 %v172_v61  ;;  %v226_v59 = vmin.f32 %v154_v49, 6.0  ;;  %v120_v60 = vmax.f32 %v48_v50, 0.0  ;;  %v152_v61 = vmax.f32 %v80_v51, 0.0  ;;  %v193_v0 = vmin.f32 %v121_v54, 6.0  ;;  %v76_v12 = vld [vmem:[%s13678_s0 + $0x1b8] sm:$0xff]  ;;  %v75_v18 = vld [vmem:[%s13678_s0 + $0x1b0] sm:$0xff] }
  0x17   :  { %580 = vmatpush1.msra.mxu1 %v204_v62  ;;  %416 = vmatprep.subr.mxu0 %v7593_v3  ;;  %v46_v62 = vld [vmem:[%s13678_s0 + $0xc8] sm:$0xff]  ;;  %v225_v1 = vmin.f32 %v153_v55, 6.0  ;;  %v119_v2 = vmax.f32 %v47_v56, 0.0  ;;  %v73_v30 = vld [vmem:[%s13678_s0 + $0x1a0] sm:$0xff]  ;;  %v72_v36 = vld [vmem:[%s13678_s0 + $0x198] sm:$0xff] }
  0x18   :  { %581 = vmatprep.subr.mxu1 %v7593_v3  ;;  %417 = vmatpush1.msra.mxu0 %v171_v4  ;;  %v151_v4 = vmax.f32 %v79_v57, 0.0  ;;  %v192_v7 = vmin.f32 %v120_v60, 6.0  ;;  %v224_v8 = vmin.f32 %v152_v61, 6.0  ;;  %v118_v9 = vmax.f32 %v46_v62, 0.0  ;;  %v74_v24 = vld [vmem:[%s13678_s0 + $0x1a8] sm:$0xff]  ;;  %v71_v42 = vld [vmem:[%s13678_s0 + $0x190] sm:$0xff] }
  0x19   :  { %582 = vmatpush1.msra.mxu1 %v203_v5  ;;  %418 = vmatprep.subr.mxu0 %v7593_v3  ;;  %v45_v5 = vld [vmem:[%s13678_s0 + $0xc0] sm:$0xff]  ;;  %v191_v13 = vmin.f32 %v119_v2, 6.0  ;;  %v70_v48 = vld [vmem:[%s13678_s0 + $0x188] sm:$0xff] }
  0x1a   :  { %583 = vmatprep.subr.mxu1 %v7593_v3  ;;  %419 = vmatpush1.msra.mxu0 %v170_v10  ;;  %v150_v10 = vmax.f32 %v78_v63, 0.0  ;;  %v223_v14 = vmin.f32 %v151_v4, 6.0  ;;  %v117_v15 = vmax.f32 %v45_v5, 0.0  ;;  %v190_v19 = vmin.f32 %v118_v9, 6.0  ;;  %v92_v63 = vld [vmem:[%s13678_s0 + $0x238] sm:$0xff]  ;;  %v238_v5 = vld [vmem:[%s13679_s1 + $0x8] sm:$0xff] }
  0x1b   :  { %584 = vmatpush1.msra.mxu1 %v202_v11  ;;  %420 = vmatprep.subr.mxu0 %v7593_v3  ;;  %v44_v11 = vld [vmem:[%s13678_s0 + $0xb8] sm:$0xff]  ;;  %v142_v57 = vmax.f32 %v70_v48, 0.0  ;;  %v164_v4 = vmax.f32 %v92_v63, 0.0  ;;  %v237_v9 = vld [vmem:[%s13679_s1] sm:$0xff] }
  0x1c   :  { %585 = vmatprep.subr.mxu1 %v7593_v3  ;;  %421 = vmatpush1.msra.mxu0 %v169_v16  ;;  %v149_v16 = vmax.f32 %v77_v6, 0.0  ;;  %v222_v20 = vmin.f32 %v150_v10, 6.0  ;;  %v116_v21 = vmax.f32 %v44_v11, 0.0  ;;  %v189_v25 = vmin.f32 %v117_v15, 6.0  ;;  %v239_v10 = vld [vmem:[%s13679_s1 + $0x10] sm:$0xff] }
  0x1d   :  { %586 = vmatpush1.msra.mxu1 %v201_v17  ;;  %422 = vmatprep.subr.mxu0 %v7593_v3  ;;  %v43_v17 = vld [vmem:[%s13678_s0 + $0xb0] sm:$0xff] }
  0x1e   :  { %587 = vmatprep.subr.mxu1 %v7593_v3  ;;  %423 = vmatpush1.msra.mxu0 %v168_v22  ;;  %v148_v22 = vmax.f32 %v76_v12, 0.0  ;;  %v221_v26 = vmin.f32 %v149_v16, 6.0  ;;  %v115_v27 = vmax.f32 %v43_v17, 0.0  ;;  %v188_v31 = vmin.f32 %v116_v21, 6.0  ;;  %v243_v11 = vld [vmem:[%s13679_s1 + $0x30] sm:$0xff]  ;;  %v245_v12 = vld [vmem:[%s13679_s1 + $0x40] sm:$0xff] }
  0x1f   :  { %588 = vmatpush1.msra.mxu1 %v200_v23  ;;  %424 = vmatprep.subr.mxu0 %v7593_v3  ;;  %v42_v23 = vld [vmem:[%s13678_s0 + $0xa8] sm:$0xff] }
  0x20   :  { %589 = vmatprep.subr.mxu1 %v7593_v3  ;;  %425 = vmatpush1.msra.mxu0 %v167_v28  ;;  %v147_v28 = vmax.f32 %v75_v18, 0.0  ;;  %v220_v32 = vmin.f32 %v148_v22, 6.0  ;;  %v114_v33 = vmax.f32 %v42_v23, 0.0  ;;  %v187_v37 = vmin.f32 %v115_v27, 6.0 }
  0x21   :  { %590 = vmatpush1.msra.mxu1 %v199_v29  ;;  %426 = vmatprep.subr.mxu0 %v7593_v3  ;;  %v41_v29 = vld [vmem:[%s13678_s0 + $0xa0] sm:$0xff] }
  0x22   :  { %591 = vmatprep.subr.mxu1 %v7593_v3  ;;  %427 = vmatpush1.msra.mxu0 %v166_v34  ;;  %v146_v34 = vmax.f32 %v74_v24, 0.0  ;;  %v219_v38 = vmin.f32 %v147_v28, 6.0  ;;  %v113_v39 = vmax.f32 %v41_v29, 0.0  ;;  %v186_v43 = vmin.f32 %v114_v33, 6.0 }
  0x23   :  { %592 = vmatpush1.msra.mxu1 %v198_v35  ;;  %428 = vmatprep.subr.mxu0 %v7593_v3  ;;  %v40_v35 = vld [vmem:[%s13678_s0 + $0x98] sm:$0xff] }
  0x24   :  { %593 = vmatprep.subr.mxu1 %v7593_v3  ;;  %429 = vmatpush1.msra.mxu0 %v165_v40  ;;  %v145_v40 = vmax.f32 %v73_v30, 0.0  ;;  %v218_v44 = vmin.f32 %v146_v34, 6.0  ;;  %v112_v45 = vmax.f32 %v40_v35, 0.0  ;;  %v185_v49 = vmin.f32 %v113_v39, 6.0 }
  0x25   :  { %594 = vmatpush1.msra.mxu1 %v197_v41  ;;  %430 = vmatprep.subr.mxu0 %v7593_v3  ;;  %v39_v41 = vld [vmem:[%s13678_s0 + $0x90] sm:$0xff] }
  0x26   :  { %595 = vmatprep.subr.mxu1 %v7593_v3  ;;  %431 = vmatpush2.msra.mxu0 %v196_v46  ;;  %v144_v46 = vmax.f32 %v72_v36, 0.0  ;;  %v217_v50 = vmin.f32 %v145_v40, 6.0  ;;  %v111_v51 = vmax.f32 %v39_v41, 0.0  ;;  %v184_v54 = vmin.f32 %v112_v45, 6.0 }
  0x27   :  { %596 = vmatpush2.msra.mxu1 %v228_v47  ;;  %432 = vmatprep.subr.mxu0 %v7593_v3  ;;  %v38_v47 = vld [vmem:[%s13678_s0 + $0x88] sm:$0xff] }
  0x28   :  { %597 = vmatprep.subr.mxu1 %v7593_v3  ;;  %433 = vmatpush2.msra.mxu0 %v195_v52  ;;  %v143_v52 = vmax.f32 %v71_v42, 0.0  ;;  %v216_v55 = vmin.f32 %v144_v46, 6.0  ;;  %v110_v56 = vmax.f32 %v38_v47, 0.0 }
  0x29   :  { %598 = vmatpush2.msra.mxu1 %v227_v53  ;;  %434 = vmatprep.subr.mxu0 %v7593_v3  ;;  %v37_v53 = vld [vmem:[%s13678_s0 + $0x80] sm:$0xff] }
  0x2a   :  { %599 = vmatprep.subr.mxu1 %v7593_v3  ;;  %435 = vmatpush2.msra.mxu0 %v194_v58  ;;  %v69_v58 = vld [vmem:[%s13678_s0 + $0x180] sm:$0xff]  ;;  %v215_v60 = vmin.f32 %v143_v52, 6.0  ;;  %v109_v61 = vmax.f32 %v37_v53, 0.0 }
  0x2b   :  { %600 = vmatpush2.msra.mxu1 %v226_v59  ;;  %436 = vmatprep.subr.mxu0 %v7593_v3  ;;  %v183_v59 = vmin.f32 %v111_v51, 6.0  ;;  %v141_v62 = vmax.f32 %v69_v58, 0.0 }
  0x2c   :  { %601 = vmatprep.subr.mxu1 %v7593_v3  ;;  %437 = vmatpush2.msra.mxu0 %v193_v0  ;;  %v182_v0 = vmin.f32 %v110_v56, 6.0  ;;  %v181_v2 = vmin.f32 %v109_v61, 6.0 }
  0x2d   :  { %602 = vmatpush2.msra.mxu1 %v225_v1  ;;  %438 = vmatprep.subr.mxu0 %v7593_v3  ;;  %v214_v1 = vmin.f32 %v142_v57, 6.0  ;;  %v213_v6 = vmin.f32 %v141_v62, 6.0 }
  0x2e   :  { %603 = vmatprep.subr.mxu1 %v7593_v3  ;;  %439 = vmatpush2.msra.mxu0 %v192_v7  ;;  %v91_v7 = vld [vmem:[%s13678_s0 + $0x230] sm:$0xff] }
  0x2f   :  { %604 = vmatpush2.msra.mxu1 %v224_v8  ;;  %440 = vmatprep.subr.mxu0 %v7593_v3  ;;  %v240_v8 = vld [vmem:[%s13679_s1 + $0x18] sm:$0xff] }
  0x30   :  { %605 = vmatprep.subr.mxu1 %v7593_v3  ;;  %441 = vmatpush2.msra.mxu0 %v191_v13  ;;  %v236_v13 = vmin.f32 %v164_v4, 6.0 }
  0x31   :  { %606 = vmatpush2.msra.mxu1 %v223_v14  ;;  %442 = vmatprep.subr.mxu0 %v7593_v3  ;;  %v163_v14 = vmax.f32 %v91_v7, 0.0 }
  0x32   :  { %607 = vmatprep.subr.mxu1 %v7593_v3  ;;  %443 = vmatpush2.msra.mxu0 %v190_v19 }
  0x33   :  { %608 = vmatpush2.msra.mxu1 %v222_v20  ;;  %444 = vmatprep.subr.mxu0 %v7593_v3 }
  0x34   :  { %609 = vmatprep.subr.mxu1 %v7593_v3  ;;  %445 = vmatpush2.msra.mxu0 %v189_v25 }
  0x35   :  { %610 = vmatpush2.msra.mxu1 %v221_v26  ;;  %446 = vmatprep.subr.mxu0 %v7593_v3 }
  0x36   :  { %611 = vmatprep.subr.mxu1 %v7593_v3  ;;  %447 = vmatpush2.msra.mxu0 %v188_v31 }
  0x37   :  { %612 = vmatpush2.msra.mxu1 %v220_v32  ;;  %448 = vmatprep.subr.mxu0 %v7593_v3 }
  0x38   :  { %613 = vmatprep.subr.mxu1 %v7593_v3  ;;  %449 = vmatpush2.msra.mxu0 %v187_v37 }
  0x39   :  { %614 = vmatpush2.msra.mxu1 %v219_v38  ;;  %450 = vmatprep.subr.mxu0 %v7593_v3 }
  0x3a   :  { %615 = vmatprep.subr.mxu1 %v7593_v3  ;;  %451 = vmatpush2.msra.mxu0 %v186_v43 }
  0x3b   :  { %616 = vmatpush2.msra.mxu1 %v218_v44  ;;  %452 = vmatprep.subr.mxu0 %v7593_v3 }
  0x3c   :  { %617 = vmatprep.subr.mxu1 %v7593_v3  ;;  %453 = vmatpush2.msra.mxu0 %v185_v49 }
  0x3d   :  { %618 = vmatpush2.msra.mxu1 %v217_v50  ;;  %454 = vmatprep.subr.mxu0 %v7593_v3 }
  0x3e   :  { %619 = vmatprep.subr.mxu1 %v7593_v3  ;;  %455 = vmatpush2.msra.mxu0 %v184_v54 }
  0x3f   :  { %620 = vmatpush2.msra.mxu1 %v216_v55  ;;  %456 = vmatprep.subr.mxu0 %v7593_v3 }
  0x40   :  { %621 = vmatprep.subr.mxu1 %v7593_v3  ;;  %457 = vmatpush2.msra.mxu0 %v183_v59 }
  0x41   :  { %622 = vmatpush2.msra.mxu1 %v215_v60  ;;  %458 = vmatprep.subr.mxu0 %v7593_v3 }
  0x42   :  { %623 = vmatprep.subr.mxu1 %v7593_v3  ;;  %459 = vmatpush2.msra.mxu0 %v182_v0 }
  0x43   :  { %624 = vmatpush2.msra.mxu1 %v214_v1  ;;  %460 = vmatprep.subr.mxu0 %v7593_v3 }
  0x44   :  { %625 = vmatprep.subr.mxu1 %v7593_v3  ;;  %461 = vmatpush2.msra.mxu0 %v181_v2 }
  0x45   :  { %462 = vmatprep.mubr.f32.mxu0 %v238_v5 }
  0x46   :  { %10 = vsyncpa [#allocation3], 0  ;;  %626 = vmatpush2.msra.mxu1 %v213_v6  ;;  %627 = vmatprep.mubr.f32.mxu1 %v240_v8  ;;  %v90_v15 = vld [vmem:[%s13678_s0 + $0x228] sm:$0xff]  ;;  %v244_v17 = vld [vmem:[%s13679_s1 + $0x38] sm:$0xff]  ;;  %v235_v20 = vmin.f32 %v163_v14, 6.0  ;;  %vm337_vm0 = vcmask 523264  }
  0x47   :  { %463 = vmatmul.mubr.f32.vlgmr.msra.gmra.mxu0 %v237_v9  ;;  %628 = vmatmul.mubr.f32.vlgmr.msra.gmra.mxu1 %v239_v10  ;;  %v242_v16 = vld [vmem:[%s13679_s1 + $0x28] sm:$0xff]  ;;  %v248_v18 = vld [vmem:[%s13679_s1 + $0x58] sm:$0xff]  ;;  %v162_v21 = vmax.f32 %v90_v15, 0.0  ;;  %v89_v22 = vld [vmem:[%s13678_s0 + $0x220] sm:$0xff]  ;;  %s7595_s9 = smov 1   ;;  %vm1798_vm1 = vcmask 261120  }
  0x48   :  { %467 = vmatprep.mubr.f32.mxu0 %v243_v11  ;;  %632 = vmatprep.mubr.f32.mxu1 %v245_v12  ;;  %v250_v19 = vld [vmem:[%s13679_s1 + $0x68] sm:$0xff]  ;;  %v247_v23 = vld [vmem:[%s13679_s1 + $0x50] sm:$0xff]  ;;  %v249_v24 = vld [vmem:[%s13679_s1 + $0x60] sm:$0xff]  ;;  %v161_v28 = vmax.f32 %v89_v22, 0.0 }
  0x49   :  { %6969 = vmatprep.subr.mxu0 %v236_v13  ;;  %7015 = vmatprep.subr.mxu1 %v7593_v3  ;;  %v253_v25 = vld [vmem:[%s13679_s1 + $0x80] sm:$0xff]  ;;  %v255_v26 = vld [vmem:[%s13679_s1 + $0x90] sm:$0xff]  ;;  %v234_v27 = vmin.f32 %v162_v21, 6.0  ;;  %v88_v29 = vld [vmem:[%s13678_s0 + $0x218] sm:$0xff] }
  0x4a   :  { %6970 = vmatpush3.msra.mxu0 %v236_v13  ;;  %v252_v30 = vld [vmem:[%s13679_s1 + $0x78] sm:$0xff]  ;;  %v254_v31 = vld [vmem:[%s13679_s1 + $0x88] sm:$0xff]  ;;  %v233_v34 = vmin.f32 %v161_v28, 6.0  ;;  %v160_v35 = vmax.f32 %v88_v29, 0.0  ;;  %v87_v36 = vld [vmem:[%s13678_s0 + $0x210] sm:$0xff] }
  0x4b   :  { %468 = vmatmul.mubr.f32.gmra.mxu0 %v242_v16  ;;  %633 = vmatmul.mubr.f32.gmra.mxu1 %v244_v17  ;;  %v258_v32 = vld [vmem:[%s13679_s1 + $0xa8] sm:$0xff]  ;;  %v260_v33 = vld [vmem:[%s13679_s1 + $0xb8] sm:$0xff]  ;;  %v257_v37 = vld [vmem:[%s13679_s1 + $0xa0] sm:$0xff]  ;;  %v159_v42 = vmax.f32 %v87_v36, 0.0 }
  0x4c   :  { %472 = vmatprep.mubr.f32.mxu0 %v248_v18  ;;  %637 = vmatprep.mubr.f32.mxu1 %v250_v19  ;;  %v259_v38 = vld [vmem:[%s13679_s1 + $0xb0] sm:$0xff]  ;;  %v265_v40 = vld [vmem:[%s13679_s1 + $0xe0] sm:$0xff]  ;;  %v232_v41 = vmin.f32 %v160_v35, 6.0  ;;  %v86_v43 = vld [vmem:[%s13678_s0 + $0x208] sm:$0xff] }
  0x4d   :  { %6971 = vmatprep.subr.mxu0 %v235_v20  ;;  %v263_v39 = vld [vmem:[%s13679_s1 + $0xd0] sm:$0xff]  ;;  %v262_v44 = vld [vmem:[%s13679_s1 + $0xc8] sm:$0xff]  ;;  %v264_v45 = vld [vmem:[%s13679_s1 + $0xd8] sm:$0xff]  ;;  %v231_v48 = vmin.f32 %v159_v42, 6.0  ;;  %v158_v49 = vmax.f32 %v86_v43, 0.0 }
  0x4e   :  { %6972 = vmatpush3.msra.mxu0 %v235_v20  ;;  %v268_v46 = vld [vmem:[%s13679_s1 + $0xf8] sm:$0xff]  ;;  %v270_v47 = vld [vmem:[%s13679_s1 + $0x108] sm:$0xff]  ;;  %v85_v50 = vld [vmem:[%s13678_s0 + $0x200] sm:$0xff] }
  0x4f   :  { %473 = vmatmul.mubr.f32.gmra.mxu0 %v247_v23  ;;  %638 = vmatmul.mubr.f32.gmra.mxu1 %v249_v24  ;;  %v267_v51 = vld [vmem:[%s13679_s1 + $0xf0] sm:$0xff]  ;;  %v269_v52 = vld [vmem:[%s13679_s1 + $0x100] sm:$0xff]  ;;  %v230_v55 = vmin.f32 %v158_v49, 6.0  ;;  %v157_v56 = vmax.f32 %v85_v50, 0.0  ;;  %v272_v57 = vld [vmem:[%s13679_s1 + $0x118] sm:$0xff] }
  0x50   :  { %477 = vmatprep.mubr.f32.mxu0 %v253_v25  ;;  %642 = vmatprep.mubr.f32.mxu1 %v255_v26  ;;  %v273_v53 = vld [vmem:[%s13679_s1 + $0x120] sm:$0xff]  ;;  %v275_v54 = vld [vmem:[%s13679_s1 + $0x130] sm:$0xff]  ;;  %v274_v58 = vld [vmem:[%s13679_s1 + $0x128] sm:$0xff] }
  0x51   :  { %6973 = vmatprep.subr.mxu0 %v234_v27  ;;  %v278_v59 = vld [vmem:[%s13679_s1 + $0x148] sm:$0xff]  ;;  %v280_v60 = vld [vmem:[%s13679_s1 + $0x158] sm:$0xff]  ;;  %v229_v61 = vmin.f32 %v157_v56, 6.0  ;;  %v277_v62 = vld [vmem:[%s13679_s1 + $0x140] sm:$0xff] }
  0x52   :  { %6974 = vmatpush3.msra.mxu0 %v234_v27  ;;  %v279_v63 = vld [vmem:[%s13679_s1 + $0x150] sm:$0xff]  ;;  %v285_v1 = vld [vmem:[%s13679_s1 + $0x180] sm:$0xff]  ;;  %v282_v2 = vld [vmem:[%s13679_s1 + $0x168] sm:$0xff] }
  0x53   :  { %478 = vmatmul.mubr.f32.gmra.mxu0 %v252_v30  ;;  %643 = vmatmul.mubr.f32.gmra.mxu1 %v254_v31  ;;  %v283_v0 = vld [vmem:[%s13679_s1 + $0x170] sm:$0xff]  ;;  %v284_v4 = vld [vmem:[%s13679_s1 + $0x178] sm:$0xff]  ;;  %v290_v6 = vld [vmem:[%s13679_s1 + $0x1a8] sm:$0xff] }
  0x54   :  { %482 = vmatprep.mubr.f32.mxu0 %v258_v32  ;;  %647 = vmatprep.mubr.f32.mxu1 %v260_v33  ;;  %v288_v5 = vld [vmem:[%s13679_s1 + $0x198] sm:$0xff]  ;;  %v287_v7 = vld [vmem:[%s13679_s1 + $0x190] sm:$0xff]  ;;  %v289_v8 = vld [vmem:[%s13679_s1 + $0x1a0] sm:$0xff] }
  0x55   :  { %6975 = vmatprep.subr.mxu0 %v233_v34  ;;  %v293_v9 = vld [vmem:[%s13679_s1 + $0x1c0] sm:$0xff]  ;;  %v295_v10 = vld [vmem:[%s13679_s1 + $0x1d0] sm:$0xff]  ;;  %v292_v11 = vld [vmem:[%s13679_s1 + $0x1b8] sm:$0xff] }
  0x56   :  { %6976 = vmatpush3.msra.mxu0 %v233_v34  ;;  %v294_v12 = vld [vmem:[%s13679_s1 + $0x1c8] sm:$0xff]  ;;  %v300_v14 = vld [vmem:[%s13679_s1 + $0x1f8] sm:$0xff]  ;;  %v297_v15 = vld [vmem:[%s13679_s1 + $0x1e0] sm:$0xff] }
  0x57   :  { %483 = vmatmul.mubr.f32.gmra.mxu0 %v257_v37  ;;  %648 = vmatmul.mubr.f32.gmra.mxu1 %v259_v38  ;;  %v298_v13 = vld [vmem:[%s13679_s1 + $0x1e8] sm:$0xff]  ;;  %v299_v16 = vld [vmem:[%s13679_s1 + $0x1f0] sm:$0xff]  ;;  %v305_v18 = vld [vmem:[%s13679_s1 + $0x220] sm:$0xff] }
  0x58   :  { %487 = vmatprep.mubr.f32.mxu0 %v263_v39  ;;  %652 = vmatprep.mubr.f32.mxu1 %v265_v40  ;;  %v303_v17 = vld [vmem:[%s13679_s1 + $0x210] sm:$0xff]  ;;  %v302_v19 = vld [vmem:[%s13679_s1 + $0x208] sm:$0xff]  ;;  %v304_v20 = vld [vmem:[%s13679_s1 + $0x218] sm:$0xff] }
  0x59   :  { %6977 = vmatprep.subr.mxu0 %v232_v41  ;;  %v308_v21 = vld [vmem:[%s13679_s1 + $0x238] sm:$0xff]  ;;  %v310_v22 = vld [vmem:[%s13679_s1 + $0x248] sm:$0xff]  ;;  %v307_v23 = vld [vmem:[%s13679_s1 + $0x230] sm:$0xff] }
  0x5a   :  { %6978 = vmatpush3.msra.mxu0 %v232_v41  ;;  %v309_v24 = vld [vmem:[%s13679_s1 + $0x240] sm:$0xff]  ;;  %v315_v26 = vld [vmem:[%s13679_s1 + $0x270] sm:$0xff]  ;;  %v312_v27 = vld [vmem:[%s13679_s1 + $0x258] sm:$0xff] }
  0x5b   :  { %488 = vmatmul.mubr.f32.gmra.mxu0 %v262_v44  ;;  %653 = vmatmul.mubr.f32.gmra.mxu1 %v264_v45  ;;  %v313_v25 = vld [vmem:[%s13679_s1 + $0x260] sm:$0xff]  ;;  %v314_v28 = vld [vmem:[%s13679_s1 + $0x268] sm:$0xff]  ;;  %v320_v30 = vld [vmem:[%s13679_s1 + $0x298] sm:$0xff] }
  0x5c   :  { %492 = vmatprep.mubr.f32.mxu0 %v268_v46  ;;  %657 = vmatprep.mubr.f32.mxu1 %v270_v47  ;;  %v318_v29 = vld [vmem:[%s13679_s1 + $0x288] sm:$0xff]  ;;  %v317_v31 = vld [vmem:[%s13679_s1 + $0x280] sm:$0xff]  ;;  %v319_v32 = vld [vmem:[%s13679_s1 + $0x290] sm:$0xff] }
  0x5d   :  { %6979 = vmatprep.subr.mxu0 %v231_v48  ;;  %v323_v33 = vld [vmem:[%s13679_s1 + $0x2b0] sm:$0xff]  ;;  %v325_v34 = vld [vmem:[%s13679_s1 + $0x2c0] sm:$0xff]  ;;  %v322_v35 = vld [vmem:[%s13679_s1 + $0x2a8] sm:$0xff] }
  0x5e   :  { %6980 = vmatpush3.msra.mxu0 %v231_v48  ;;  %v324_v36 = vld [vmem:[%s13679_s1 + $0x2b8] sm:$0xff]  ;;  %v330_v38 = vld [vmem:[%s13679_s1 + $0x2e8] sm:$0xff]  ;;  %v327_v39 = vld [vmem:[%s13679_s1 + $0x2d0] sm:$0xff] }
  0x5f   :  { %493 = vmatmul.mubr.f32.gmra.mxu0 %v267_v51  ;;  %658 = vmatmul.mubr.f32.gmra.mxu1 %v269_v52  ;;  %v328_v37 = vld [vmem:[%s13679_s1 + $0x2d8] sm:$0xff]  ;;  %v329_v40 = vld [vmem:[%s13679_s1 + $0x2e0] sm:$0xff]  ;;  %v335_v42 = vld [vmem:[%s13679_s1 + $0x310] sm:$0xff] }
  0x60   :  { %497 = vmatprep.mubr.f32.mxu0 %v273_v53  ;;  %662 = vmatprep.mubr.f32.mxu1 %v275_v54  ;;  %v333_v41 = vld [vmem:[%s13679_s1 + $0x300] sm:$0xff]  ;;  %v332_v43 = vld [vmem:[%s13679_s1 + $0x2f8] sm:$0xff]  ;;  %v334_v44 = vld [vmem:[%s13679_s1 + $0x308] sm:$0xff] }
  0x61   :  { %6981 = vmatprep.subr.mxu0 %v230_v55  ;;  %v241_v45 = vld [vmem:[%s13679_s1 + $0x20] sm:$0xff]  ;;  %v246_v46 = vld [vmem:[%s13679_s1 + $0x48] sm:$0xff]  ;;  %v251_v47 = vld [vmem:[%s13679_s1 + $0x70] sm:$0xff] }
  0x62   :  { %6982 = vmatpush3.msra.mxu0 %v230_v55  ;;  %v256_v48 = vld [vmem:[%s13679_s1 + $0x98] sm:$0xff]  ;;  %v261_v49 = vld [vmem:[%s13679_s1 + $0xc0] sm:$0xff]  ;;  %v266_v50 = vld [vmem:[%s13679_s1 + $0xe8] sm:$0xff] }
  0x63   :  { %498 = vmatmul.mubr.f32.gmra.mxu0 %v272_v57  ;;  %663 = vmatmul.mubr.f32.gmra.mxu1 %v274_v58  ;;  %v271_v51 = vld [vmem:[%s13679_s1 + $0x110] sm:$0xff]  ;;  %v276_v52 = vld [vmem:[%s13679_s1 + $0x138] sm:$0xff]  ;;  %v281_v53 = vld [vmem:[%s13679_s1 + $0x160] sm:$0xff] }
  0x64   :  { %502 = vmatprep.mubr.f32.mxu0 %v278_v59  ;;  %667 = vmatprep.mubr.f32.mxu1 %v280_v60  ;;  %v286_v54 = vld [vmem:[%s13679_s1 + $0x188] sm:$0xff]  ;;  %v291_v55 = vld [vmem:[%s13679_s1 + $0x1b0] sm:$0xff]  ;;  %v296_v56 = vld [vmem:[%s13679_s1 + $0x1d8] sm:$0xff] }
  0x65   :  { %6983 = vmatprep.subr.mxu0 %v229_v61  ;;  %v301_v57 = vld [vmem:[%s13679_s1 + $0x200] sm:$0xff]  ;;  %v306_v58 = vld [vmem:[%s13679_s1 + $0x228] sm:$0xff]  ;;  %v311_v59 = vld [vmem:[%s13679_s1 + $0x250] sm:$0xff] }
  0x66   :  { %6984 = vmatpush3.msra.mxu0 %v229_v61  ;;  %v316_v60 = vld [vmem:[%s13679_s1 + $0x278] sm:$0xff]  ;;  %v321_v61 = vld [vmem:[%s13679_s1 + $0x2a0] sm:$0xff] }
  0x67   :  { %503 = vmatmul.mubr.f32.gmra.mxu0 %v277_v62  ;;  %668 = vmatmul.mubr.f32.gmra.mxu1 %v279_v63  ;;  %v326_v62 = vld [vmem:[%s13679_s1 + $0x2c8] sm:$0xff]  ;;  %v331_v63 = vld [vmem:[%s13679_s1 + $0x2f0] sm:$0xff] }
  0x68   :  { %507 = vmatprep.mubr.f32.mxu0 %v283_v0  ;;  %672 = vmatprep.mubr.f32.mxu1 %v285_v1  ;;  %v336_v0 = vld [vmem:[%s13679_s1 + $0x318] sm:$0xff] }
  0x69   :  { %2159 = vmatprep.subr.mxu0 %v7593_v3 }
  0x6b   :  { %508 = vmatmul.mubr.f32.gmra.mxu0 %v282_v2  ;;  %673 = vmatmul.mubr.f32.gmra.mxu1 %v284_v4 }
  0x6c   :  { %512 = vmatprep.mubr.f32.mxu0 %v288_v5  ;;  %677 = vmatprep.mubr.f32.mxu1 %v290_v6 }
  0x6f   :  { %513 = vmatmul.mubr.f32.gmra.mxu0 %v287_v7  ;;  %678 = vmatmul.mubr.f32.gmra.mxu1 %v289_v8 }
  0x70   :  { %517 = vmatprep.mubr.f32.mxu0 %v293_v9  ;;  %682 = vmatprep.mubr.f32.mxu1 %v295_v10 }
  0x73   :  { %518 = vmatmul.mubr.f32.gmra.mxu0 %v292_v11  ;;  %683 = vmatmul.mubr.f32.gmra.mxu1 %v294_v12 }
  0x74   :  { %522 = vmatprep.mubr.f32.mxu0 %v298_v13  ;;  %687 = vmatprep.mubr.f32.mxu1 %v300_v14 }
  0x77   :  { %523 = vmatmul.mubr.f32.gmra.mxu0 %v297_v15  ;;  %688 = vmatmul.mubr.f32.gmra.mxu1 %v299_v16 }
  0x78   :  { %527 = vmatprep.mubr.f32.mxu0 %v303_v17  ;;  %692 = vmatprep.mubr.f32.mxu1 %v305_v18 }
  0x7b   :  { %528 = vmatmul.mubr.f32.gmra.mxu0 %v302_v19  ;;  %693 = vmatmul.mubr.f32.gmra.mxu1 %v304_v20 }
  0x7c   :  { %532 = vmatprep.mubr.f32.mxu0 %v308_v21  ;;  %697 = vmatprep.mubr.f32.mxu1 %v310_v22 }
  0x7f   :  { %533 = vmatmul.mubr.f32.gmra.mxu0 %v307_v23  ;;  %698 = vmatmul.mubr.f32.gmra.mxu1 %v309_v24 }
  0x80   :  { %537 = vmatprep.mubr.f32.mxu0 %v313_v25  ;;  %702 = vmatprep.mubr.f32.mxu1 %v315_v26 }
  0x83   :  { %538 = vmatmul.mubr.f32.gmra.mxu0 %v312_v27  ;;  %703 = vmatmul.mubr.f32.gmra.mxu1 %v314_v28 }
  0x84   :  { %542 = vmatprep.mubr.f32.mxu0 %v318_v29  ;;  %707 = vmatprep.mubr.f32.mxu1 %v320_v30 }
  0x87   :  { %543 = vmatmul.mubr.f32.gmra.mxu0 %v317_v31  ;;  %708 = vmatmul.mubr.f32.gmra.mxu1 %v319_v32 }
  0x88   :  { %547 = vmatprep.mubr.f32.mxu0 %v323_v33  ;;  %712 = vmatprep.mubr.f32.mxu1 %v325_v34 }
  0x8b   :  { %548 = vmatmul.mubr.f32.gmra.mxu0 %v322_v35  ;;  %713 = vmatmul.mubr.f32.gmra.mxu1 %v324_v36 }
  0x8c   :  { %552 = vmatprep.mubr.f32.mxu0 %v328_v37  ;;  %717 = vmatprep.mubr.f32.mxu1 %v330_v38 }
  0x8f   :  { %553 = vmatmul.mubr.f32.gmra.mxu0 %v327_v39  ;;  %718 = vmatmul.mubr.f32.gmra.mxu1 %v329_v40 }
  0x90   :  { %557 = vmatprep.mubr.f32.mxu0 %v333_v41  ;;  %722 = vmatprep.mubr.f32.mxu1 %v335_v42 }
  0x93   :  { %558 = vmatmul.mubr.f32.gmra.mxu0 %v332_v43  ;;  %723 = vmatmul.mubr.f32.gmra.mxu1 %v334_v44 }
  0x94   :  { %6985 = vmatprep.mubr.msk.f32.mxu0 %vm337_vm0, %v241_v45 }
  0x97   :  { %6986 = vmatmul.mubr.msk.f32.vlgmr.msra.gmra.mxu0 %vm337_vm0, %v246_v46 }
  0x98   :  { %6988 = vmatprep.mubr.msk.f32.mxu0 %vm337_vm0, %v251_v47 }
  0x9b   :  { %6989 = vmatmul.mubr.msk.f32.gmra.mxu0 %vm337_vm0, %v256_v48 }
  0x9c   :  { %6991 = vmatprep.mubr.msk.f32.mxu0 %vm337_vm0, %v261_v49 }
  0x9f   :  { %6992 = vmatmul.mubr.msk.f32.gmra.mxu0 %vm337_vm0, %v266_v50 }
  0xa0   :  { %6994 = vmatprep.mubr.msk.f32.mxu0 %vm337_vm0, %v271_v51 }
  0xa3   :  { %6995 = vmatmul.mubr.msk.f32.gmra.mxu0 %vm337_vm0, %v276_v52 }
  0xa4   :  { %6997 = vmatprep.mubr.msk.f32.mxu0 %vm337_vm0, %v281_v53 }
  0xa7   :  { %6998 = vmatmul.mubr.msk.f32.gmra.mxu0 %vm337_vm0, %v286_v54 }
  0xa8   :  { %7000 = vmatprep.mubr.msk.f32.mxu0 %vm337_vm0, %v291_v55 }
  0xab   :  { %7001 = vmatmul.mubr.msk.f32.gmra.mxu0 %vm337_vm0, %v296_v56 }
  0xac   :  { %7003 = vmatprep.mubr.msk.f32.mxu0 %vm337_vm0, %v301_v57 }
  0xaf   :  { %7004 = vmatmul.mubr.msk.f32.gmra.mxu0 %vm337_vm0, %v306_v58 }
  0xb0   :  { %7006 = vmatprep.mubr.msk.f32.mxu0 %vm337_vm0, %v311_v59 }
  0xb3   :  { %7007 = vmatmul.mubr.msk.f32.gmra.mxu0 %vm337_vm0, %v316_v60 }
  0xb4   :  { %7009 = vmatprep.mubr.msk.f32.mxu0 %vm337_vm0, %v321_v61 }
  0xb7   :  { %7010 = vmatmul.mubr.msk.f32.gmra.mxu0 %vm337_vm0, %v326_v62 }
  0xb8   :  { %7012 = vmatprep.mubr.msk.f32.mxu0 %vm337_vm0, %v331_v63 }
  0xbb   :  { %7013 = vmatmul.mubr.msk.f32.gmra.mxu0 %vm337_vm0, %v336_v0 }
 0x107   :  { %v464_v1 = vpop.f32.mrf.mxu0  ;;  %v629_v2 = vpop.f32.mrf.mxu1 }
 0x108   :  { %v8232_v4 = vadd.f32 %v629_v2, %v464_v1 }
 0x109   :  { %v466_v5 = vpop.f32.mrf.mxu0  ;;  %v631_v6 = vpop.f32.mrf.mxu1 }
 0x10b   :  { %v469_v7 = vpop.f32.mrf.mxu0  ;;  %v634_v8 = vpop.f32.mrf.mxu1 }
 0x10c   :  { %v8234_v9 = vadd.f32 %v634_v8, %v469_v7 }
 0x10d   :  { %v471_v10 = vpop.f32.mrf.mxu0  ;;  %v636_v11 = vpop.f32.mrf.mxu1 }
 0x10f   :  { %v474_v12 = vpop.f32.mrf.mxu0  ;;  %v639_v13 = vpop.f32.mrf.mxu1 }
 0x110   :  { %v8236_v14 = vadd.f32 %v639_v13, %v474_v12 }
 0x111   :  { %v476_v15 = vpop.f32.mrf.mxu0  ;;  %v641_v16 = vpop.f32.mrf.mxu1 }
 0x113   :  { %v479_v17 = vpop.f32.mrf.mxu0  ;;  %v644_v18 = vpop.f32.mrf.mxu1 }
 0x114   :  { %v8238_v19 = vadd.f32 %v644_v18, %v479_v17 }
 0x115   :  { %v481_v20 = vpop.f32.mrf.mxu0  ;;  %v646_v21 = vpop.f32.mrf.mxu1 }
 0x117   :  { %v484_v22 = vpop.f32.mrf.mxu0  ;;  %v649_v23 = vpop.f32.mrf.mxu1 }
 0x118   :  { %v8240_v24 = vadd.f32 %v649_v23, %v484_v22 }
 0x119   :  { %v486_v25 = vpop.f32.mrf.mxu0  ;;  %v651_v26 = vpop.f32.mrf.mxu1 }
 0x11b   :  { %v489_v27 = vpop.f32.mrf.mxu0  ;;  %v654_v28 = vpop.f32.mrf.mxu1 }
 0x11c   :  { %v8242_v29 = vadd.f32 %v654_v28, %v489_v27 }
 0x11d   :  { %v491_v30 = vpop.f32.mrf.mxu0  ;;  %v656_v31 = vpop.f32.mrf.mxu1 }
 0x11f   :  { %v494_v32 = vpop.f32.mrf.mxu0  ;;  %v659_v33 = vpop.f32.mrf.mxu1 }
 0x120   :  { %v8244_v34 = vadd.f32 %v659_v33, %v494_v32 }
 0x121   :  { %v496_v35 = vpop.f32.mrf.mxu0  ;;  %v661_v36 = vpop.f32.mrf.mxu1 }
 0x123   :  { %v499_v37 = vpop.f32.mrf.mxu0  ;;  %v664_v38 = vpop.f32.mrf.mxu1 }
 0x124   :  { %v8246_v39 = vadd.f32 %v664_v38, %v499_v37 }
 0x125   :  { %v501_v40 = vpop.f32.mrf.mxu0  ;;  %v666_v41 = vpop.f32.mrf.mxu1 }
 0x127   :  { %v504_v42 = vpop.f32.mrf.mxu0  ;;  %v669_v43 = vpop.f32.mrf.mxu1 }
 0x128   :  { %v8248_v44 = vadd.f32 %v669_v43, %v504_v42 }
 0x129   :  { %v506_v45 = vpop.f32.mrf.mxu0  ;;  %v671_v46 = vpop.f32.mrf.mxu1 }
 0x12b   :  { %v509_v47 = vpop.f32.mrf.mxu0  ;;  %v674_v48 = vpop.f32.mrf.mxu1 }
 0x12c   :  { %v8250_v49 = vadd.f32 %v674_v48, %v509_v47 }
 0x12d   :  { %v511_v50 = vpop.f32.mrf.mxu0  ;;  %v676_v51 = vpop.f32.mrf.mxu1 }
 0x12f   :  { %v514_v52 = vpop.f32.mrf.mxu0  ;;  %v679_v53 = vpop.f32.mrf.mxu1 }
 0x130   :  { %v8252_v54 = vadd.f32 %v679_v53, %v514_v52 }
 0x131   :  { %v516_v55 = vpop.f32.mrf.mxu0  ;;  %v681_v56 = vpop.f32.mrf.mxu1 }
 0x133   :  { %v519_v57 = vpop.f32.mrf.mxu0  ;;  %v684_v58 = vpop.f32.mrf.mxu1 }
 0x134   :  { %v8254_v59 = vadd.f32 %v684_v58, %v519_v57 }
 0x135   :  { %v521_v60 = vpop.f32.mrf.mxu0  ;;  %v686_v61 = vpop.f32.mrf.mxu1 }
 0x137   :  { %v524_v62 = vpop.f32.mrf.mxu0  ;;  %v689_v63 = vpop.f32.mrf.mxu1 }
 0x138   :  { %v8256_v0 = vadd.f32 %v689_v63, %v524_v62 }
 0x139   :  { %v526_v1 = vpop.f32.mrf.mxu0  ;;  %v691_v2 = vpop.f32.mrf.mxu1 }
 0x13b   :  { %v529_v5 = vpop.f32.mrf.mxu0  ;;  %v694_v6 = vpop.f32.mrf.mxu1 }
 0x13c   :  { %v8258_v7 = vadd.f32 %v694_v6, %v529_v5 }
 0x13d   :  { %v531_v8 = vpop.f32.mrf.mxu0  ;;  %v696_v10 = vpop.f32.mrf.mxu1 }
 0x13f   :  { %v534_v11 = vpop.f32.mrf.mxu0  ;;  %v699_v12 = vpop.f32.mrf.mxu1 }
 0x140   :  { %v8260_v13 = vadd.f32 %v699_v12, %v534_v11 }
 0x141   :  { %v536_v15 = vpop.f32.mrf.mxu0  ;;  %v701_v16 = vpop.f32.mrf.mxu1 }
 0x143   :  { %v539_v17 = vpop.f32.mrf.mxu0  ;;  %v704_v18 = vpop.f32.mrf.mxu1 }
 0x144   :  { %v8262_v20 = vadd.f32 %v704_v18, %v539_v17  ;;  %v13684_v17 = vmov 0  }
 0x145   :  { %v541_v21 = vpop.f32.mrf.mxu0  ;;  %v706_v22 = vpop.f32.mrf.mxu1  ;;  %7062 = vset.pattern.permute.xlu1 %v13684_v17  ;;  %7063 = vset.pattern.permute.xlu0 %v13684_v17 }
 0x147   :  { %v544_v23 = vpop.f32.mrf.mxu0  ;;  %v709_v25 = vpop.f32.mrf.mxu1 }
 0x148   :  { %v8264_v26 = vadd.f32 %v709_v25, %v544_v23 }
 0x149   :  { %v546_v27 = vpop.f32.mrf.mxu0  ;;  %v711_v28 = vpop.f32.mrf.mxu1 }
 0x14b   :  { %v549_v30 = vpop.f32.mrf.mxu0  ;;  %v714_v31 = vpop.f32.mrf.mxu1 }
 0x14c   :  { %v8266_v32 = vadd.f32 %v714_v31, %v549_v30 }
 0x14d   :  { %v551_v33 = vpop.f32.mrf.mxu0  ;;  %v716_v35 = vpop.f32.mrf.mxu1 }
 0x14f   :  { %v554_v36 = vpop.f32.mrf.mxu0  ;;  %v719_v37 = vpop.f32.mrf.mxu1 }
 0x150   :  { %v8268_v38 = vadd.f32 %v719_v37, %v554_v36 }
 0x151   :  { %v556_v40 = vpop.f32.mrf.mxu0  ;;  %v721_v41 = vpop.f32.mrf.mxu1 }
 0x153   :  { %v559_v42 = vpop.f32.mrf.mxu0  ;;  %v724_v43 = vpop.f32.mrf.mxu1 }
 0x154   :  { %v8270_v45 = vadd.f32 %v724_v43, %v559_v42 }
 0x155   :  { %v561_v46 = vpop.f32.mrf.mxu0  ;;  %v726_v47 = vpop.f32.mrf.mxu1 }
 0x157   :  { %v6987_v48 = vpop.f32.mrf.mxu0 }
 0x158   :  { %v8273_v50 = vadd.f32 %v6987_v48, %v8234_v9 }
 0x159   :  { %v794_v51 = vpop.f32.mrf.mxu0 }
 0x15a   :  { %895 = vadd.xlane.f32.xlu0 %v8273_v50  ;;  %v934_v52 = vmul.f32 %v8273_v50, %v8273_v50  ;;  %v8279_v55 = vadd.f32 %v794_v51, %v8232_v4 }
 0x15b   :  { %v6990_v53 = vpop.f32.mrf.mxu0 }
 0x15c   :  { %955 = vadd.xlane.f32.xlu1 %v934_v52  ;;  %v8282_v57 = vadd.f32 %v6990_v53, %v8238_v19  ;;  %v933_v58 = vmul.f32 %v8279_v55, %v8279_v55 }
 0x15d   :  { %v804_v56 = vpop.f32.mrf.mxu0 }
 0x15e   :  { %893 = vadd.xlane.f32.xlu0 %v8279_v55  ;;  %v8286_v9 = vadd.f32 %v804_v56, %v8236_v14  ;;  %v936_v19 = vmul.f32 %v8282_v57, %v8282_v57 }
 0x15f   :  { %v6993_v60 = vpop.f32.mrf.mxu0 }
 0x160   :  { %899 = vadd.xlane.f32.xlu1 %v8282_v57  ;;  %v935_v4 = vmul.f32 %v8286_v9, %v8286_v9  ;;  %v8300_v63 = vadd.f32 %v6993_v60, %v8242_v29 }
 0x161   :  { %v814_v61 = vpop.f32.mrf.mxu0 }
 0x162   :  { %953 = vadd.xlane.f32.xlu0 %v933_v58  ;;  %v8297_v14 = vadd.f32 %v814_v61, %v8240_v24  ;;  %v938_v5 = vmul.f32 %v8300_v63, %v8300_v63 }
 0x163   :  { %v6996_v62 = vpop.f32.mrf.mxu0 }
 0x164   :  { %897 = vadd.xlane.f32.xlu1 %v8286_v9  ;;  %v937_v1 = vmul.f32 %v8297_v14, %v8297_v14  ;;  %v8312_v29 = vadd.f32 %v6996_v62, %v8246_v39 }
 0x165   :  { %v824_v2 = vpop.f32.mrf.mxu0 }
 0x166   :  { %957 = vadd.xlane.f32.xlu0 %v935_v4  ;;  %v8309_v24 = vadd.f32 %v824_v2, %v8244_v34  ;;  %v940_v11 = vmul.f32 %v8312_v29, %v8312_v29 }
 0x167   :  { %v6999_v6 = vpop.f32.mrf.mxu0 }
 0x168   :  { %959 = vadd.xlane.f32.xlu1 %v936_v19  ;;  %v939_v8 = vmul.f32 %v8309_v24, %v8309_v24  ;;  %v8324_v39 = vadd.f32 %v6999_v6, %v8250_v49 }
 0x169   :  { %v834_v10 = vpop.f32.mrf.mxu0 }
 0x16a   :  { %901 = vadd.xlane.f32.xlu0 %v8297_v14  ;;  %v8321_v34 = vadd.f32 %v834_v10, %v8248_v44  ;;  %v942_v44 = vmul.f32 %v8324_v39, %v8324_v39 }
 0x16b   :  { %v7002_v12 = vpop.f32.mrf.mxu0 }
 0x16c   :  { %903 = vadd.xlane.f32.xlu1 %v8300_v63  ;;  %v941_v15 = vmul.f32 %v8321_v34, %v8321_v34  ;;  %v8338_v21 = vadd.f32 %v7002_v12, %v8254_v59 }
 0x16d   :  { %v844_v16 = vpop.f32.mrf.mxu0 }
 0x16e   :  { %961 = vadd.xlane.f32.xlu0 %v937_v1  ;;  %v8335_v49 = vadd.f32 %v844_v16, %v8252_v54  ;;  %v944_v25 = vmul.f32 %v8338_v21, %v8338_v21 }
 0x16f   :  { %v7005_v18 = vpop.f32.mrf.mxu0 }
 0x170   :  { %963 = vadd.xlane.f32.xlu1 %v938_v5  ;;  %v943_v22 = vmul.f32 %v8335_v49, %v8335_v49  ;;  %v8350_v59 = vadd.f32 %v7005_v18, %v8258_v7 }
 0x171   :  { %v854_v23 = vpop.f32.mrf.mxu0 }
 0x172   :  { %905 = vadd.xlane.f32.xlu0 %v8309_v24  ;;  %v8347_v54 = vadd.f32 %v854_v23, %v8256_v0  ;;  %v946_v31 = vmul.f32 %v8350_v59, %v8350_v59 }
 0x173   :  { %v7008_v27 = vpop.f32.mrf.mxu0 }
 0x174   :  { %907 = vadd.xlane.f32.xlu1 %v8312_v29  ;;  %v945_v28 = vmul.f32 %v8347_v54, %v8347_v54  ;;  %v8362_v7 = vadd.f32 %v7008_v27, %v8262_v20 }
 0x175   :  { %v864_v30 = vpop.f32.mrf.mxu0 }
 0x176   :  { %965 = vadd.xlane.f32.xlu0 %v939_v8  ;;  %v8359_v0 = vadd.f32 %v864_v30, %v8260_v13  ;;  %v948_v37 = vmul.f32 %v8362_v7, %v8362_v7 }
 0x177   :  { %v7011_v33 = vpop.f32.mrf.mxu0 }
 0x178   :  { %967 = vadd.xlane.f32.xlu1 %v940_v11  ;;  %v947_v35 = vmul.f32 %v8359_v0, %v8359_v0  ;;  %v8374_v20 = vadd.f32 %v7011_v33, %v8266_v32 }
 0x179   :  { %v874_v36 = vpop.f32.mrf.mxu0 }
 0x17a   :  { %909 = vadd.xlane.f32.xlu0 %v8321_v34  ;;  %v8371_v13 = vadd.f32 %v874_v36, %v8264_v26  ;;  %v950_v43 = vmul.f32 %v8374_v20, %v8374_v20 }
 0x17b   :  { %v7014_v40 = vpop.f32.mrf.mxu0 }
 0x17c   :  { %911 = vadd.xlane.f32.xlu1 %v8324_v39  ;;  %13848 = vst [vmem:[#allocation5_spill] sm:$0xff] %v8371_v13  ;;  %v949_v41 = vmul.f32 %v8371_v13, %v8371_v13  ;;  %v8386_v46 = vadd.f32 %v7014_v40, %v8270_v45 }
 0x17d   :  { %v884_v42 = vpop.f32.mrf.mxu0 }
 0x17e   :  { %969 = vadd.xlane.f32.xlu0 %v941_v15  ;;  %v8383_v26 = vadd.f32 %v884_v42, %v8268_v38  ;;  %v952_v47 = vmul.f32 %v8386_v46, %v8386_v46 }
 0x180   :  { %971 = vadd.xlane.f32.xlu1 %v942_v44  ;;  %v951_v32 = vmul.f32 %v8383_v26, %v8383_v26 }
 0x182   :  { %913 = vadd.xlane.f32.xlu0 %v8335_v49 }
 0x184   :  { %915 = vadd.xlane.f32.xlu1 %v8338_v21 }
 0x186   :  { %973 = vadd.xlane.f32.xlu0 %v943_v22 }
 0x188   :  { %975 = vadd.xlane.f32.xlu1 %v944_v25 }
 0x18a   :  { %917 = vadd.xlane.f32.xlu0 %v8347_v54 }
 0x18c   :  { %919 = vadd.xlane.f32.xlu1 %v8350_v59 }
 0x18e   :  { %977 = vadd.xlane.f32.xlu0 %v945_v28 }
 0x190   :  { %979 = vadd.xlane.f32.xlu1 %v946_v31 }
 0x192   :  { %921 = vadd.xlane.f32.xlu0 %v8359_v0 }
 0x194   :  { %923 = vadd.xlane.f32.xlu1 %v8362_v7 }
 0x196   :  { %981 = vadd.xlane.f32.xlu0 %v947_v35 }
 0x198   :  { %983 = vadd.xlane.f32.xlu1 %v948_v37 }
 0x19a   :  { %925 = vadd.xlane.f32.xlu0 %v8371_v13 }
 0x19c   :  { %927 = vadd.xlane.f32.xlu1 %v8374_v20 }
 0x19e   :  { %985 = vadd.xlane.f32.xlu0 %v949_v41 }
 0x1a0   :  { %987 = vadd.xlane.f32.xlu1 %v950_v43  ;;  %v8419_v43 = vld [vmem:[%s13680_s2 + $0x8] sm:$0xff] }
 0x1a2   :  { %929 = vadd.xlane.f32.xlu0 %v8383_v26 }
 0x1a4   :  { %931 = vadd.xlane.f32.xlu1 %v8386_v46 }
 0x1a6   :  { %989 = vadd.xlane.f32.xlu0 %v951_v32 }
 0x1a8   :  { %991 = vadd.xlane.f32.xlu1 %v952_v47 }
 0x1e3   :  { %v896_v48 = vpop.xlane.xlu0 %895 }
 0x1e4   :  { %v8394_v51 = vmul.f32 0.020408163, %v896_v48 }
 0x1e5   :  { %v956_v38 = vpop.xlane.xlu1 %955 }
 0x1e6   :  { %v1034_v45 = vmul.f32 %v8394_v51, %v8394_v51  ;;  %v1014_v52 = vmul.f32 0.020408163, %v956_v38 }
 0x1e7   :  { %v894_v53 = vpop.xlane.xlu0 %893 }
 0x1e8   :  { %v1054_v56 = vsub.f32 %v1014_v52, %v1034_v45  ;;  %v8398_v58 = vmul.f32 0.020408163, %v894_v53 }
 0x1e9   :  { %v900_v60 = vpop.xlane.xlu1 %899 }
 0x1ea   :  { %v1074_v4 = vmax.f32 %v1054_v56, 0.0  ;;  %v1033_v62 = vmul.f32 %v8398_v58, %v8398_v58  ;;  %v8402_v5 = vmul.f32 0.020408163, %v900_v60 }
 0x1eb   :  { %v954_v61 = vpop.xlane.xlu0 %953 }
 0x1ec   :  { %v1114_v19 = vadd.f32 1e-05, %v1074_v4  ;;  %v1013_v1 = vmul.f32 0.020408163, %v954_v61  ;;  %v1036_v44 = vmul.f32 %v8402_v5, %v8402_v5 }
 0x1ed   :  { %v898_v2 = vpop.xlane.xlu1 %897 }
 0x1ee   :  { %7184 = vrsqrt.f32 %v1114_v19  ;;  %v1053_v6 = vsub.f32 %v1013_v1, %v1033_v62  ;;  %v8404_v8 = vmul.f32 0.020408163, %v898_v2 }
 0x1ef   :  { %v958_v10 = vpop.xlane.xlu0 %957 }
 0x1f0   :  { %v1073_v11 = vmax.f32 %v1053_v6, 0.0  ;;  %v1035_v12 = vmul.f32 %v8404_v8, %v8404_v8  ;;  %v1015_v15 = vmul.f32 0.020408163, %v958_v10  ;;  %v8431_v6 = vld [vmem:[%s13680_s2] sm:$0xff] }
 0x1f1   :  { %v960_v16 = vpop.xlane.xlu1 %959 }
 0x1f2   :  { %v1113_v18 = vadd.f32 1e-05, %v1073_v11  ;;  %v1016_v22 = vmul.f32 0.020408163, %v960_v16  ;;  %v1055_v23 = vsub.f32 %v1015_v15, %v1035_v12 }
 0x1f3   :  { %v902_v25 = vpop.xlane.xlu0 %901 }
 0x1f4   :  { %7186 = vrsqrt.f32 %v1113_v18  ;;  %v1056_v27 = vsub.f32 %v1016_v22, %v1036_v44  ;;  %v8410_v28 = vmul.f32 0.020408163, %v902_v25  ;;  %v1075_v35 = vmax.f32 %v1055_v23, 0.0 }
 0x1f5   :  { %v904_v30 = vpop.xlane.xlu1 %903 }
 0x1f6   :  { %v1076_v31 = vmax.f32 %v1056_v27, 0.0  ;;  %v8412_v33 = vmul.f32 0.020408163, %v904_v30  ;;  %v1037_v40 = vmul.f32 %v8410_v28, %v8410_v28  ;;  %v1115_v45 = vadd.f32 1e-05, %v1075_v35 }
 0x1f7   :  { %v962_v36 = vpop.xlane.xlu0 %961 }
 0x1f8   :  { %v1116_v37 = vadd.f32 1e-05, %v1076_v31  ;;  %v1017_v41 = vmul.f32 0.020408163, %v962_v36  ;;  %v1038_v32 = vmul.f32 %v8412_v33, %v8412_v33 }
 0x1f9   :  { %v964_v42 = vpop.xlane.xlu1 %963 }
 0x1fa   :  { %7188 = vrsqrt.f32 %v1116_v37  ;;  %v1057_v47 = vsub.f32 %v1017_v41, %v1037_v40  ;;  %v1018_v48 = vmul.f32 0.020408163, %v964_v42  ;;  %v8448_v42 = vld [vmem:[%s13680_s2 + $0x18] sm:$0xff] }
 0x1fb   :  { %v7185_v38 = vpop.eup %7184  ;;  %v906_v52 = vpop.xlane.xlu0 %905  ;;  %7190 = vrsqrt.f32 %v1115_v45 }
 0x1fc   :  { %v1077_v53 = vmax.f32 %v1057_v47, 0.0  ;;  %v1058_v56 = vsub.f32 %v1018_v48, %v1038_v32  ;;  %v8423_v60 = vmul.f32 0.020408163, %v906_v52  ;;  %v1154_v4 = vmul.f32 %v7185_v38, %v8419_v43 }
 0x1fd   :  { %v908_v61 = vpop.xlane.xlu1 %907 }
 0x1fe   :  { %v1117_v19 = vadd.f32 1e-05, %v1077_v53  ;;  %v1078_v62 = vmax.f32 %v1058_v56, 0.0  ;;  %v8426_v1 = vmul.f32 0.020408163, %v908_v61  ;;  %1305 = vperm.xlu1 %7062, %v1154_v4   ;;  %v1039_v11 = vmul.f32 %v8423_v60, %v8423_v60 }
 0x1ff   :  { %v966_v2 = vpop.xlane.xlu0 %965  ;;  %v1174_v15 = vmul.f32 %v1154_v4, %v8394_v51 }
 0x200   :  { %v1118_v10 = vadd.f32 1e-05, %v1078_v62  ;;  %v1019_v12 = vmul.f32 0.020408163, %v966_v2  ;;  %7192 = vrsqrt.f32 %v1117_v19  ;;  %v1040_v44 = vmul.f32 %v8426_v1, %v8426_v1 }
 0x201   :  { %v7187_v16 = vpop.eup %7186  ;;  %v968_v18 = vpop.xlane.xlu1 %967 }
 0x202   :  { %7194 = vrsqrt.f32 %v1118_v10  ;;  %v1059_v22 = vsub.f32 %v1019_v12, %v1039_v11  ;;  %v1020_v23 = vmul.f32 0.020408163, %v968_v18  ;;  %1215 = vrot.lane.b32.xlu1 %v1174_v15, %s7595_s9  ;;  %v1153_v25 = vmul.f32 %v7187_v16, %v8431_v6  ;;  %v8462_v12 = vld [vmem:[%s13680_s2 + $0x10] sm:$0xff]  ;;  %v8468_v16 = vld [vmem:[%s13680_s2 + $0x20] sm:$0xff] }
 0x203   :  { %v910_v27 = vpop.xlane.xlu0 %909 }
 0x204   :  { %v1079_v30 = vmax.f32 %v1059_v22, 0.0  ;;  %v1060_v31 = vsub.f32 %v1020_v23, %v1040_v44  ;;  %v8440_v35 = vmul.f32 0.020408163, %v910_v27  ;;  %1300 = vperm.xlu0 %7063, %v1153_v25   ;;  %v1173_v41 = vmul.f32 %v1153_v25, %v8398_v58  ;;  %v8475_v23 = vld [vmem:[%s13680_s2 + $0x28] sm:$0xff] }
 0x205   :  { %v912_v51 = vpop.xlane.xlu1 %911 }
 0x206   :  { %v1119_v36 = vadd.f32 1e-05, %v1079_v30  ;;  %v1080_v37 = vmax.f32 %v1060_v31, 0.0  ;;  %v8442_v40 = vmul.f32 0.020408163, %v912_v51  ;;  %v1041_v38 = vmul.f32 %v8440_v35, %v8440_v35 }
 0x207   :  { %v7189_v32 = vpop.eup %7188  ;;  %v970_v47 = vpop.xlane.xlu0 %969 }
 0x208   :  { %v1120_v48 = vadd.f32 1e-05, %v1080_v37  ;;  %v1021_v45 = vmul.f32 0.020408163, %v970_v47  ;;  %1213 = vrot.lane.b32.xlu0 %v1173_v41, %s7595_s9  ;;  %7196 = vrsqrt.f32 %v1119_v36  ;;  %v1156_v53 = vmul.f32 %v7189_v32, %v8448_v42  ;;  %v7191_v62 = vpop.eup %7190 }
 0x209   :  { %v972_v52 = vpop.xlane.xlu1 %971  ;;  %v1042_v58 = vmul.f32 %v8442_v40, %v8442_v40  ;;  %v1155_v30 = vmul.f32 %v7191_v62, %v8462_v12 }
 0x20a   :  { %7198 = vrsqrt.f32 %v1120_v48  ;;  %v1061_v56 = vsub.f32 %v1021_v45, %v1041_v38  ;;  %v1022_v4 = vmul.f32 0.020408163, %v972_v52  ;;  %v1176_v19 = vmul.f32 %v1156_v53, %v8402_v5 }
 0x20b   :  { %v914_v61 = vpop.xlane.xlu0 %913  ;;  %v1175_v52 = vmul.f32 %v1155_v30, %v8404_v8  ;;  %v8499_v8 = vld [vmem:[%s13680_s2 + $0x38] sm:$0xff] }
 0x20c   :  { %v1081_v2 = vmax.f32 %v1061_v56, 0.0  ;;  %v1062_v10 = vsub.f32 %v1022_v4, %v1042_v58  ;;  %v8457_v11 = vmul.f32 0.020408163, %v914_v61  ;;  %1315 = vperm.xlu0 %7063, %v1156_v53   ;;  %1219 = vrot.lane.b32.xlu1 %v1176_v19, %s7595_s9  ;;  %v8492_v19 = vld [vmem:[%s13680_s2 + $0x30] sm:$0xff] }
 0x20d   :  { %v916_v15 = vpop.xlane.xlu1 %915  ;;  %v7193_v5 = vpop.eup %7192 }
 0x20e   :  { %v1121_v44 = vadd.f32 1e-05, %v1081_v2  ;;  %v1082_v18 = vmax.f32 %v1062_v10, 0.0  ;;  %v8470_v22 = vmul.f32 0.020408163, %v916_v15  ;;  %v1043_v51 = vmul.f32 %v8457_v11, %v8457_v11 }
 0x20f   :  { %v7195_v25 = vpop.eup %7194  ;;  %v974_v27 = vpop.xlane.xlu0 %973  ;;  %v1157_v32 = vmul.f32 %v7193_v5, %v8468_v16 }
 0x210   :  { %v1122_v31 = vadd.f32 1e-05, %v1082_v18  ;;  %v1023_v36 = vmul.f32 0.020408163, %v974_v27  ;;  %7200 = vrsqrt.f32 %v1121_v44  ;;  %1310 = vperm.xlu1 %7062, %v1155_v30   ;;  %v1158_v41 = vmul.f32 %v7195_v25, %v8475_v23 }
 0x211   :  { %v976_v37 = vpop.xlane.xlu1 %975  ;;  %v1044_v47 = vmul.f32 %v8470_v22, %v8470_v22  ;;  %v1177_v61 = vmul.f32 %v1157_v32, %v8410_v28 }
 0x212   :  { %7202 = vrsqrt.f32 %v1122_v31  ;;  %v1063_v48 = vsub.f32 %v1023_v36, %v1043_v51  ;;  %v1024_v38 = vmul.f32 0.020408163, %v976_v37  ;;  %1325 = vperm.xlu0 %7063, %v1158_v41   ;;  %v1178_v28 = vmul.f32 %v1158_v41, %v8412_v33 }
 0x213   :  { %v918_v45 = vpop.xlane.xlu0 %917 }
 0x214   :  { %v1083_v53 = vmax.f32 %v1063_v48, 0.0  ;;  %v1064_v58 = vsub.f32 %v1024_v38, %v1044_v47  ;;  %v8485_v56 = vmul.f32 0.020408163, %v918_v45  ;;  %1217 = vrot.lane.b32.xlu1 %v1175_v52, %s7595_s9 }
 0x215   :  { %v920_v4 = vpop.xlane.xlu1 %919  ;;  %v7197_v62 = vpop.eup %7196 }
 0x216   :  { %v1123_v2 = vadd.f32 1e-05, %v1083_v53  ;;  %v1084_v10 = vmax.f32 %v1064_v58, 0.0  ;;  %v8494_v15 = vmul.f32 0.020408163, %v920_v4  ;;  %1221 = vrot.lane.b32.xlu0 %v1177_v61, %s7595_s9  ;;  %v1045_v25 = vmul.f32 %v8485_v56, %v8485_v56  ;;  %v8516_v53 = vld [vmem:[%s13680_s2 + $0x40] sm:$0xff] }
 0x217   :  { %v7199_v5 = vpop.eup %7198  ;;  %v978_v44 = vpop.xlane.xlu0 %977  ;;  %v1159_v51 = vmul.f32 %v7197_v62, %v8492_v19 }
 0x218   :  { %v1124_v18 = vadd.f32 1e-05, %v1084_v10  ;;  %v1025_v27 = vmul.f32 0.020408163, %v978_v44  ;;  %7204 = vrsqrt.f32 %v1123_v2  ;;  %1223 = vrot.lane.b32.xlu1 %v1178_v28, %s7595_s9  ;;  %v1160_v31 = vmul.f32 %v7199_v5, %v8499_v8  ;;  %v8523_v2 = vld [vmem:[%s13680_s2 + $0x48] sm:$0xff] }
 0x219   :  { %v980_v30 = vpop.xlane.xlu1 %979  ;;  %v1046_v36 = vmul.f32 %v8494_v15, %v8494_v15  ;;  %v1179_v52 = vmul.f32 %v1159_v51, %v8423_v60 }
 0x21a   :  { %7206 = vrsqrt.f32 %v1124_v18  ;;  %v1065_v37 = vsub.f32 %v1025_v27, %v1045_v25  ;;  %v1026_v47 = vmul.f32 0.020408163, %v980_v30  ;;  %1335 = vperm.xlu0 %7063, %v1160_v31   ;;  %v1180_v60 = vmul.f32 %v1160_v31, %v8426_v1 }
 0x21b   :  { %v922_v33 = vpop.xlane.xlu0 %921 }
 0x21c   :  { %v1085_v41 = vmax.f32 %v1065_v37, 0.0  ;;  %v1066_v48 = vsub.f32 %v1026_v47, %v1046_v36  ;;  %v8510_v38 = vmul.f32 0.020408163, %v922_v33  ;;  %1320 = vperm.xlu1 %7062, %v1157_v32  }
 0x21d   :  { %v924_v45 = vpop.xlane.xlu1 %923  ;;  %v7201_v58 = vpop.eup %7200 }
 0x21e   :  { %v1125_v4 = vadd.f32 1e-05, %v1085_v41  ;;  %v1086_v61 = vmax.f32 %v1066_v48, 0.0  ;;  %v8518_v62 = vmul.f32 0.020408163, %v924_v45  ;;  %1225 = vrot.lane.b32.xlu0 %v1179_v52, %s7595_s9  ;;  %v1047_v44 = vmul.f32 %v8510_v38, %v8510_v38  ;;  %v8540_v45 = vld [vmem:[%s13680_s2 + $0x50] sm:$0xff] }
 0x21f   :  { %v7203_v10 = vpop.eup %7202  ;;  %v982_v32 = vpop.xlane.xlu0 %981  ;;  %v1161_v27 = vmul.f32 %v7201_v58, %v8516_v53 }
 0x220   :  { %v1126_v5 = vadd.f32 1e-05, %v1086_v61  ;;  %v1027_v28 = vmul.f32 0.020408163, %v982_v32  ;;  %7208 = vrsqrt.f32 %v1125_v4  ;;  %1227 = vrot.lane.b32.xlu1 %v1180_v60, %s7595_s9  ;;  %v1162_v25 = vmul.f32 %v7203_v10, %v8523_v2  ;;  %v8547_v10 = vld [vmem:[%s13680_s2 + $0x58] sm:$0xff] }
 0x221   :  { %v984_v18 = vpop.xlane.xlu1 %983  ;;  %v1048_v30 = vmul.f32 %v8518_v62, %v8518_v62  ;;  %v1181_v48 = vmul.f32 %v1161_v27, %v8440_v35 }
 0x222   :  { %7210 = vrsqrt.f32 %v1126_v5  ;;  %v1067_v36 = vsub.f32 %v1027_v28, %v1047_v44  ;;  %v1028_v37 = vmul.f32 0.020408163, %v984_v18  ;;  %1345 = vperm.xlu0 %7063, %v1162_v25   ;;  %v1182_v35 = vmul.f32 %v1162_v25, %v8442_v40 }
 0x223   :  { %v926_v1 = vpop.xlane.xlu0 %925 }
 0x224   :  { %v1087_v31 = vmax.f32 %v1067_v36, 0.0  ;;  %v1068_v47 = vsub.f32 %v1028_v37, %v1048_v30  ;;  %v8534_v33 = vmul.f32 0.020408163, %v926_v1  ;;  %1330 = vperm.xlu1 %7062, %v1159_v51  }
 0x225   :  { %v928_v41 = vpop.xlane.xlu1 %927  ;;  %v7205_v52 = vpop.eup %7204 }
 0x226   :  { %v1127_v58 = vadd.f32 1e-05, %v1087_v31  ;;  %v1088_v4 = vmax.f32 %v1068_v47, 0.0  ;;  %v8542_v61 = vmul.f32 0.020408163, %v928_v41  ;;  %1229 = vrot.lane.b32.xlu0 %v1181_v48, %s7595_s9  ;;  %v1049_v5 = vmul.f32 %v8534_v33, %v8534_v33 }
 0x227   :  { %v7207_v32 = vpop.eup %7206  ;;  %v986_v51 = vpop.xlane.xlu0 %985  ;;  %v1163_v30 = vmul.f32 %v7205_v52, %v8540_v45  ;;  %v8564_v52 = vld [vmem:[%s13680_s2 + $0x60] sm:$0xff] }
 0x228   :  { %v1128_v60 = vadd.f32 1e-05, %v1088_v4  ;;  %v1029_v44 = vmul.f32 0.020408163, %v986_v51  ;;  %7212 = vrsqrt.f32 %v1127_v58  ;;  %1231 = vrot.lane.b32.xlu1 %v1182_v35, %s7595_s9  ;;  %v1164_v18 = vmul.f32 %v7207_v32, %v8547_v10  ;;  %v8571_v35 = vld [vmem:[%s13680_s2 + $0x68] sm:$0xff] }
 0x229   :  { %v988_v28 = vpop.xlane.xlu1 %987  ;;  %v1050_v36 = vmul.f32 %v8542_v61, %v8542_v61  ;;  %v1183_v48 = vmul.f32 %v1163_v30, %v8457_v11 }
 0x22a   :  { %7214 = vrsqrt.f32 %v1128_v60  ;;  %v1069_v37 = vsub.f32 %v1029_v44, %v1049_v5  ;;  %v1030_v1 = vmul.f32 0.020408163, %v988_v28  ;;  %1355 = vperm.xlu0 %7063, %v1164_v18   ;;  %v1184_v11 = vmul.f32 %v1164_v18, %v8470_v22 }
 0x22b   :  { %v930_v40 = vpop.xlane.xlu0 %929 }
 0x22c   :  { %v1089_v25 = vmax.f32 %v1069_v37, 0.0  ;;  %v1070_v31 = vsub.f32 %v1030_v1, %v1050_v36  ;;  %v8558_v47 = vmul.f32 0.020408163, %v930_v40  ;;  %1340 = vperm.xlu1 %7062, %v1161_v27  }
 0x22d   :  { %v932_v41 = vpop.xlane.xlu1 %931  ;;  %v7209_v58 = vpop.eup %7208 }
 0x22e   :  { %v1129_v4 = vadd.f32 1e-05, %v1089_v25  ;;  %v1090_v32 = vmax.f32 %v1070_v31, 0.0  ;;  %v8566_v51 = vmul.f32 0.020408163, %v932_v41  ;;  %1233 = vrot.lane.b32.xlu0 %v1183_v48, %s7595_s9  ;;  %v1051_v44 = vmul.f32 %v8558_v47, %v8558_v47  ;;  %v8586_v48 = vld [vmem:[%s13680_s2 + $0x78] sm:$0xff] }
 0x22f   :  { %v7211_v60 = vpop.eup %7210  ;;  %v990_v27 = vpop.xlane.xlu0 %989  ;;  %v1165_v1 = vmul.f32 %v7209_v58, %v8564_v52 }
 0x230   :  { %v1130_v5 = vadd.f32 1e-05, %v1090_v32  ;;  %v1031_v28 = vmul.f32 0.020408163, %v990_v27  ;;  %7216 = vrsqrt.f32 %v1129_v4  ;;  %1235 = vrot.lane.b32.xlu1 %v1184_v11, %s7595_s9  ;;  %v1166_v37 = vmul.f32 %v7211_v60, %v8571_v35  ;;  %v8591_v60 = vld [vmem:[%s13680_s2 + $0x70] sm:$0xff] }
 0x231   :  { %v992_v36 = vpop.xlane.xlu1 %991  ;;  %v1052_v40 = vmul.f32 %v8566_v51, %v8566_v51  ;;  %v1185_v41 = vmul.f32 %v1165_v1, %v8485_v56 }
 0x232   :  { %7218 = vrsqrt.f32 %v1130_v5  ;;  %v1071_v25 = vsub.f32 %v1031_v28, %v1051_v44  ;;  %v1032_v31 = vmul.f32 0.020408163, %v992_v36  ;;  %1365 = vperm.xlu0 %7063, %v1166_v37   ;;  %v8602_v28 = vld [vmem:[%s13680_s2 + $0x88] sm:$0xff] }
 0x234   :  { %v1091_v22 = vmax.f32 %v1071_v25, 0.0  ;;  %v1072_v18 = vsub.f32 %v1032_v31, %v1052_v40  ;;  %1350 = vperm.xlu1 %7062, %v1163_v30   ;;  %v1186_v30 = vmul.f32 %v1166_v37, %v8494_v15  ;;  %v8607_v15 = vld [vmem:[%s13680_s2 + $0x80] sm:$0xff]  ;;  %v8618_v31 = vld [vmem:[%s13680_s2 + $0x98] sm:$0xff] }
 0x235   :  { %v7213_v4 = vpop.eup %7212 }
 0x236   :  { %v1131_v32 = vadd.f32 1e-05, %v1091_v22  ;;  %v1092_v58 = vmax.f32 %v1072_v18, 0.0  ;;  %1237 = vrot.lane.b32.xlu0 %v1185_v41, %s7595_s9  ;;  %v1167_v5 = vmul.f32 %v7213_v4, %v8591_v60 }
 0x237   :  { %v7215_v27 = vpop.eup %7214 }
 0x238   :  { %v1132_v11 = vadd.f32 1e-05, %v1092_v58  ;;  %v1168_v56 = vmul.f32 %v7215_v27, %v8586_v48  ;;  %7220 = vrsqrt.f32 %v1131_v32  ;;  %1239 = vrot.lane.b32.xlu1 %v1186_v30, %s7595_s9  ;;  %v1187_v44 = vmul.f32 %v1167_v5, %v8510_v38 }
 0x239   :  { %v13686_v27 = vmov 1  }
 0x23a   :  { %7222 = vrsqrt.f32 %v1132_v11  ;;  %1375 = vperm.xlu0 %7063, %v1168_v56   ;;  %v1188_v40 = vmul.f32 %v1168_v56, %v8518_v62  ;;  %v8623_v62 = vld [vmem:[%s13680_s2 + $0x90] sm:$0xff] }
 0x23c   :  { %1360 = vperm.xlu1 %7062, %v1165_v1  }
 0x23d   :  { %v7217_v36 = vpop.eup %7216 }
 0x23e   :  { %1241 = vrot.lane.b32.xlu0 %v1187_v44, %s7595_s9  ;;  %v1169_v38 = vmul.f32 %v7217_v36, %v8607_v15 }
 0x23f   :  { %v7219_v37 = vpop.eup %7218 }
 0x240   :  { %v1170_v1 = vmul.f32 %v7219_v37, %v8602_v28  ;;  %1243 = vrot.lane.b32.xlu1 %v1188_v40, %s7595_s9  ;;  %v1189_v25 = vmul.f32 %v1169_v38, %v8534_v33 }
 0x242   :  { %1385 = vperm.xlu0 %7063, %v1170_v1   ;;  %v1190_v41 = vmul.f32 %v1170_v1, %v8542_v61 }
 0x244   :  { %1370 = vperm.xlu1 %7062, %v1167_v5  }
 0x245   :  { %v7221_v22 = vpop.eup %7220 }
 0x246   :  { %1245 = vrot.lane.b32.xlu0 %v1189_v25, %s7595_s9  ;;  %v1171_v33 = vmul.f32 %v7221_v22, %v8623_v62 }
 0x247   :  { %v7223_v18 = vpop.eup %7222 }
 0x248   :  { %v1172_v4 = vmul.f32 %v7223_v18, %v8618_v31  ;;  %1247 = vrot.lane.b32.xlu1 %v1190_v41, %s7595_s9  ;;  %v1191_v32 = vmul.f32 %v1171_v33, %v8558_v47 }
 0x24a   :  { %1395 = vperm.xlu0 %7063, %v1172_v4   ;;  %v1192_v58 = vmul.f32 %v1172_v4, %v8566_v51 }
 0x24c   :  { %1380 = vperm.xlu1 %7062, %v1169_v38  }
 0x24e   :  { %1249 = vrot.lane.b32.xlu0 %v1191_v32, %s7595_s9 }
 0x24f   :  { %7064 = vset.pattern.permute.xlu0 %v13686_v27 }
 0x250   :  { %1251 = vrot.lane.b32.xlu1 %v1192_v58, %s7595_s9 }
 0x254   :  { %1390 = vperm.xlu1 %7062, %v1171_v33  }
 0x258   :  { %7065 = vset.pattern.permute.xlu1 %v13686_v27 }
 0x279   :  { %v8636_v61 = vpop.permute.xlu1 %1305 }
 0x27d   :  { %v1216_v30 = vpop.permute.xlu1 %1215 }
 0x27e   :  { %v1274_v11 = vsub.f32 %v8419_v43, %v1216_v30 }
 0x27f   :  { %v8639_v56 = vpop.permute.xlu0 %1300 }
 0x280   :  { %1425 = vperm.xlu0 %7064, %v1274_v11  }
 0x281   :  { %v1220_v51 = vpop.permute.xlu1 %1219 }
 0x282   :  { %v1276_v44 = vsub.f32 %v8448_v42, %v1220_v51 }
 0x283   :  { %v1214_v47 = vpop.permute.xlu0 %1213 }
 0x284   :  { %v1273_v5 = vsub.f32 %v8431_v6, %v1214_v47 }
 0x286   :  { %1420 = vperm.xlu1 %7065, %v1273_v5  }
 0x287   :  { %v8643_v36 = vpop.permute.xlu0 %1315 }
 0x28a   :  { %1435 = vperm.xlu1 %7065, %v1276_v44  }
 0x28b   :  { %v8645_v37 = vpop.permute.xlu1 %1310 }
 0x28d   :  { %v8647_v40 = vpop.permute.xlu0 %1325 }
 0x28f   :  { %v1218_v1 = vpop.permute.xlu1 %1217 }
 0x290   :  { %v1275_v43 = vsub.f32 %v8462_v12, %v1218_v1 }
 0x291   :  { %v1222_v38 = vpop.permute.xlu0 %1221 }
 0x292   :  { %v1277_v25 = vsub.f32 %v8468_v16, %v1222_v38  ;;  %1430 = vperm.xlu1 %7065, %v1275_v43  }
 0x293   :  { %v1224_v22 = vpop.permute.xlu1 %1223 }
 0x294   :  { %v1278_v6 = vsub.f32 %v8475_v23, %v1224_v22  ;;  %1440 = vperm.xlu0 %7064, %v1277_v25  }
 0x295   :  { %v8652_v18 = vpop.permute.xlu0 %1335 }
 0x296   :  { %1445 = vperm.xlu1 %7065, %v1278_v6  }
 0x297   :  { %v8654_v42 = vpop.permute.xlu1 %1320 }
 0x299   :  { %v1226_v41 = vpop.permute.xlu0 %1225 }
 0x29a   :  { %v1279_v4 = vsub.f32 %v8492_v19, %v1226_v41 }
 0x29b   :  { %v1228_v33 = vpop.permute.xlu1 %1227 }
 0x29c   :  { %v1280_v32 = vsub.f32 %v8499_v8, %v1228_v33  ;;  %1450 = vperm.xlu0 %7064, %v1279_v4  }
 0x29d   :  { %v8658_v12 = vpop.permute.xlu0 %1345 }
 0x29e   :  { %1455 = vperm.xlu1 %7065, %v1280_v32  }
 0x29f   :  { %v8660_v16 = vpop.permute.xlu1 %1330 }
 0x2a1   :  { %v1230_v58 = vpop.permute.xlu0 %1229 }
 0x2a2   :  { %v1281_v23 = vsub.f32 %v8516_v53, %v1230_v58 }
 0x2a3   :  { %v1232_v30 = vpop.permute.xlu1 %1231 }
 0x2a4   :  { %v1282_v11 = vsub.f32 %v8523_v2, %v1232_v30  ;;  %1460 = vperm.xlu0 %7064, %v1281_v23  }
 0x2a5   :  { %v8664_v47 = vpop.permute.xlu0 %1355 }
 0x2a6   :  { %1465 = vperm.xlu1 %7065, %v1282_v11  }
 0x2a7   :  { %v8666_v19 = vpop.permute.xlu1 %1340 }
 0x2a9   :  { %v1234_v5 = vpop.permute.xlu0 %1233 }
 0x2aa   :  { %v1283_v8 = vsub.f32 %v8540_v45, %v1234_v5 }
 0x2ab   :  { %v1236_v51 = vpop.permute.xlu1 %1235 }
 0x2ac   :  { %v1284_v44 = vsub.f32 %v8547_v10, %v1236_v51  ;;  %1470 = vperm.xlu0 %7064, %v1283_v8  }
 0x2ad   :  { %v8670_v1 = vpop.permute.xlu0 %1365 }
 0x2ae   :  { %1475 = vperm.xlu1 %7065, %v1284_v44  }
 0x2af   :  { %v8672_v53 = vpop.permute.xlu1 %1350 }
 0x2b1   :  { %v1238_v43 = vpop.permute.xlu0 %1237 }
 0x2b2   :  { %v1285_v2 = vsub.f32 %v8564_v52, %v1238_v43 }
 0x2b3   :  { %v1240_v38 = vpop.permute.xlu1 %1239 }
 0x2b4   :  { %v1286_v25 = vsub.f32 %v8571_v35, %v1240_v38  ;;  %1480 = vperm.xlu0 %7064, %v1285_v2  }
 0x2b5   :  { %v1376_v22 = vpop.permute.xlu0 %1375 }
 0x2b6   :  { %1485 = vperm.xlu1 %7065, %v1286_v25  }
 0x2b7   :  { %v8676_v6 = vpop.permute.xlu1 %1360 }
 0x2b9   :  { %v1242_v45 = vpop.permute.xlu0 %1241 }
 0x2ba   :  { %v1287_v10 = vsub.f32 %v8591_v60, %v1242_v45 }
 0x2bb   :  { %v1244_v41 = vpop.permute.xlu1 %1243 }
 0x2bc   :  { %v1288_v4 = vsub.f32 %v8586_v48, %v1244_v41  ;;  %1490 = vperm.xlu0 %7064, %v1287_v10  }
 0x2bd   :  { %v8680_v33 = vpop.permute.xlu0 %1385 }
 0x2be   :  { %13849 = vst [vmem:[#allocation6_spill] sm:$0xff] %v8680_v33  ;;  %1495 = vperm.xlu1 %7065, %v1288_v4   ;;  %v1293_v4 = vlaneseq }
 0x2bf   :  { %v1371_v32 = vpop.permute.xlu1 %1370 }
 0x2c0   :  { %v1412_v27 = vmul.f32 %v1371_v32, %v8359_v0 }
 0x2c1   :  { %v1246_v52 = vpop.permute.xlu0 %1245 }
 0x2c2   :  { %v1289_v58 = vsub.f32 %v8607_v15, %v1246_v52  ;;  %v1669_v15 = vld [vmem:[%s13681_s3 + $0x378] sm:$0xff] }
 0x2c3   :  { %v1248_v35 = vpop.permute.xlu1 %1247  ;;  %6876 = vmatprep.mubr.msk.f32.mxu1 %vm1798_vm1, %v1669_v15 }
 0x2c4   :  { %v1290_v23 = vsub.f32 %v8602_v28, %v1248_v35  ;;  %1500 = vperm.xlu0 %7064, %v1289_v58   ;;  %v1559_v28 = vld [vmem:[%s13681_s3 + $0x8] sm:$0xff]  ;;  %v1294_v35 = vand.u32 127, %v1293_v4  ;;  %v1411_v4 = vmul.f32 %v8670_v1, %v8350_v59 }
 0x2c5   :  { %v8684_v30 = vpop.permute.xlu0 %1395  ;;  %6821 = vmatprep.mubr.msk.f32.mxu0 %vm1798_vm1, %v1559_v28  ;;  %v1413_v28 = vmul.f32 %v1376_v22, %v8362_v7  ;;  %v1410_v7 = vmul.f32 %v8676_v6, %v8347_v54  ;;  %v1408_v54 = vmul.f32 %v8672_v53, %v8335_v49  ;;  %v1406_v49 = vmul.f32 %v8666_v19, %v8321_v34 }
 0x2c6   :  { %1505 = vperm.xlu1 %7065, %v1290_v23   ;;  %vm1295_vm2 = vcmp.lt.s32.totalorder %v1294_v35, 49  ;;  %v1404_v34 = vmul.f32 %v8660_v16, %v8309_v24  ;;  %v1402_v24 = vmul.f32 %v8654_v42, %v8297_v14  ;;  %v1400_v42 = vmul.f32 %v8645_v37, %v8286_v9 }
 0x2c7   :  { %v8686_v11 = vpop.permute.xlu1 %1380  ;;  %v1398_v37 = vmul.f32 %v8639_v56, %v8279_v55 }
 0x2c8   :  { %13850 = vst [vmem:[#allocation7_spill] sm:$0xff] %v8686_v11 }
 0x2c9   :  { %v1250_v60 = vpop.permute.xlu0 %1249 }
 0x2ca   :  { %v1291_v48 = vsub.f32 %v8623_v62, %v1250_v60 }
 0x2cb   :  { %v1252_v5 = vpop.permute.xlu1 %1251 }
 0x2cc   :  { %v1292_v8 = vsub.f32 %v8618_v31, %v1252_v5  ;;  %1510 = vperm.xlu0 %7064, %v1291_v48   ;;  %v8717_v5 = vsel %vm1295_vm2, 1.0, %v7593_v3 }
 0x2ce   :  { %1515 = vperm.xlu1 %7065, %v1292_v8  }
 0x2cf   :  { %v8700_v31 = vpop.permute.xlu1 %1390 }
 0x2d0   :  { %7066 = vset.pattern.permute.xlu0 %v13684_v17  ;;  %v1416_v55 = vmul.f32 %v8700_v31, %v8383_v26  ;;  %v13852_v26 = vld [vmem:[#allocation5_spill] sm:$0xff]  ;;  %v13853_v31 = vld [vmem:[#allocation7_spill] sm:$0xff] }
 0x2d2   :  { %7067 = vset.pattern.permute.xlu1 %v13684_v17 }
 0x2fb   :  { %v8706_v44 = vpop.permute.xlu0 %1425 }
 0x301   :  { %v8702_v62 = vpop.permute.xlu1 %1420 }
 0x305   :  { %v8704_v51 = vpop.permute.xlu1 %1435 }
 0x306   :  { %v1521_v16 = vmul.f32 %v8717_v5, %v8704_v51  ;;  %v1519_v51 = vmul.f32 %v8717_v5, %v8706_v44 }
 0x30d   :  { %v8708_v43 = vpop.permute.xlu1 %1430 }
 0x30f   :  { %v8710_v2 = vpop.permute.xlu0 %1440 }
 0x311   :  { %v8712_v38 = vpop.permute.xlu1 %1445 }
 0x312   :  { %v1523_v19 = vmul.f32 %v8717_v5, %v8712_v38 }
 0x317   :  { %v8714_v25 = vpop.permute.xlu0 %1450 }
 0x319   :  { %v1456_v45 = vpop.permute.xlu1 %1455 }
 0x31a   :  { %v1525_v53 = vmul.f32 %v8717_v5, %v1456_v45 }
 0x31f   :  { %v1461_v10 = vpop.permute.xlu0 %1460 }
 0x321   :  { %v1466_v41 = vpop.permute.xlu1 %1465 }
 0x327   :  { %v1471_v52 = vpop.permute.xlu0 %1470 }
 0x328   :  { %v1528_v59 = vmul.f32 %v8717_v5, %v1471_v52 }
 0x329   :  { %v1476_v58 = vpop.permute.xlu1 %1475 }
 0x32a   :  { %v1529_v0 = vmul.f32 %v8717_v5, %v1476_v58  ;;  %v1548_v6 = vadd.f32 %v1528_v59, %v1408_v54  ;;  %v1565_v59 = vld [vmem:[%s13681_s3 + $0x38] sm:$0xff]  ;;  %v1564_v54 = vld [vmem:[%s13681_s3 + $0x30] sm:$0xff] }
 0x32f   :  { %v1481_v23 = vpop.permute.xlu0 %1480 }
 0x330   :  { %v1530_v35 = vmul.f32 %v8717_v5, %v1481_v23 }
 0x331   :  { %v1486_v60 = vpop.permute.xlu1 %1485 }
 0x332   :  { %v1531_v11 = vmul.f32 %v8717_v5, %v1486_v60 }
 0x334   :  { %v1551_v22 = vadd.f32 %v1531_v11, %v1411_v4  ;;  %v1671_v4 = vld [vmem:[%s13681_s3 + $0x388] sm:$0xff] }
 0x337   :  { %v1491_v48 = vpop.permute.xlu0 %1490 }
 0x338   :  { %v1532_v15 = vmul.f32 %v8717_v5, %v1491_v48  ;;  %v1414_v48 = vmul.f32 %v13853_v31, %v13852_v26  ;;  %v1699_v26 = vld [vmem:[%s13681_s3 + $0x468] sm:$0xff]  ;;  %v1588_v31 = vld [vmem:[%s13681_s3 + $0xf0] sm:$0xff] }
 0x339   :  { %v1496_v8 = vpop.permute.xlu1 %1495 }
 0x33a   :  { %v1533_v17 = vmul.f32 %v8717_v5, %v1496_v8  ;;  %v1552_v33 = vadd.f32 %v1532_v15, %v1412_v27  ;;  %v1527_v27 = vmul.f32 %v8717_v5, %v1466_v41  ;;  %v1561_v15 = vld [vmem:[%s13681_s3 + $0x18] sm:$0xff] }
 0x33c   :  { %v1553_v13 = vadd.f32 %v1533_v17, %v1413_v28  ;;  %v1409_v17 = vmul.f32 %v8664_v47, %v8338_v21  ;;  %v1407_v21 = vmul.f32 %v8658_v12, %v8324_v39  ;;  %v1526_v47 = vmul.f32 %v8717_v5, %v1461_v10  ;;  %v1668_v28 = vld [vmem:[%s13681_s3 + $0x370] sm:$0xff] }
 0x33d   :  { %v1405_v39 = vmul.f32 %v8652_v18, %v8312_v29  ;;  %v1524_v12 = vmul.f32 %v8717_v5, %v8714_v25  ;;  %v1403_v29 = vmul.f32 %v8647_v40, %v8300_v63  ;;  %v1522_v18 = vmul.f32 %v8717_v5, %v8710_v2 }
 0x33e   :  { %2160 = vmatpush1.msra.mxu0 %v1553_v13  ;;  %7035 = vmatpush1.msra.mxu1 %v1553_v13  ;;  %v1550_v13 = vadd.f32 %v1530_v35, %v1410_v7  ;;  %v1549_v1 = vadd.f32 %v1529_v0, %v1409_v17  ;;  %v1546_v32 = vadd.f32 %v1526_v47, %v1406_v49  ;;  %v1670_v35 = vld [vmem:[%s13681_s3 + $0x380] sm:$0xff]  ;;  %v1563_v7 = vld [vmem:[%s13681_s3 + $0x28] sm:$0xff]  ;;  %v1673_v0 = vld [vmem:[%s13681_s3 + $0x398] sm:$0xff] }
 0x33f   :  { %2161 = vmatprep.subr.mxu0 %v7593_v3  ;;  %7016 = vmatprep.subr.mxu1 %v7593_v3  ;;  %v1545_v11 = vadd.f32 %v1525_v53, %v1405_v39  ;;  %v1544_v25 = vadd.f32 %v1524_v12, %v1404_v34  ;;  %v1543_v38 = vadd.f32 %v1523_v19, %v1403_v29  ;;  %v1501_v14 = vpop.permute.xlu0 %1500  ;;  %v1672_v17 = vld [vmem:[%s13681_s3 + $0x390] sm:$0xff]  ;;  %v1569_v49 = vld [vmem:[%s13681_s3 + $0x58] sm:$0xff]  ;;  %v1679_v53 = vld [vmem:[%s13681_s3 + $0x3c8] sm:$0xff] }
 0x340   :  { %2162 = vmatpush1.msra.mxu0 %v1552_v33  ;;  %7036 = vmatpush1.msra.mxu1 %v1552_v33  ;;  %v1547_v33 = vadd.f32 %v1527_v27, %v1407_v21  ;;  %v1401_v40 = vmul.f32 %v8643_v36, %v8282_v57  ;;  %v1520_v2 = vmul.f32 %v8717_v5, %v8708_v43  ;;  %v1674_v27 = vld [vmem:[%s13681_s3 + $0x3a0] sm:$0xff]  ;;  %v1567_v21 = vld [vmem:[%s13681_s3 + $0x48] sm:$0xff]  ;;  %v1676_v47 = vld [vmem:[%s13681_s3 + $0x3b0] sm:$0xff] }
 0x341   :  { %2163 = vmatprep.subr.mxu0 %v7593_v3  ;;  %7017 = vmatprep.subr.mxu1 %v7593_v3  ;;  %v1506_v63 = vpop.permute.xlu1 %1505  ;;  %v1542_v45 = vadd.f32 %v1522_v18, %v1402_v24  ;;  %v1399_v36 = vmul.f32 %v8636_v61, %v8273_v50  ;;  %v1518_v43 = vmul.f32 %v8717_v5, %v8702_v62  ;;  %v1678_v39 = vld [vmem:[%s13681_s3 + $0x3c0] sm:$0xff]  ;;  %v1681_v12 = vld [vmem:[%s13681_s3 + $0x3d8] sm:$0xff]  ;;  %v1680_v34 = vld [vmem:[%s13681_s3 + $0x3d0] sm:$0xff] }
 0x342   :  { %2164 = vmatpush1.msra.mxu0 %v1551_v22  ;;  %7037 = vmatpush1.msra.mxu1 %v1551_v22  ;;  %v1541_v10 = vadd.f32 %v1521_v16, %v1401_v40  ;;  %v1540_v41 = vadd.f32 %v1520_v2, %v1400_v42  ;;  %v1417_v50 = vmul.f32 %v8684_v30, %v8386_v46  ;;  %v13851_v46 = vld [vmem:[#allocation6_spill] sm:$0xff]  ;;  %v1562_v22 = vld [vmem:[%s13681_s3 + $0x20] sm:$0xff]  ;;  %v1572_v18 = vld [vmem:[%s13681_s3 + $0x70] sm:$0xff] }
 0x343   :  { %2165 = vmatprep.subr.mxu0 %v7593_v3  ;;  %7018 = vmatprep.subr.mxu1 %v7593_v3  ;;  %v1539_v44 = vadd.f32 %v1519_v51, %v1399_v36  ;;  %v1538_v61 = vadd.f32 %v1518_v43, %v1398_v37  ;;  %v1535_v56 = vmul.f32 %v8717_v5, %v1506_v63  ;;  %v1570_v19 = vld [vmem:[%s13681_s3 + $0x60] sm:$0xff]  ;;  %v1683_v29 = vld [vmem:[%s13681_s3 + $0x3e8] sm:$0xff]  ;;  %v1685_v24 = vld [vmem:[%s13681_s3 + $0x3f8] sm:$0xff] }
 0x344   :  { %2166 = vmatpush1.msra.mxu0 %v1550_v13  ;;  %7038 = vmatpush1.msra.mxu1 %v1550_v13  ;;  %v1415_v30 = vmul.f32 %v13851_v46, %v8374_v20  ;;  %v1534_v23 = vmul.f32 %v8717_v5, %v1501_v14  ;;  %v1675_v13 = vld [vmem:[%s13681_s3 + $0x3a8] sm:$0xff]  ;;  %v1574_v63 = vld [vmem:[%s13681_s3 + $0x80] sm:$0xff]  ;;  %v1577_v40 = vld [vmem:[%s13681_s3 + $0x98] sm:$0xff] }
 0x345   :  { %2167 = vmatprep.subr.mxu0 %v7593_v3  ;;  %7019 = vmatprep.subr.mxu1 %v7593_v3  ;;  %v1575_v16 = vld [vmem:[%s13681_s3 + $0x88] sm:$0xff]  ;;  %v1686_v14 = vld [vmem:[%s13681_s3 + $0x400] sm:$0xff]  ;;  %v1689_v42 = vld [vmem:[%s13681_s3 + $0x418] sm:$0xff] }
 0x346   :  { %2168 = vmatpush1.msra.mxu0 %v1549_v1  ;;  %7039 = vmatpush1.msra.mxu1 %v1549_v1  ;;  %v1555_v8 = vadd.f32 %v1535_v56, %v1415_v30  ;;  %v1554_v20 = vadd.f32 %v1534_v23, %v1414_v48  ;;  %v1677_v1 = vld [vmem:[%s13681_s3 + $0x3b8] sm:$0xff]  ;;  %v1687_v2 = vld [vmem:[%s13681_s3 + $0x408] sm:$0xff]  ;;  %v1694_v56 = vld [vmem:[%s13681_s3 + $0x440] sm:$0xff] }
 0x347   :  { %2169 = vmatprep.subr.mxu0 %v7593_v3  ;;  %7020 = vmatprep.subr.mxu1 %v7593_v3  ;;  %v1511_v9 = vpop.permute.xlu0 %1510  ;;  %v1579_v51 = vld [vmem:[%s13681_s3 + $0xa8] sm:$0xff]  ;;  %v1581_v36 = vld [vmem:[%s13681_s3 + $0xb8] sm:$0xff]  ;;  %v1696_v30 = vld [vmem:[%s13681_s3 + $0x450] sm:$0xff] }
 0x348   :  { %2170 = vmatpush1.msra.mxu0 %v1548_v6  ;;  %7040 = vmatpush1.msra.mxu1 %v1548_v6  ;;  %v1536_v62 = vmul.f32 %v8717_v5, %v1511_v9  ;;  %v1566_v6 = vld [vmem:[%s13681_s3 + $0x40] sm:$0xff]  ;;  %v1691_v43 = vld [vmem:[%s13681_s3 + $0x428] sm:$0xff]  ;;  %v1693_v37 = vld [vmem:[%s13681_s3 + $0x438] sm:$0xff] }
 0x349   :  { %2171 = vmatprep.subr.mxu0 %v7593_v3  ;;  %7021 = vmatprep.subr.mxu1 %v7593_v3  ;;  %v1516_v57 = vpop.permute.xlu1 %1515  ;;  %v1690_v9 = vld [vmem:[%s13681_s3 + $0x420] sm:$0xff]  ;;  %v1587_v46 = vld [vmem:[%s13681_s3 + $0xe8] sm:$0xff] }
 0x34a   :  { %2172 = vmatpush1.msra.mxu0 %v1547_v33  ;;  %7041 = vmatpush1.msra.mxu1 %v1547_v33  ;;  %v1537_v52 = vmul.f32 %v8717_v5, %v1516_v57  ;;  %v1556_v60 = vadd.f32 %v1536_v62, %v1416_v55  ;;  %v1558_v5 = vld [vmem:[%s13681_s3] sm:$0xff]  ;;  %v1568_v33 = vld [vmem:[%s13681_s3 + $0x50] sm:$0xff]  ;;  %v1695_v62 = vld [vmem:[%s13681_s3 + $0x448] sm:$0xff] }
 0x34b   :  { %2173 = vmatprep.subr.mxu0 %v7593_v3  ;;  %7022 = vmatprep.subr.mxu1 %v7593_v3  ;;  %v1578_v57 = vld [vmem:[%s13681_s3 + $0xa0] sm:$0xff]  ;;  %v1584_v55 = vld [vmem:[%s13681_s3 + $0xd0] sm:$0xff] }
 0x34c   :  { %2174 = vmatpush1.msra.mxu0 %v1546_v32  ;;  %7042 = vmatpush1.msra.mxu1 %v1546_v32  ;;  %v1557_v58 = vadd.f32 %v1537_v52, %v1417_v50  ;;  %v1571_v32 = vld [vmem:[%s13681_s3 + $0x68] sm:$0xff]  ;;  %v1692_v52 = vld [vmem:[%s13681_s3 + $0x430] sm:$0xff]  ;;  %v1582_v50 = vld [vmem:[%s13681_s3 + $0xc0] sm:$0xff] }
 0x34d   :  { %2175 = vmatprep.subr.mxu0 %v7593_v3  ;;  %7023 = vmatprep.subr.mxu1 %v7593_v3  ;;  %v1586_v23 = vld [vmem:[%s13681_s3 + $0xe0] sm:$0xff] }
 0x34e   :  { %2176 = vmatpush1.msra.mxu0 %v1545_v11  ;;  %7043 = vmatpush1.msra.mxu1 %v1545_v11  ;;  %v1573_v11 = vld [vmem:[%s13681_s3 + $0x78] sm:$0xff]  ;;  %v1698_v48 = vld [vmem:[%s13681_s3 + $0x460] sm:$0xff] }
 0x34f   :  { %2177 = vmatprep.subr.mxu0 %v7593_v3  ;;  %7024 = vmatprep.subr.mxu1 %v7593_v3 }
 0x350   :  { %2178 = vmatpush1.msra.mxu0 %v1544_v25  ;;  %7044 = vmatpush1.msra.mxu1 %v1544_v25  ;;  %v1682_v25 = vld [vmem:[%s13681_s3 + $0x3e0] sm:$0xff] }
 0x351   :  { %2179 = vmatprep.subr.mxu0 %v7593_v3  ;;  %7025 = vmatprep.subr.mxu1 %v7593_v3 }
 0x352   :  { %2180 = vmatpush1.msra.mxu0 %v1543_v38  ;;  %7045 = vmatpush1.msra.mxu1 %v1543_v38  ;;  %v1684_v38 = vld [vmem:[%s13681_s3 + $0x3f0] sm:$0xff] }
 0x353   :  { %2181 = vmatprep.subr.mxu0 %v7593_v3  ;;  %7026 = vmatprep.subr.mxu1 %v7593_v3 }
 0x354   :  { %2182 = vmatpush1.msra.mxu0 %v1542_v45  ;;  %7046 = vmatpush1.msra.mxu1 %v1542_v45  ;;  %v1576_v45 = vld [vmem:[%s13681_s3 + $0x90] sm:$0xff] }
 0x355   :  { %2183 = vmatprep.subr.mxu0 %v7593_v3  ;;  %7027 = vmatprep.subr.mxu1 %v7593_v3 }
 0x356   :  { %2184 = vmatpush1.msra.mxu0 %v1541_v10  ;;  %7047 = vmatpush1.msra.mxu1 %v1541_v10  ;;  %v1688_v10 = vld [vmem:[%s13681_s3 + $0x410] sm:$0xff] }
 0x357   :  { %2185 = vmatprep.subr.mxu0 %v7593_v3  ;;  %7028 = vmatprep.subr.mxu1 %v7593_v3 }
 0x358   :  { %2186 = vmatpush1.msra.mxu0 %v1540_v41  ;;  %7048 = vmatpush1.msra.mxu1 %v1540_v41  ;;  %v1580_v41 = vld [vmem:[%s13681_s3 + $0xb0] sm:$0xff] }
 0x359   :  { %2187 = vmatprep.subr.mxu0 %v7593_v3  ;;  %7029 = vmatprep.subr.mxu1 %v7593_v3 }
 0x35a   :  { %2188 = vmatpush1.msra.mxu0 %v1539_v44  ;;  %7049 = vmatpush1.msra.mxu1 %v1539_v44  ;;  %v1583_v44 = vld [vmem:[%s13681_s3 + $0xc8] sm:$0xff] }
 0x35b   :  { %2189 = vmatprep.subr.mxu0 %v7593_v3  ;;  %7030 = vmatprep.subr.mxu1 %v7593_v3 }
 0x35c   :  { %2190 = vmatpush1.msra.mxu0 %v1538_v61  ;;  %7050 = vmatpush1.msra.mxu1 %v1538_v61  ;;  %v1585_v61 = vld [vmem:[%s13681_s3 + $0xd8] sm:$0xff] }
 0x35d   :  { %2215 = vmatprep.subr.mxu0 %v7593_v3  ;;  %7031 = vmatprep.subr.mxu1 %v7593_v3 }
 0x35e   :  { %2216 = vmatpush2.msra.mxu0 %v1557_v58  ;;  %7051 = vmatpush2.msra.mxu1 %v1557_v58  ;;  %v1697_v58 = vld [vmem:[%s13681_s3 + $0x458] sm:$0xff] }
 0x35f   :  { %2217 = vmatprep.subr.mxu0 %v7593_v3  ;;  %7032 = vmatprep.subr.mxu1 %v7593_v3 }
 0x360   :  { %2218 = vmatpush2.msra.mxu0 %v1556_v60  ;;  %7052 = vmatpush2.msra.mxu1 %v1556_v60  ;;  %v1589_v60 = vld [vmem:[%s13681_s3 + $0xf8] sm:$0xff] }
 0x361   :  { %2219 = vmatprep.subr.mxu0 %v7593_v3  ;;  %7033 = vmatprep.subr.mxu1 %v7593_v3 }
 0x362   :  { %2220 = vmatpush2.msra.mxu0 %v1555_v8  ;;  %7053 = vmatpush2.msra.mxu1 %v1555_v8  ;;  %v1701_v8 = vld [vmem:[%s13681_s3 + $0x478] sm:$0xff] }
 0x363   :  { %2221 = vmatprep.subr.mxu0 %v7593_v3  ;;  %7034 = vmatprep.subr.mxu1 %v7593_v3  ;;  %v1560_v3 = vld [vmem:[%s13681_s3 + $0x10] sm:$0xff] }
 0x364   :  { %2222 = vmatpush2.msra.mxu0 %v1554_v20  ;;  %7054 = vmatpush2.msra.mxu1 %v1554_v20  ;;  %v1591_v20 = vld [vmem:[%s13681_s3 + $0x108] sm:$0xff] }
 0x365   :  { %2224 = vmatmul.mubr.f32.vlgmr.msra.gmra.mxu0 %v1558_v5  ;;  %2499 = vmatmul.mubr.f32.vlgmr.msra.gmra.mxu1 %v1668_v28  ;;  %v1700_v5 = vld [vmem:[%s13681_s3 + $0x470] sm:$0xff]  ;;  %v1590_v28 = vld [vmem:[%s13681_s3 + $0x100] sm:$0xff] }
 0x366   :  { %6822 = vmatprep.mubr.msk.f32.mxu0 %vm1798_vm1, %v1561_v15  ;;  %6877 = vmatprep.mubr.msk.f32.mxu1 %vm1798_vm1, %v1671_v4  ;;  %v1593_v15 = vld [vmem:[%s13681_s3 + $0x118] sm:$0xff]  ;;  %v1703_v4 = vld [vmem:[%s13681_s3 + $0x488] sm:$0xff] }
 0x369   :  { %2229 = vmatmul.mubr.f32.gmra.mxu0 %v1560_v3  ;;  %2504 = vmatmul.mubr.f32.gmra.mxu1 %v1670_v35  ;;  %v1592_v3 = vld [vmem:[%s13681_s3 + $0x110] sm:$0xff]  ;;  %v1702_v35 = vld [vmem:[%s13681_s3 + $0x480] sm:$0xff] }
 0x36a   :  { %6823 = vmatprep.mubr.msk.f32.mxu0 %vm1798_vm1, %v1563_v7  ;;  %6878 = vmatprep.mubr.msk.f32.mxu1 %vm1798_vm1, %v1673_v0  ;;  %v1705_v7 = vld [vmem:[%s13681_s3 + $0x498] sm:$0xff]  ;;  %v1595_v0 = vld [vmem:[%s13681_s3 + $0x128] sm:$0xff] }
 0x36d   :  { %2234 = vmatmul.mubr.f32.gmra.mxu0 %v1562_v22  ;;  %2509 = vmatmul.mubr.f32.gmra.mxu1 %v1672_v17  ;;  %v1704_v22 = vld [vmem:[%s13681_s3 + $0x490] sm:$0xff]  ;;  %v1594_v17 = vld [vmem:[%s13681_s3 + $0x120] sm:$0xff] }
 0x36e   :  { %6824 = vmatprep.mubr.msk.f32.mxu0 %vm1798_vm1, %v1565_v59  ;;  %6879 = vmatprep.mubr.msk.f32.mxu1 %vm1798_vm1, %v1675_v13  ;;  %v1597_v59 = vld [vmem:[%s13681_s3 + $0x138] sm:$0xff]  ;;  %v1707_v13 = vld [vmem:[%s13681_s3 + $0x4a8] sm:$0xff] }
 0x371   :  { %2239 = vmatmul.mubr.f32.gmra.mxu0 %v1564_v54  ;;  %2514 = vmatmul.mubr.f32.gmra.mxu1 %v1674_v27  ;;  %v1596_v54 = vld [vmem:[%s13681_s3 + $0x130] sm:$0xff]  ;;  %v1706_v27 = vld [vmem:[%s13681_s3 + $0x4a0] sm:$0xff] }
 0x372   :  { %6880 = vmatprep.mubr.msk.f32.mxu1 %vm1798_vm1, %v1677_v1  ;;  %6825 = vmatprep.mubr.msk.f32.mxu0 %vm1798_vm1, %v1567_v21  ;;  %v1709_v1 = vld [vmem:[%s13681_s3 + $0x4b8] sm:$0xff]  ;;  %v1599_v21 = vld [vmem:[%s13681_s3 + $0x148] sm:$0xff] }
 0x375   :  { %2519 = vmatmul.mubr.f32.gmra.mxu1 %v1676_v47  ;;  %2244 = vmatmul.mubr.f32.gmra.mxu0 %v1566_v6  ;;  %v1708_v47 = vld [vmem:[%s13681_s3 + $0x4b0] sm:$0xff]  ;;  %v1598_v6 = vld [vmem:[%s13681_s3 + $0x140] sm:$0xff] }
 0x376   :  { %6826 = vmatprep.mubr.msk.f32.mxu0 %vm1798_vm1, %v1569_v49  ;;  %6881 = vmatprep.mubr.msk.f32.mxu1 %vm1798_vm1, %v1679_v53  ;;  %v1601_v49 = vld [vmem:[%s13681_s3 + $0x158] sm:$0xff]  ;;  %v1711_v53 = vld [vmem:[%s13681_s3 + $0x4c8] sm:$0xff] }
 0x379   :  { %2249 = vmatmul.mubr.f32.gmra.mxu0 %v1568_v33  ;;  %2524 = vmatmul.mubr.f32.gmra.mxu1 %v1678_v39  ;;  %v1600_v33 = vld [vmem:[%s13681_s3 + $0x150] sm:$0xff]  ;;  %v1710_v39 = vld [vmem:[%s13681_s3 + $0x4c0] sm:$0xff] }
 0x37a   :  { %6882 = vmatprep.mubr.msk.f32.mxu1 %vm1798_vm1, %v1681_v12  ;;  %6827 = vmatprep.mubr.msk.f32.mxu0 %vm1798_vm1, %v1571_v32  ;;  %v1713_v12 = vld [vmem:[%s13681_s3 + $0x4d8] sm:$0xff]  ;;  %v1603_v32 = vld [vmem:[%s13681_s3 + $0x168] sm:$0xff] }
 0x37d   :  { %2529 = vmatmul.mubr.f32.gmra.mxu1 %v1680_v34  ;;  %2254 = vmatmul.mubr.f32.gmra.mxu0 %v1570_v19  ;;  %v1712_v34 = vld [vmem:[%s13681_s3 + $0x4d0] sm:$0xff]  ;;  %v1602_v19 = vld [vmem:[%s13681_s3 + $0x160] sm:$0xff] }
 0x37e   :  { %6828 = vmatprep.mubr.msk.f32.mxu0 %vm1798_vm1, %v1573_v11  ;;  %6883 = vmatprep.mubr.msk.f32.mxu1 %vm1798_vm1, %v1683_v29  ;;  %v1605_v11 = vld [vmem:[%s13681_s3 + $0x178] sm:$0xff]  ;;  %v1715_v29 = vld [vmem:[%s13681_s3 + $0x4e8] sm:$0xff] }
 0x381   :  { %2259 = vmatmul.mubr.f32.gmra.mxu0 %v1572_v18  ;;  %2534 = vmatmul.mubr.f32.gmra.mxu1 %v1682_v25  ;;  %v1604_v18 = vld [vmem:[%s13681_s3 + $0x170] sm:$0xff]  ;;  %v1714_v25 = vld [vmem:[%s13681_s3 + $0x4e0] sm:$0xff] }
 0x382   :  { %6884 = vmatprep.mubr.msk.f32.mxu1 %vm1798_vm1, %v1685_v24  ;;  %6829 = vmatprep.mubr.msk.f32.mxu0 %vm1798_vm1, %v1575_v16  ;;  %v1717_v24 = vld [vmem:[%s13681_s3 + $0x4f8] sm:$0xff]  ;;  %v1607_v16 = vld [vmem:[%s13681_s3 + $0x188] sm:$0xff] }
 0x385   :  { %2539 = vmatmul.mubr.f32.gmra.mxu1 %v1684_v38  ;;  %2264 = vmatmul.mubr.f32.gmra.mxu0 %v1574_v63  ;;  %v1716_v38 = vld [vmem:[%s13681_s3 + $0x4f0] sm:$0xff]  ;;  %v1606_v63 = vld [vmem:[%s13681_s3 + $0x180] sm:$0xff] }
 0x386   :  { %6830 = vmatprep.mubr.msk.f32.mxu0 %vm1798_vm1, %v1577_v40  ;;  %6885 = vmatprep.mubr.msk.f32.mxu1 %vm1798_vm1, %v1687_v2  ;;  %v1609_v40 = vld [vmem:[%s13681_s3 + $0x198] sm:$0xff]  ;;  %v1719_v2 = vld [vmem:[%s13681_s3 + $0x508] sm:$0xff] }
 0x389   :  { %2269 = vmatmul.mubr.f32.gmra.mxu0 %v1576_v45  ;;  %2544 = vmatmul.mubr.f32.gmra.mxu1 %v1686_v14  ;;  %v1608_v45 = vld [vmem:[%s13681_s3 + $0x190] sm:$0xff]  ;;  %v1718_v14 = vld [vmem:[%s13681_s3 + $0x500] sm:$0xff] }
 0x38a   :  { %6886 = vmatprep.mubr.msk.f32.mxu1 %vm1798_vm1, %v1689_v42  ;;  %6831 = vmatprep.mubr.msk.f32.mxu0 %vm1798_vm1, %v1579_v51  ;;  %v1721_v42 = vld [vmem:[%s13681_s3 + $0x518] sm:$0xff]  ;;  %v1611_v51 = vld [vmem:[%s13681_s3 + $0x1a8] sm:$0xff] }
 0x38d   :  { %2549 = vmatmul.mubr.f32.gmra.mxu1 %v1688_v10  ;;  %2274 = vmatmul.mubr.f32.gmra.mxu0 %v1578_v57  ;;  %v1720_v10 = vld [vmem:[%s13681_s3 + $0x510] sm:$0xff]  ;;  %v1610_v57 = vld [vmem:[%s13681_s3 + $0x1a0] sm:$0xff] }
 0x38e   :  { %6832 = vmatprep.mubr.msk.f32.mxu0 %vm1798_vm1, %v1581_v36  ;;  %6887 = vmatprep.mubr.msk.f32.mxu1 %vm1798_vm1, %v1691_v43  ;;  %v1613_v36 = vld [vmem:[%s13681_s3 + $0x1b8] sm:$0xff]  ;;  %v1723_v43 = vld [vmem:[%s13681_s3 + $0x528] sm:$0xff] }
 0x391   :  { %2279 = vmatmul.mubr.f32.gmra.mxu0 %v1580_v41  ;;  %2554 = vmatmul.mubr.f32.gmra.mxu1 %v1690_v9  ;;  %v1612_v41 = vld [vmem:[%s13681_s3 + $0x1b0] sm:$0xff]  ;;  %v1722_v9 = vld [vmem:[%s13681_s3 + $0x520] sm:$0xff] }
 0x392   :  { %6888 = vmatprep.mubr.msk.f32.mxu1 %vm1798_vm1, %v1693_v37  ;;  %6833 = vmatprep.mubr.msk.f32.mxu0 %vm1798_vm1, %v1583_v44  ;;  %v1725_v37 = vld [vmem:[%s13681_s3 + $0x538] sm:$0xff]  ;;  %v1615_v44 = vld [vmem:[%s13681_s3 + $0x1c8] sm:$0xff] }
 0x395   :  { %2559 = vmatmul.mubr.f32.gmra.mxu1 %v1692_v52  ;;  %2284 = vmatmul.mubr.f32.gmra.mxu0 %v1582_v50  ;;  %v1724_v52 = vld [vmem:[%s13681_s3 + $0x530] sm:$0xff]  ;;  %v1614_v50 = vld [vmem:[%s13681_s3 + $0x1c0] sm:$0xff] }
 0x396   :  { %6834 = vmatprep.mubr.msk.f32.mxu0 %vm1798_vm1, %v1585_v61  ;;  %6889 = vmatprep.mubr.msk.f32.mxu1 %vm1798_vm1, %v1695_v62  ;;  %v1617_v61 = vld [vmem:[%s13681_s3 + $0x1d8] sm:$0xff]  ;;  %v1727_v62 = vld [vmem:[%s13681_s3 + $0x548] sm:$0xff] }
 0x399   :  { %2289 = vmatmul.mubr.f32.gmra.mxu0 %v1584_v55  ;;  %2564 = vmatmul.mubr.f32.gmra.mxu1 %v1694_v56  ;;  %v1616_v55 = vld [vmem:[%s13681_s3 + $0x1d0] sm:$0xff]  ;;  %v1726_v56 = vld [vmem:[%s13681_s3 + $0x540] sm:$0xff] }
 0x39a   :  { %6890 = vmatprep.mubr.msk.f32.mxu1 %vm1798_vm1, %v1697_v58  ;;  %6835 = vmatprep.mubr.msk.f32.mxu0 %vm1798_vm1, %v1587_v46  ;;  %v1729_v58 = vld [vmem:[%s13681_s3 + $0x558] sm:$0xff]  ;;  %v1619_v46 = vld [vmem:[%s13681_s3 + $0x1e8] sm:$0xff] }
 0x39d   :  { %2569 = vmatmul.mubr.f32.gmra.mxu1 %v1696_v30  ;;  %2294 = vmatmul.mubr.f32.gmra.mxu0 %v1586_v23  ;;  %v1728_v30 = vld [vmem:[%s13681_s3 + $0x550] sm:$0xff]  ;;  %v1618_v23 = vld [vmem:[%s13681_s3 + $0x1e0] sm:$0xff] }
 0x39e   :  { %6836 = vmatprep.mubr.msk.f32.mxu0 %vm1798_vm1, %v1589_v60  ;;  %6891 = vmatprep.mubr.msk.f32.mxu1 %vm1798_vm1, %v1699_v26  ;;  %v1621_v60 = vld [vmem:[%s13681_s3 + $0x1f8] sm:$0xff]  ;;  %v1731_v26 = vld [vmem:[%s13681_s3 + $0x568] sm:$0xff] }
 0x3a1   :  { %2299 = vmatmul.mubr.f32.gmra.mxu0 %v1588_v31  ;;  %2574 = vmatmul.mubr.f32.gmra.mxu1 %v1698_v48  ;;  %v1620_v31 = vld [vmem:[%s13681_s3 + $0x1f0] sm:$0xff]  ;;  %v1730_v48 = vld [vmem:[%s13681_s3 + $0x560] sm:$0xff] }
 0x3a2   :  { %6892 = vmatprep.mubr.msk.f32.mxu1 %vm1798_vm1, %v1701_v8  ;;  %6837 = vmatprep.mubr.msk.f32.mxu0 %vm1798_vm1, %v1591_v20  ;;  %v1733_v8 = vld [vmem:[%s13681_s3 + $0x578] sm:$0xff]  ;;  %v1623_v20 = vld [vmem:[%s13681_s3 + $0x208] sm:$0xff] }
 0x3a5   :  { %2579 = vmatmul.mubr.f32.gmra.mxu1 %v1700_v5  ;;  %2304 = vmatmul.mubr.f32.gmra.mxu0 %v1590_v28  ;;  %v1732_v5 = vld [vmem:[%s13681_s3 + $0x570] sm:$0xff]  ;;  %v1622_v28 = vld [vmem:[%s13681_s3 + $0x200] sm:$0xff] }
 0x3a6   :  { %6838 = vmatprep.mubr.msk.f32.mxu0 %vm1798_vm1, %v1593_v15  ;;  %6893 = vmatprep.mubr.msk.f32.mxu1 %vm1798_vm1, %v1703_v4  ;;  %v1625_v15 = vld [vmem:[%s13681_s3 + $0x218] sm:$0xff]  ;;  %v1624_v4 = vld [vmem:[%s13681_s3 + $0x210] sm:$0xff] }
 0x3a9   :  { %2309 = vmatmul.mubr.f32.gmra.mxu0 %v1592_v3  ;;  %2584 = vmatmul.mubr.f32.gmra.mxu1 %v1702_v35  ;;  %v1735_v3 = vld [vmem:[%s13681_s3 + $0x588] sm:$0xff]  ;;  %v1734_v35 = vld [vmem:[%s13681_s3 + $0x580] sm:$0xff] }
 0x3aa   :  { %6894 = vmatprep.mubr.msk.f32.mxu1 %vm1798_vm1, %v1705_v7  ;;  %6839 = vmatprep.mubr.msk.f32.mxu0 %vm1798_vm1, %v1595_v0  ;;  %v1737_v7 = vld [vmem:[%s13681_s3 + $0x598] sm:$0xff]  ;;  %v1736_v0 = vld [vmem:[%s13681_s3 + $0x590] sm:$0xff] }
 0x3ad   :  { %2589 = vmatmul.mubr.f32.gmra.mxu1 %v1704_v22  ;;  %2314 = vmatmul.mubr.f32.gmra.mxu0 %v1594_v17  ;;  %v1627_v22 = vld [vmem:[%s13681_s3 + $0x228] sm:$0xff]  ;;  %v1626_v17 = vld [vmem:[%s13681_s3 + $0x220] sm:$0xff] }
 0x3ae   :  { %6840 = vmatprep.mubr.msk.f32.mxu0 %vm1798_vm1, %v1597_v59  ;;  %6895 = vmatprep.mubr.msk.f32.mxu1 %vm1798_vm1, %v1707_v13  ;;  %v1629_v59 = vld [vmem:[%s13681_s3 + $0x238] sm:$0xff]  ;;  %v1628_v13 = vld [vmem:[%s13681_s3 + $0x230] sm:$0xff] }
 0x3b1   :  { %2319 = vmatmul.mubr.f32.gmra.mxu0 %v1596_v54  ;;  %2594 = vmatmul.mubr.f32.gmra.mxu1 %v1706_v27  ;;  %v1739_v54 = vld [vmem:[%s13681_s3 + $0x5a8] sm:$0xff]  ;;  %v1738_v27 = vld [vmem:[%s13681_s3 + $0x5a0] sm:$0xff] }
 0x3b2   :  { %6896 = vmatprep.mubr.msk.f32.mxu1 %vm1798_vm1, %v1709_v1  ;;  %6841 = vmatprep.mubr.msk.f32.mxu0 %vm1798_vm1, %v1599_v21  ;;  %v1741_v1 = vld [vmem:[%s13681_s3 + $0x5b8] sm:$0xff]  ;;  %v1740_v21 = vld [vmem:[%s13681_s3 + $0x5b0] sm:$0xff] }
 0x3b5   :  { %2599 = vmatmul.mubr.f32.gmra.mxu1 %v1708_v47  ;;  %2324 = vmatmul.mubr.f32.gmra.mxu0 %v1598_v6  ;;  %v1631_v47 = vld [vmem:[%s13681_s3 + $0x248] sm:$0xff]  ;;  %v1630_v6 = vld [vmem:[%s13681_s3 + $0x240] sm:$0xff] }
 0x3b6   :  { %6842 = vmatprep.mubr.msk.f32.mxu0 %vm1798_vm1, %v1601_v49  ;;  %6897 = vmatprep.mubr.msk.f32.mxu1 %vm1798_vm1, %v1711_v53  ;;  %v1633_v49 = vld [vmem:[%s13681_s3 + $0x258] sm:$0xff]  ;;  %v1632_v53 = vld [vmem:[%s13681_s3 + $0x250] sm:$0xff] }
 0x3b9   :  { %2329 = vmatmul.mubr.f32.gmra.mxu0 %v1600_v33  ;;  %2604 = vmatmul.mubr.f32.gmra.mxu1 %v1710_v39  ;;  %v1743_v33 = vld [vmem:[%s13681_s3 + $0x5c8] sm:$0xff]  ;;  %v1742_v39 = vld [vmem:[%s13681_s3 + $0x5c0] sm:$0xff] }
 0x3ba   :  { %6898 = vmatprep.mubr.msk.f32.mxu1 %vm1798_vm1, %v1713_v12  ;;  %6843 = vmatprep.mubr.msk.f32.mxu0 %vm1798_vm1, %v1603_v32  ;;  %v1745_v12 = vld [vmem:[%s13681_s3 + $0x5d8] sm:$0xff]  ;;  %v1744_v32 = vld [vmem:[%s13681_s3 + $0x5d0] sm:$0xff] }
 0x3bd   :  { %2609 = vmatmul.mubr.f32.gmra.mxu1 %v1712_v34  ;;  %2334 = vmatmul.mubr.f32.gmra.mxu0 %v1602_v19  ;;  %v1635_v34 = vld [vmem:[%s13681_s3 + $0x268] sm:$0xff]  ;;  %v1634_v19 = vld [vmem:[%s13681_s3 + $0x260] sm:$0xff] }
 0x3be   :  { %6844 = vmatprep.mubr.msk.f32.mxu0 %vm1798_vm1, %v1605_v11  ;;  %6899 = vmatprep.mubr.msk.f32.mxu1 %vm1798_vm1, %v1715_v29  ;;  %v1637_v11 = vld [vmem:[%s13681_s3 + $0x278] sm:$0xff]  ;;  %v1636_v29 = vld [vmem:[%s13681_s3 + $0x270] sm:$0xff] }
 0x3c1   :  { %2339 = vmatmul.mubr.f32.gmra.mxu0 %v1604_v18  ;;  %2614 = vmatmul.mubr.f32.gmra.mxu1 %v1714_v25  ;;  %v1747_v18 = vld [vmem:[%s13681_s3 + $0x5e8] sm:$0xff]  ;;  %v1746_v25 = vld [vmem:[%s13681_s3 + $0x5e0] sm:$0xff] }
 0x3c2   :  { %6900 = vmatprep.mubr.msk.f32.mxu1 %vm1798_vm1, %v1717_v24  ;;  %6845 = vmatprep.mubr.msk.f32.mxu0 %vm1798_vm1, %v1607_v16  ;;  %v1749_v24 = vld [vmem:[%s13681_s3 + $0x5f8] sm:$0xff]  ;;  %v1748_v16 = vld [vmem:[%s13681_s3 + $0x5f0] sm:$0xff] }
 0x3c5   :  { %2619 = vmatmul.mubr.f32.gmra.mxu1 %v1716_v38  ;;  %2344 = vmatmul.mubr.f32.gmra.mxu0 %v1606_v63  ;;  %v1639_v38 = vld [vmem:[%s13681_s3 + $0x288] sm:$0xff]  ;;  %v1638_v63 = vld [vmem:[%s13681_s3 + $0x280] sm:$0xff] }
 0x3c6   :  { %6846 = vmatprep.mubr.msk.f32.mxu0 %vm1798_vm1, %v1609_v40  ;;  %6901 = vmatprep.mubr.msk.f32.mxu1 %vm1798_vm1, %v1719_v2 }
 0x3c9   :  { %2349 = vmatmul.mubr.f32.gmra.mxu0 %v1608_v45  ;;  %2624 = vmatmul.mubr.f32.gmra.mxu1 %v1718_v14  ;;  %v1641_v45 = vld [vmem:[%s13681_s3 + $0x298] sm:$0xff] }
 0x3ca   :  { %6902 = vmatprep.mubr.msk.f32.mxu1 %vm1798_vm1, %v1721_v42  ;;  %6847 = vmatprep.mubr.msk.f32.mxu0 %vm1798_vm1, %v1611_v51  ;;  %v1640_v42 = vld [vmem:[%s13681_s3 + $0x290] sm:$0xff] }
 0x3cd   :  { %2629 = vmatmul.mubr.f32.gmra.mxu1 %v1720_v10  ;;  %2354 = vmatmul.mubr.f32.gmra.mxu0 %v1610_v57 }
 0x3ce   :  { %6848 = vmatprep.mubr.msk.f32.mxu0 %vm1798_vm1, %v1613_v36  ;;  %6903 = vmatprep.mubr.msk.f32.mxu1 %vm1798_vm1, %v1723_v43 }
 0x3d1   :  { %2359 = vmatmul.mubr.f32.gmra.mxu0 %v1612_v41  ;;  %2634 = vmatmul.mubr.f32.gmra.mxu1 %v1722_v9 }
 0x3d2   :  { %6904 = vmatprep.mubr.msk.f32.mxu1 %vm1798_vm1, %v1725_v37  ;;  %6849 = vmatprep.mubr.msk.f32.mxu0 %vm1798_vm1, %v1615_v44 }
 0x3d5   :  { %2639 = vmatmul.mubr.f32.gmra.mxu1 %v1724_v52  ;;  %2364 = vmatmul.mubr.f32.gmra.mxu0 %v1614_v50 }
 0x3d6   :  { %6850 = vmatprep.mubr.msk.f32.mxu0 %vm1798_vm1, %v1617_v61  ;;  %6905 = vmatprep.mubr.msk.f32.mxu1 %vm1798_vm1, %v1727_v62  ;;  %v1751_v62 = vld [vmem:[%s13681_s3 + $0x608] sm:$0xff] }
 0x3d9   :  { %2369 = vmatmul.mubr.f32.gmra.mxu0 %v1616_v55  ;;  %2644 = vmatmul.mubr.f32.gmra.mxu1 %v1726_v56  ;;  %v1750_v56 = vld [vmem:[%s13681_s3 + $0x600] sm:$0xff] }
 0x3da   :  { %6906 = vmatprep.mubr.msk.f32.mxu1 %vm1798_vm1, %v1729_v58  ;;  %6851 = vmatprep.mubr.msk.f32.mxu0 %vm1798_vm1, %v1619_v46 }
 0x3dd   :  { %2649 = vmatmul.mubr.f32.gmra.mxu1 %v1728_v30  ;;  %2374 = vmatmul.mubr.f32.gmra.mxu0 %v1618_v23 }
 0x3de   :  { %6852 = vmatprep.mubr.msk.f32.mxu0 %vm1798_vm1, %v1621_v60  ;;  %6907 = vmatprep.mubr.msk.f32.mxu1 %vm1798_vm1, %v1731_v26 }
 0x3e1   :  { %2379 = vmatmul.mubr.f32.gmra.mxu0 %v1620_v31  ;;  %2654 = vmatmul.mubr.f32.gmra.mxu1 %v1730_v48 }
 0x3e2   :  { %6908 = vmatprep.mubr.msk.f32.mxu1 %vm1798_vm1, %v1733_v8  ;;  %6853 = vmatprep.mubr.msk.f32.mxu0 %vm1798_vm1, %v1623_v20 }
 0x3e5   :  { %2659 = vmatmul.mubr.f32.gmra.mxu1 %v1732_v5  ;;  %2384 = vmatmul.mubr.f32.gmra.mxu0 %v1622_v28 }
 0x3e6   :  { %6854 = vmatprep.mubr.msk.f32.mxu0 %vm1798_vm1, %v1625_v15  ;;  %6909 = vmatprep.mubr.msk.f32.mxu1 %vm1798_vm1, %v1735_v3 }
 0x3e9   :  { %2389 = vmatmul.mubr.f32.gmra.mxu0 %v1624_v4  ;;  %2664 = vmatmul.mubr.f32.gmra.mxu1 %v1734_v35 }
 0x3ea   :  { %6910 = vmatprep.mubr.msk.f32.mxu1 %vm1798_vm1, %v1737_v7  ;;  %6855 = vmatprep.mubr.msk.f32.mxu0 %vm1798_vm1, %v1627_v22 }
 0x3ed   :  { %2669 = vmatmul.mubr.f32.gmra.mxu1 %v1736_v0  ;;  %2394 = vmatmul.mubr.f32.gmra.mxu0 %v1626_v17 }
 0x3ee   :  { %6856 = vmatprep.mubr.msk.f32.mxu0 %vm1798_vm1, %v1629_v59  ;;  %6911 = vmatprep.mubr.msk.f32.mxu1 %vm1798_vm1, %v1739_v54 }
 0x3f1   :  { %2399 = vmatmul.mubr.f32.gmra.mxu0 %v1628_v13  ;;  %2674 = vmatmul.mubr.f32.gmra.mxu1 %v1738_v27 }
 0x3f2   :  { %6912 = vmatprep.mubr.msk.f32.mxu1 %vm1798_vm1, %v1741_v1  ;;  %6857 = vmatprep.mubr.msk.f32.mxu0 %vm1798_vm1, %v1631_v47 }
 0x3f5   :  { %2679 = vmatmul.mubr.f32.gmra.mxu1 %v1740_v21  ;;  %2404 = vmatmul.mubr.f32.gmra.mxu0 %v1630_v6 }
 0x3f6   :  { %6858 = vmatprep.mubr.msk.f32.mxu0 %vm1798_vm1, %v1633_v49  ;;  %6913 = vmatprep.mubr.msk.f32.mxu1 %vm1798_vm1, %v1743_v33 }
 0x3f9   :  { %2409 = vmatmul.mubr.f32.gmra.mxu0 %v1632_v53  ;;  %2684 = vmatmul.mubr.f32.gmra.mxu1 %v1742_v39 }
 0x3fa   :  { %6914 = vmatprep.mubr.msk.f32.mxu1 %vm1798_vm1, %v1745_v12  ;;  %6859 = vmatprep.mubr.msk.f32.mxu0 %vm1798_vm1, %v1635_v34 }
 0x3fd   :  { %2689 = vmatmul.mubr.f32.gmra.mxu1 %v1744_v32  ;;  %2414 = vmatmul.mubr.f32.gmra.mxu0 %v1634_v19 }
 0x3fe   :  { %6860 = vmatprep.mubr.msk.f32.mxu0 %vm1798_vm1, %v1637_v11  ;;  %6915 = vmatprep.mubr.msk.f32.mxu1 %vm1798_vm1, %v1747_v18 }
 0x401   :  { %2419 = vmatmul.mubr.f32.gmra.mxu0 %v1636_v29  ;;  %2694 = vmatmul.mubr.f32.gmra.mxu1 %v1746_v25 }
 0x402   :  { %6916 = vmatprep.mubr.msk.f32.mxu1 %vm1798_vm1, %v1749_v24  ;;  %6861 = vmatprep.mubr.msk.f32.mxu0 %vm1798_vm1, %v1639_v38 }
 0x405   :  { %2699 = vmatmul.mubr.f32.gmra.mxu1 %v1748_v16  ;;  %2424 = vmatmul.mubr.f32.gmra.mxu0 %v1638_v63 }
 0x406   :  { %6862 = vmatprep.mubr.msk.f32.mxu0 %vm1798_vm1, %v1641_v45  ;;  %6917 = vmatprep.mubr.msk.f32.mxu1 %vm1798_vm1, %v1751_v62 }
 0x409   :  { %2429 = vmatmul.mubr.f32.gmra.mxu0 %v1640_v42  ;;  %2704 = vmatmul.mubr.f32.gmra.mxu1 %v1750_v56 }
 0x425   :  { %v9388_v40 = vpop.f32.mrf.mxu0  ;;  %v9390_v2 = vpop.f32.mrf.mxu1 }
 0x426   :  { %13854 = vst [vmem:[#allocation6_spill] sm:$0xff] %v9388_v40  ;;  %13855 = vst [vmem:[#allocation5_spill] sm:$0xff] %v9390_v2  ;;  %v3064_v14 = vmul.f32 %v9388_v40, %v9388_v40  ;;  %2934 = vadd.xlane.f32.xlu1 %v9390_v2  ;;  %2824 = vadd.xlane.f32.xlu0 %v9388_v40  ;;  %v3119_v57 = vmul.f32 %v9390_v2, %v9390_v2 }
 0x427   :  { %v2227_v51 = vpop.f32.mrf.mxu0  ;;  %v2502_v10 = vpop.f32.mrf.mxu1 }
 0x429   :  { %v9405_v36 = vpop.f32.mrf.mxu0  ;;  %v9407_v43 = vpop.f32.mrf.mxu1 }
 0x42a   :  { %13856 = vst [vmem:[#allocation7_spill] sm:$0xff] %v9405_v36  ;;  %13857 = vst [vmem:[#allocation8_spill] sm:$0xff] %v9407_v43  ;;  %3294 = vadd.xlane.f32.xlu1 %v3119_v57  ;;  %3184 = vadd.xlane.f32.xlu0 %v3064_v14  ;;  %v3120_v52 = vmul.f32 %v9407_v43, %v9407_v43  ;;  %v3065_v55 = vmul.f32 %v9405_v36, %v9405_v36 }
 0x42b   :  { %v2232_v41 = vpop.f32.mrf.mxu0  ;;  %v2507_v9 = vpop.f32.mrf.mxu1 }
 0x42d   :  { %v9409_v37 = vpop.f32.mrf.mxu0  ;;  %v9411_v44 = vpop.f32.mrf.mxu1 }
 0x42e   :  { %13858 = vst [vmem:[#allocation9_spill] sm:$0xff] %v9409_v37  ;;  %13859 = vst [vmem:[#allocation10_spill] sm:$0xff] %v9411_v44  ;;  %2936 = vadd.xlane.f32.xlu0 %v9407_v43  ;;  %2826 = vadd.xlane.f32.xlu1 %v9405_v36  ;;  %v3066_v31 = vmul.f32 %v9409_v37, %v9409_v37  ;;  %v3121_v20 = vmul.f32 %v9411_v44, %v9411_v44 }
 0x42f   :  { %v2237_v50 = vpop.f32.mrf.mxu0  ;;  %v2512_v61 = vpop.f32.mrf.mxu1 }
 0x431   :  { %v9426_v58 = vpop.f32.mrf.mxu0  ;;  %v9428_v46 = vpop.f32.mrf.mxu1 }
 0x432   :  { %13860 = vst [vmem:[#allocation11_spill] sm:$0xff] %v9426_v58  ;;  %13861 = vst [vmem:[#allocation12_spill] sm:$0xff] %v9428_v46  ;;  %3296 = vadd.xlane.f32.xlu0 %v3120_v52  ;;  %3186 = vadd.xlane.f32.xlu1 %v3065_v55  ;;  %v3067_v15 = vmul.f32 %v9426_v58, %v9426_v58  ;;  %v3122_v27 = vmul.f32 %v9428_v46, %v9428_v46 }
 0x433   :  { %v2517_v30 = vpop.f32.mrf.mxu1  ;;  %v2242_v23 = vpop.f32.mrf.mxu0 }
 0x434   :  { %v1753_v23 = vld [vmem:[%s13681_s3 + $0x618] sm:$0xff] }
 0x435   :  { %v9430_v60 = vpop.f32.mrf.mxu1  ;;  %v9432_v26 = vpop.f32.mrf.mxu0  ;;  %6918 = vmatprep.mubr.msk.f32.mxu1 %vm1798_vm1, %v1753_v23 }
 0x436   :  { %13862 = vst [vmem:[#allocation13_spill] sm:$0xff] %v9430_v60  ;;  %13863 = vst [vmem:[#allocation14_spill] sm:$0xff] %v9432_v26  ;;  %2938 = vadd.xlane.f32.xlu1 %v9411_v44  ;;  %2828 = vadd.xlane.f32.xlu0 %v9409_v37  ;;  %v3123_v1 = vmul.f32 %v9430_v60, %v9430_v60  ;;  %v3068_v32 = vmul.f32 %v9432_v26, %v9432_v26 }
 0x437   :  { %v2247_v48 = vpop.f32.mrf.mxu0  ;;  %v2522_v8 = vpop.f32.mrf.mxu1 }
 0x439   :  { %v9440_v5 = vpop.f32.mrf.mxu0  ;;  %v9442_v28 = vpop.f32.mrf.mxu1 }
 0x43a   :  { %13864 = vst [vmem:[#allocation15_spill] sm:$0xff] %v9440_v5  ;;  %13865 = vst [vmem:[#allocation16_spill] sm:$0xff] %v9442_v28  ;;  %3298 = vadd.xlane.f32.xlu1 %v3121_v20  ;;  %3188 = vadd.xlane.f32.xlu0 %v3066_v31  ;;  %v3069_v34 = vmul.f32 %v9440_v5, %v9440_v5  ;;  %v3124_v63 = vmul.f32 %v9442_v28, %v9442_v28  ;;  %v1752_v31 = vld [vmem:[%s13681_s3 + $0x610] sm:$0xff] }
 0x43b   :  { %v2527_v4 = vpop.f32.mrf.mxu1  ;;  %v2252_v3 = vpop.f32.mrf.mxu0  ;;  %2709 = vmatmul.mubr.f32.gmra.mxu1 %v1752_v31 }
 0x43d   :  { %v9446_v35 = vpop.f32.mrf.mxu1  ;;  %v9448_v7 = vpop.f32.mrf.mxu0 }
 0x43e   :  { %13866 = vst [vmem:[#allocation17_spill] sm:$0xff] %v9446_v35  ;;  %13867 = vst [vmem:[#allocation18_spill] sm:$0xff] %v9448_v7  ;;  %2830 = vadd.xlane.f32.xlu0 %v9426_v58  ;;  %3190 = vadd.xlane.f32.xlu1 %v3067_v15  ;;  %v3125_v45 = vmul.f32 %v9446_v35, %v9446_v35  ;;  %v3070_v50 = vmul.f32 %v9448_v7, %v9448_v7 }
 0x43f   :  { %v2257_v0 = vpop.f32.mrf.mxu0  ;;  %v2532_v22 = vpop.f32.mrf.mxu1 }
 0x441   :  { %v9451_v17 = vpop.f32.mrf.mxu0  ;;  %v9453_v59 = vpop.f32.mrf.mxu1 }
 0x442   :  { %13868 = vst [vmem:[#allocation19_spill] sm:$0xff] %v9451_v17  ;;  %13869 = vst [vmem:[#allocation20_spill] sm:$0xff] %v9453_v59  ;;  %2940 = vadd.xlane.f32.xlu0 %v9428_v46  ;;  %2942 = vadd.xlane.f32.xlu1 %v9430_v60  ;;  %v3071_v61 = vmul.f32 %v9451_v17, %v9451_v17  ;;  %v3126_v4 = vmul.f32 %v9453_v59, %v9453_v59 }
 0x443   :  { %v2537_v13 = vpop.f32.mrf.mxu1  ;;  %v2262_v54 = vpop.f32.mrf.mxu0 }
 0x445   :  { %v9461_v21 = vpop.f32.mrf.mxu1  ;;  %v9463_v47 = vpop.f32.mrf.mxu0 }
 0x446   :  { %13870 = vst [vmem:[#allocation21_spill] sm:$0xff] %v9461_v21  ;;  %13871 = vst [vmem:[#allocation22_spill] sm:$0xff] %v9463_v47  ;;  %3300 = vadd.xlane.f32.xlu0 %v3122_v27  ;;  %3302 = vadd.xlane.f32.xlu1 %v3123_v1  ;;  %v3127_v3 = vmul.f32 %v9461_v21, %v9461_v21 }
 0x447   :  { %v2267_v6 = vpop.f32.mrf.mxu0  ;;  %v2542_v49 = vpop.f32.mrf.mxu1 }
 0x449   :  { %v9465_v53 = vpop.f32.mrf.mxu0  ;;  %v9467_v33 = vpop.f32.mrf.mxu1 }
 0x44a   :  { %13872 = vst [vmem:[#allocation23_spill] sm:$0xff] %v9465_v53  ;;  %13873 = vst [vmem:[#allocation24_spill] sm:$0xff] %v9467_v33  ;;  %2832 = vadd.xlane.f32.xlu0 %v9432_v26  ;;  %2834 = vadd.xlane.f32.xlu1 %v9440_v5 }
 0x44b   :  { %v2547_v39 = vpop.f32.mrf.mxu1  ;;  %v2272_v12 = vpop.f32.mrf.mxu0 }
 0x44c   :  { %v3072_v39 = vmul.f32 %v9463_v47, %v9463_v47  ;;  %v3073_v12 = vmul.f32 %v9465_v53, %v9465_v53 }
 0x44d   :  { %v9475_v19 = vpop.f32.mrf.mxu1  ;;  %v9477_v11 = vpop.f32.mrf.mxu0 }
 0x44e   :  { %13874 = vst [vmem:[#allocation25_spill] sm:$0xff] %v9475_v19  ;;  %13875 = vst [vmem:[#allocation26_spill] sm:$0xff] %v9477_v11  ;;  %3192 = vadd.xlane.f32.xlu0 %v3068_v32  ;;  %3194 = vadd.xlane.f32.xlu1 %v3069_v34 }
 0x44f   :  { %v2277_v29 = vpop.f32.mrf.mxu0  ;;  %v2552_v18 = vpop.f32.mrf.mxu1 }
 0x451   :  { %v9479_v25 = vpop.f32.mrf.mxu0  ;;  %v9481_v24 = vpop.f32.mrf.mxu1 }
 0x452   :  { %13876 = vst [vmem:[#allocation27_spill] sm:$0xff] %v9479_v25  ;;  %13877 = vst [vmem:[#allocation28_spill] sm:$0xff] %v9481_v24  ;;  %2944 = vadd.xlane.f32.xlu0 %v9442_v28  ;;  %2946 = vadd.xlane.f32.xlu1 %v9446_v35 }
 0x453   :  { %v2557_v16 = vpop.f32.mrf.mxu1  ;;  %v2282_v38 = vpop.f32.mrf.mxu0 }
 0x455   :  { %v9489_v14 = vpop.f32.mrf.mxu1  ;;  %v9491_v42 = vpop.f32.mrf.mxu0 }
 0x456   :  { %13878 = vst [vmem:[#allocation29_spill] sm:$0xff] %v9489_v14  ;;  %13879 = vst [vmem:[#allocation30_spill] sm:$0xff] %v9491_v42  ;;  %3304 = vadd.xlane.f32.xlu0 %v3124_v63  ;;  %3306 = vadd.xlane.f32.xlu1 %v3125_v45 }
 0x457   :  { %v2287_v51 = vpop.f32.mrf.mxu0  ;;  %v2562_v10 = vpop.f32.mrf.mxu1 }
 0x458   :  { %v3128_v51 = vmul.f32 %v9467_v33, %v9467_v33  ;;  %v3129_v10 = vmul.f32 %v9475_v19, %v9475_v19 }
 0x459   :  { %v9493_v57 = vpop.f32.mrf.mxu0  ;;  %v9495_v41 = vpop.f32.mrf.mxu1 }
 0x45a   :  { %13880 = vst [vmem:[#allocation31_spill] sm:$0xff] %v9493_v57  ;;  %13881 = vst [vmem:[#allocation32_spill] sm:$0xff] %v9495_v41  ;;  %2836 = vadd.xlane.f32.xlu0 %v9448_v7  ;;  %2838 = vadd.xlane.f32.xlu1 %v9451_v17 }
 0x45b   :  { %v2567_v9 = vpop.f32.mrf.mxu1  ;;  %v2292_v52 = vpop.f32.mrf.mxu0 }
 0x45d   :  { %v9503_v62 = vpop.f32.mrf.mxu1  ;;  %v9505_v55 = vpop.f32.mrf.mxu0 }
 0x45e   :  { %13882 = vst [vmem:[#allocation33_spill] sm:$0xff] %v9503_v62  ;;  %13883 = vst [vmem:[#allocation34_spill] sm:$0xff] %v9505_v55  ;;  %3196 = vadd.xlane.f32.xlu0 %v3070_v50  ;;  %3198 = vadd.xlane.f32.xlu1 %v3071_v61 }
 0x45f   :  { %v2297_v56 = vpop.f32.mrf.mxu0  ;;  %v2572_v30 = vpop.f32.mrf.mxu1 }
 0x461   :  { %v9514_v48 = vpop.f32.mrf.mxu0  ;;  %v9516_v8 = vpop.f32.mrf.mxu1 }
 0x462   :  { %13884 = vst [vmem:[#allocation35_spill] sm:$0xff] %v9514_v48  ;;  %13885 = vst [vmem:[#allocation36_spill] sm:$0xff] %v9516_v8  ;;  %2948 = vadd.xlane.f32.xlu0 %v9453_v59  ;;  %2950 = vadd.xlane.f32.xlu1 %v9461_v21 }
 0x463   :  { %v2577_v20 = vpop.f32.mrf.mxu1  ;;  %v2302_v15 = vpop.f32.mrf.mxu0 }
 0x464   :  { %v3074_v20 = vmul.f32 %v9477_v11, %v9477_v11  ;;  %v3075_v15 = vmul.f32 %v9479_v25, %v9479_v25 }
 0x465   :  { %v9524_v0 = vpop.f32.mrf.mxu1  ;;  %v9526_v22 = vpop.f32.mrf.mxu0 }
 0x466   :  { %13886 = vst [vmem:[#allocation37_spill] sm:$0xff] %v9524_v0  ;;  %13887 = vst [vmem:[#allocation38_spill] sm:$0xff] %v9526_v22  ;;  %3308 = vadd.xlane.f32.xlu0 %v3126_v4  ;;  %3310 = vadd.xlane.f32.xlu1 %v3127_v3 }
 0x467   :  { %v2307_v13 = vpop.f32.mrf.mxu0  ;;  %v2582_v54 = vpop.f32.mrf.mxu1 }
 0x469   :  { %v9528_v27 = vpop.f32.mrf.mxu0  ;;  %v9530_v1 = vpop.f32.mrf.mxu1 }
 0x46a   :  { %13888 = vst [vmem:[#allocation39_spill] sm:$0xff] %v9528_v27  ;;  %13889 = vst [vmem:[#allocation40_spill] sm:$0xff] %v9530_v1  ;;  %2840 = vadd.xlane.f32.xlu0 %v9463_v47  ;;  %2842 = vadd.xlane.f32.xlu1 %v9465_v53 }
 0x46b   :  { %v2587_v6 = vpop.f32.mrf.mxu1  ;;  %v2312_v49 = vpop.f32.mrf.mxu0 }
 0x46d   :  { %v9538_v32 = vpop.f32.mrf.mxu1  ;;  %v9540_v34 = vpop.f32.mrf.mxu0 }
 0x46e   :  { %13890 = vst [vmem:[#allocation41_spill] sm:$0xff] %v9538_v32  ;;  %13891 = vst [vmem:[#allocation42_spill] sm:$0xff] %v9540_v34  ;;  %3200 = vadd.xlane.f32.xlu0 %v3072_v39  ;;  %3202 = vadd.xlane.f32.xlu1 %v3073_v12 }
 0x46f   :  { %v2317_v29 = vpop.f32.mrf.mxu0  ;;  %v2592_v18 = vpop.f32.mrf.mxu1 }
 0x470   :  { %v3130_v29 = vmul.f32 %v9481_v24, %v9481_v24  ;;  %v3131_v18 = vmul.f32 %v9489_v14, %v9489_v14 }
 0x471   :  { %v9542_v16 = vpop.f32.mrf.mxu0  ;;  %v9544_v38 = vpop.f32.mrf.mxu1 }
 0x472   :  { %13892 = vst [vmem:[#allocation43_spill] sm:$0xff] %v9542_v16  ;;  %13893 = vst [vmem:[#allocation44_spill] sm:$0xff] %v9544_v38  ;;  %2952 = vadd.xlane.f32.xlu0 %v9467_v33  ;;  %2954 = vadd.xlane.f32.xlu1 %v9475_v19 }
 0x473   :  { %v2597_v63 = vpop.f32.mrf.mxu1  ;;  %v2322_v45 = vpop.f32.mrf.mxu0 }
 0x475   :  { %v9552_v9 = vpop.f32.mrf.mxu1  ;;  %v9554_v52 = vpop.f32.mrf.mxu0 }
 0x476   :  { %13894 = vst [vmem:[#allocation45_spill] sm:$0xff] %v9552_v9  ;;  %13895 = vst [vmem:[#allocation46_spill] sm:$0xff] %v9554_v52  ;;  %3312 = vadd.xlane.f32.xlu0 %v3128_v51  ;;  %3314 = vadd.xlane.f32.xlu1 %v3129_v10 }
 0x477   :  { %v2327_v50 = vpop.f32.mrf.mxu0  ;;  %v2602_v61 = vpop.f32.mrf.mxu1 }
 0x479   :  { %v9556_v56 = vpop.f32.mrf.mxu0  ;;  %v9558_v30 = vpop.f32.mrf.mxu1 }
 0x47a   :  { %13896 = vst [vmem:[#allocation47_spill] sm:$0xff] %v9556_v56  ;;  %13897 = vst [vmem:[#allocation48_spill] sm:$0xff] %v9558_v30  ;;  %2844 = vadd.xlane.f32.xlu0 %v9477_v11  ;;  %2846 = vadd.xlane.f32.xlu1 %v9479_v25  ;;  %v3079_v25 = vmul.f32 %v9514_v48, %v9514_v48 }
 0x47b   :  { %v2607_v23 = vpop.f32.mrf.mxu1  ;;  %v2332_v31 = vpop.f32.mrf.mxu0 }
 0x47d   :  { %v9566_v4 = vpop.f32.mrf.mxu1  ;;  %v9568_v3 = vpop.f32.mrf.mxu0 }
 0x47e   :  { %13898 = vst [vmem:[#allocation49_spill] sm:$0xff] %v9566_v4  ;;  %13899 = vst [vmem:[#allocation50_spill] sm:$0xff] %v9568_v3  ;;  %3204 = vadd.xlane.f32.xlu0 %v3074_v20  ;;  %3206 = vadd.xlane.f32.xlu1 %v3075_v15  ;;  %v3076_v20 = vmul.f32 %v9491_v42, %v9491_v42  ;;  %v3077_v15 = vmul.f32 %v9493_v57, %v9493_v57 }
 0x47f   :  { %v2337_v13 = vpop.f32.mrf.mxu0  ;;  %v2612_v54 = vpop.f32.mrf.mxu1  ;;  %v3141_v36 = vmul.f32 %v9566_v4, %v9566_v4 }
 0x481   :  { %v9570_v6 = vpop.f32.mrf.mxu0  ;;  %v9572_v49 = vpop.f32.mrf.mxu1 }
 0x482   :  { %13900 = vst [vmem:[#allocation51_spill] sm:$0xff] %v9570_v6  ;;  %13901 = vst [vmem:[#allocation52_spill] sm:$0xff] %v9572_v49  ;;  %2956 = vadd.xlane.f32.xlu0 %v9481_v24  ;;  %2958 = vadd.xlane.f32.xlu1 %v9489_v14 }
 0x483   :  { %v2617_v39 = vpop.f32.mrf.mxu1  ;;  %v2342_v12 = vpop.f32.mrf.mxu0 }
 0x485   :  { %v9580_v63 = vpop.f32.mrf.mxu1  ;;  %v9582_v45 = vpop.f32.mrf.mxu0 }
 0x486   :  { %13902 = vst [vmem:[#allocation53_spill] sm:$0xff] %v9580_v63  ;;  %13903 = vst [vmem:[#allocation54_spill] sm:$0xff] %v9582_v45  ;;  %3316 = vadd.xlane.f32.xlu0 %v3130_v29  ;;  %3318 = vadd.xlane.f32.xlu1 %v3131_v18 }
 0x487   :  { %v2347_v51 = vpop.f32.mrf.mxu0  ;;  %v2622_v10 = vpop.f32.mrf.mxu1 }
 0x489   :  { %v9584_v50 = vpop.f32.mrf.mxu0  ;;  %v9586_v61 = vpop.f32.mrf.mxu1 }
 0x48a   :  { %13904 = vst [vmem:[#allocation55_spill] sm:$0xff] %v9584_v50  ;;  %13905 = vst [vmem:[#allocation56_spill] sm:$0xff] %v9586_v61  ;;  %2848 = vadd.xlane.f32.xlu0 %v9491_v42  ;;  %2850 = vadd.xlane.f32.xlu1 %v9493_v57 }
 0x48b   :  { %v2627_v23 = vpop.f32.mrf.mxu1  ;;  %v2352_v31 = vpop.f32.mrf.mxu0 }
 0x48c   :  { %v3132_v23 = vmul.f32 %v9495_v41, %v9495_v41  ;;  %v3133_v31 = vmul.f32 %v9503_v62, %v9503_v62 }
 0x48d   :  { %v9594_v13 = vpop.f32.mrf.mxu1  ;;  %v9596_v54 = vpop.f32.mrf.mxu0 }
 0x48e   :  { %13906 = vst [vmem:[#allocation57_spill] sm:$0xff] %v9594_v13  ;;  %13907 = vst [vmem:[#allocation58_spill] sm:$0xff] %v9596_v54  ;;  %3208 = vadd.xlane.f32.xlu0 %v3076_v20  ;;  %3210 = vadd.xlane.f32.xlu1 %v3077_v15 }
 0x48f   :  { %v2357_v39 = vpop.f32.mrf.mxu0  ;;  %v2632_v12 = vpop.f32.mrf.mxu1 }
 0x491   :  { %v9598_v29 = vpop.f32.mrf.mxu0  ;;  %v9600_v18 = vpop.f32.mrf.mxu1 }
 0x492   :  { %13908 = vst [vmem:[#allocation59_spill] sm:$0xff] %v9598_v29  ;;  %13909 = vst [vmem:[#allocation60_spill] sm:$0xff] %v9600_v18  ;;  %2960 = vadd.xlane.f32.xlu0 %v9495_v41  ;;  %2962 = vadd.xlane.f32.xlu1 %v9503_v62  ;;  %v3078_v62 = vmul.f32 %v9505_v55, %v9505_v55 }
 0x493   :  { %v2637_v51 = vpop.f32.mrf.mxu1  ;;  %v2362_v10 = vpop.f32.mrf.mxu0 }
 0x495   :  { %v9608_v20 = vpop.f32.mrf.mxu1  ;;  %v9610_v15 = vpop.f32.mrf.mxu0 }
 0x496   :  { %13910 = vst [vmem:[#allocation61_spill] sm:$0xff] %v9608_v20  ;;  %13911 = vst [vmem:[#allocation62_spill] sm:$0xff] %v9610_v15  ;;  %3320 = vadd.xlane.f32.xlu0 %v3132_v23  ;;  %3322 = vadd.xlane.f32.xlu1 %v3133_v31 }
 0x497   :  { %v2367_v39 = vpop.f32.mrf.mxu0  ;;  %v2642_v12 = vpop.f32.mrf.mxu1 }
 0x498   :  { %v1643_v39 = vld [vmem:[%s13681_s3 + $0x2a8] sm:$0xff] }
 0x499   :  { %v9612_v57 = vpop.f32.mrf.mxu0  ;;  %v9614_v14 = vpop.f32.mrf.mxu1  ;;  %6863 = vmatprep.mubr.msk.f32.mxu0 %vm1798_vm1, %v1643_v39  ;;  %v3135_v39 = vmul.f32 %v9524_v0, %v9524_v0 }
 0x49a   :  { %13912 = vst [vmem:[#allocation63_spill] sm:$0xff] %v9612_v57  ;;  %13913 = vst [vmem:[#allocation64_spill] sm:$0xff] %v9614_v14  ;;  %2852 = vadd.xlane.f32.xlu0 %v9505_v55  ;;  %2854 = vadd.xlane.f32.xlu1 %v9514_v48 }
 0x49b   :  { %v2647_v51 = vpop.f32.mrf.mxu1  ;;  %v2372_v10 = vpop.f32.mrf.mxu0 }
 0x49c   :  { %v1642_v51 = vld [vmem:[%s13681_s3 + $0x2a0] sm:$0xff] }
 0x49d   :  { %v9622_v23 = vpop.f32.mrf.mxu1  ;;  %v9624_v31 = vpop.f32.mrf.mxu0  ;;  %2434 = vmatmul.mubr.f32.gmra.mxu0 %v1642_v51 }
 0x49e   :  { %13914 = vst [vmem:[#allocation65_spill] sm:$0xff] %v9622_v23  ;;  %13915 = vst [vmem:[#allocation66_spill] sm:$0xff] %v9624_v31  ;;  %3212 = vadd.xlane.f32.xlu0 %v3078_v62  ;;  %3214 = vadd.xlane.f32.xlu1 %v3079_v25 }
 0x49f   :  { %v2377_v12 = vpop.f32.mrf.mxu0  ;;  %v2652_v19 = vpop.f32.mrf.mxu1 }
 0x4a0   :  { %v3134_v19 = vmul.f32 %v9516_v8, %v9516_v8 }
 0x4a1   :  { %v9633_v10 = vpop.f32.mrf.mxu0  ;;  %v9635_v48 = vpop.f32.mrf.mxu1 }
 0x4a2   :  { %13916 = vst [vmem:[#allocation67_spill] sm:$0xff] %v9633_v10  ;;  %13917 = vst [vmem:[#allocation68_spill] sm:$0xff] %v9635_v48  ;;  %2964 = vadd.xlane.f32.xlu0 %v9516_v8  ;;  %2966 = vadd.xlane.f32.xlu1 %v9524_v0  ;;  %v3081_v0 = vmul.f32 %v9528_v27, %v9528_v27 }
 0x4a3   :  { %v2657_v25 = vpop.f32.mrf.mxu1  ;;  %v2382_v62 = vpop.f32.mrf.mxu0 }
 0x4a4   :  { %v3080_v62 = vmul.f32 %v9526_v22, %v9526_v22 }
 0x4a5   :  { %v9643_v12 = vpop.f32.mrf.mxu1  ;;  %v9645_v55 = vpop.f32.mrf.mxu0 }
 0x4a6   :  { %13918 = vst [vmem:[#allocation69_spill] sm:$0xff] %v9643_v12  ;;  %13919 = vst [vmem:[#allocation70_spill] sm:$0xff] %v9645_v55  ;;  %3324 = vadd.xlane.f32.xlu0 %v3134_v19  ;;  %3326 = vadd.xlane.f32.xlu1 %v3135_v39 }
 0x4a7   :  { %v2387_v51 = vpop.f32.mrf.mxu0  ;;  %v2662_v41 = vpop.f32.mrf.mxu1 }
 0x4a9   :  { %v9647_v53 = vpop.f32.mrf.mxu0  ;;  %v9655_v8 = vpop.f32.mrf.mxu1 }
 0x4aa   :  { %13920 = vst [vmem:[#allocation71_spill] sm:$0xff] %v9647_v53  ;;  %2856 = vadd.xlane.f32.xlu0 %v9526_v22  ;;  %2858 = vadd.xlane.f32.xlu1 %v9528_v27  ;;  %13921 = vst [vmem:[#allocation72_spill] sm:$0xff] %v9655_v8 }
 0x4ab   :  { %v2392_v25 = vpop.f32.mrf.mxu0  ;;  %v2667_v19 = vpop.f32.mrf.mxu1 }
 0x4ad   :  { %v9661_v21 = vpop.f32.mrf.mxu1  ;;  %v9673_v17 = vpop.f32.mrf.mxu0 }
 0x4ae   :  { %3216 = vadd.xlane.f32.xlu0 %v3080_v62  ;;  %3218 = vadd.xlane.f32.xlu1 %v3081_v0  ;;  %13922 = vst [vmem:[#allocation73_spill] sm:$0xff] %v9661_v21  ;;  %v3136_v0 = vmul.f32 %v9530_v1, %v9530_v1  ;;  %13923 = vst [vmem:[#allocation74_spill] sm:$0xff] %v9673_v17 }
 0x4af   :  { %v2935_v39 = vpop.xlane.xlu1 %2934  ;;  %v2825_v41 = vpop.xlane.xlu0 %2824 }
 0x4b0   :  { %v9657_v51 = vmul.f32 0.020408163, %v2935_v39  ;;  %v9659_v42 = vmul.f32 0.020408163, %v2825_v41  ;;  %v2672_v27 = vpop.f32.mrf.mxu1  ;;  %v3137_v41 = vmul.f32 %v9538_v32, %v9538_v32 }
 0x4b1   :  { %v2397_v27 = vpop.f32.mrf.mxu0 }
 0x4b2   :  { %2968 = vadd.xlane.f32.xlu0 %v9530_v1  ;;  %2970 = vadd.xlane.f32.xlu1 %v9538_v32  ;;  %v3664_v25 = vmul.f32 %v9659_v42, %v9659_v42  ;;  %v3719_v39 = vmul.f32 %v9657_v51, %v9657_v51 }
 0x4b3   :  { %v3295_v62 = vpop.xlane.xlu1 %3294  ;;  %v3185_v19 = vpop.xlane.xlu0 %3184 }
 0x4b4   :  { %v3599_v22 = vmul.f32 0.020408163, %v3295_v62  ;;  %v3544_v24 = vmul.f32 0.020408163, %v3185_v19  ;;  %v9679_v58 = vpop.f32.mrf.mxu0 }
 0x4b5   :  { %13924 = vst [vmem:[#allocation75_spill] sm:$0xff] %v9679_v58 }
 0x4b6   :  { %v3839_v11 = vsub.f32 %v3599_v22, %v3719_v39  ;;  %3328 = vadd.xlane.f32.xlu0 %v3136_v0  ;;  %3330 = vadd.xlane.f32.xlu1 %v3137_v41  ;;  %v3784_v35 = vsub.f32 %v3544_v24, %v3664_v25  ;;  %v2402_v22 = vpop.f32.mrf.mxu0  ;;  %v9691_v0 = vpop.f32.mrf.mxu1 }
 0x4b7   :  { %v2827_v33 = vpop.xlane.xlu1 %2826  ;;  %v2937_v5 = vpop.xlane.xlu0 %2936  ;;  %13925 = vst [vmem:[#allocation76_spill] sm:$0xff] %v9691_v0 }
 0x4b8   :  { %v3959_v1 = vmax.f32 %v3839_v11, 0.0  ;;  %v3904_v47 = vmax.f32 %v3784_v35, 0.0  ;;  %v9675_v60 = vmul.f32 0.020408163, %v2827_v33  ;;  %v9677_v59 = vmul.f32 0.020408163, %v2937_v5  ;;  %v2677_v41 = vpop.f32.mrf.mxu1 }
 0x4b9   :  { %v3082_v11 = vmul.f32 %v9540_v34, %v9540_v34  ;;  %v3083_v35 = vmul.f32 %v9542_v16, %v9542_v16 }
 0x4ba   :  { %v4199_v32 = vadd.f32 1e-05, %v3959_v1  ;;  %v4144_v62 = vadd.f32 1e-05, %v3904_v47  ;;  %2860 = vadd.xlane.f32.xlu0 %v9540_v34  ;;  %2862 = vadd.xlane.f32.xlu1 %v9542_v16  ;;  %v3720_v24 = vmul.f32 %v9677_v59, %v9677_v59  ;;  %v3665_v47 = vmul.f32 %v9675_v60, %v9675_v60  ;;  %v9697_v44 = vpop.f32.mrf.mxu1 }
 0x4bb   :  { %v3187_v5 = vpop.xlane.xlu1 %3186  ;;  %v3297_v33 = vpop.xlane.xlu0 %3296  ;;  %13926 = vst [vmem:[#allocation77_spill] sm:$0xff] %v9697_v44 }
 0x4bc   :  { %7224 = vrsqrt.f32 %v4199_v32  ;;  %v3545_v1 = vmul.f32 0.020408163, %v3187_v5  ;;  %v3600_v25 = vmul.f32 0.020408163, %v3297_v33 }
 0x4bd   :  { %7226 = vrsqrt.f32 %v4144_v62 }
 0x4be   :  { %v3785_v19 = vsub.f32 %v3545_v1, %v3665_v47  ;;  %3220 = vadd.xlane.f32.xlu0 %v3082_v11  ;;  %3222 = vadd.xlane.f32.xlu1 %v3083_v35  ;;  %v3840_v39 = vsub.f32 %v3600_v25, %v3720_v24  ;;  %v2682_v24 = vpop.f32.mrf.mxu1  ;;  %v3138_v11 = vmul.f32 %v9544_v38, %v9544_v38 }
 0x4bf   :  { %v2939_v27 = vpop.xlane.xlu1 %2938  ;;  %v2829_v22 = vpop.xlane.xlu0 %2828  ;;  %v3139_v35 = vmul.f32 %v9552_v9, %v9552_v9 }
 0x4c0   :  { %v3905_v34 = vmax.f32 %v3785_v19, 0.0  ;;  %v3960_v16 = vmax.f32 %v3840_v39, 0.0  ;;  %v9693_v7 = vmul.f32 0.020408163, %v2939_v27  ;;  %v9695_v32 = vmul.f32 0.020408163, %v2829_v22  ;;  %v9709_v19 = vpop.f32.mrf.mxu0 }
 0x4c1   :  { %13927 = vst [vmem:[#allocation78_spill] sm:$0xff] %v9709_v19 }
 0x4c2   :  { %v4145_v5 = vadd.f32 1e-05, %v3905_v34  ;;  %v4200_v33 = vadd.f32 1e-05, %v3960_v16  ;;  %2972 = vadd.xlane.f32.xlu0 %v9544_v38  ;;  %2974 = vadd.xlane.f32.xlu1 %v9552_v9  ;;  %v3666_v62 = vmul.f32 %v9695_v32, %v9695_v32  ;;  %v3721_v34 = vmul.f32 %v9693_v7, %v9693_v7  ;;  %v2407_v27 = vpop.f32.mrf.mxu0  ;;  %v4079_v9 = vld [vmem:[%s13682_s4 + $0x1b8] sm:$0xff] }
 0x4c3   :  { %v3299_v47 = vpop.xlane.xlu1 %3298  ;;  %v3189_v1 = vpop.xlane.xlu0 %3188  ;;  %v3085_v27 = vmul.f32 %v9556_v56, %v9556_v56 }
 0x4c4   :  { %7228 = vrsqrt.f32 %v4145_v5  ;;  %v3601_v16 = vmul.f32 0.020408163, %v3299_v47  ;;  %v3546_v25 = vmul.f32 0.020408163, %v3189_v1  ;;  %v9716_v47 = vpop.f32.mrf.mxu0 }
 0x4c5   :  { %7230 = vrsqrt.f32 %v4200_v33  ;;  %13929 = vst [vmem:[#allocation80_spill] sm:$0xff] %v9716_v47  ;;  %v4024_v33 = vld [vmem:[%s13682_s4] sm:$0xff] }
 0x4c6   :  { %v3841_v39 = vsub.f32 %v3601_v16, %v3721_v34  ;;  %3332 = vadd.xlane.f32.xlu0 %v3138_v11  ;;  %3334 = vadd.xlane.f32.xlu1 %v3139_v35  ;;  %v3786_v41 = vsub.f32 %v3546_v25, %v3666_v62  ;;  %v2412_v25 = vpop.f32.mrf.mxu0 }
 0x4c7   :  { %v3191_v22 = vpop.xlane.xlu1 %3190  ;;  %v2831_v24 = vpop.xlane.xlu0 %2830 }
 0x4c8   :  { %v3961_v5 = vmax.f32 %v3841_v39, 0.0  ;;  %v3906_v38 = vmax.f32 %v3786_v41, 0.0  ;;  %v9714_v37 = vmul.f32 0.020408163, %v2831_v24  ;;  %v9721_v35 = vmul.f32 0.020408163, %v3191_v22 }
 0x4c9   :  { %v7225_v11 = vpop.eup %7224  ;;  %v3084_v41 = vmul.f32 %v9554_v52, %v9554_v52 }
 0x4ca   :  { %13928 = vst [vmem:[#allocation79_spill] sm:$0xff] %v9714_v37  ;;  %13930 = vst [vmem:[#allocation81_spill] sm:$0xff] %v9721_v35  ;;  %v7227_v62 = vpop.eup %7226  ;;  %v4201_v1 = vadd.f32 1e-05, %v3961_v5  ;;  %v4146_v34 = vadd.f32 1e-05, %v3906_v38  ;;  %2864 = vadd.xlane.f32.xlu0 %v9554_v52  ;;  %2866 = vadd.xlane.f32.xlu1 %v9556_v56  ;;  %v9727_v16 = vmul.f32 %v9714_v37, %v9714_v37 }
 0x4cb   :  { %v9729_v39 = vmul.f32 %v7225_v11, %v4079_v9  ;;  %v2943_v22 = vpop.xlane.xlu1 %2942  ;;  %v2941_v24 = vpop.xlane.xlu0 %2940  ;;  %v9735_v38 = vmul.f32 %v7227_v62, %v4024_v33  ;;  %v1645_v11 = vld [vmem:[%s13681_s3 + $0x2b8] sm:$0xff] }
 0x4cc   :  { %13931 = vst [vmem:[#allocation82_spill] sm:$0xff] %v9727_v16  ;;  %7232 = vrsqrt.f32 %v4201_v1  ;;  %v9739_v28 = vmul.f32 0.020408163, %v2943_v22  ;;  %v9741_v26 = vmul.f32 0.020408163, %v2941_v24  ;;  %v9743_v9 = vpop.f32.mrf.mxu1  ;;  %v1644_v1 = vld [vmem:[%s13681_s3 + $0x2b0] sm:$0xff]  ;;  %6864 = vmatprep.mubr.msk.f32.mxu0 %vm1798_vm1, %v1645_v11 }
 0x4cd   :  { %13933 = vst [vmem:[#allocation84_spill] sm:$0xff] %v9743_v9  ;;  %7234 = vrsqrt.f32 %v4146_v34  ;;  %v9750_v25 = vmul.f32 %v9729_v39, %v9657_v51  ;;  %v9754_v33 = vmul.f32 %v9735_v38, %v9659_v42  ;;  %v4025_v51 = vld [vmem:[%s13682_s4 + $0x8] sm:$0xff]  ;;  %2439 = vmatmul.mubr.f32.gmra.mxu0 %v1644_v1  ;;  %v4080_v11 = vld [vmem:[%s13682_s4 + $0x1c0] sm:$0xff]  ;;  %v3140_v1 = vmul.f32 %v9558_v30, %v9558_v30 }
 0x4ce   :  { %13932 = vst [vmem:[#allocation83_spill] sm:$0xff] %v9739_v28  ;;  %3224 = vadd.xlane.f32.xlu0 %v3084_v41  ;;  %3226 = vadd.xlane.f32.xlu1 %v3085_v27  ;;  %v2687_v62 = vpop.f32.mrf.mxu1  ;;  %v9765_v24 = vmul.f32 %v9739_v28, %v9739_v28  ;;  %v3722_v42 = vmul.f32 %v9741_v26, %v9741_v26 }
 0x4cf   :  { %v3303_v34 = vpop.xlane.xlu1 %3302  ;;  %v3301_v22 = vpop.xlane.xlu0 %3300 }
 0x4d0   :  { %13934 = vst [vmem:[#allocation85_spill] sm:$0xff] %v9765_v24  ;;  %v9769_v41 = vmul.f32 0.020408163, %v3303_v34  ;;  %v3602_v27 = vmul.f32 0.020408163, %v3301_v22  ;;  %v9771_v62 = vpop.f32.mrf.mxu1  ;;  %v9792_v24 = vpop.f32.mrf.mxu0 }
 0x4d1   :  { %13936 = vst [vmem:[#allocation87_spill] sm:$0xff] %v9771_v62  ;;  %v7229_v5 = vpop.eup %7228  ;;  %13938 = vst [vmem:[#allocation89_spill] sm:$0xff] %v9792_v24 }
 0x4d2   :  { %13935 = vst [vmem:[#allocation86_spill] sm:$0xff] %v9769_v41  ;;  %v7231_v56 = vpop.eup %7230  ;;  %2976 = vadd.xlane.f32.xlu0 %v9558_v30  ;;  %2978 = vadd.xlane.f32.xlu1 %v9566_v4  ;;  %v3842_v2 = vsub.f32 %v3602_v27, %v3722_v42  ;;  %v2692_v34 = vpop.f32.mrf.mxu1  ;;  %v9780_v40 = vmul.f32 %v7229_v5, %v4025_v51 }
 0x4d3   :  { %v2835_v22 = vpop.xlane.xlu1 %2834  ;;  %v2833_v46 = vpop.xlane.xlu0 %2832  ;;  %v9784_v43 = vmul.f32 %v7231_v56, %v4080_v11  ;;  %v4081_v11 = vld [vmem:[%s13682_s4 + $0x1c8] sm:$0xff]  ;;  %v1754_v34 = vld [vmem:[%s13681_s3 + $0x620] sm:$0xff] }
 0x4d4   :  { %v3962_v28 = vmax.f32 %v3842_v2, 0.0  ;;  %v9788_v52 = vmul.f32 0.020408163, %v2835_v22  ;;  %v9790_v37 = vmul.f32 0.020408163, %v2833_v46  ;;  %v9796_v5 = vmul.f32 %v9780_v40, %v9675_v60  ;;  %v2417_v42 = vpop.f32.mrf.mxu0  ;;  %v1755_v46 = vld [vmem:[%s13681_s3 + $0x628] sm:$0xff] }
 0x4d5   :  { %v9800_v51 = vmul.f32 %v9784_v43, %v9677_v59  ;;  %6919 = vmatprep.mubr.msk.f32.mxu1 %vm1798_vm1, %v1755_v46  ;;  %v4026_v22 = vld [vmem:[%s13682_s4 + $0x10] sm:$0xff] }
 0x4d6   :  { %13937 = vst [vmem:[#allocation88_spill] sm:$0xff] %v9788_v52  ;;  %v4202_v56 = vadd.f32 1e-05, %v3962_v28  ;;  %3336 = vadd.xlane.f32.xlu0 %v3140_v1  ;;  %3338 = vadd.xlane.f32.xlu1 %v3141_v36  ;;  %v9810_v60 = vmul.f32 %v9788_v52, %v9788_v52  ;;  %v3668_v28 = vmul.f32 %v9790_v37, %v9790_v37  ;;  %v9820_v1 = vpop.f32.mrf.mxu0 }
 0x4d7   :  { %v3195_v27 = vpop.xlane.xlu1 %3194  ;;  %v3193_v2 = vpop.xlane.xlu0 %3192  ;;  %13941 = vst [vmem:[#allocation92_spill] sm:$0xff] %v9820_v1  ;;  %2714 = vmatmul.mubr.f32.gmra.mxu1 %v1754_v34  ;;  %v3086_v52 = vmul.f32 %v9568_v3, %v9568_v3 }
 0x4d8   :  { %13939 = vst [vmem:[#allocation90_spill] sm:$0xff] %v9810_v60  ;;  %v9814_v59 = vmul.f32 0.020408163, %v3195_v27  ;;  %v3548_v36 = vmul.f32 0.020408163, %v3193_v2  ;;  %7236 = vrsqrt.f32 %v4202_v56  ;;  %v2422_v46 = vpop.f32.mrf.mxu0  ;;  %v3087_v56 = vmul.f32 %v9570_v6, %v9570_v6 }
 0x4d9   :  { %v7233_v42 = vpop.eup %7232 }
 0x4da   :  { %13940 = vst [vmem:[#allocation91_spill] sm:$0xff] %v9814_v59  ;;  %v7235_v4 = vpop.eup %7234  ;;  %2868 = vadd.xlane.f32.xlu0 %v9568_v3  ;;  %2870 = vadd.xlane.f32.xlu1 %v9570_v6  ;;  %v3788_v2 = vsub.f32 %v3548_v36, %v3668_v28  ;;  %v9829_v30 = vmul.f32 %v7233_v42, %v4081_v11  ;;  %v9841_v59 = vpop.f32.mrf.mxu1 }
 0x4db   :  { %v2947_v41 = vpop.xlane.xlu1 %2946  ;;  %v2945_v16 = vpop.xlane.xlu0 %2944  ;;  %v9833_v35 = vmul.f32 %v7235_v4, %v4026_v22  ;;  %13943 = vst [vmem:[#allocation94_spill] sm:$0xff] %v9841_v59 }
 0x4dc   :  { %v3908_v34 = vmax.f32 %v3788_v2, 0.0  ;;  %v9837_v27 = vmul.f32 0.020408163, %v2947_v41  ;;  %v9839_v60 = vmul.f32 0.020408163, %v2945_v16  ;;  %v9849_v28 = vmul.f32 %v9829_v30, %v9693_v7  ;;  %v2697_v36 = vpop.f32.mrf.mxu1  ;;  %v9873_v7 = vpop.f32.mrf.mxu0 }
 0x4dd   :  { %v9845_v11 = vmul.f32 %v9833_v35, %v9695_v32  ;;  %13949 = vst [vmem:[#allocation100_spill] sm:$0xff] %v9873_v7 }
 0x4de   :  { %13942 = vst [vmem:[#allocation93_spill] sm:$0xff] %v9837_v27  ;;  %13944 = vst [vmem:[#allocation95_spill] sm:$0xff] %v9849_v28  ;;  %v4148_v4 = vadd.f32 1e-05, %v3908_v34  ;;  %3228 = vadd.xlane.f32.xlu0 %v3086_v52  ;;  %3230 = vadd.xlane.f32.xlu1 %v3087_v56  ;;  %v9853_v16 = vmul.f32 %v9837_v27, %v9837_v27  ;;  %v3724_v41 = vmul.f32 %v9839_v60, %v9839_v60  ;;  %v9859_v46 = vpop.f32.mrf.mxu1 }
 0x4df   :  { %v3307_v22 = vpop.xlane.xlu1 %3306  ;;  %v3305_v42 = vpop.xlane.xlu0 %3304  ;;  %13947 = vst [vmem:[#allocation98_spill] sm:$0xff] %v9859_v46  ;;  %v3142_v34 = vmul.f32 %v9572_v49, %v9572_v49 }
 0x4e0   :  { %13945 = vst [vmem:[#allocation96_spill] sm:$0xff] %v9853_v16  ;;  %v9857_v2 = vmul.f32 0.020408163, %v3307_v22  ;;  %v3604_v32 = vmul.f32 0.020408163, %v3305_v42  ;;  %7238 = vrsqrt.f32 %v4148_v4  ;;  %v2702_v56 = vpop.f32.mrf.mxu1  ;;  %v3143_v22 = vmul.f32 %v9580_v63, %v9580_v63 }
 0x4e2   :  { %13946 = vst [vmem:[#allocation97_spill] sm:$0xff] %v9857_v2  ;;  %2980 = vadd.xlane.f32.xlu0 %v9572_v49  ;;  %2982 = vadd.xlane.f32.xlu1 %v9580_v63  ;;  %v3844_v52 = vsub.f32 %v3604_v32, %v3724_v41  ;;  %v4082_v41 = vld [vmem:[%s13682_s4 + $0x1d0] sm:$0xff]  ;;  %v2427_v49 = vpop.f32.mrf.mxu0 }
 0x4e3   :  { %v2839_v36 = vpop.xlane.xlu1 %2838  ;;  %v2837_v6 = vpop.xlane.xlu0 %2836 }
 0x4e4   :  { %v3964_v42 = vmax.f32 %v3844_v52, 0.0  ;;  %v9869_v3 = vmul.f32 0.020408163, %v2839_v36  ;;  %v9871_v4 = vmul.f32 0.020408163, %v2837_v6  ;;  %v9888_v28 = vpop.f32.mrf.mxu0 }
 0x4e5   :  { %v7237_v32 = vpop.eup %7236  ;;  %13952 = vst [vmem:[#allocation103_spill] sm:$0xff] %v9888_v28 }
 0x4e6   :  { %13948 = vst [vmem:[#allocation99_spill] sm:$0xff] %v9869_v3  ;;  %v4204_v56 = vadd.f32 1e-05, %v3964_v42  ;;  %3340 = vadd.xlane.f32.xlu0 %v3142_v34  ;;  %3342 = vadd.xlane.f32.xlu1 %v3143_v22  ;;  %v9878_v2 = vmul.f32 %v7237_v32, %v4082_v41  ;;  %v9882_v52 = vmul.f32 %v9869_v3, %v9869_v3  ;;  %v2432_v42 = vpop.f32.mrf.mxu0  ;;  %v4028_v34 = vld [vmem:[%s13682_s4 + $0x20] sm:$0xff] }
 0x4e7   :  { %v3199_v27 = vpop.xlane.xlu1 %3198  ;;  %v3197_v16 = vpop.xlane.xlu0 %3196  ;;  %v3670_v6 = vmul.f32 %v9871_v4, %v9871_v4  ;;  %v3089_v32 = vmul.f32 %v9584_v50, %v9584_v50 }
 0x4e8   :  { %13950 = vst [vmem:[#allocation101_spill] sm:$0xff] %v9882_v52  ;;  %v9886_v36 = vmul.f32 0.020408163, %v3199_v27  ;;  %v3550_v63 = vmul.f32 0.020408163, %v3197_v16  ;;  %7240 = vrsqrt.f32 %v4204_v56  ;;  %v9892_v49 = vmul.f32 %v9878_v2, %v9741_v26 }
 0x4e9   :  { %v3088_v27 = vmul.f32 %v9582_v45, %v9582_v45 }
 0x4ea   :  { %13951 = vst [vmem:[#allocation102_spill] sm:$0xff] %v9886_v36  ;;  %2872 = vadd.xlane.f32.xlu0 %v9582_v45  ;;  %2874 = vadd.xlane.f32.xlu1 %v9584_v50  ;;  %v3790_v22 = vsub.f32 %v3550_v63, %v3670_v6 }
 0x4eb   :  { %v2951_v16 = vpop.xlane.xlu1 %2950  ;;  %v2949_v41 = vpop.xlane.xlu0 %2948 }
 0x4ec   :  { %v3910_v56 = vmax.f32 %v3790_v22, 0.0  ;;  %v9902_v26 = vmul.f32 0.020408163, %v2951_v16  ;;  %v9904_v3 = vmul.f32 0.020408163, %v2949_v41 }
 0x4ed   :  { %v7239_v52 = vpop.eup %7238 }
 0x4ee   :  { %13953 = vst [vmem:[#allocation104_spill] sm:$0xff] %v9902_v26  ;;  %v4150_v63 = vadd.f32 1e-05, %v3910_v56  ;;  %3232 = vadd.xlane.f32.xlu0 %v3088_v27  ;;  %3234 = vadd.xlane.f32.xlu1 %v3089_v32  ;;  %v9909_v45 = vmul.f32 %v7239_v52, %v4028_v34  ;;  %v9913_v50 = vmul.f32 %v9902_v26, %v9902_v26  ;;  %v9927_v34 = vpop.f32.mrf.mxu1 }
 0x4ef   :  { %v3311_v6 = vpop.xlane.xlu1 %3310  ;;  %v3309_v42 = vpop.xlane.xlu0 %3308  ;;  %v3726_v22 = vmul.f32 %v9904_v3, %v9904_v3  ;;  %13957 = vst [vmem:[#allocation108_spill] sm:$0xff] %v9927_v34  ;;  %v3144_v32 = vmul.f32 %v9586_v61, %v9586_v61 }
 0x4f0   :  { %13954 = vst [vmem:[#allocation105_spill] sm:$0xff] %v9913_v50  ;;  %v9917_v16 = vmul.f32 0.020408163, %v3311_v6  ;;  %v3606_v41 = vmul.f32 0.020408163, %v3309_v42  ;;  %7242 = vrsqrt.f32 %v4150_v63  ;;  %v9921_v56 = vmul.f32 %v9909_v45, %v9790_v37  ;;  %v2707_v27 = vpop.f32.mrf.mxu1 }
 0x4f1   :  { %v3145_v63 = vmul.f32 %v9594_v13, %v9594_v13 }
 0x4f2   :  { %13955 = vst [vmem:[#allocation106_spill] sm:$0xff] %v9917_v16  ;;  %13956 = vst [vmem:[#allocation107_spill] sm:$0xff] %v9921_v56  ;;  %2984 = vadd.xlane.f32.xlu0 %v9586_v61  ;;  %2986 = vadd.xlane.f32.xlu1 %v9594_v13  ;;  %v3846_v52 = vsub.f32 %v3606_v41, %v3726_v22  ;;  %v4084_v22 = vld [vmem:[%s13682_s4 + $0x1e0] sm:$0xff] }
 0x4f3   :  { %v2843_v6 = vpop.xlane.xlu1 %2842  ;;  %v2841_v42 = vpop.xlane.xlu0 %2840 }
 0x4f4   :  { %v3966_v37 = vmax.f32 %v3846_v52, 0.0  ;;  %v9933_v26 = vmul.f32 0.020408163, %v2843_v6  ;;  %v9935_v36 = vmul.f32 0.020408163, %v2841_v42 }
 0x4f5   :  { %v7241_v41 = vpop.eup %7240 }
 0x4f6   :  { %13958 = vst [vmem:[#allocation109_spill] sm:$0xff] %v9933_v26  ;;  %v4206_v50 = vadd.f32 1e-05, %v3966_v37  ;;  %3344 = vadd.xlane.f32.xlu0 %v3144_v32  ;;  %3346 = vadd.xlane.f32.xlu1 %v3145_v63  ;;  %v9940_v56 = vmul.f32 %v7241_v41, %v4084_v22  ;;  %v9944_v52 = vmul.f32 %v9933_v26, %v9933_v26  ;;  %v4030_v32 = vld [vmem:[%s13682_s4 + $0x30] sm:$0xff] }
 0x4f7   :  { %v3203_v61 = vpop.xlane.xlu1 %3202  ;;  %v3201_v16 = vpop.xlane.xlu0 %3200  ;;  %v3672_v6 = vmul.f32 %v9935_v36, %v9935_v36  ;;  %v3090_v22 = vmul.f32 %v9596_v54, %v9596_v54 }
 0x4f8   :  { %13959 = vst [vmem:[#allocation110_spill] sm:$0xff] %v9944_v52  ;;  %v9948_v27 = vmul.f32 0.020408163, %v3203_v61  ;;  %v3552_v42 = vmul.f32 0.020408163, %v3201_v16  ;;  %7244 = vrsqrt.f32 %v4206_v50  ;;  %v9952_v37 = vmul.f32 %v9940_v56, %v9839_v60 }
 0x4f9   :  { %v3091_v50 = vmul.f32 %v9598_v29, %v9598_v29 }
 0x4fa   :  { %13960 = vst [vmem:[#allocation111_spill] sm:$0xff] %v9948_v27  ;;  %2876 = vadd.xlane.f32.xlu0 %v9596_v54  ;;  %2878 = vadd.xlane.f32.xlu1 %v9598_v29  ;;  %v3792_v63 = vsub.f32 %v3552_v42, %v3672_v6 }
 0x4fb   :  { %v2955_v41 = vpop.xlane.xlu1 %2954  ;;  %v2953_v61 = vpop.xlane.xlu0 %2952 }
 0x4fc   :  { %v3912_v16 = vmax.f32 %v3792_v63, 0.0  ;;  %v9962_v13 = vmul.f32 0.020408163, %v2955_v41  ;;  %v9964_v60 = vmul.f32 0.020408163, %v2953_v61 }
 0x4fd   :  { %v7243_v26 = vpop.eup %7242 }
 0x4fe   :  { %13961 = vst [vmem:[#allocation112_spill] sm:$0xff] %v9962_v13  ;;  %v4152_v52 = vadd.f32 1e-05, %v3912_v16  ;;  %3236 = vadd.xlane.f32.xlu0 %v3090_v22  ;;  %3238 = vadd.xlane.f32.xlu1 %v3091_v50  ;;  %v9969_v54 = vmul.f32 %v7243_v26, %v4030_v32  ;;  %v9973_v29 = vmul.f32 %v9962_v13, %v9962_v13  ;;  %v4086_v22 = vld [vmem:[%s13682_s4 + $0x1f0] sm:$0xff] }
 0x4ff   :  { %v3315_v6 = vpop.xlane.xlu1 %3314  ;;  %v3313_v42 = vpop.xlane.xlu0 %3312  ;;  %v3728_v63 = vmul.f32 %v9964_v60, %v9964_v60  ;;  %v3146_v32 = vmul.f32 %v9600_v18, %v9600_v18 }
 0x500   :  { %13962 = vst [vmem:[#allocation113_spill] sm:$0xff] %v9973_v29  ;;  %v9977_v41 = vmul.f32 0.020408163, %v3315_v6  ;;  %v3608_v61 = vmul.f32 0.020408163, %v3313_v42  ;;  %7246 = vrsqrt.f32 %v4152_v52  ;;  %v9981_v16 = vmul.f32 %v9969_v54, %v9871_v4 }
 0x501   :  { %v3147_v52 = vmul.f32 %v9608_v20, %v9608_v20 }
 0x502   :  { %13963 = vst [vmem:[#allocation114_spill] sm:$0xff] %v9977_v41  ;;  %2988 = vadd.xlane.f32.xlu0 %v9600_v18  ;;  %2990 = vadd.xlane.f32.xlu1 %v9608_v20  ;;  %v3848_v26 = vsub.f32 %v3608_v61, %v3728_v63 }
 0x503   :  { %v2847_v50 = vpop.xlane.xlu1 %2846  ;;  %v2845_v6 = vpop.xlane.xlu0 %2844 }
 0x504   :  { %v3968_v42 = vmax.f32 %v3848_v26, 0.0  ;;  %v9991_v13 = vmul.f32 0.020408163, %v2847_v50  ;;  %v9993_v4 = vmul.f32 0.020408163, %v2845_v6 }
 0x505   :  { %v7245_v29 = vpop.eup %7244 }
 0x506   :  { %13964 = vst [vmem:[#allocation115_spill] sm:$0xff] %v9991_v13  ;;  %v4208_v41 = vadd.f32 1e-05, %v3968_v42  ;;  %3348 = vadd.xlane.f32.xlu0 %v3146_v32  ;;  %3350 = vadd.xlane.f32.xlu1 %v3147_v52  ;;  %v9998_v18 = vmul.f32 %v7245_v29, %v4086_v22  ;;  %v10002_v20 = vmul.f32 %v9991_v13, %v9991_v13  ;;  %v4032_v32 = vld [vmem:[%s13682_s4 + $0x40] sm:$0xff] }
 0x507   :  { %v3207_v63 = vpop.xlane.xlu1 %3206  ;;  %v3205_v61 = vpop.xlane.xlu0 %3204  ;;  %v3674_v26 = vmul.f32 %v9993_v4, %v9993_v4  ;;  %v3092_v22 = vmul.f32 %v9610_v15, %v9610_v15 }
 0x508   :  { %13965 = vst [vmem:[#allocation116_spill] sm:$0xff] %v10002_v20  ;;  %v10006_v50 = vmul.f32 0.020408163, %v3207_v63  ;;  %v3554_v6 = vmul.f32 0.020408163, %v3205_v61  ;;  %7248 = vrsqrt.f32 %v4208_v41  ;;  %v10010_v42 = vmul.f32 %v9998_v18, %v9904_v3 }
 0x509   :  { %v3093_v41 = vmul.f32 %v9612_v57, %v9612_v57 }
 0x50a   :  { %13966 = vst [vmem:[#allocation117_spill] sm:$0xff] %v10006_v50  ;;  %2880 = vadd.xlane.f32.xlu0 %v9610_v15  ;;  %2882 = vadd.xlane.f32.xlu1 %v9612_v57  ;;  %v3794_v29 = vsub.f32 %v3554_v6, %v3674_v26 }
 0x50b   :  { %v2959_v52 = vpop.xlane.xlu1 %2958  ;;  %v2957_v63 = vpop.xlane.xlu0 %2956 }
 0x50c   :  { %v3914_v61 = vmax.f32 %v3794_v29, 0.0  ;;  %v10020_v13 = vmul.f32 0.020408163, %v2959_v52  ;;  %v10022_v3 = vmul.f32 0.020408163, %v2957_v63 }
 0x50d   :  { %v7247_v20 = vpop.eup %7246 }
 0x50e   :  { %13967 = vst [vmem:[#allocation118_spill] sm:$0xff] %v10020_v13  ;;  %v4154_v50 = vadd.f32 1e-05, %v3914_v61  ;;  %3240 = vadd.xlane.f32.xlu0 %v3092_v22  ;;  %3242 = vadd.xlane.f32.xlu1 %v3093_v41  ;;  %v10027_v15 = vmul.f32 %v7247_v20, %v4032_v32  ;;  %v10031_v57 = vmul.f32 %v10020_v13, %v10020_v13  ;;  %v1647_v61 = vld [vmem:[%s13681_s3 + $0x2c8] sm:$0xff]  ;;  %v1646_v20 = vld [vmem:[%s13681_s3 + $0x2c0] sm:$0xff] }
 0x50f   :  { %v3319_v26 = vpop.xlane.xlu1 %3318  ;;  %v3317_v6 = vpop.xlane.xlu0 %3316  ;;  %v3730_v29 = vmul.f32 %v10022_v3, %v10022_v3  ;;  %6865 = vmatprep.mubr.msk.f32.mxu0 %vm1798_vm1, %v1647_v61  ;;  %v3149_v61 = vmul.f32 %v9622_v23, %v9622_v23  ;;  %v4088_v22 = vld [vmem:[%s13682_s4 + $0x200] sm:$0xff] }
 0x510   :  { %13968 = vst [vmem:[#allocation119_spill] sm:$0xff] %v10031_v57  ;;  %v10035_v52 = vmul.f32 0.020408163, %v3319_v26  ;;  %v3610_v63 = vmul.f32 0.020408163, %v3317_v6  ;;  %7250 = vrsqrt.f32 %v4154_v50  ;;  %v10046_v32 = vmul.f32 %v10027_v15, %v9935_v36  ;;  %2444 = vmatmul.mubr.f32.gmra.mxu0 %v1646_v20 }
 0x511   :  { %v3148_v50 = vmul.f32 %v9614_v14, %v9614_v14 }
 0x512   :  { %13969 = vst [vmem:[#allocation120_spill] sm:$0xff] %v10035_v52  ;;  %13970 = vst [vmem:[#allocation121_spill] sm:$0xff] %v10046_v32  ;;  %2992 = vadd.xlane.f32.xlu0 %v9614_v14  ;;  %2994 = vadd.xlane.f32.xlu1 %v9622_v23  ;;  %v3850_v41 = vsub.f32 %v3610_v63, %v3730_v29 }
 0x513   :  { %v2851_v26 = vpop.xlane.xlu1 %2850  ;;  %v2849_v6 = vpop.xlane.xlu0 %2848 }
 0x514   :  { %v3970_v13 = vmax.f32 %v3850_v41, 0.0  ;;  %v10056_v36 = vmul.f32 0.020408163, %v2851_v26  ;;  %v10058_v27 = vmul.f32 0.020408163, %v2849_v6 }
 0x515   :  { %v7249_v57 = vpop.eup %7248 }
 0x516   :  { %13971 = vst [vmem:[#allocation122_spill] sm:$0xff] %v10056_v36  ;;  %v4210_v29 = vadd.f32 1e-05, %v3970_v13  ;;  %3352 = vadd.xlane.f32.xlu0 %v3148_v50  ;;  %3354 = vadd.xlane.f32.xlu1 %v3149_v61  ;;  %v10063_v52 = vmul.f32 %v7249_v57, %v4088_v22  ;;  %v10067_v20 = vmul.f32 %v10056_v36, %v10056_v36  ;;  %v4034_v50 = vld [vmem:[%s13682_s4 + $0x50] sm:$0xff] }
 0x517   :  { %v3211_v63 = vpop.xlane.xlu1 %3210  ;;  %v3209_v14 = vpop.xlane.xlu0 %3208  ;;  %v3676_v41 = vmul.f32 %v10058_v27, %v10058_v27  ;;  %v3094_v22 = vmul.f32 %v9624_v31, %v9624_v31 }
 0x518   :  { %13972 = vst [vmem:[#allocation123_spill] sm:$0xff] %v10063_v52  ;;  %13973 = vst [vmem:[#allocation124_spill] sm:$0xff] %v10067_v20  ;;  %v10071_v26 = vmul.f32 0.020408163, %v3211_v63  ;;  %v3556_v6 = vmul.f32 0.020408163, %v3209_v14  ;;  %7252 = vrsqrt.f32 %v4210_v29  ;;  %v10075_v13 = vmul.f32 %v10063_v52, %v9964_v60 }
 0x519   :  { %v3095_v14 = vmul.f32 %v9633_v10, %v9633_v10 }
 0x51a   :  { %13974 = vst [vmem:[#allocation125_spill] sm:$0xff] %v10071_v26  ;;  %13975 = vst [vmem:[#allocation126_spill] sm:$0xff] %v10075_v13  ;;  %2884 = vadd.xlane.f32.xlu0 %v9624_v31  ;;  %2886 = vadd.xlane.f32.xlu1 %v9633_v10  ;;  %v3796_v57 = vsub.f32 %v3556_v6, %v3676_v41  ;;  %v10098_v26 = vpop.f32.mrf.mxu1 }
 0x51b   :  { %v2963_v61 = vpop.xlane.xlu1 %2962  ;;  %v2961_v63 = vpop.xlane.xlu0 %2960  ;;  %13977 = vst [vmem:[#allocation128_spill] sm:$0xff] %v10098_v26 }
 0x51c   :  { %v3916_v29 = vmax.f32 %v3796_v57, 0.0  ;;  %v10085_v23 = vmul.f32 0.020408163, %v2963_v61  ;;  %v10087_v60 = vmul.f32 0.020408163, %v2961_v63 }
 0x51d   :  { %v7251_v36 = vpop.eup %7250 }
 0x51e   :  { %v4156_v20 = vadd.f32 1e-05, %v3916_v29  ;;  %3244 = vadd.xlane.f32.xlu0 %v3094_v22  ;;  %3246 = vadd.xlane.f32.xlu1 %v3095_v14  ;;  %v10092_v31 = vmul.f32 %v7251_v36, %v4034_v50  ;;  %v3733_v10 = vmul.f32 %v10085_v23, %v10085_v23  ;;  %v3732_v57 = vmul.f32 %v10087_v60, %v10087_v60 }
 0x51f   :  { %v3323_v41 = vpop.xlane.xlu1 %3322  ;;  %v3321_v6 = vpop.xlane.xlu0 %3320  ;;  %v3150_v50 = vmul.f32 %v9635_v48, %v9635_v48  ;;  %v3151_v14 = vmul.f32 %v9643_v12, %v9643_v12 }
 0x520   :  { %13976 = vst [vmem:[#allocation127_spill] sm:$0xff] %v10092_v31  ;;  %v3613_v61 = vmul.f32 0.020408163, %v3323_v41  ;;  %v3612_v63 = vmul.f32 0.020408163, %v3321_v6  ;;  %7254 = vrsqrt.f32 %v4156_v20  ;;  %v10102_v29 = vmul.f32 %v10092_v31, %v9993_v4  ;;  %v4090_v6 = vld [vmem:[%s13682_s4 + $0x210] sm:$0xff]  ;;  %v2712_v31 = vpop.f32.mrf.mxu1 }
 0x522   :  { %13978 = vst [vmem:[#allocation129_spill] sm:$0xff] %v10102_v29  ;;  %v3853_v22 = vsub.f32 %v3613_v61, %v3733_v10  ;;  %2996 = vadd.xlane.f32.xlu0 %v9635_v48  ;;  %2998 = vadd.xlane.f32.xlu1 %v9643_v12  ;;  %v3852_v36 = vsub.f32 %v3612_v63, %v3732_v57 }
 0x523   :  { %v2855_v41 = vpop.xlane.xlu1 %2854  ;;  %v2853_v20 = vpop.xlane.xlu0 %2852 }
 0x524   :  { %v3973_v4 = vmax.f32 %v3853_v22, 0.0  ;;  %v3972_v29 = vmax.f32 %v3852_v36, 0.0  ;;  %v10113_v10 = vmul.f32 0.020408163, %v2855_v41  ;;  %v10115_v61 = vmul.f32 0.020408163, %v2853_v20 }
 0x525   :  { %v7253_v57 = vpop.eup %7252  ;;  %v3097_v20 = vmul.f32 %v9647_v53, %v9647_v53 }
 0x526   :  { %v4213_v63 = vadd.f32 1e-05, %v3973_v4  ;;  %v4212_v13 = vadd.f32 1e-05, %v3972_v29  ;;  %3356 = vadd.xlane.f32.xlu0 %v3150_v50  ;;  %3358 = vadd.xlane.f32.xlu1 %v3151_v14  ;;  %v3679_v12 = vmul.f32 %v10113_v10, %v10113_v10  ;;  %v10119_v32 = vmul.f32 %v7253_v57, %v4090_v6 }
 0x527   :  { %v3215_v48 = vpop.xlane.xlu1 %3214  ;;  %v3213_v52 = vpop.xlane.xlu0 %3212  ;;  %v3678_v22 = vmul.f32 %v10115_v61, %v10115_v61  ;;  %v3096_v14 = vmul.f32 %v9645_v55, %v9645_v55 }
 0x528   :  { %13979 = vst [vmem:[#allocation130_spill] sm:$0xff] %v10119_v32  ;;  %7256 = vrsqrt.f32 %v4213_v63  ;;  %v3559_v36 = vmul.f32 0.020408163, %v3215_v48  ;;  %v3558_v41 = vmul.f32 0.020408163, %v3213_v52  ;;  %v10125_v31 = vmul.f32 %v10119_v32, %v10022_v3  ;;  %v4036_v52 = vld [vmem:[%s13682_s4 + $0x60] sm:$0xff] }
 0x529   :  { %7258 = vrsqrt.f32 %v4212_v13 }
 0x52a   :  { %13980 = vst [vmem:[#allocation131_spill] sm:$0xff] %v10125_v31  ;;  %v3799_v29 = vsub.f32 %v3559_v36, %v3679_v12  ;;  %2888 = vadd.xlane.f32.xlu0 %v9645_v55  ;;  %2890 = vadd.xlane.f32.xlu1 %v9647_v53  ;;  %v3798_v50 = vsub.f32 %v3558_v41, %v3678_v22 }
 0x52b   :  { %v2967_v6 = vpop.xlane.xlu1 %2966  ;;  %v2965_v48 = vpop.xlane.xlu0 %2964 }
 0x52c   :  { %v3919_v3 = vmax.f32 %v3799_v29, 0.0  ;;  %v3918_v13 = vmax.f32 %v3798_v50, 0.0  ;;  %v10136_v12 = vmul.f32 0.020408163, %v2967_v6  ;;  %v10138_v4 = vmul.f32 0.020408163, %v2965_v48 }
 0x52d   :  { %v7255_v57 = vpop.eup %7254 }
 0x52e   :  { %v4159_v63 = vadd.f32 1e-05, %v3919_v3  ;;  %v4158_v22 = vadd.f32 1e-05, %v3918_v13  ;;  %3248 = vadd.xlane.f32.xlu0 %v3096_v14  ;;  %3250 = vadd.xlane.f32.xlu1 %v3097_v20  ;;  %v3735_v36 = vmul.f32 %v10136_v12, %v10136_v12  ;;  %v10142_v55 = vmul.f32 %v7255_v57, %v4036_v52 }
 0x52f   :  { %v3327_v41 = vpop.xlane.xlu1 %3326  ;;  %v3325_v53 = vpop.xlane.xlu0 %3324  ;;  %v3734_v29 = vmul.f32 %v10138_v4, %v10138_v4  ;;  %v3152_v52 = vmul.f32 %v9655_v8, %v9655_v8  ;;  %v3153_v3 = vmul.f32 %v9661_v21, %v9661_v21 }
 0x530   :  { %13981 = vst [vmem:[#allocation132_spill] sm:$0xff] %v10142_v55  ;;  %7260 = vrsqrt.f32 %v4159_v63  ;;  %v3615_v50 = vmul.f32 0.020408163, %v3327_v41  ;;  %v3614_v6 = vmul.f32 0.020408163, %v3325_v53  ;;  %v10148_v48 = vmul.f32 %v10142_v55, %v10058_v27  ;;  %v4092_v53 = vld [vmem:[%s13682_s4 + $0x220] sm:$0xff] }
 0x531   :  { %7262 = vrsqrt.f32 %v4158_v22  ;;  %v4093_v27 = vld [vmem:[%s13682_s4 + $0x228] sm:$0xff] }
 0x532   :  { %13982 = vst [vmem:[#allocation133_spill] sm:$0xff] %v10148_v48  ;;  %v3855_v14 = vsub.f32 %v3615_v50, %v3735_v36  ;;  %3000 = vadd.xlane.f32.xlu0 %v9655_v8  ;;  %3002 = vadd.xlane.f32.xlu1 %v9661_v21  ;;  %v3854_v20 = vsub.f32 %v3614_v6, %v3734_v29 }
 0x533   :  { %v2859_v13 = vpop.xlane.xlu1 %2858  ;;  %v2857_v57 = vpop.xlane.xlu0 %2856 }
 0x534   :  { %v3975_v63 = vmax.f32 %v3855_v14, 0.0  ;;  %v3974_v22 = vmax.f32 %v3854_v20, 0.0  ;;  %v10162_v36 = vmul.f32 0.020408163, %v2859_v13  ;;  %v10164_v41 = vmul.f32 0.020408163, %v2857_v57 }
 0x535   :  { %v7257_v29 = vpop.eup %7256 }
 0x536   :  { %v7259_v50 = vpop.eup %7258  ;;  %v4215_v6 = vadd.f32 1e-05, %v3975_v63  ;;  %v4214_v21 = vadd.f32 1e-05, %v3974_v22  ;;  %3360 = vadd.xlane.f32.xlu0 %v3152_v52  ;;  %3362 = vadd.xlane.f32.xlu1 %v3153_v3  ;;  %v3681_v8 = vmul.f32 %v10162_v36, %v10162_v36  ;;  %v10170_v32 = vmul.f32 %v7257_v29, %v4093_v27  ;;  %v1756_v22 = vld [vmem:[%s13681_s3 + $0x630] sm:$0xff] }
 0x537   :  { %v3219_v48 = vpop.xlane.xlu1 %3218  ;;  %v3217_v55 = vpop.xlane.xlu0 %3216  ;;  %v10168_v31 = vmul.f32 %v7259_v50, %v4092_v53  ;;  %v3680_v14 = vmul.f32 %v10164_v41, %v10164_v41 }
 0x538   :  { %7264 = vrsqrt.f32 %v4215_v6  ;;  %v3561_v20 = vmul.f32 0.020408163, %v3219_v48  ;;  %v3560_v13 = vmul.f32 0.020408163, %v3217_v55  ;;  %v10180_v3 = vmul.f32 %v10170_v32, %v10085_v23  ;;  %v1757_v48 = vld [vmem:[%s13681_s3 + $0x638] sm:$0xff] }
 0x539   :  { %7266 = vrsqrt.f32 %v4214_v21  ;;  %v10176_v52 = vmul.f32 %v10168_v31, %v10087_v60  ;;  %v3098_v21 = vmul.f32 %v9673_v17, %v9673_v17  ;;  %v3099_v60 = vmul.f32 %v9679_v58, %v9679_v58  ;;  %6920 = vmatprep.mubr.msk.f32.mxu1 %vm1798_vm1, %v1757_v48  ;;  %v4039_v23 = vld [vmem:[%s13682_s4 + $0x78] sm:$0xff] }
 0x53a   :  { %v3801_v57 = vsub.f32 %v3561_v20, %v3681_v8  ;;  %2892 = vadd.xlane.f32.xlu0 %v9673_v17  ;;  %2894 = vadd.xlane.f32.xlu1 %v9679_v58  ;;  %v3800_v53 = vsub.f32 %v3560_v13, %v3680_v14  ;;  %v4038_v8 = vld [vmem:[%s13682_s4 + $0x70] sm:$0xff]  ;;  %v3155_v48 = vmul.f32 %v9697_v44, %v9697_v44 }
 0x53b   :  { %2719 = vmatmul.mubr.f32.gmra.mxu1 %v1756_v22  ;;  %v3101_v22 = vmul.f32 %v9716_v47, %v9716_v47 }
 0x53c   :  { %v3921_v55 = vmax.f32 %v3801_v57, 0.0  ;;  %v3920_v27 = vmax.f32 %v3800_v53, 0.0  ;;  %v3154_v53 = vmul.f32 %v9691_v0, %v9691_v0 }
 0x53d   :  { %v7261_v63 = vpop.eup %7260 }
 0x53e   :  { %v7263_v29 = vpop.eup %7262  ;;  %v4161_v50 = vadd.f32 1e-05, %v3921_v55  ;;  %v4160_v6 = vadd.f32 1e-05, %v3920_v27  ;;  %3252 = vadd.xlane.f32.xlu0 %v3098_v21  ;;  %3254 = vadd.xlane.f32.xlu1 %v3099_v60  ;;  %v10203_v20 = vmul.f32 %v7261_v63, %v4039_v23  ;;  %v4094_v21 = vld [vmem:[%s13682_s4 + $0x230] sm:$0xff]  ;;  %v3100_v63 = vmul.f32 %v9709_v19, %v9709_v19 }
 0x53f   :  { %v10201_v14 = vmul.f32 %v7263_v29, %v4038_v8  ;;  %v4040_v29 = vld [vmem:[%s13682_s4 + $0x80] sm:$0xff] }
 0x540   :  { %7268 = vrsqrt.f32 %v4161_v50  ;;  %v10211_v57 = vmul.f32 %v10203_v20, %v10113_v10 }
 0x541   :  { %7270 = vrsqrt.f32 %v4160_v6  ;;  %v10207_v13 = vmul.f32 %v10201_v14, %v10115_v61  ;;  %v4095_v61 = vld [vmem:[%s13682_s4 + $0x238] sm:$0xff] }
 0x542   :  { %3004 = vadd.xlane.f32.xlu0 %v9691_v0  ;;  %3006 = vadd.xlane.f32.xlu1 %v9697_v44  ;;  %v1762_v44 = vld [vmem:[%s13681_s3 + $0x660] sm:$0xff] }
 0x545   :  { %v7265_v10 = vpop.eup %7264 }
 0x546   :  { %v7267_v55 = vpop.eup %7266  ;;  %3364 = vadd.xlane.f32.xlu0 %v3154_v53  ;;  %3366 = vadd.xlane.f32.xlu1 %v3155_v48  ;;  %v10227_v27 = vmul.f32 %v7265_v10, %v4095_v61  ;;  %v3156_v61 = vmul.f32 %v9743_v9, %v9743_v9  ;;  %v3157_v10 = vmul.f32 %v9771_v62, %v9771_v62 }
 0x547   :  { %v10225_v60 = vmul.f32 %v7267_v55, %v4094_v21 }
 0x548   :  { %v10235_v23 = vmul.f32 %v10227_v27, %v10136_v12 }
 0x549   :  { %v10231_v8 = vmul.f32 %v10225_v60, %v10138_v4  ;;  %v4041_v4 = vld [vmem:[%s13682_s4 + $0x88] sm:$0xff] }
 0x54a   :  { %2896 = vadd.xlane.f32.xlu0 %v9709_v19  ;;  %2898 = vadd.xlane.f32.xlu1 %v9716_v47  ;;  %v13999_v19 = vld [vmem:[#allocation85_spill] sm:$0xff] }
 0x54d   :  { %v7269_v12 = vpop.eup %7268 }
 0x54e   :  { %v7271_v50 = vpop.eup %7270  ;;  %3256 = vadd.xlane.f32.xlu0 %v3100_v63  ;;  %3258 = vadd.xlane.f32.xlu1 %v3101_v22  ;;  %v10251_v53 = vmul.f32 %v7269_v12, %v4041_v4  ;;  %v3158_v22 = vmul.f32 %v9841_v59, %v9841_v59  ;;  %v3104_v4 = vmul.f32 %v9873_v7, %v9873_v7 }
 0x54f   :  { %v10249_v6 = vmul.f32 %v7271_v50, %v4040_v29  ;;  %v3159_v29 = vmul.f32 %v9859_v46, %v9859_v46  ;;  %v3105_v12 = vmul.f32 %v9888_v28, %v9888_v28  ;;  %v1759_v50 = vld [vmem:[%s13681_s3 + $0x648] sm:$0xff] }
 0x550   :  { %v10259_v21 = vmul.f32 %v10251_v53, %v10162_v36  ;;  %v3102_v36 = vmul.f32 %v9792_v24, %v9792_v24  ;;  %6921 = vmatprep.mubr.msk.f32.mxu1 %vm1798_vm1, %v1759_v50 }
 0x551   :  { %v10255_v48 = vmul.f32 %v10249_v6, %v10164_v41  ;;  %v3103_v41 = vmul.f32 %v9820_v1, %v9820_v1 }
 0x552   :  { %3008 = vadd.xlane.f32.xlu0 %v9743_v9  ;;  %3010 = vadd.xlane.f32.xlu1 %v9771_v62  ;;  %v1655_v9 = vld [vmem:[%s13681_s3 + $0x308] sm:$0xff] }
 0x556   :  { %3368 = vadd.xlane.f32.xlu0 %v3156_v61  ;;  %3370 = vadd.xlane.f32.xlu1 %v3157_v10  ;;  %v1758_v61 = vld [vmem:[%s13681_s3 + $0x640] sm:$0xff]  ;;  %v10297_v10 = vpop.xlane.xlu0 %2968 }
 0x557   :  { %2724 = vmatmul.mubr.f32.gmra.mxu1 %v1758_v61 }
 0x55a   :  { %2900 = vadd.xlane.f32.xlu0 %v9792_v24  ;;  %2902 = vadd.xlane.f32.xlu1 %v9820_v1 }
 0x55d   :  { %v10273_v55 = vpop.f32.mrf.mxu0 }
 0x55e   :  { %3260 = vadd.xlane.f32.xlu0 %v3102_v36  ;;  %3262 = vadd.xlane.f32.xlu1 %v3103_v41  ;;  %13983 = vst [vmem:[#allocation134_spill] sm:$0xff] %v10273_v55  ;;  %v10300_v36 = vpop.xlane.xlu0 %3328 }
 0x55f   :  { %v2437_v63 = vpop.f32.mrf.mxu0 }
 0x562   :  { %3012 = vadd.xlane.f32.xlu0 %v9841_v59  ;;  %3014 = vadd.xlane.f32.xlu1 %v9859_v46 }
 0x566   :  { %3372 = vadd.xlane.f32.xlu0 %v3158_v22  ;;  %3374 = vadd.xlane.f32.xlu1 %v3159_v29 }
 0x56a   :  { %2904 = vadd.xlane.f32.xlu0 %v9873_v7  ;;  %2906 = vadd.xlane.f32.xlu1 %v9888_v28 }
 0x56e   :  { %3264 = vadd.xlane.f32.xlu0 %v3104_v4  ;;  %3266 = vadd.xlane.f32.xlu1 %v3105_v12  ;;  %v1649_v4 = vld [vmem:[%s13681_s3 + $0x2d8] sm:$0xff]  ;;  %v10313_v12 = vpop.xlane.xlu1 %2970 }
 0x56f   :  { %6866 = vmatprep.mubr.msk.f32.mxu0 %vm1798_vm1, %v1649_v4 }
 0x572   :  { %3016 = vadd.xlane.f32.xlu0 %v9927_v34  ;;  %v10321_v50 = vpop.xlane.xlu1 %3330 }
 0x576   :  { %v10324_v61 = vpop.xlane.xlu1 %2862 }
 0x57f   :  { %4854 = vrot.lane.b32.xlu1 %v9750_v25, %s7595_s9  ;;  %v1648_v25 = vld [vmem:[%s13681_s3 + $0x2d0] sm:$0xff] }
 0x580   :  { %2449 = vmatmul.mubr.f32.gmra.mxu0 %v1648_v25  ;;  %v3161_v25 = vmul.f32 %v10098_v26, %v10098_v26 }
 0x588   :  { %5226 = vperm.xlu0 %7066, %v9735_v38   ;;  %v10319_v38 = vpop.xlane.xlu0 %2860 }
 0x58c   :  { %5501 = vperm.xlu0 %7066, %v9729_v39   ;;  %v3160_v39 = vmul.f32 %v9927_v34, %v9927_v34 }
 0x58d   :  { %v10303_v41 = vpop.f32.mrf.mxu0 }
 0x58e   :  { %13984 = vst [vmem:[#allocation135_spill] sm:$0xff] %v10303_v41  ;;  %v3107_v47 = vmul.f32 %v10303_v41, %v10303_v41 }
 0x58f   :  { %v2442_v63 = vpop.f32.mrf.mxu0 }
 0x590   :  { %v10327_v63 = vpop.xlane.xlu0 %3220 }
 0x597   :  { %v10305_v22 = vpop.f32.mrf.mxu1 }
 0x598   :  { %13985 = vst [vmem:[#allocation136_spill] sm:$0xff] %v10305_v22 }
 0x599   :  { %v2717_v29 = vpop.f32.mrf.mxu1 }
 0x5a3   :  { %3018 = vadd.xlane.f32.xlu1 %v10098_v26 }
 0x5ab   :  { %3376 = vadd.xlane.f32.xlu0 %v3160_v39  ;;  %v1651_v39 = vld [vmem:[%s13681_s3 + $0x2e8] sm:$0xff] }
 0x5ac   :  { %6867 = vmatprep.mubr.msk.f32.mxu0 %vm1798_vm1, %v1651_v39 }
 0x5b4   :  { %5231 = vperm.xlu1 %7067, %v9780_v40   ;;  %v1650_v40 = vld [vmem:[%s13681_s3 + $0x2e0] sm:$0xff] }
 0x5b5   :  { %2454 = vmatmul.mubr.f32.gmra.mxu0 %v1650_v40  ;;  %v1761_v40 = vld [vmem:[%s13681_s3 + $0x658] sm:$0xff] }
 0x5b6   :  { %6922 = vmatprep.mubr.msk.f32.mxu1 %vm1798_vm1, %v1761_v40 }
 0x5b8   :  { %5506 = vperm.xlu1 %7067, %v9784_v43   ;;  %v10341_v43 = vpop.xlane.xlu1 %3222 }
 0x5bc   :  { %v10351_v28 = vpop.xlane.xlu1 %2974 }
 0x5c0   :  { %v10368_v1 = vpop.xlane.xlu1 %3334 }
 0x5c1   :  { %4744 = vrot.lane.b32.xlu0 %v9754_v33, %s7595_s9  ;;  %v10344_v33 = vpop.xlane.xlu0 %2972 }
 0x5c5   :  { %v10349_v26 = vpop.xlane.xlu0 %3332 }
 0x5c9   :  { %v10355_v46 = vpop.xlane.xlu0 %2864 }
 0x5d0   :  { %v10331_v29 = vpop.f32.mrf.mxu0 }
 0x5d1   :  { %13986 = vst [vmem:[#allocation137_spill] sm:$0xff] %v10331_v29 }
 0x5d2   :  { %v2447_v4 = vpop.f32.mrf.mxu0 }
 0x5d3   :  { %v3106_v4 = vmul.f32 %v10273_v55, %v10273_v55 }
 0x5dc   :  { %3378 = vadd.xlane.f32.xlu1 %v3161_v25 }
 0x5e0   :  { %2908 = vadd.xlane.f32.xlu0 %v10273_v55 }
 0x5e4   :  { %3268 = vadd.xlane.f32.xlu0 %v3106_v4  ;;  %v1760_v4 = vld [vmem:[%s13681_s3 + $0x650] sm:$0xff] }
 0x5e5   :  { %2729 = vmatmul.mubr.f32.gmra.mxu1 %v1760_v4  ;;  %v1763_v4 = vld [vmem:[%s13681_s3 + $0x668] sm:$0xff] }
 0x5e6   :  { %6923 = vmatprep.mubr.msk.f32.mxu1 %vm1798_vm1, %v1763_v4 }
 0x5e9   :  { %2734 = vmatmul.mubr.f32.gmra.mxu1 %v1762_v44 }
 0x5ed   :  { %4746 = vrot.lane.b32.xlu1 %v9796_v5, %s7595_s9  ;;  %v10371_v5 = vpop.xlane.xlu0 %3224 }
 0x5fa   :  { %4856 = vrot.lane.b32.xlu0 %v9800_v51, %s7595_s9  ;;  %v10374_v51 = vpop.xlane.xlu1 %2866 }
 0x5fb   :  { %v10359_v25 = vpop.f32.mrf.mxu1 }
 0x5fc   :  { %13987 = vst [vmem:[#allocation138_spill] sm:$0xff] %v10359_v25 }
 0x5fd   :  { %v2722_v39 = vpop.f32.mrf.mxu1 }
 0x5fe   :  { %v10377_v39 = vpop.xlane.xlu0 %2976  ;;  %v10390_v58 = vpop.xlane.xlu1 %3226 }
 0x602   :  { %v10403_v24 = vpop.xlane.xlu1 %2978 }
 0x606   :  { %v10407_v44 = vpop.xlane.xlu1 %3338 }
 0x611   :  { %2910 = vadd.xlane.f32.xlu1 %v10303_v41  ;;  %v13990_v41 = vld [vmem:[#allocation82_spill] sm:$0xff] }
 0x617   :  { %v10380_v40 = vpop.f32.mrf.mxu1 }
 0x618   :  { %13988 = vst [vmem:[#allocation139_spill] sm:$0xff] %v10380_v40 }
 0x619   :  { %3020 = vadd.xlane.f32.xlu0 %v10305_v22  ;;  %v2727_v62 = vpop.f32.mrf.mxu1 }
 0x61a   :  { %v13989_v62 = vld [vmem:[#allocation81_spill] sm:$0xff] }
 0x61b   :  { %v13991_v55 = vsub.f32 %v13989_v62, %v13990_v41 }
 0x61d   :  { %v3907_v34 = vmax.f32 %v13991_v55, 0.0 }
 0x61f   :  { %v4147_v7 = vadd.f32 1e-05, %v3907_v34  ;;  %v4027_v34 = vld [vmem:[%s13682_s4 + $0x18] sm:$0xff] }
 0x621   :  { %7272 = vrsqrt.f32 %v4147_v7  ;;  %v1652_v7 = vld [vmem:[%s13681_s3 + $0x2f0] sm:$0xff] }
 0x622   :  { %5236 = vperm.xlu1 %7067, %v9833_v35   ;;  %v10395_v35 = vpop.xlane.xlu0 %3336 }
 0x626   :  { %v10400_v59 = vpop.xlane.xlu0 %2868 }
 0x62a   :  { %v10416_v62 = vpop.xlane.xlu0 %3228 }
 0x62e   :  { %v7273_v4 = vpop.eup %7272 }
 0x62f   :  { %5511 = vperm.xlu0 %7066, %v9829_v30   ;;  %v3162_v30 = vmul.f32 %v10305_v22, %v10305_v22  ;;  %v4387_v41 = vmul.f32 %v7273_v4, %v4027_v34  ;;  %v3108_v4 = vmul.f32 %v10331_v29, %v10331_v29  ;;  %v10430_v34 = vpop.xlane.xlu0 %2980 }
 0x640   :  { %v10414_v55 = vpop.f32.mrf.mxu0 }
 0x641   :  { %13993 = vst [vmem:[#allocation81_spill] sm:$0xff] %v10414_v55 }
 0x646   :  { %3270 = vadd.xlane.f32.xlu1 %v3107_v47  ;;  %v13992_v47 = vld [vmem:[#allocation95_spill] sm:$0xff] }
 0x64e   :  { %3380 = vadd.xlane.f32.xlu0 %v3162_v30  ;;  %v2452_v30 = vpop.f32.mrf.mxu0 }
 0x652   :  { %2912 = vadd.xlane.f32.xlu0 %v10331_v29 }
 0x657   :  { %4748 = vrot.lane.b32.xlu1 %v9845_v11, %s7595_s9  ;;  %v1653_v11 = vld [vmem:[%s13681_s3 + $0x2f8] sm:$0xff] }
 0x658   :  { %6868 = vmatprep.mubr.msk.f32.mxu0 %vm1798_vm1, %v1653_v11  ;;  %v10435_v11 = vpop.xlane.xlu0 %3340 }
 0x659   :  { %2459 = vmatmul.mubr.f32.gmra.mxu0 %v1652_v7  ;;  %13996 = vst [vmem:[#allocation140_spill] sm:$0xff] %v10435_v11 }
 0x65a   :  { %6869 = vmatprep.mubr.msk.f32.mxu0 %vm1798_vm1, %v1655_v9 }
 0x65b   :  { %4858 = vrot.lane.b32.xlu1 %v13992_v47, %s7595_s9  ;;  %v10425_v47 = vpop.xlane.xlu1 %2870 }
 0x65c   :  { %13994 = vst [vmem:[#allocation82_spill] sm:$0xff] %v10425_v47  ;;  %v14002_v47 = vld [vmem:[#allocation79_spill] sm:$0xff] }
 0x65d   :  { %v4507_v11 = vmul.f32 %v4387_v41, %v14002_v47 }
 0x65f   :  { %v10432_v30 = vpop.xlane.xlu1 %3230 }
 0x660   :  { %13995 = vst [vmem:[#allocation95_spill] sm:$0xff] %v10432_v30  ;;  %v10455_v30 = vpop.xlane.xlu0 %2872 }
 0x663   :  { %v10450_v29 = vpop.xlane.xlu1 %2982 }
 0x667   :  { %v10459_v9 = vpop.xlane.xlu1 %3342 }
 0x668   :  { %5241 = vperm.xlu0 %7066, %v4387_v41   ;;  %14003 = vst [vmem:[#allocation85_spill] sm:$0xff] %v10459_v9  ;;  %v1764_v41 = vld [vmem:[%s13681_s3 + $0x670] sm:$0xff] }
 0x669   :  { %v14015_v9 = vld [vmem:[#allocation83_spill] sm:$0xff] }
 0x66b   :  { %v10476_v47 = vpop.xlane.xlu1 %2874 }
 0x66c   :  { %14006 = vst [vmem:[#allocation143_spill] sm:$0xff] %v10476_v47  ;;  %v1767_v47 = vld [vmem:[%s13681_s3 + $0x688] sm:$0xff] }
 0x675   :  { %v10439_v7 = vpop.f32.mrf.mxu0 }
 0x676   :  { %13997 = vst [vmem:[#allocation141_spill] sm:$0xff] %v10439_v7 }
 0x677   :  { %v2457_v22 = vpop.f32.mrf.mxu0 }
 0x67f   :  { %3022 = vadd.xlane.f32.xlu1 %v10359_v25 }
 0x687   :  { %3272 = vadd.xlane.f32.xlu0 %v3108_v4  ;;  %v1654_v4 = vld [vmem:[%s13681_s3 + $0x300] sm:$0xff] }
 0x688   :  { %2464 = vmatmul.mubr.f32.gmra.mxu0 %v1654_v4 }
 0x690   :  { %5516 = vperm.xlu1 %7067, %v9878_v2   ;;  %v3163_v2 = vmul.f32 %v10359_v25, %v10359_v25 }
 0x69d   :  { %4860 = vrot.lane.b32.xlu0 %v9892_v49, %s7595_s9  ;;  %v13998_v49 = vld [vmem:[#allocation86_spill] sm:$0xff] }
 0x69e   :  { %v14000_v22 = vsub.f32 %v13998_v49, %v13999_v19  ;;  %14001 = vst [vmem:[#allocation86_spill] sm:$0xff] %v10455_v30 }
 0x6a0   :  { %v3963_v0 = vmax.f32 %v14000_v22, 0.0 }
 0x6a2   :  { %v4203_v17 = vadd.f32 1e-05, %v3963_v0  ;;  %v10467_v0 = vpop.xlane.xlu0 %3232 }
 0x6a3   :  { %14005 = vst [vmem:[#allocation142_spill] sm:$0xff] %v10467_v0 }
 0x6a4   :  { %7274 = vrsqrt.f32 %v4203_v17  ;;  %v1765_v17 = vld [vmem:[%s13681_s3 + $0x678] sm:$0xff] }
 0x6a5   :  { %v10465_v19 = vpop.f32.mrf.mxu1  ;;  %6924 = vmatprep.mubr.msk.f32.mxu1 %vm1798_vm1, %v1765_v17 }
 0x6a6   :  { %14004 = vst [vmem:[#allocation79_spill] sm:$0xff] %v10465_v19  ;;  %2739 = vmatmul.mubr.f32.gmra.mxu1 %v1764_v41  ;;  %v10481_v22 = vpop.xlane.xlu0 %2984 }
 0x6a7   :  { %v2732_v49 = vpop.f32.mrf.mxu1  ;;  %14007 = vst [vmem:[#allocation144_spill] sm:$0xff] %v10481_v22  ;;  %6925 = vmatprep.mubr.msk.f32.mxu1 %vm1798_vm1, %v1767_v47 }
 0x6a8   :  { %v14010_v49 = vld [vmem:[#allocation107_spill] sm:$0xff] }
 0x6a9   :  { %v10490_v17 = vpop.f32.mrf.mxu1 }
 0x6aa   :  { %14011 = vst [vmem:[#allocation107_spill] sm:$0xff] %v10490_v17 }
 0x6ab   :  { %v2737_v41 = vpop.f32.mrf.mxu1 }
 0x6b1   :  { %v7275_v4 = vpop.eup %7274 }
 0x6b4   :  { %3382 = vadd.xlane.f32.xlu1 %v3163_v2  ;;  %v4083_v2 = vld [vmem:[%s13682_s4 + $0x1d8] sm:$0xff] }
 0x6b5   :  { %v4443_v25 = vmul.f32 %v7275_v4, %v4083_v2  ;;  %v10483_v4 = vpop.xlane.xlu1 %3234  ;;  %v10486_v2 = vpop.xlane.xlu0 %3344 }
 0x6b6   :  { %14008 = vst [vmem:[#allocation145_spill] sm:$0xff] %v10483_v4  ;;  %14009 = vst [vmem:[#allocation146_spill] sm:$0xff] %v10486_v2  ;;  %v14013_v2 = vld [vmem:[#allocation90_spill] sm:$0xff] }
 0x6b7   :  { %v4563_v30 = vmul.f32 %v4443_v25, %v14015_v9 }
 0x6b9   :  { %v10506_v0 = vpop.xlane.xlu0 %2876 }
 0x6bc   :  { %3024 = vadd.xlane.f32.xlu0 %v10380_v40 }
 0x6c5   :  { %4750 = vrot.lane.b32.xlu1 %v4507_v11, %s7595_s9  ;;  %v3164_v11 = vmul.f32 %v10380_v40, %v10380_v40  ;;  %v10501_v40 = vpop.xlane.xlu1 %2986 }
 0x6c9   :  { %v10510_v47 = vpop.xlane.xlu1 %3346 }
 0x6cd   :  { %v10527_v9 = vpop.xlane.xlu1 %2878 }
 0x6ce   :  { %14019 = vst [vmem:[#allocation147_spill] sm:$0xff] %v10527_v9 }
 0x6d2   :  { %5521 = vperm.xlu0 %7066, %v4443_v25   ;;  %v1657_v25 = vld [vmem:[%s13681_s3 + $0x318] sm:$0xff] }
 0x6d3   :  { %6870 = vmatprep.mubr.msk.f32.mxu0 %vm1798_vm1, %v1657_v25 }
 0x6e9   :  { %2914 = vadd.xlane.f32.xlu1 %v10414_v55 }
 0x6f1   :  { %3384 = vadd.xlane.f32.xlu0 %v3164_v11  ;;  %v1766_v11 = vld [vmem:[%s13681_s3 + $0x680] sm:$0xff] }
 0x6f2   :  { %2744 = vmatmul.mubr.f32.gmra.mxu1 %v1766_v11 }
 0x6fa   :  { %5246 = vperm.xlu1 %7067, %v9909_v45   ;;  %v3109_v45 = vmul.f32 %v10414_v55, %v10414_v55 }
 0x707   :  { %4752 = vrot.lane.b32.xlu0 %v14010_v49, %s7595_s9  ;;  %v14012_v49 = vld [vmem:[#allocation91_spill] sm:$0xff] }
 0x708   :  { %v14014_v41 = vsub.f32 %v14012_v49, %v14013_v2  ;;  %14016 = vst [vmem:[#allocation91_spill] sm:$0xff] %v10510_v47 }
 0x70a   :  { %v3909_v4 = vmax.f32 %v14014_v41, 0.0 }
 0x70c   :  { %v4149_v22 = vadd.f32 1e-05, %v3909_v4  ;;  %v10518_v4 = vpop.xlane.xlu0 %3236 }
 0x70d   :  { %14018 = vst [vmem:[#allocation83_spill] sm:$0xff] %v10518_v4  ;;  %v14027_v4 = vld [vmem:[#allocation88_spill] sm:$0xff] }
 0x70e   :  { %7276 = vrsqrt.f32 %v4149_v22  ;;  %v3110_v22 = vmul.f32 %v10439_v7, %v10439_v7 }
 0x710   :  { %v10532_v41 = vpop.xlane.xlu0 %2988 }
 0x711   :  { %14020 = vst [vmem:[#allocation148_spill] sm:$0xff] %v10532_v41 }
 0x719   :  { %v10516_v2 = vpop.f32.mrf.mxu0 }
 0x71a   :  { %14017 = vst [vmem:[#allocation90_spill] sm:$0xff] %v10516_v2 }
 0x71b   :  { %v7277_v11 = vpop.eup %7276  ;;  %v2462_v49 = vpop.f32.mrf.mxu0 }
 0x71e   :  { %3274 = vadd.xlane.f32.xlu1 %v3109_v45  ;;  %v4029_v45 = vld [vmem:[%s13682_s4 + $0x28] sm:$0xff] }
 0x71f   :  { %v4389_v55 = vmul.f32 %v7277_v11, %v4029_v45  ;;  %v10534_v11 = vpop.xlane.xlu1 %3238  ;;  %v10537_v45 = vpop.xlane.xlu0 %3348 }
 0x720   :  { %14021 = vst [vmem:[#allocation149_spill] sm:$0xff] %v10534_v11  ;;  %14022 = vst [vmem:[#allocation150_spill] sm:$0xff] %v10537_v45  ;;  %v14025_v45 = vld [vmem:[#allocation96_spill] sm:$0xff] }
 0x721   :  { %v4509_v47 = vmul.f32 %v4389_v55, %v14027_v4 }
 0x723   :  { %v10557_v9 = vpop.xlane.xlu0 %2880 }
 0x726   :  { %2916 = vadd.xlane.f32.xlu0 %v10439_v7  ;;  %v10552_v7 = vpop.xlane.xlu1 %2990 }
 0x72f   :  { %4862 = vrot.lane.b32.xlu1 %v4563_v30, %s7595_s9  ;;  %v1656_v30 = vld [vmem:[%s13681_s3 + $0x310] sm:$0xff] }
 0x730   :  { %2469 = vmatmul.mubr.f32.gmra.mxu0 %v1656_v30  ;;  %v1659_v30 = vld [vmem:[%s13681_s3 + $0x328] sm:$0xff] }
 0x731   :  { %6871 = vmatprep.mubr.msk.f32.mxu0 %vm1798_vm1, %v1659_v30  ;;  %v10561_v30 = vpop.xlane.xlu1 %3350 }
 0x735   :  { %v10578_v4 = vpop.xlane.xlu1 %2882 }
 0x736   :  { %14031 = vst [vmem:[#allocation152_spill] sm:$0xff] %v10578_v4 }
 0x73c   :  { %5251 = vperm.xlu0 %7066, %v4389_v55   ;;  %v1769_v55 = vld [vmem:[%s13681_s3 + $0x698] sm:$0xff] }
 0x73d   :  { %6926 = vmatprep.mubr.msk.f32.mxu1 %vm1798_vm1, %v1769_v55 }
 0x748   :  { %v10541_v49 = vpop.f32.mrf.mxu0 }
 0x749   :  { %14023 = vst [vmem:[#allocation151_spill] sm:$0xff] %v10541_v49 }
 0x74a   :  { %v2467_v25 = vpop.f32.mrf.mxu0 }
 0x753   :  { %3026 = vadd.xlane.f32.xlu1 %v10465_v19 }
 0x75b   :  { %3276 = vadd.xlane.f32.xlu0 %v3110_v22  ;;  %v1658_v22 = vld [vmem:[%s13681_s3 + $0x320] sm:$0xff] }
 0x75c   :  { %2474 = vmatmul.mubr.f32.gmra.mxu0 %v1658_v22 }
 0x764   :  { %5526 = vperm.xlu1 %7067, %v9940_v56   ;;  %v3165_v56 = vmul.f32 %v10465_v19, %v10465_v19 }
 0x771   :  { %4864 = vrot.lane.b32.xlu0 %v9952_v37, %s7595_s9  ;;  %v14024_v37 = vld [vmem:[#allocation97_spill] sm:$0xff] }
 0x772   :  { %v14026_v25 = vsub.f32 %v14024_v37, %v14025_v45  ;;  %14028 = vst [vmem:[#allocation97_spill] sm:$0xff] %v10561_v30  ;;  %v10567_v45 = vpop.f32.mrf.mxu1 }
 0x773   :  { %14029 = vst [vmem:[#allocation96_spill] sm:$0xff] %v10567_v45 }
 0x774   :  { %v3965_v11 = vmax.f32 %v14026_v25, 0.0  ;;  %v2742_v37 = vpop.f32.mrf.mxu1 }
 0x776   :  { %v4205_v41 = vadd.f32 1e-05, %v3965_v11  ;;  %v10569_v11 = vpop.xlane.xlu0 %3240 }
 0x777   :  { %14030 = vst [vmem:[#allocation88_spill] sm:$0xff] %v10569_v11  ;;  %v14039_v11 = vld [vmem:[#allocation93_spill] sm:$0xff] }
 0x778   :  { %7278 = vrsqrt.f32 %v4205_v41  ;;  %v3166_v41 = vmul.f32 %v10490_v17, %v10490_v17 }
 0x77a   :  { %v10583_v25 = vpop.xlane.xlu0 %2992 }
 0x77b   :  { %14032 = vst [vmem:[#allocation153_spill] sm:$0xff] %v10583_v25 }
 0x785   :  { %v7279_v22 = vpop.eup %7278 }
 0x788   :  { %3386 = vadd.xlane.f32.xlu1 %v3165_v56  ;;  %v4085_v56 = vld [vmem:[%s13682_s4 + $0x1e8] sm:$0xff] }
 0x789   :  { %v4445_v19 = vmul.f32 %v7279_v22, %v4085_v56  ;;  %v10585_v22 = vpop.xlane.xlu1 %3242  ;;  %v10588_v56 = vpop.xlane.xlu0 %3352 }
 0x78a   :  { %14033 = vst [vmem:[#allocation154_spill] sm:$0xff] %v10585_v22  ;;  %14034 = vst [vmem:[#allocation155_spill] sm:$0xff] %v10588_v56  ;;  %v14037_v56 = vld [vmem:[#allocation101_spill] sm:$0xff] }
 0x78b   :  { %v4565_v30 = vmul.f32 %v4445_v19, %v14039_v11 }
 0x78d   :  { %v10608_v4 = vpop.xlane.xlu0 %2884 }
 0x790   :  { %3028 = vadd.xlane.f32.xlu0 %v10490_v17  ;;  %v10603_v17 = vpop.xlane.xlu1 %2994 }
 0x799   :  { %4754 = vrot.lane.b32.xlu1 %v4509_v47, %s7595_s9  ;;  %v1768_v47 = vld [vmem:[%s13681_s3 + $0x690] sm:$0xff] }
 0x79a   :  { %2749 = vmatmul.mubr.f32.gmra.mxu1 %v1768_v47  ;;  %v1771_v47 = vld [vmem:[%s13681_s3 + $0x6a8] sm:$0xff] }
 0x79b   :  { %6927 = vmatprep.mubr.msk.f32.mxu1 %vm1798_vm1, %v1771_v47  ;;  %v10612_v47 = vpop.xlane.xlu1 %3354 }
 0x79f   :  { %v10629_v11 = vpop.xlane.xlu1 %2886 }
 0x7a0   :  { %14043 = vst [vmem:[#allocation157_spill] sm:$0xff] %v10629_v11 }
 0x7a6   :  { %5531 = vperm.xlu0 %7066, %v4445_v19   ;;  %v1661_v19 = vld [vmem:[%s13681_s3 + $0x338] sm:$0xff] }
 0x7a7   :  { %6872 = vmatprep.mubr.msk.f32.mxu0 %vm1798_vm1, %v1661_v19 }
 0x7b2   :  { %v10592_v37 = vpop.f32.mrf.mxu1 }
 0x7b3   :  { %14035 = vst [vmem:[#allocation156_spill] sm:$0xff] %v10592_v37 }
 0x7b4   :  { %v2747_v55 = vpop.f32.mrf.mxu1 }
 0x7bd   :  { %2918 = vadd.xlane.f32.xlu1 %v10516_v2 }
 0x7c5   :  { %3388 = vadd.xlane.f32.xlu0 %v3166_v41  ;;  %v1770_v41 = vld [vmem:[%s13681_s3 + $0x6a0] sm:$0xff] }
 0x7c6   :  { %2754 = vmatmul.mubr.f32.gmra.mxu1 %v1770_v41 }
 0x7ce   :  { %5256 = vperm.xlu1 %7067, %v9969_v54   ;;  %v3111_v54 = vmul.f32 %v10516_v2, %v10516_v2 }
 0x7db   :  { %4756 = vrot.lane.b32.xlu0 %v9981_v16, %s7595_s9  ;;  %v14036_v16 = vld [vmem:[#allocation102_spill] sm:$0xff] }
 0x7dc   :  { %v14038_v55 = vsub.f32 %v14036_v16, %v14037_v56  ;;  %14040 = vst [vmem:[#allocation102_spill] sm:$0xff] %v10612_v47 }
 0x7de   :  { %v3911_v22 = vmax.f32 %v14038_v55, 0.0 }
 0x7e0   :  { %v4151_v25 = vadd.f32 1e-05, %v3911_v22  ;;  %v10620_v22 = vpop.xlane.xlu0 %3244 }
 0x7e1   :  { %14042 = vst [vmem:[#allocation93_spill] sm:$0xff] %v10620_v22  ;;  %v14052_v22 = vld [vmem:[#allocation99_spill] sm:$0xff] }
 0x7e2   :  { %7280 = vrsqrt.f32 %v4151_v25  ;;  %v3112_v25 = vmul.f32 %v10541_v49, %v10541_v49 }
 0x7e4   :  { %v10634_v55 = vpop.xlane.xlu0 %2996 }
 0x7e5   :  { %14044 = vst [vmem:[#allocation158_spill] sm:$0xff] %v10634_v55 }
 0x7ef   :  { %v7281_v41 = vpop.eup %7280 }
 0x7f0   :  { %v10618_v56 = vpop.f32.mrf.mxu0 }
 0x7f1   :  { %14041 = vst [vmem:[#allocation101_spill] sm:$0xff] %v10618_v56 }
 0x7f2   :  { %3278 = vadd.xlane.f32.xlu1 %v3111_v54  ;;  %v4031_v54 = vld [vmem:[%s13682_s4 + $0x38] sm:$0xff]  ;;  %v2472_v16 = vpop.f32.mrf.mxu0 }
 0x7f3   :  { %v4391_v2 = vmul.f32 %v7281_v41, %v4031_v54  ;;  %v10636_v41 = vpop.xlane.xlu1 %3246  ;;  %v10639_v54 = vpop.xlane.xlu0 %3356 }
 0x7f4   :  { %14045 = vst [vmem:[#allocation159_spill] sm:$0xff] %v10636_v41  ;;  %14046 = vst [vmem:[#allocation160_spill] sm:$0xff] %v10639_v54  ;;  %v14049_v54 = vld [vmem:[#allocation105_spill] sm:$0xff] }
 0x7f5   :  { %v4511_v47 = vmul.f32 %v4391_v2, %v14052_v22 }
 0x7f7   :  { %v10659_v11 = vpop.xlane.xlu0 %2888 }
 0x7fa   :  { %2920 = vadd.xlane.f32.xlu0 %v10541_v49  ;;  %v10654_v49 = vpop.xlane.xlu1 %2998 }
 0x803   :  { %4866 = vrot.lane.b32.xlu1 %v4565_v30, %s7595_s9  ;;  %v1660_v30 = vld [vmem:[%s13681_s3 + $0x330] sm:$0xff] }
 0x804   :  { %2479 = vmatmul.mubr.f32.gmra.mxu0 %v1660_v30  ;;  %v1663_v30 = vld [vmem:[%s13681_s3 + $0x348] sm:$0xff] }
 0x805   :  { %6873 = vmatprep.mubr.msk.f32.mxu0 %vm1798_vm1, %v1663_v30  ;;  %v10663_v30 = vpop.xlane.xlu1 %3358 }
 0x806   :  { %14053 = vst [vmem:[#allocation105_spill] sm:$0xff] %v10663_v30  ;;  %v14067_v30 = vld [vmem:[#allocation104_spill] sm:$0xff] }
 0x809   :  { %v10680_v22 = vpop.xlane.xlu1 %2890 }
 0x80a   :  { %14056 = vst [vmem:[#allocation163_spill] sm:$0xff] %v10680_v22  ;;  %v1775_v22 = vld [vmem:[%s13681_s3 + $0x6c8] sm:$0xff] }
 0x810   :  { %5261 = vperm.xlu0 %7066, %v4391_v2   ;;  %v1773_v2 = vld [vmem:[%s13681_s3 + $0x6b8] sm:$0xff] }
 0x811   :  { %6928 = vmatprep.mubr.msk.f32.mxu1 %vm1798_vm1, %v1773_v2 }
 0x81c   :  { %v10643_v16 = vpop.f32.mrf.mxu0 }
 0x81d   :  { %14047 = vst [vmem:[#allocation161_spill] sm:$0xff] %v10643_v16 }
 0x81e   :  { %v2477_v19 = vpop.f32.mrf.mxu0 }
 0x827   :  { %3030 = vadd.xlane.f32.xlu1 %v10567_v45 }
 0x82f   :  { %3280 = vadd.xlane.f32.xlu0 %v3112_v25  ;;  %v1662_v25 = vld [vmem:[%s13681_s3 + $0x340] sm:$0xff] }
 0x830   :  { %2484 = vmatmul.mubr.f32.gmra.mxu0 %v1662_v25 }
 0x838   :  { %5536 = vperm.xlu1 %7067, %v9998_v18   ;;  %v3167_v18 = vmul.f32 %v10567_v45, %v10567_v45 }
 0x845   :  { %4868 = vrot.lane.b32.xlu0 %v10010_v42, %s7595_s9  ;;  %v14048_v42 = vld [vmem:[#allocation106_spill] sm:$0xff] }
 0x846   :  { %v14050_v19 = vsub.f32 %v14048_v42, %v14049_v54  ;;  %14051 = vst [vmem:[#allocation106_spill] sm:$0xff] %v10659_v11 }
 0x848   :  { %v3967_v41 = vmax.f32 %v14050_v19, 0.0 }
 0x84a   :  { %v4207_v55 = vadd.f32 1e-05, %v3967_v41  ;;  %v10671_v41 = vpop.xlane.xlu0 %3248 }
 0x84b   :  { %14055 = vst [vmem:[#allocation162_spill] sm:$0xff] %v10671_v41 }
 0x84c   :  { %7282 = vrsqrt.f32 %v4207_v55  ;;  %v3168_v55 = vmul.f32 %v10592_v37, %v10592_v37 }
 0x84e   :  { %v10685_v19 = vpop.xlane.xlu0 %3000 }
 0x84f   :  { %14057 = vst [vmem:[#allocation164_spill] sm:$0xff] %v10685_v19 }
 0x859   :  { %v7283_v25 = vpop.eup %7282 }
 0x85a   :  { %v10669_v54 = vpop.f32.mrf.mxu1 }
 0x85b   :  { %14054 = vst [vmem:[#allocation99_spill] sm:$0xff] %v10669_v54 }
 0x85c   :  { %3390 = vadd.xlane.f32.xlu1 %v3167_v18  ;;  %v4087_v18 = vld [vmem:[%s13682_s4 + $0x1f8] sm:$0xff]  ;;  %v2752_v42 = vpop.f32.mrf.mxu1 }
 0x85d   :  { %v4447_v45 = vmul.f32 %v7283_v25, %v4087_v18  ;;  %v10687_v25 = vpop.xlane.xlu1 %3250  ;;  %v10690_v18 = vpop.xlane.xlu0 %3360  ;;  %v14060_v42 = vld [vmem:[#allocation121_spill] sm:$0xff] }
 0x85e   :  { %14058 = vst [vmem:[#allocation165_spill] sm:$0xff] %v10687_v25  ;;  %14059 = vst [vmem:[#allocation166_spill] sm:$0xff] %v10690_v18  ;;  %v14064_v18 = vld [vmem:[#allocation110_spill] sm:$0xff] }
 0x85f   :  { %v4567_v11 = vmul.f32 %v4447_v45, %v14067_v30 }
 0x861   :  { %v10710_v41 = vpop.xlane.xlu0 %2892 }
 0x864   :  { %3032 = vadd.xlane.f32.xlu0 %v10592_v37  ;;  %v10705_v37 = vpop.xlane.xlu1 %3002 }
 0x865   :  { %14062 = vst [vmem:[#allocation167_spill] sm:$0xff] %v10705_v37 }
 0x86d   :  { %4758 = vrot.lane.b32.xlu1 %v4511_v47, %s7595_s9  ;;  %v1772_v47 = vld [vmem:[%s13681_s3 + $0x6b0] sm:$0xff] }
 0x86e   :  { %2759 = vmatmul.mubr.f32.gmra.mxu1 %v1772_v47 }
 0x86f   :  { %6929 = vmatprep.mubr.msk.f32.mxu1 %vm1798_vm1, %v1775_v22  ;;  %v10714_v22 = vpop.xlane.xlu1 %3362 }
 0x870   :  { %14068 = vst [vmem:[#allocation110_spill] sm:$0xff] %v10714_v22 }
 0x873   :  { %v10731_v30 = vpop.xlane.xlu1 %2894 }
 0x874   :  { %14071 = vst [vmem:[#allocation169_spill] sm:$0xff] %v10731_v30 }
 0x87a   :  { %5541 = vperm.xlu0 %7066, %v4447_v45   ;;  %v1665_v45 = vld [vmem:[%s13681_s3 + $0x358] sm:$0xff] }
 0x87b   :  { %6874 = vmatprep.mubr.msk.f32.mxu0 %vm1798_vm1, %v1665_v45  ;;  %v14076_v45 = vld [vmem:[#allocation126_spill] sm:$0xff] }
 0x886   :  { %v10694_v2 = vpop.f32.mrf.mxu1 }
 0x887   :  { %14061 = vst [vmem:[#allocation121_spill] sm:$0xff] %v10694_v2 }
 0x888   :  { %v2757_v47 = vpop.f32.mrf.mxu1 }
 0x891   :  { %2922 = vadd.xlane.f32.xlu1 %v10618_v56 }
 0x899   :  { %3392 = vadd.xlane.f32.xlu0 %v3168_v55  ;;  %v1774_v55 = vld [vmem:[%s13681_s3 + $0x6c0] sm:$0xff] }
 0x89a   :  { %2764 = vmatmul.mubr.f32.gmra.mxu1 %v1774_v55 }
 0x8a2   :  { %5266 = vperm.xlu1 %7067, %v10027_v15   ;;  %v3113_v15 = vmul.f32 %v10618_v56, %v10618_v56 }
 0x8af   :  { %4760 = vrot.lane.b32.xlu0 %v14060_v42, %s7595_s9  ;;  %v14063_v42 = vld [vmem:[#allocation111_spill] sm:$0xff] }
 0x8b0   :  { %v14065_v47 = vsub.f32 %v14063_v42, %v14064_v18  ;;  %14066 = vst [vmem:[#allocation111_spill] sm:$0xff] %v10710_v41  ;;  %v14083_v41 = vld [vmem:[#allocation109_spill] sm:$0xff] }
 0x8b2   :  { %v3913_v25 = vmax.f32 %v14065_v47, 0.0 }
 0x8b4   :  { %v4153_v19 = vadd.f32 1e-05, %v3913_v25  ;;  %v10722_v25 = vpop.xlane.xlu0 %3252 }
 0x8b5   :  { %14070 = vst [vmem:[#allocation168_spill] sm:$0xff] %v10722_v25  ;;  %v1667_v25 = vld [vmem:[%s13681_s3 + $0x368] sm:$0xff] }
 0x8b6   :  { %7284 = vrsqrt.f32 %v4153_v19  ;;  %v3114_v19 = vmul.f32 %v10643_v16, %v10643_v16 }
 0x8b8   :  { %v10736_v47 = vpop.xlane.xlu0 %3004 }
 0x8b9   :  { %14072 = vst [vmem:[#allocation170_spill] sm:$0xff] %v10736_v47 }
 0x8c3   :  { %v7285_v55 = vpop.eup %7284 }
 0x8c4   :  { %v10720_v18 = vpop.f32.mrf.mxu0 }
 0x8c5   :  { %14069 = vst [vmem:[#allocation104_spill] sm:$0xff] %v10720_v18 }
 0x8c6   :  { %3282 = vadd.xlane.f32.xlu1 %v3113_v15  ;;  %v4033_v15 = vld [vmem:[%s13682_s4 + $0x48] sm:$0xff]  ;;  %v2482_v42 = vpop.f32.mrf.mxu0 }
 0x8c7   :  { %v4393_v56 = vmul.f32 %v7285_v55, %v4033_v15  ;;  %v10738_v55 = vpop.xlane.xlu1 %3254  ;;  %v14074_v15 = vld [vmem:[#allocation123_spill] sm:$0xff]  ;;  %v10741_v42 = vpop.xlane.xlu0 %3364 }
 0x8c8   :  { %14073 = vst [vmem:[#allocation171_spill] sm:$0xff] %v10738_v55  ;;  %14075 = vst [vmem:[#allocation123_spill] sm:$0xff] %v10741_v42  ;;  %v14080_v42 = vld [vmem:[#allocation113_spill] sm:$0xff] }
 0x8c9   :  { %v4513_v37 = vmul.f32 %v4393_v56, %v14083_v41 }
 0x8cb   :  { %v10761_v22 = vpop.xlane.xlu0 %2896 }
 0x8ce   :  { %2924 = vadd.xlane.f32.xlu0 %v10643_v16  ;;  %v10756_v16 = vpop.xlane.xlu1 %3006 }
 0x8cf   :  { %14078 = vst [vmem:[#allocation172_spill] sm:$0xff] %v10756_v16 }
 0x8d7   :  { %4870 = vrot.lane.b32.xlu1 %v4567_v11, %s7595_s9  ;;  %v1664_v11 = vld [vmem:[%s13681_s3 + $0x350] sm:$0xff] }
 0x8d8   :  { %2489 = vmatmul.mubr.f32.gmra.mxu0 %v1664_v11 }
 0x8d9   :  { %6875 = vmatprep.mubr.msk.f32.mxu0 %vm1798_vm1, %v1667_v25  ;;  %v10765_v25 = vpop.xlane.xlu1 %3366 }
 0x8da   :  { %14084 = vst [vmem:[#allocation113_spill] sm:$0xff] %v10765_v25 }
 0x8dd   :  { %v10782_v41 = vpop.xlane.xlu1 %2898 }
 0x8de   :  { %14087 = vst [vmem:[#allocation174_spill] sm:$0xff] %v10782_v41 }
 0x8e4   :  { %5271 = vperm.xlu0 %7066, %v4393_v56   ;;  %v1777_v56 = vld [vmem:[%s13681_s3 + $0x6d8] sm:$0xff] }
 0x8e5   :  { %6930 = vmatprep.mubr.msk.f32.mxu1 %vm1798_vm1, %v1777_v56  ;;  %v14092_v56 = vld [vmem:[#allocation129_spill] sm:$0xff] }
 0x8f0   :  { %v10745_v11 = vpop.f32.mrf.mxu0 }
 0x8f1   :  { %14077 = vst [vmem:[#allocation126_spill] sm:$0xff] %v10745_v11 }
 0x8f2   :  { %v2487_v30 = vpop.f32.mrf.mxu0 }
 0x8fb   :  { %3034 = vadd.xlane.f32.xlu1 %v10669_v54 }
 0x903   :  { %3284 = vadd.xlane.f32.xlu0 %v3114_v19  ;;  %v1666_v19 = vld [vmem:[%s13681_s3 + $0x360] sm:$0xff] }
 0x904   :  { %2494 = vmatmul.mubr.f32.gmra.mxu0 %v1666_v19 }
 0x90c   :  { %5546 = vperm.xlu1 %7067, %v14074_v15   ;;  %v3169_v15 = vmul.f32 %v10669_v54, %v10669_v54 }
 0x919   :  { %4872 = vrot.lane.b32.xlu0 %v14076_v45, %s7595_s9  ;;  %v14079_v45 = vld [vmem:[#allocation114_spill] sm:$0xff] }
 0x91a   :  { %v14081_v30 = vsub.f32 %v14079_v45, %v14080_v42  ;;  %14082 = vst [vmem:[#allocation114_spill] sm:$0xff] %v10761_v22  ;;  %v14099_v22 = vld [vmem:[#allocation112_spill] sm:$0xff] }
 0x91c   :  { %v3969_v55 = vmax.f32 %v14081_v30, 0.0 }
 0x91e   :  { %v4209_v47 = vadd.f32 1e-05, %v3969_v55  ;;  %v10773_v55 = vpop.xlane.xlu0 %3256 }
 0x91f   :  { %14086 = vst [vmem:[#allocation173_spill] sm:$0xff] %v10773_v55  ;;  %v1779_v55 = vld [vmem:[%s13681_s3 + $0x6e8] sm:$0xff] }
 0x920   :  { %7286 = vrsqrt.f32 %v4209_v47  ;;  %v3170_v47 = vmul.f32 %v10694_v2, %v10694_v2 }
 0x922   :  { %v10787_v30 = vpop.xlane.xlu0 %3008 }
 0x923   :  { %14088 = vst [vmem:[#allocation175_spill] sm:$0xff] %v10787_v30 }
 0x92d   :  { %v7287_v19 = vpop.eup %7286 }
 0x92e   :  { %v10771_v42 = vpop.f32.mrf.mxu1 }
 0x92f   :  { %14085 = vst [vmem:[#allocation109_spill] sm:$0xff] %v10771_v42 }
 0x930   :  { %3394 = vadd.xlane.f32.xlu1 %v3169_v15  ;;  %v4089_v15 = vld [vmem:[%s13682_s4 + $0x208] sm:$0xff]  ;;  %v2762_v45 = vpop.f32.mrf.mxu1 }
 0x931   :  { %v4449_v54 = vmul.f32 %v7287_v19, %v4089_v15  ;;  %v10789_v19 = vpop.xlane.xlu1 %3258  ;;  %v14090_v15 = vld [vmem:[#allocation127_spill] sm:$0xff]  ;;  %v10792_v45 = vpop.xlane.xlu0 %3368 }
 0x932   :  { %14089 = vst [vmem:[#allocation176_spill] sm:$0xff] %v10789_v19  ;;  %14091 = vst [vmem:[#allocation127_spill] sm:$0xff] %v10792_v45  ;;  %v14096_v45 = vld [vmem:[#allocation116_spill] sm:$0xff] }
 0x933   :  { %v4569_v16 = vmul.f32 %v4449_v54, %v14099_v22 }
 0x935   :  { %v10812_v25 = vpop.xlane.xlu0 %2900 }
 0x938   :  { %3036 = vadd.xlane.f32.xlu0 %v10694_v2  ;;  %v10807_v2 = vpop.xlane.xlu1 %3010 }
 0x939   :  { %14094 = vst [vmem:[#allocation177_spill] sm:$0xff] %v10807_v2 }
 0x941   :  { %4762 = vrot.lane.b32.xlu1 %v4513_v37, %s7595_s9  ;;  %v1776_v37 = vld [vmem:[%s13681_s3 + $0x6d0] sm:$0xff] }
 0x942   :  { %2769 = vmatmul.mubr.f32.gmra.mxu1 %v1776_v37 }
 0x943   :  { %6931 = vmatprep.mubr.msk.f32.mxu1 %vm1798_vm1, %v1779_v55  ;;  %v10816_v55 = vpop.xlane.xlu1 %3370 }
 0x944   :  { %14100 = vst [vmem:[#allocation116_spill] sm:$0xff] %v10816_v55 }
 0x947   :  { %v10833_v22 = vpop.xlane.xlu1 %2902 }
 0x948   :  { %14103 = vst [vmem:[#allocation179_spill] sm:$0xff] %v10833_v22  ;;  %v3171_v22 = vmul.f32 %v10771_v42, %v10771_v42 }
 0x94e   :  { %5551 = vperm.xlu0 %7066, %v4449_v54   ;;  %v1781_v54 = vld [vmem:[%s13681_s3 + $0x6f8] sm:$0xff] }
 0x95a   :  { %v10796_v37 = vpop.f32.mrf.mxu1 }
 0x95b   :  { %14093 = vst [vmem:[#allocation129_spill] sm:$0xff] %v10796_v37 }
 0x95c   :  { %v2767_v41 = vpop.f32.mrf.mxu1 }
 0x965   :  { %2926 = vadd.xlane.f32.xlu1 %v10720_v18 }
 0x96d   :  { %3396 = vadd.xlane.f32.xlu0 %v3170_v47  ;;  %v1778_v47 = vld [vmem:[%s13681_s3 + $0x6e0] sm:$0xff] }
 0x96e   :  { %2774 = vmatmul.mubr.f32.gmra.mxu1 %v1778_v47 }
 0x96f   :  { %6932 = vmatprep.mubr.msk.f32.mxu1 %vm1798_vm1, %v1781_v54 }
 0x976   :  { %5276 = vperm.xlu1 %7067, %v14090_v15   ;;  %v3115_v15 = vmul.f32 %v10720_v18, %v10720_v18 }
 0x983   :  { %4764 = vrot.lane.b32.xlu0 %v14092_v56, %s7595_s9  ;;  %v14095_v56 = vld [vmem:[#allocation117_spill] sm:$0xff] }
 0x984   :  { %v14097_v41 = vsub.f32 %v14095_v56, %v14096_v45  ;;  %14098 = vst [vmem:[#allocation117_spill] sm:$0xff] %v10812_v25 }
 0x986   :  { %v3915_v19 = vmax.f32 %v14097_v41, 0.0 }
 0x988   :  { %v4155_v30 = vadd.f32 1e-05, %v3915_v19  ;;  %v10824_v19 = vpop.xlane.xlu0 %3260 }
 0x989   :  { %14102 = vst [vmem:[#allocation178_spill] sm:$0xff] %v10824_v19  ;;  %v14108_v19 = vld [vmem:[#allocation131_spill] sm:$0xff] }
 0x98a   :  { %7288 = vrsqrt.f32 %v4155_v30  ;;  %v3116_v30 = vmul.f32 %v10745_v11, %v10745_v11 }
 0x98c   :  { %v10838_v41 = vpop.xlane.xlu0 %3012 }
 0x98d   :  { %14104 = vst [vmem:[#allocation180_spill] sm:$0xff] %v10838_v41 }
 0x997   :  { %v7289_v47 = vpop.eup %7288 }
 0x998   :  { %v10822_v45 = vpop.f32.mrf.mxu0 }
 0x999   :  { %14101 = vst [vmem:[#allocation112_spill] sm:$0xff] %v10822_v45 }
 0x99a   :  { %3286 = vadd.xlane.f32.xlu1 %v3115_v15  ;;  %v4035_v15 = vld [vmem:[%s13682_s4 + $0x58] sm:$0xff]  ;;  %v2492_v56 = vpop.f32.mrf.mxu0 }
 0x99b   :  { %v4395_v18 = vmul.f32 %v7289_v47, %v4035_v15  ;;  %v10840_v47 = vpop.xlane.xlu1 %3262  ;;  %v14106_v15 = vld [vmem:[#allocation130_spill] sm:$0xff]  ;;  %v10843_v56 = vpop.xlane.xlu0 %3372 }
 0x99c   :  { %14105 = vst [vmem:[#allocation181_spill] sm:$0xff] %v10840_v47  ;;  %14107 = vst [vmem:[#allocation130_spill] sm:$0xff] %v10843_v56 }
 0x99f   :  { %v10851_v55 = vpop.xlane.xlu1 %3014 }
 0x9a0   :  { %14110 = vst [vmem:[#allocation182_spill] sm:$0xff] %v10851_v55 }
 0x9a2   :  { %2928 = vadd.xlane.f32.xlu0 %v10745_v11  ;;  %v14111_v11 = vld [vmem:[#allocation120_spill] sm:$0xff] }
 0x9ab   :  { %4874 = vrot.lane.b32.xlu1 %v4569_v16, %s7595_s9  ;;  %v1780_v16 = vld [vmem:[%s13681_s3 + $0x6f0] sm:$0xff] }
 0x9ac   :  { %2779 = vmatmul.mubr.f32.gmra.mxu1 %v1780_v16 }
 0x9b8   :  { %5281 = vperm.xlu0 %7066, %v4395_v18  }
 0x9c4   :  { %v10847_v54 = vpop.f32.mrf.mxu0 }
 0x9c5   :  { %14109 = vst [vmem:[#allocation131_spill] sm:$0xff] %v10847_v54 }
 0x9c6   :  { %v2497_v16 = vpop.f32.mrf.mxu0 }
 0x9c7   :  { %v14115_v16 = vld [vmem:[#allocation115_spill] sm:$0xff] }
 0x9cf   :  { %3038 = vadd.xlane.f32.xlu1 %v10771_v42 }
 0x9d7   :  { %3288 = vadd.xlane.f32.xlu0 %v3116_v30  ;;  %v14112_v30 = vld [vmem:[#allocation119_spill] sm:$0xff] }
 0x9d8   :  { %v14113_v41 = vsub.f32 %v14111_v11, %v14112_v30  ;;  %v4515_v11 = vmul.f32 %v4395_v18, %v14115_v16  ;;  %v3172_v18 = vmul.f32 %v10796_v37, %v10796_v37  ;;  %v1785_v16 = vld [vmem:[%s13681_s3 + $0x718] sm:$0xff] }
 0x9da   :  { %v3971_v47 = vmax.f32 %v14113_v41, 0.0  ;;  %v10867_v41 = vpop.xlane.xlu1 %3374 }
 0x9db   :  { %14116 = vst [vmem:[#allocation119_spill] sm:$0xff] %v10867_v41 }
 0x9dc   :  { %v4211_v25 = vadd.f32 1e-05, %v3971_v47 }
 0x9de   :  { %7290 = vrsqrt.f32 %v4211_v25  ;;  %v4091_v25 = vld [vmem:[%s13682_s4 + $0x218] sm:$0xff]  ;;  %v10877_v55 = vpop.xlane.xlu1 %2906 }
 0x9df   :  { %14119 = vst [vmem:[#allocation184_spill] sm:$0xff] %v10877_v55 }
 0x9e0   :  { %5556 = vperm.xlu1 %7067, %v14106_v15   ;;  %v10856_v15 = vpop.xlane.xlu0 %2904 }
 0x9e1   :  { %14114 = vst [vmem:[#allocation120_spill] sm:$0xff] %v10856_v15 }
 0x9eb   :  { %v7291_v47 = vpop.eup %7290 }
 0x9ec   :  { %v4451_v30 = vmul.f32 %v7291_v47, %v4091_v25  ;;  %v14122_v47 = vld [vmem:[#allocation132_spill] sm:$0xff] }
 0x9ed   :  { %4876 = vrot.lane.b32.xlu0 %v14108_v19, %s7595_s9  ;;  %v1783_v19 = vld [vmem:[%s13681_s3 + $0x708] sm:$0xff] }
 0x9ee   :  { %6933 = vmatprep.mubr.msk.f32.mxu1 %vm1798_vm1, %v1783_v19  ;;  %v10875_v19 = vpop.xlane.xlu0 %3264 }
 0x9ef   :  { %14118 = vst [vmem:[#allocation183_spill] sm:$0xff] %v10875_v19  ;;  %v14126_v19 = vld [vmem:[#allocation125_spill] sm:$0xff] }
 0xa02   :  { %v10873_v42 = vpop.f32.mrf.mxu1 }
 0xa03   :  { %14117 = vst [vmem:[#allocation115_spill] sm:$0xff] %v10873_v42 }
 0xa04   :  { %3398 = vadd.xlane.f32.xlu1 %v3171_v22  ;;  %v1782_v22 = vld [vmem:[%s13681_s3 + $0x700] sm:$0xff]  ;;  %v2772_v15 = vpop.f32.mrf.mxu1 }
 0xa05   :  { %2784 = vmatmul.mubr.f32.gmra.mxu1 %v1782_v22  ;;  %v10882_v22 = vpop.xlane.xlu0 %3016  ;;  %v1784_v15 = vld [vmem:[%s13681_s3 + $0x710] sm:$0xff] }
 0xa06   :  { %14120 = vst [vmem:[#allocation185_spill] sm:$0xff] %v10882_v22  ;;  %6934 = vmatprep.mubr.msk.f32.mxu1 %vm1798_vm1, %v1785_v16  ;;  %v3117_v16 = vmul.f32 %v10822_v45, %v10822_v45 }
 0xa09   :  { %2789 = vmatmul.mubr.f32.gmra.mxu1 %v1784_v15  ;;  %v10894_v25 = vpop.permute.xlu0 %5226  ;;  %v14127_v15 = vld [vmem:[#allocation124_spill] sm:$0xff] }
 0xa0a   :  { %14123 = vst [vmem:[#allocation132_spill] sm:$0xff] %v10894_v25  ;;  %v14128_v41 = vsub.f32 %v14126_v19, %v14127_v15 }
 0xa0c   :  { %3040 = vadd.xlane.f32.xlu0 %v10796_v37  ;;  %v14124_v37 = vld [vmem:[#allocation133_spill] sm:$0xff] }
 0xa15   :  { %4766 = vrot.lane.b32.xlu1 %v4515_v11, %s7595_s9  ;;  %v10891_v11 = vpop.xlane.xlu1 %3266 }
 0xa16   :  { %14121 = vst [vmem:[#allocation186_spill] sm:$0xff] %v10891_v11  ;;  %v3917_v11 = vmax.f32 %v14128_v41, 0.0  ;;  %v1786_v41 = vld [vmem:[%s13681_s3 + $0x720] sm:$0xff] }
 0xa18   :  { %v4157_v56 = vadd.f32 1e-05, %v3917_v11 }
 0xa19   :  { %v10902_v55 = vpop.permute.xlu1 %4854 }
 0xa1a   :  { %7292 = vrsqrt.f32 %v4157_v56  ;;  %v4037_v56 = vld [vmem:[%s13682_s4 + $0x68] sm:$0xff] }
 0xa1d   :  { %v10911_v2 = vpop.xlane.xlu1 %3018 }
 0xa21   :  { %v10928_v15 = vpop.permute.xlu1 %5231 }
 0xa22   :  { %5561 = vperm.xlu0 %7066, %v4451_v30  }
 0xa27   :  { %v7293_v19 = vpop.eup %7292 }
 0xa39   :  { %2930 = vadd.xlane.f32.xlu1 %v10822_v45 }
 0xa41   :  { %3400 = vadd.xlane.f32.xlu0 %v3172_v18  ;;  %v10898_v18 = vpop.f32.mrf.mxu1 }
 0xa42   :  { %14125 = vst [vmem:[#allocation133_spill] sm:$0xff] %v10898_v18 }
 0xa43   :  { %v2777_v22 = vpop.f32.mrf.mxu1 }
 0xa44   :  { %v1787_v22 = vld [vmem:[%s13681_s3 + $0x728] sm:$0xff] }
 0xa45   :  { %6935 = vmatprep.mubr.msk.f32.mxu1 %vm1798_vm1, %v1787_v22 }
 0xa46   :  { %2794 = vmatmul.mubr.f32.gmra.mxu1 %v1786_v41  ;;  %v10935_v41 = vpop.permute.xlu1 %5506 }
 0xa47   :  { %14133 = vst [vmem:[#allocation187_spill] sm:$0xff] %v10935_v41 }
 0xa4a   :  { %5286 = vperm.xlu1 %7067, %v14122_v47   ;;  %v10907_v47 = vpop.permute.xlu0 %5501 }
 0xa4b   :  { %14129 = vst [vmem:[#allocation125_spill] sm:$0xff] %v10907_v47 }
 0xa4e   :  { %v10924_v11 = vpop.xlane.xlu0 %3376 }
 0xa52   :  { %v10933_v22 = vpop.permute.xlu0 %4744 }
 0xa57   :  { %4768 = vrot.lane.b32.xlu0 %v14124_v37, %s7595_s9  ;;  %v14130_v37 = vld [vmem:[#allocation118_spill] sm:$0xff] }
 0xa58   :  { %v4571_v25 = vmul.f32 %v4451_v30, %v14130_v37  ;;  %v4397_v30 = vmul.f32 %v7293_v19, %v4037_v56  ;;  %14132 = vst [vmem:[#allocation118_spill] sm:$0xff] %v10928_v15  ;;  %v3118_v37 = vmul.f32 %v10847_v54, %v10847_v54  ;;  %v1789_v19 = vld [vmem:[%s13681_s3 + $0x738] sm:$0xff]  ;;  %v1788_v56 = vld [vmem:[%s13681_s3 + $0x730] sm:$0xff] }
 0xa59   :  { %6936 = vmatprep.mubr.msk.f32.mxu1 %vm1798_vm1, %v1789_v19 }
 0xa5a   :  { %2799 = vmatmul.mubr.f32.gmra.mxu1 %v1788_v56  ;;  %v14135_v56 = vld [vmem:[#allocation122_spill] sm:$0xff] }
 0xa5b   :  { %v4517_v41 = vmul.f32 %v4397_v30, %v14135_v56 }
 0xa6e   :  { %3290 = vadd.xlane.f32.xlu1 %v3117_v16 }
 0xa76   :  { %2932 = vadd.xlane.f32.xlu0 %v10847_v54  ;;  %v10953_v54 = vpop.xlane.xlu1 %3378 }
 0xa7a   :  { %v10958_v47 = vpop.permute.xlu1 %4746 }
 0xa7f   :  { %4878 = vrot.lane.b32.xlu1 %v4571_v25, %s7595_s9  ;;  %v10926_v25 = vpop.f32.mrf.mxu1 }
 0xa80   :  { %14131 = vst [vmem:[#allocation124_spill] sm:$0xff] %v10926_v25 }
 0xa81   :  { %v2782_v16 = vpop.f32.mrf.mxu1 }
 0xa82   :  { %v10945_v16 = vpop.xlane.xlu0 %2908 }
 0xa86   :  { %v10955_v19 = vpop.xlane.xlu0 %3268 }
 0xa8c   :  { %5291 = vperm.xlu0 %7066, %v4397_v30   ;;  %v10976_v30 = vpop.permute.xlu0 %4856 }
 0xa90   :  { %v10983_v56 = vpop.xlane.xlu0 %3020 }
 0xa91   :  { %14139 = vst [vmem:[#allocation191_spill] sm:$0xff] %v10983_v56 }
 0xaa3   :  { %3042 = vadd.xlane.f32.xlu1 %v10873_v42 }
 0xaab   :  { %3292 = vadd.xlane.f32.xlu0 %v3118_v37 }
 0xab4   :  { %5566 = vperm.xlu1 %7067, %v10168_v31   ;;  %v3173_v31 = vmul.f32 %v10873_v42, %v10873_v42  ;;  %v1790_v42 = vld [vmem:[%s13681_s3 + $0x740] sm:$0xff] }
 0xac1   :  { %4880 = vrot.lane.b32.xlu0 %v10176_v52, %s7595_s9  ;;  %v10962_v52 = vpop.xlane.xlu1 %2910 }
 0xac2   :  { %14136 = vst [vmem:[#allocation122_spill] sm:$0xff] %v10962_v52 }
 0xac5   :  { %v10949_v37 = vpop.f32.mrf.mxu1 }
 0xac6   :  { %14134 = vst [vmem:[#allocation188_spill] sm:$0xff] %v10949_v37 }
 0xac7   :  { %v2787_v45 = vpop.f32.mrf.mxu1 }
 0xac8   :  { %v10965_v45 = vpop.permute.xlu1 %5236 }
 0xac9   :  { %14137 = vst [vmem:[#allocation189_spill] sm:$0xff] %v10965_v45 }
 0xacc   :  { %v10985_v45 = vpop.xlane.xlu1 %3270 }
 0xacd   :  { %14140 = vst [vmem:[#allocation192_spill] sm:$0xff] %v10985_v45 }
 0xad0   :  { %v10988_v52 = vpop.permute.xlu1 %4748 }
 0xad8   :  { %3402 = vadd.xlane.f32.xlu1 %v3173_v31  ;;  %v1791_v31 = vld [vmem:[%s13681_s3 + $0x748] sm:$0xff] }
 0xad9   :  { %6937 = vmatprep.mubr.msk.f32.mxu1 %vm1798_vm1, %v1791_v31  ;;  %v10998_v31 = vpop.permute.xlu0 %5511 }
 0xada   :  { %2804 = vmatmul.mubr.f32.gmra.mxu1 %v1790_v42  ;;  %v1792_v42 = vld [vmem:[%s13681_s3 + $0x750] sm:$0xff]  ;;  %14141 = vst [vmem:[#allocation193_spill] sm:$0xff] %v10998_v31 }
 0xae0   :  { %3044 = vadd.xlane.f32.xlu0 %v10898_v18 }
 0xae9   :  { %4770 = vrot.lane.b32.xlu1 %v4517_v41, %s7595_s9 }
 0xaed   :  { %5296 = vperm.xlu1 %7067, %v10201_v14   ;;  %v10979_v14 = vpop.f32.mrf.mxu1 }
 0xaee   :  { %14138 = vst [vmem:[#allocation190_spill] sm:$0xff] %v10979_v14 }
 0xaef   :  { %v2792_v41 = vpop.f32.mrf.mxu1 }
 0xaf0   :  { %v11002_v41 = vpop.xlane.xlu0 %3380 }
 0xaf1   :  { %4882 = vrot.lane.b32.xlu1 %v10180_v3, %s7595_s9  ;;  %v3174_v3 = vmul.f32 %v10898_v18, %v10898_v18  ;;  %14142 = vst [vmem:[#allocation194_spill] sm:$0xff] %v11002_v41  ;;  %v3176_v41 = vmul.f32 %v10949_v37, %v10949_v37 }
 0xaf6   :  { %5571 = vperm.xlu0 %7066, %v10170_v32   ;;  %v1793_v32 = vld [vmem:[%s13681_s3 + $0x758] sm:$0xff] }
 0xaf7   :  { %6938 = vmatprep.mubr.msk.f32.mxu1 %vm1798_vm1, %v1793_v32  ;;  %v3175_v32 = vmul.f32 %v10926_v25, %v10926_v25 }
 0xaf8   :  { %2809 = vmatmul.mubr.f32.gmra.mxu1 %v1792_v42  ;;  %v11013_v42 = vpop.permute.xlu1 %4858 }
 0xb15   :  { %3046 = vadd.xlane.f32.xlu1 %v10926_v25  ;;  %3404 = vadd.xlane.f32.xlu0 %v3174_v3  ;;  %v11009_v3 = vpop.f32.mrf.mxu1  ;;  %v3616_v25 = vmul.f32 0.020408163, %v10300_v36 }
 0xb16   :  { %14144 = vst [vmem:[#allocation196_spill] sm:$0xff] %v11009_v3 }
 0xb17   :  { %v2797_v18 = vpop.f32.mrf.mxu1 }
 0xb18   :  { %v1795_v18 = vld [vmem:[%s13681_s3 + $0x768] sm:$0xff] }
 0xb19   :  { %6939 = vmatprep.mubr.msk.f32.mxu1 %vm1798_vm1, %v1795_v18 }
 0xb26   :  { %5576 = vperm.xlu1 %7067, %v10225_v60   ;;  %v11005_v60 = vpop.xlane.xlu0 %2912 }
 0xb27   :  { %14143 = vst [vmem:[#allocation195_spill] sm:$0xff] %v11005_v60 }
 0xb2a   :  { %v11015_v31 = vpop.permute.xlu0 %5241 }
 0xb2b   :  { %4772 = vrot.lane.b32.xlu0 %v10207_v13, %s7595_s9  ;;  %14145 = vst [vmem:[#allocation197_spill] sm:$0xff] %v11015_v31  ;;  %v11018_v13 = vpop.xlane.xlu1 %3022 }
 0xb2c   :  { %14146 = vst [vmem:[#allocation198_spill] sm:$0xff] %v11018_v13 }
 0xb2f   :  { %5301 = vperm.xlu0 %7066, %v10203_v20   ;;  %v11022_v20 = vpop.permute.xlu1 %5516 }
 0xb30   :  { %14147 = vst [vmem:[#allocation199_spill] sm:$0xff] %v11022_v20 }
 0xb33   :  { %4884 = vrot.lane.b32.xlu0 %v10231_v8, %s7595_s9  ;;  %v11025_v8 = vpop.xlane.xlu1 %3382 }
 0xb34   :  { %14148 = vst [vmem:[#allocation200_spill] sm:$0xff] %v11025_v8 }
 0xb4a   :  { %3406 = vadd.xlane.f32.xlu1 %v3175_v32  ;;  %v1794_v32 = vld [vmem:[%s13681_s3 + $0x760] sm:$0xff] }
 0xb4b   :  { %2814 = vmatmul.mubr.f32.gmra.mxu1 %v1794_v32  ;;  %v11047_v32 = vpop.permute.xlu1 %4750 }
 0xb52   :  { %3048 = vadd.xlane.f32.xlu0 %v10949_v37 }
 0xb5b   :  { %4774 = vrot.lane.b32.xlu1 %v10211_v57, %s7595_s9  ;;  %v11036_v57 = vpop.xlane.xlu0 %3272 }
 0xb5c   :  { %14149 = vst [vmem:[#allocation201_spill] sm:$0xff] %v11036_v57 }
 0xb5f   :  { %5306 = vperm.xlu1 %7067, %v10249_v6   ;;  %v3496_v6 = vmul.f32 0.020408163, %v10297_v10  ;;  %v11045_v18 = vpop.permute.xlu0 %4860  ;;  %v4096_v10 = vld [vmem:[%s13682_s4 + $0x240] sm:$0xff] }
 0xb61   :  { %v3736_v31 = vmul.f32 %v3496_v6, %v3496_v6 }
 0xb63   :  { %4886 = vrot.lane.b32.xlu1 %v10235_v23, %s7595_s9  ;;  %v11041_v23 = vpop.f32.mrf.mxu1  ;;  %v3856_v8 = vsub.f32 %v3616_v25, %v3736_v31  ;;  %v11053_v25 = vpop.xlane.xlu1 %2914  ;;  %v1797_v31 = vld [vmem:[%s13681_s3 + $0x778] sm:$0xff] }
 0xb64   :  { %14150 = vst [vmem:[#allocation202_spill] sm:$0xff] %v11041_v23  ;;  %14151 = vst [vmem:[#allocation203_spill] sm:$0xff] %v11053_v25  ;;  %6940 = vmatprep.mubr.msk.f32.mxu1 %vm1798_vm1, %v1797_v31  ;;  %v3617_v31 = vmul.f32 0.020408163, %v10321_v50 }
 0xb65   :  { %v2802_v20 = vpop.f32.mrf.mxu1  ;;  %v3976_v13 = vmax.f32 %v3856_v8, 0.0 }
 0xb67   :  { %v4216_v60 = vadd.f32 1e-05, %v3976_v13  ;;  %v11080_v57 = vpop.permute.xlu1 %5246 }
 0xb68   :  { %5581 = vperm.xlu0 %7066, %v10227_v27   ;;  %14156 = vst [vmem:[#allocation208_spill] sm:$0xff] %v11080_v57 }
 0xb69   :  { %7294 = vrsqrt.f32 %v4216_v60  ;;  %v1796_v60 = vld [vmem:[%s13681_s3 + $0x770] sm:$0xff] }
 0xb6a   :  { %2819 = vmatmul.mubr.f32.gmra.mxu1 %v1796_v60  ;;  %v3562_v60 = vmul.f32 0.020408163, %v10327_v63 }
 0xb6b   :  { %v11085_v63 = vpop.xlane.xlu1 %3274 }
 0xb6c   :  { %14157 = vst [vmem:[#allocation209_spill] sm:$0xff] %v11085_v63  ;;  %v14229_v63 = vld [vmem:[#allocation146_spill] sm:$0xff] }
 0xb76   :  { %v7295_v27 = vpop.eup %7294 }
 0xb77   :  { %v4456_v36 = vmul.f32 %v7295_v27, %v4096_v10  ;;  %v3497_v27 = vmul.f32 0.020408163, %v10313_v12  ;;  %v3442_v10 = vmul.f32 0.020408163, %v10319_v38 }
 0xb79   :  { %v4576_v20 = vmul.f32 %v4456_v36, %v3496_v6  ;;  %v3737_v37 = vmul.f32 %v3497_v27, %v3497_v27  ;;  %v3682_v25 = vmul.f32 %v3442_v10, %v3442_v10 }
 0xb87   :  { %3050 = vadd.xlane.f32.xlu1 %v10979_v14  ;;  %3408 = vadd.xlane.f32.xlu0 %v3176_v41  ;;  %v11062_v41 = vpop.xlane.xlu0 %3024 }
 0xb88   :  { %14152 = vst [vmem:[#allocation204_spill] sm:$0xff] %v11062_v41  ;;  %v3802_v41 = vsub.f32 %v3562_v60, %v3682_v25  ;;  %v4042_v25 = vld [vmem:[%s13682_s4 + $0x90] sm:$0xff]  ;;  %v11095_v60 = vpop.permute.xlu1 %4862 }
 0xb8b   :  { %v11066_v13 = vpop.permute.xlu0 %5521 }
 0xb8c   :  { %14153 = vst [vmem:[#allocation205_spill] sm:$0xff] %v11066_v13 }
 0xb8f   :  { %v11069_v8 = vpop.xlane.xlu0 %3384 }
 0xb90   :  { %14154 = vst [vmem:[#allocation206_spill] sm:$0xff] %v11069_v8 }
 0xb93   :  { %v11082_v38 = vpop.permute.xlu0 %4752 }
 0xb98   :  { %5586 = vperm.xlu1 %7067, %v4456_v36   ;;  %v3922_v36 = vmax.f32 %v3802_v41, 0.0  ;;  %v4097_v41 = vld [vmem:[%s13682_s4 + $0x248] sm:$0xff] }
 0xb9a   :  { %v11076_v13 = vpop.f32.mrf.mxu1  ;;  %v4162_v12 = vadd.f32 1e-05, %v3922_v36  ;;  %v3498_v36 = vmul.f32 0.020408163, %v10344_v33 }
 0xb9b   :  { %14155 = vst [vmem:[#allocation207_spill] sm:$0xff] %v11076_v13 }
 0xb9c   :  { %v2807_v6 = vpop.f32.mrf.mxu1 }
 0xb9d   :  { %4776 = vrot.lane.b32.xlu0 %v10255_v48, %s7595_s9  ;;  %v3857_v48 = vsub.f32 %v3617_v31, %v3737_v37  ;;  %v11100_v6 = vpop.xlane.xlu0 %2916 }
 0xb9e   :  { %14159 = vst [vmem:[#allocation211_spill] sm:$0xff] %v11100_v6 }
 0xba1   :  { %5311 = vperm.xlu0 %7066, %v10251_v53   ;;  %v3977_v53 = vmax.f32 %v3857_v48, 0.0  ;;  %v11110_v6 = vpop.permute.xlu0 %5251 }
 0xba2   :  { %14161 = vst [vmem:[#allocation213_spill] sm:$0xff] %v11110_v6 }
 0xba3   :  { %v4217_v8 = vadd.f32 1e-05, %v3977_v53  ;;  %v11097_v53 = vpop.xlane.xlu1 %3026 }
 0xba4   :  { %14158 = vst [vmem:[#allocation210_spill] sm:$0xff] %v11097_v53 }
 0xba5   :  { %4888 = vrot.lane.b32.xlu0 %v4576_v20, %s7595_s9  ;;  %v3177_v20 = vmul.f32 %v10979_v14, %v10979_v14  ;;  %7296 = vrsqrt.f32 %v4217_v8 }
 0xba6   :  { %7298 = vrsqrt.f32 %v4162_v12 }
 0xbb2   :  { %v7297_v50 = vpop.eup %7296 }
 0xbb3   :  { %v7299_v37 = vpop.eup %7298  ;;  %v4457_v31 = vmul.f32 %v7297_v50, %v4097_v41 }
 0xbb4   :  { %v4402_v8 = vmul.f32 %v7299_v37, %v4042_v25  ;;  %v3443_v25 = vmul.f32 0.020408163, %v10324_v61 }
 0xbb5   :  { %v4577_v48 = vmul.f32 %v4457_v31, %v3497_v27  ;;  %v3563_v27 = vmul.f32 0.020408163, %v10341_v43  ;;  %v4098_v43 = vld [vmem:[%s13682_s4 + $0x250] sm:$0xff] }
 0xbb6   :  { %v3683_v14 = vmul.f32 %v3443_v25, %v3443_v25 }
 0xbb8   :  { %v11104_v12 = vpop.f32.mrf.mxu1 }
 0xbb9   :  { %14160 = vst [vmem:[#allocation212_spill] sm:$0xff] %v11104_v12 }
 0xbba   :  { %v2812_v37 = vpop.f32.mrf.mxu1 }
 0xbbb   :  { %v4522_v37 = vmul.f32 %v4402_v8, %v3442_v10  ;;  %v11133_v10 = vmul.f32 0.020408163, %v10355_v46 }
 0xbbc   :  { %3410 = vadd.xlane.f32.xlu1 %v3177_v20  ;;  %v3618_v20 = vmul.f32 0.020408163, %v10349_v26  ;;  %v11112_v26 = vpop.permute.xlu1 %5526 }
 0xbbd   :  { %14162 = vst [vmem:[#allocation214_spill] sm:$0xff] %v11112_v26 }
 0xbc4   :  { %3052 = vadd.xlane.f32.xlu0 %v11009_v3 }
 0xbcd   :  { %4778 = vrot.lane.b32.xlu1 %v10259_v21, %s7595_s9  ;;  %v3738_v21 = vmul.f32 %v3498_v36, %v3498_v36 }
 0xbcf   :  { %v3858_v50 = vsub.f32 %v3618_v20, %v3738_v21  ;;  %v11118_v21 = vpop.xlane.xlu1 %3386 }
 0xbd0   :  { %14163 = vst [vmem:[#allocation215_spill] sm:$0xff] %v11118_v21 }
 0xbd1   :  { %5316 = vperm.xlu1 %7067, %v4402_v8   ;;  %v3978_v41 = vmax.f32 %v3858_v50, 0.0  ;;  %v3619_v8 = vmul.f32 0.020408163, %v10368_v1 }
 0xbd3   :  { %v4218_v53 = vadd.f32 1e-05, %v3978_v41  ;;  %v4043_v41 = vld [vmem:[%s13682_s4 + $0x98] sm:$0xff] }
 0xbd5   :  { %4890 = vrot.lane.b32.xlu1 %v4577_v48, %s7595_s9  ;;  %v3803_v48 = vsub.f32 %v3563_v27, %v3683_v14  ;;  %7300 = vrsqrt.f32 %v4218_v53  ;;  %v11120_v53 = vpop.xlane.xlu0 %3276 }
 0xbd6   :  { %14164 = vst [vmem:[#allocation216_spill] sm:$0xff] %v11120_v53  ;;  %v14228_v53 = vld [vmem:[#allocation145_spill] sm:$0xff] }
 0xbd7   :  { %v3923_v33 = vmax.f32 %v3803_v48, 0.0 }
 0xbd9   :  { %v4163_v20 = vadd.f32 1e-05, %v3923_v33  ;;  %v11126_v48 = vpop.permute.xlu0 %4864 }
 0xbda   :  { %5591 = vperm.xlu0 %7066, %v4457_v31   ;;  %v3178_v31 = vmul.f32 %v11009_v3, %v11009_v3 }
 0xbdb   :  { %7302 = vrsqrt.f32 %v4163_v20  ;;  %v3499_v20 = vmul.f32 0.020408163, %v10351_v28  ;;  %v3179_v28 = vmul.f32 %v11041_v23, %v11041_v23 }
 0xbdd   :  { %v11128_v33 = vpop.xlane.xlu0 %3028 }
 0xbde   :  { %14165 = vst [vmem:[#allocation217_spill] sm:$0xff] %v11128_v33  ;;  %v11143_v33 = vpop.permute.xlu1 %4754 }
 0xbe1   :  { %v11145_v1 = vpop.permute.xlu0 %5531 }
 0xbe2   :  { %v7301_v61 = vpop.eup %7300  ;;  %14167 = vst [vmem:[#allocation219_spill] sm:$0xff] %v11145_v1 }
 0xbe3   :  { %v4458_v14 = vmul.f32 %v7301_v61, %v4098_v43  ;;  %v3564_v61 = vmul.f32 0.020408163, %v10371_v5  ;;  %v3739_v43 = vmul.f32 %v3499_v20, %v3499_v20 }
 0xbe8   :  { %v7303_v50 = vpop.eup %7302 }
 0xbe9   :  { %v4403_v27 = vmul.f32 %v7303_v50, %v4043_v41  ;;  %v3859_v50 = vsub.f32 %v3619_v8, %v3739_v43  ;;  %v11148_v8 = vpop.xlane.xlu1 %2918  ;;  %v4044_v43 = vld [vmem:[%s13682_s4 + $0xa0] sm:$0xff] }
 0xbea   :  { %14168 = vst [vmem:[#allocation220_spill] sm:$0xff] %v11148_v8 }
 0xbf9   :  { %3054 = vadd.xlane.f32.xlu1 %v11041_v23  ;;  %3412 = vadd.xlane.f32.xlu0 %v3178_v31  ;;  %v4578_v31 = vmul.f32 %v4458_v14, %v3498_v36 }
 0xc0a   :  { %5596 = vperm.xlu1 %7067, %v4458_v14   ;;  %v3979_v14 = vmax.f32 %v3859_v50, 0.0 }
 0xc0b   :  { %v11139_v36 = vpop.f32.mrf.mxu1 }
 0xc0c   :  { %14166 = vst [vmem:[#allocation218_spill] sm:$0xff] %v11139_v36  ;;  %v4219_v6 = vadd.f32 1e-05, %v3979_v14 }
 0xc0d   :  { %v2817_v3 = vpop.f32.mrf.mxu1 }
 0xc0e   :  { %7304 = vrsqrt.f32 %v4219_v6 }
 0xc0f   :  { %4780 = vrot.lane.b32.xlu0 %v4522_v37, %s7595_s9  ;;  %v3684_v37 = vmul.f32 %v11133_v10, %v11133_v10 }
 0xc11   :  { %v3804_v41 = vsub.f32 %v3564_v61, %v3684_v37  ;;  %v4523_v61 = vmul.f32 %v4403_v27, %v3443_v25  ;;  %v4099_v37 = vld [vmem:[%s13682_s4 + $0x258] sm:$0xff]  ;;  %v11162_v25 = vpop.xlane.xlu0 %3388 }
 0xc12   :  { %14171 = vst [vmem:[#allocation223_spill] sm:$0xff] %v11162_v25 }
 0xc13   :  { %5321 = vperm.xlu0 %7066, %v4403_v27  }
 0xc15   :  { %v11164_v27 = vpop.permute.xlu0 %4756 }
 0xc17   :  { %4892 = vrot.lane.b32.xlu0 %v4578_v31, %s7595_s9  ;;  %v3924_v31 = vmax.f32 %v3804_v41, 0.0  ;;  %v11157_v41 = vpop.permute.xlu1 %5256 }
 0xc18   :  { %14169 = vst [vmem:[#allocation221_spill] sm:$0xff] %v11157_v41  ;;  %v3180_v41 = vmul.f32 %v11076_v13, %v11076_v13 }
 0xc19   :  { %v4164_v46 = vadd.f32 1e-05, %v3924_v31 }
 0xc1b   :  { %7306 = vrsqrt.f32 %v4164_v46  ;;  %v7305_v5 = vpop.eup %7304  ;;  %v11159_v31 = vpop.xlane.xlu1 %3278  ;;  %v3620_v46 = vmul.f32 0.020408163, %v10395_v35 }
 0xc1c   :  { %v4459_v50 = vmul.f32 %v7305_v5, %v4099_v37  ;;  %14170 = vst [vmem:[#allocation222_spill] sm:$0xff] %v11159_v31 }
 0xc1e   :  { %v4579_v14 = vmul.f32 %v4459_v50, %v3499_v20 }
 0xc28   :  { %v7307_v3 = vpop.eup %7306 }
 0xc29   :  { %v4404_v6 = vmul.f32 %v7307_v3, %v4044_v43 }
 0xc2a   :  { %v11170_v5 = vpop.f32.mrf.mxu1 }
 0xc2b   :  { %14173 = vst [vmem:[#allocation225_spill] sm:$0xff] %v11170_v5 }
 0xc2c   :  { %v2822_v43 = vpop.f32.mrf.mxu1 }
 0xc2d   :  { %v11186_v43 = vpop.permute.xlu1 %4866 }
 0xc2e   :  { %3414 = vadd.xlane.f32.xlu1 %v3179_v28  ;;  %v3500_v28 = vmul.f32 0.020408163, %v10377_v39 }
 0xc30   :  { %v3740_v3 = vmul.f32 %v3500_v28, %v3500_v28 }
 0xc32   :  { %v3860_v20 = vsub.f32 %v3620_v46, %v3740_v3 }
 0xc34   :  { %v3980_v23 = vmax.f32 %v3860_v20, 0.0 }
 0xc36   :  { %3056 = vadd.xlane.f32.xlu0 %v11076_v13  ;;  %v4220_v35 = vadd.f32 1e-05, %v3980_v23 }
 0xc38   :  { %7308 = vrsqrt.f32 %v4220_v35  ;;  %v11198_v35 = vpop.xlane.xlu1 %3030 }
 0xc39   :  { %14179 = vst [vmem:[#allocation231_spill] sm:$0xff] %v11198_v35 }
 0xc3f   :  { %4782 = vrot.lane.b32.xlu1 %v4523_v61, %s7595_s9  ;;  %v11168_v61 = vpop.xlane.xlu0 %2920 }
 0xc40   :  { %14172 = vst [vmem:[#allocation224_spill] sm:$0xff] %v11168_v61 }
 0xc43   :  { %5326 = vperm.xlu1 %7067, %v4404_v6   ;;  %v11172_v37 = vpop.permute.xlu0 %5261 }
 0xc44   :  { %14174 = vst [vmem:[#allocation226_spill] sm:$0xff] %v11172_v37 }
 0xc45   :  { %v7309_v23 = vpop.eup %7308 }
 0xc47   :  { %4894 = vrot.lane.b32.xlu1 %v4579_v14, %s7595_s9  ;;  %v11175_v14 = vmul.f32 0.020408163, %v10374_v51  ;;  %v11178_v1 = vpop.xlane.xlu0 %3280 }
 0xc48   :  { %14175 = vst [vmem:[#allocation227_spill] sm:$0xff] %v11178_v1 }
 0xc49   :  { %v3685_v39 = vmul.f32 %v11175_v14, %v11175_v14 }
 0xc4b   :  { %v11184_v46 = vpop.permute.xlu0 %4868 }
 0xc4c   :  { %5601 = vperm.xlu0 %7066, %v4459_v50   ;;  %v3565_v50 = vmul.f32 0.020408163, %v10390_v58 }
 0xc4e   :  { %v3805_v61 = vsub.f32 %v3565_v50, %v3685_v39  ;;  %v4100_v50 = vld [vmem:[%s13682_s4 + $0x260] sm:$0xff] }
 0xc4f   :  { %v11189_v58 = vpop.xlane.xlu0 %3032 }
 0xc50   :  { %v3925_v3 = vmax.f32 %v3805_v61, 0.0  ;;  %14176 = vst [vmem:[#allocation228_spill] sm:$0xff] %v11189_v58  ;;  %v4460_v61 = vmul.f32 %v7309_v23, %v4100_v50 }
 0xc52   :  { %v4165_v51 = vadd.f32 1e-05, %v3925_v3  ;;  %v4524_v3 = vmul.f32 %v4404_v6, %v11133_v10  ;;  %v4580_v23 = vmul.f32 %v4460_v61, %v3500_v28  ;;  %v3566_v28 = vmul.f32 0.020408163, %v10416_v62 }
 0xc53   :  { %v11191_v20 = vpop.permute.xlu0 %5541  ;;  %v3181_v62 = vmul.f32 %v11104_v12, %v11104_v12 }
 0xc54   :  { %7310 = vrsqrt.f32 %v4165_v51  ;;  %14177 = vst [vmem:[#allocation229_spill] sm:$0xff] %v11191_v20  ;;  %v4045_v20 = vld [vmem:[%s13682_s4 + $0xa8] sm:$0xff] }
 0xc57   :  { %v11196_v39 = vpop.xlane.xlu0 %3392 }
 0xc58   :  { %14178 = vst [vmem:[#allocation230_spill] sm:$0xff] %v11196_v39 }
 0xc5b   :  { %v11200_v13 = vpop.permute.xlu0 %4760 }
 0xc5f   :  { %v11209_v37 = vpop.xlane.xlu0 %2924 }
 0xc60   :  { %14181 = vst [vmem:[#allocation233_spill] sm:$0xff] %v11209_v37  ;;  %v3621_v37 = vmul.f32 0.020408163, %v10407_v44 }
 0xc61   :  { %v7311_v51 = vpop.eup %7310 }
 0xc62   :  { %v4405_v58 = vmul.f32 %v7311_v51, %v4045_v20 }
 0xc63   :  { %v11213_v50 = vpop.permute.xlu0 %5271 }
 0xc64   :  { %14183 = vst [vmem:[#allocation235_spill] sm:$0xff] %v11213_v50 }
 0xc67   :  { %v11218_v10 = vpop.xlane.xlu0 %3284 }
 0xc68   :  { %14185 = vst [vmem:[#allocation237_spill] sm:$0xff] %v11218_v10 }
 0xc6b   :  { %3058 = vadd.xlane.f32.xlu1 %v11104_v12  ;;  %3416 = vadd.xlane.f32.xlu0 %v3180_v41  ;;  %v11202_v41 = vpop.permute.xlu1 %5536  ;;  %v11227_v20 = vpop.permute.xlu0 %4872 }
 0xc6c   :  { %14180 = vst [vmem:[#allocation232_spill] sm:$0xff] %v11202_v41  ;;  %v3501_v41 = vmul.f32 0.020408163, %v10403_v24 }
 0xc6e   :  { %v3741_v51 = vmul.f32 %v3501_v41, %v3501_v41 }
 0xc6f   :  { %v11211_v39 = vpop.xlane.xlu1 %3390  ;;  %v11234_v10 = vpop.xlane.xlu0 %3036 }
 0xc70   :  { %14182 = vst [vmem:[#allocation234_spill] sm:$0xff] %v11211_v39  ;;  %v3861_v50 = vsub.f32 %v3621_v37, %v3741_v51  ;;  %14188 = vst [vmem:[#allocation240_spill] sm:$0xff] %v11234_v10 }
 0xc73   :  { %v11215_v1 = vpop.permute.xlu1 %4758  ;;  %v11238_v35 = vpop.permute.xlu0 %5551 }
 0xc74   :  { %14184 = vst [vmem:[#allocation236_spill] sm:$0xff] %v11215_v1  ;;  %14190 = vst [vmem:[#allocation242_spill] sm:$0xff] %v11238_v35 }
 0xc77   :  { %v11220_v6 = vpop.xlane.xlu1 %2922  ;;  %v11244_v25 = vpop.xlane.xlu0 %3396 }
 0xc78   :  { %14186 = vst [vmem:[#allocation238_spill] sm:$0xff] %v11220_v6  ;;  %14192 = vst [vmem:[#allocation244_spill] sm:$0xff] %v11244_v25 }
 0xc7c   :  { %5606 = vperm.xlu1 %7067, %v4460_v61   ;;  %v11230_v61 = vpop.permute.xlu1 %5266 }
 0xc7d   :  { %14187 = vst [vmem:[#allocation239_spill] sm:$0xff] %v11230_v61 }
 0xc80   :  { %v11236_v24 = vpop.xlane.xlu1 %3282 }
 0xc81   :  { %4784 = vrot.lane.b32.xlu0 %v4524_v3, %s7595_s9  ;;  %v11224_v3 = vmul.f32 0.020408163, %v10400_v59  ;;  %14189 = vst [vmem:[#allocation241_spill] sm:$0xff] %v11236_v24  ;;  %v3981_v59 = vmax.f32 %v3861_v50, 0.0 }
 0xc83   :  { %v4221_v31 = vadd.f32 1e-05, %v3981_v59 }
 0xc84   :  { %v11240_v44 = vpop.permute.xlu1 %4870 }
 0xc85   :  { %5331 = vperm.xlu0 %7066, %v4405_v58   ;;  %14191 = vst [vmem:[#allocation243_spill] sm:$0xff] %v11240_v44  ;;  %7312 = vrsqrt.f32 %v4221_v31  ;;  %v4046_v31 = vld [vmem:[%s13682_s4 + $0xb0] sm:$0xff] }
 0xc88   :  { %v11246_v37 = vpop.xlane.xlu1 %3034 }
 0xc89   :  { %4896 = vrot.lane.b32.xlu0 %v4580_v23, %s7595_s9  ;;  %v3686_v23 = vmul.f32 %v11224_v3, %v11224_v3  ;;  %14193 = vst [vmem:[#allocation245_spill] sm:$0xff] %v11246_v37 }
 0xc8b   :  { %v3806_v6 = vsub.f32 %v3566_v28, %v3686_v23  ;;  %v11248_v28 = vpop.permute.xlu0 %4764 }
 0xc8c   :  { %14194 = vst [vmem:[#allocation246_spill] sm:$0xff] %v11248_v28  ;;  %v11250_v50 = vpop.permute.xlu1 %5546 }
 0xc8d   :  { %v3926_v39 = vmax.f32 %v3806_v6, 0.0  ;;  %14195 = vst [vmem:[#allocation247_spill] sm:$0xff] %v11250_v50 }
 0xc8f   :  { %v4166_v61 = vadd.f32 1e-05, %v3926_v39  ;;  %v11253_v6 = vpop.xlane.xlu0 %2928  ;;  %v4525_v39 = vmul.f32 %v4405_v58, %v11175_v14 }
 0xc90   :  { %14196 = vst [vmem:[#allocation248_spill] sm:$0xff] %v11253_v6  ;;  %v11255_v51 = vpop.xlane.xlu1 %3394 }
 0xc91   :  { %7314 = vrsqrt.f32 %v4166_v61  ;;  %14197 = vst [vmem:[#allocation249_spill] sm:$0xff] %v11255_v51  ;;  %v4101_v61 = vld [vmem:[%s13682_s4 + $0x268] sm:$0xff] }
 0xc92   :  { %v7313_v23 = vpop.eup %7312 }
 0xc93   :  { %v11258_v12 = vpop.permute.xlu0 %5281  ;;  %v4461_v6 = vmul.f32 %v7313_v23, %v4101_v61 }
 0xc94   :  { %14198 = vst [vmem:[#allocation250_spill] sm:$0xff] %v11258_v12 }
 0xc95   :  { %v4581_v58 = vmul.f32 %v4461_v6, %v3501_v41  ;;  %v11294_v41 = vmul.f32 0.020408163, %v10430_v34  ;;  %v14216_v34 = vld [vmem:[#allocation95_spill] sm:$0xff] }
 0xc96   :  { %v3567_v37 = vmul.f32 0.020408163, %v14216_v34 }
 0xc97   :  { %v11271_v25 = vpop.xlane.xlu0 %3288 }
 0xc98   :  { %14200 = vst [vmem:[#allocation252_spill] sm:$0xff] %v11271_v25 }
 0xc9b   :  { %v11277_v12 = vpop.permute.xlu0 %4876 }
 0xc9c   :  { %14202 = vst [vmem:[#allocation254_spill] sm:$0xff] %v11277_v12 }
 0xc9e   :  { %v7315_v59 = vpop.eup %7314 }
 0xc9f   :  { %v11269_v35 = vmul.f32 %v7315_v59, %v4046_v31  ;;  %v11281_v50 = vpop.xlane.xlu0 %3040 }
 0xca0   :  { %3418 = vadd.xlane.f32.xlu1 %v3181_v62  ;;  %v11266_v62 = vpop.permute.xlu1 %4762  ;;  %14204 = vst [vmem:[#allocation256_spill] sm:$0xff] %v11281_v50 }
 0xca1   :  { %14199 = vst [vmem:[#allocation251_spill] sm:$0xff] %v11266_v62  ;;  %v3624_v62 = vmul.f32 0.020408163, %v14229_v63  ;;  %v11360_v63 = vmul.f32 0.020408163, %v10501_v40 }
 0xca3   :  { %v11285_v59 = vpop.permute.xlu0 %5561  ;;  %v3745_v40 = vmul.f32 %v11360_v63, %v11360_v63 }
 0xca4   :  { %v11273_v14 = vpop.xlane.xlu1 %2926  ;;  %14206 = vst [vmem:[#allocation258_spill] sm:$0xff] %v11285_v59 }
 0xca5   :  { %14201 = vst [vmem:[#allocation253_spill] sm:$0xff] %v11273_v14  ;;  %v14214_v14 = vld [vmem:[#allocation82_spill] sm:$0xff] }
 0xca6   :  { %v11306_v51 = vmul.f32 0.020408163, %v14214_v14 }
 0xca7   :  { %v11289_v31 = vpop.xlane.xlu0 %3400 }
 0xca8   :  { %3060 = vadd.xlane.f32.xlu0 %v11139_v36  ;;  %v11279_v10 = vpop.permute.xlu1 %5276  ;;  %14208 = vst [vmem:[#allocation260_spill] sm:$0xff] %v11289_v31 }
 0xca9   :  { %14203 = vst [vmem:[#allocation255_spill] sm:$0xff] %v11279_v10  ;;  %v3742_v10 = vmul.f32 %v11294_v41, %v11294_v41 }
 0xcab   :  { %v11299_v50 = vpop.permute.xlu0 %4768 }
 0xcaf   :  { %v11303_v59 = vpop.xlane.xlu0 %2932 }
 0xcb0   :  { %14213 = vst [vmem:[#allocation263_spill] sm:$0xff] %v11303_v59  ;;  %v14220_v59 = vld [vmem:[#allocation85_spill] sm:$0xff] }
 0xcb1   :  { %4786 = vrot.lane.b32.xlu1 %v4525_v39, %s7595_s9  ;;  %v11283_v39 = vpop.xlane.xlu1 %3286  ;;  %v3623_v34 = vmul.f32 0.020408163, %v14220_v59 }
 0xcb2   :  { %14205 = vst [vmem:[#allocation257_spill] sm:$0xff] %v11283_v39 }
 0xcb3   :  { %v11313_v8 = vpop.permute.xlu0 %5291 }
 0xcb4   :  { %14217 = vst [vmem:[#allocation95_spill] sm:$0xff] %v11313_v8 }
 0xcb5   :  { %5336 = vperm.xlu1 %7067, %v11269_v35   ;;  %v11287_v23 = vpop.permute.xlu1 %4874 }
 0xcb6   :  { %14207 = vst [vmem:[#allocation259_spill] sm:$0xff] %v11287_v23  ;;  %v3569_v23 = vmul.f32 0.020408163, %v14228_v53  ;;  %v4102_v53 = vld [vmem:[%s13682_s4 + $0x270] sm:$0xff] }
 0xcb9   :  { %4898 = vrot.lane.b32.xlu1 %v4581_v58, %s7595_s9  ;;  %v11291_v61 = vpop.xlane.xlu1 %3038  ;;  %v14210_v58 = vld [vmem:[#allocation140_spill] sm:$0xff] }
 0xcba   :  { %14209 = vst [vmem:[#allocation261_spill] sm:$0xff] %v11291_v61  ;;  %v3622_v25 = vmul.f32 0.020408163, %v14210_v58  ;;  %14211 = vst [vmem:[#allocation140_spill] sm:$0xff] %v11299_v50  ;;  %v3687_v58 = vmul.f32 %v11306_v51, %v11306_v51  ;;  %v14239_v50 = vld [vmem:[#allocation148_spill] sm:$0xff] }
 0xcbc   :  { %v3862_v39 = vsub.f32 %v3622_v25, %v3742_v10  ;;  %v3807_v26 = vsub.f32 %v3567_v37, %v3687_v58  ;;  %v11318_v25 = vmul.f32 0.020408163, %v10450_v29  ;;  %v14219_v10 = vld [vmem:[#allocation86_spill] sm:$0xff] }
 0xcbd   :  { %v11321_v14 = vmul.f32 0.020408163, %v14219_v10 }
 0xcbe   :  { %5611 = vperm.xlu0 %7066, %v4461_v6   ;;  %v11301_v6 = vpop.permute.xlu1 %5556  ;;  %v3982_v61 = vmax.f32 %v3862_v39, 0.0  ;;  %v3182_v39 = vmul.f32 %v11139_v36, %v11139_v36  ;;  %v3743_v29 = vmul.f32 %v11318_v25, %v11318_v25 }
 0xcbf   :  { %14212 = vst [vmem:[#allocation262_spill] sm:$0xff] %v11301_v6  ;;  %v11326_v6 = vpop.xlane.xlu0 %3292  ;;  %v3688_v58 = vmul.f32 %v11321_v14, %v11321_v14 }
 0xcc0   :  { %v4222_v24 = vadd.f32 1e-05, %v3982_v61  ;;  %14221 = vst [vmem:[#allocation86_spill] sm:$0xff] %v11326_v6  ;;  %v3927_v61 = vmax.f32 %v3807_v26, 0.0  ;;  %v3863_v10 = vsub.f32 %v3623_v34, %v3743_v29 }
 0xcc2   :  { %v11308_v31 = vpop.xlane.xlu1 %3398  ;;  %7316 = vrsqrt.f32 %v4222_v24  ;;  %v4167_v36 = vadd.f32 1e-05, %v3927_v61  ;;  %v14224_v24 = vld [vmem:[#allocation143_spill] sm:$0xff] }
 0xcc3   :  { %14215 = vst [vmem:[#allocation82_spill] sm:$0xff] %v11308_v31  ;;  %v14222_v31 = vld [vmem:[#allocation142_spill] sm:$0xff]  ;;  %v11339_v26 = vpop.permute.xlu0 %4880 }
 0xcc4   :  { %v3568_v8 = vmul.f32 0.020408163, %v14222_v31  ;;  %14225 = vst [vmem:[#allocation142_spill] sm:$0xff] %v11339_v26  ;;  %v14226_v31 = vld [vmem:[#allocation144_spill] sm:$0xff]  ;;  %7318 = vrsqrt.f32 %v4167_v36  ;;  %v11363_v36 = vmul.f32 0.020408163, %v10506_v0 }
 0xcc5   :  { %v11342_v6 = vmul.f32 0.020408163, %v14226_v31 }
 0xcc6   :  { %v11315_v21 = vpop.permute.xlu1 %4766  ;;  %v3808_v59 = vsub.f32 %v3568_v8, %v3688_v58  ;;  %v3690_v0 = vmul.f32 %v11363_v36, %v11363_v36 }
 0xcc7   :  { %14218 = vst [vmem:[#allocation264_spill] sm:$0xff] %v11315_v21  ;;  %v11337_v21 = vmul.f32 0.020408163, %v14224_v24  ;;  %v11350_v34 = vpop.xlane.xlu0 %3044  ;;  %v3744_v61 = vmul.f32 %v11342_v6, %v11342_v6 }
 0xcc8   :  { %v3928_v57 = vmax.f32 %v3808_v59, 0.0  ;;  %14230 = vst [vmem:[#allocation144_spill] sm:$0xff] %v11350_v34  ;;  %v14232_v34 = vld [vmem:[#allocation91_spill] sm:$0xff] }
 0xcc9   :  { %v3689_v8 = vmul.f32 %v11337_v21, %v11337_v21  ;;  %v3625_v26 = vmul.f32 0.020408163, %v14232_v34 }
 0xcca   :  { %v11329_v37 = vpop.xlane.xlu1 %2930 }
 0xccb   :  { %14223 = vst [vmem:[#allocation85_spill] sm:$0xff] %v11329_v37  ;;  %v3809_v24 = vsub.f32 %v3569_v23, %v3689_v8 }
 0xccd   :  { %v3929_v59 = vmax.f32 %v3809_v24, 0.0 }
 0xcce   :  { %v11344_v37 = vpop.permute.xlu1 %5286 }
 0xccf   :  { %14227 = vst [vmem:[#allocation143_spill] sm:$0xff] %v11344_v37  ;;  %v7317_v31 = vpop.eup %7316  ;;  %v3864_v37 = vsub.f32 %v3624_v62, %v3744_v61  ;;  %v14234_v62 = vld [vmem:[#allocation83_spill] sm:$0xff]  ;;  %v4169_v61 = vadd.f32 1e-05, %v3929_v59  ;;  %v11388_v59 = vmul.f32 0.020408163, %v14239_v50 }
 0xcd0   :  { %v4462_v23 = vmul.f32 %v7317_v31, %v4102_v53  ;;  %v14238_v53 = vld [vmem:[#allocation147_spill] sm:$0xff] }
 0xcd1   :  { %v3746_v50 = vmul.f32 %v11388_v59, %v11388_v59 }
 0xcd2   :  { %v11354_v29 = vpop.xlane.xlu1 %3290 }
 0xcd3   :  { %14231 = vst [vmem:[#allocation145_spill] sm:$0xff] %v11354_v29  ;;  %v11366_v29 = vpop.permute.xlu0 %5571 }
 0xcd4   :  { %14233 = vst [vmem:[#allocation146_spill] sm:$0xff] %v11366_v29 }
 0xcd6   :  { %v11369_v8 = vpop.permute.xlu1 %4878 }
 0xcd7   :  { %14235 = vst [vmem:[#allocation91_spill] sm:$0xff] %v11369_v8  ;;  %v11375_v24 = vpop.xlane.xlu0 %3404  ;;  %v4047_v8 = vld [vmem:[%s13682_s4 + $0xb8] sm:$0xff] }
 0xcd8   :  { %14236 = vst [vmem:[#allocation83_spill] sm:$0xff] %v11375_v24 }
 0xcda   :  { %v11377_v31 = vpop.xlane.xlu1 %3042 }
 0xcdb   :  { %14237 = vst [vmem:[#allocation265_spill] sm:$0xff] %v11377_v31  ;;  %v11397_v24 = vpop.permute.xlu0 %4772 }
 0xcdc   :  { %14242 = vst [vmem:[#allocation147_spill] sm:$0xff] %v11397_v24 }
 0xcdd   :  { %3062 = vadd.xlane.f32.xlu1 %v11170_v5  ;;  %3420 = vadd.xlane.f32.xlu0 %v3182_v39  ;;  %v3983_v39 = vmax.f32 %v3863_v10, 0.0  ;;  %v4168_v10 = vadd.f32 1e-05, %v3928_v57  ;;  %v3984_v57 = vmax.f32 %v3864_v37, 0.0  ;;  %v4526_v37 = vmul.f32 %v11269_v35, %v11224_v3  ;;  %v14241_v35 = vld [vmem:[#allocation150_spill] sm:$0xff] }
 0xcde   :  { %v3626_v3 = vmul.f32 0.020408163, %v14241_v35  ;;  %v11401_v31 = vpop.permute.xlu1 %5566  ;;  %v11409_v35 = vmul.f32 0.020408163, %v10552_v7 }
 0xcdf   :  { %v4223_v58 = vadd.f32 1e-05, %v3983_v39  ;;  %v3570_v39 = vmul.f32 0.020408163, %v14234_v62  ;;  %v4224_v34 = vadd.f32 1e-05, %v3984_v57  ;;  %v11411_v24 = vpop.permute.xlu0 %5301 }
 0xce0   :  { %v11382_v62 = vmul.f32 0.020408163, %v14238_v53  ;;  %v14240_v57 = vld [vmem:[#allocation149_spill] sm:$0xff]  ;;  %14243 = vst [vmem:[#allocation148_spill] sm:$0xff] %v11401_v31 }
 0xce1   :  { %7320 = vrsqrt.f32 %v4223_v58  ;;  %v3865_v58 = vsub.f32 %v3625_v26, %v3745_v40  ;;  %v3810_v29 = vsub.f32 %v3570_v39, %v3690_v0  ;;  %v3571_v39 = vmul.f32 0.020408163, %v14240_v57  ;;  %14244 = vst [vmem:[#allocation149_spill] sm:$0xff] %v11411_v24 }
 0xce2   :  { %7322 = vrsqrt.f32 %v4168_v10  ;;  %v7319_v10 = vpop.eup %7318  ;;  %v3691_v53 = vmul.f32 %v11382_v62, %v11382_v62 }
 0xce3   :  { %7324 = vrsqrt.f32 %v4169_v61  ;;  %v3985_v26 = vmax.f32 %v3865_v58, 0.0  ;;  %v3930_v40 = vmax.f32 %v3810_v29, 0.0  ;;  %v11393_v0 = vmul.f32 %v7319_v10, %v4047_v8  ;;  %v4103_v10 = vld [vmem:[%s13682_s4 + $0x278] sm:$0xff] }
 0xce4   :  { %7326 = vrsqrt.f32 %v4224_v34  ;;  %v3811_v58 = vsub.f32 %v3571_v39, %v3691_v53  ;;  %v4582_v8 = vmul.f32 %v4462_v23, %v11294_v41  ;;  %v11417_v39 = vmul.f32 0.020408163, %v10557_v9 }
 0xce5   :  { %v4225_v61 = vadd.f32 1e-05, %v3985_v26  ;;  %v4170_v29 = vadd.f32 1e-05, %v3930_v40  ;;  %v4048_v26 = vld [vmem:[%s13682_s4 + $0xc0] sm:$0xff]  ;;  %v11419_v40 = vpop.xlane.xlu1 %3402  ;;  %v3747_v9 = vmul.f32 %v11409_v35, %v11409_v35 }
 0xce6   :  { %14245 = vst [vmem:[#allocation150_spill] sm:$0xff] %v11419_v40  ;;  %v3931_v41 = vmax.f32 %v3811_v58, 0.0  ;;  %v3692_v40 = vmul.f32 %v11417_v39, %v11417_v39 }
 0xce7   :  { %7328 = vrsqrt.f32 %v4225_v61 }
 0xce8   :  { %7330 = vrsqrt.f32 %v4170_v29  ;;  %v4171_v61 = vadd.f32 1e-05, %v3931_v41  ;;  %v4104_v41 = vld [vmem:[%s13682_s4 + $0x280] sm:$0xff] }
 0xcea   :  { %7332 = vrsqrt.f32 %v4171_v61 }
 0xcee   :  { %5616 = vperm.xlu1 %7067, %v4462_v23   ;;  %v7321_v34 = vpop.eup %7320  ;;  %v14246_v23 = vld [vmem:[#allocation97_spill] sm:$0xff] }
 0xcef   :  { %v7323_v57 = vpop.eup %7322  ;;  %v11423_v53 = vmul.f32 %v7321_v34, %v4103_v10 }
 0xcf0   :  { %v11426_v31 = vmul.f32 %v7323_v57, %v4048_v26  ;;  %v7325_v34 = vpop.eup %7324  ;;  %v4049_v26 = vld [vmem:[%s13682_s4 + $0xc8] sm:$0xff] }
 0xcf2   :  { %v4528_v57 = vmul.f32 %v11426_v31, %v11321_v14  ;;  %v14252_v14 = vld [vmem:[#allocation154_spill] sm:$0xff] }
 0xcf3   :  { %4788 = vrot.lane.b32.xlu0 %v4526_v37, %s7595_s9  ;;  %v3866_v37 = vsub.f32 %v3626_v3, %v3746_v50  ;;  %v3627_v3 = vmul.f32 0.020408163, %v14246_v23  ;;  %v14247_v50 = vld [vmem:[#allocation88_spill] sm:$0xff]  ;;  %v7327_v23 = vpop.eup %7326 }
 0xcf4   :  { %v3572_v24 = vmul.f32 0.020408163, %v14247_v50  ;;  %v14250_v50 = vld [vmem:[#allocation152_spill] sm:$0xff]  ;;  %v11458_v45 = vmul.f32 %v7327_v23, %v4104_v41  ;;  %v11473_v41 = vmul.f32 0.020408163, %v10603_v17 }
 0xcf5   :  { %v3986_v7 = vmax.f32 %v3866_v37, 0.0  ;;  %v3867_v58 = vsub.f32 %v3627_v3, %v3747_v9  ;;  %v11435_v37 = vpop.permute.xlu1 %4770  ;;  %v11443_v44 = vmul.f32 0.020408163, %v14250_v50  ;;  %v14251_v3 = vld [vmem:[#allocation153_spill] sm:$0xff] }
 0xcf6   :  { %v3812_v29 = vsub.f32 %v3572_v24, %v3692_v40  ;;  %14249 = vst [vmem:[#allocation88_spill] sm:$0xff] %v11435_v37  ;;  %v3573_v40 = vmul.f32 0.020408163, %v14252_v14  ;;  %v11455_v37 = vmul.f32 %v7325_v34, %v4049_v26  ;;  %v7329_v34 = vpop.eup %7328 }
 0xcf7   :  { %5341 = vperm.xlu0 %7066, %v11393_v0   ;;  %v4226_v10 = vadd.f32 1e-05, %v3986_v7  ;;  %v11449_v7 = vmul.f32 0.020408163, %v14251_v3  ;;  %v3987_v24 = vmax.f32 %v3867_v58, 0.0  ;;  %v3693_v3 = vmul.f32 %v11443_v44, %v11443_v44  ;;  %v7331_v23 = vpop.eup %7330 }
 0xcf8   :  { %v3932_v50 = vmax.f32 %v3812_v29, 0.0  ;;  %v4105_v29 = vld [vmem:[%s13682_s4 + $0x288] sm:$0xff] }
 0xcf9   :  { %7334 = vrsqrt.f32 %v4226_v10  ;;  %v11464_v61 = vpop.permute.xlu1 %5296  ;;  %v4227_v58 = vadd.f32 1e-05, %v3987_v24  ;;  %v3813_v14 = vsub.f32 %v3573_v40, %v3693_v3  ;;  %v4050_v24 = vld [vmem:[%s13682_s4 + $0xd0] sm:$0xff]  ;;  %v11481_v40 = vmul.f32 0.020408163, %v10608_v4 }
 0xcfa   :  { %14255 = vst [vmem:[#allocation153_spill] sm:$0xff] %v11464_v61  ;;  %v4172_v26 = vadd.f32 1e-05, %v3932_v50  ;;  %v11485_v3 = vmul.f32 %v7329_v34, %v4105_v29  ;;  %v11490_v1 = vmul.f32 %v7331_v23, %v4050_v24  ;;  %v3749_v4 = vmul.f32 %v11473_v41, %v11473_v41 }
 0xcfb   :  { %4900 = vrot.lane.b32.xlu0 %v4582_v8, %s7595_s9  ;;  %v11433_v8 = vpop.permute.xlu0 %4884  ;;  %7336 = vrsqrt.f32 %v4227_v58  ;;  %v3694_v58 = vmul.f32 %v11481_v40, %v11481_v40 }
 0xcfc   :  { %14248 = vst [vmem:[#allocation97_spill] sm:$0xff] %v11433_v8  ;;  %v14254_v8 = vld [vmem:[#allocation155_spill] sm:$0xff]  ;;  %7338 = vrsqrt.f32 %v4172_v26  ;;  %v3183_v26 = vmul.f32 %v11170_v5, %v11170_v5  ;;  %v4530_v24 = vmul.f32 %v11490_v1, %v11363_v36 }
 0xcfd   :  { %v3628_v12 = vmul.f32 0.020408163, %v14254_v8  ;;  %v4584_v8 = vmul.f32 %v11458_v45, %v11342_v6  ;;  %v14257_v6 = vld [vmem:[#allocation102_spill] sm:$0xff] }
 0xcfe   :  { %v3629_v50 = vmul.f32 0.020408163, %v14257_v6 }
 0xcff   :  { %5621 = vperm.xlu0 %7066, %v11423_v53   ;;  %v11453_v9 = vpop.xlane.xlu0 %3048 }
 0xd00   :  { %14253 = vst [vmem:[#allocation152_spill] sm:$0xff] %v11453_v9  ;;  %v3869_v34 = vsub.f32 %v3629_v50, %v3749_v4 }
 0xd02   :  { %v3989_v50 = vmax.f32 %v3869_v34, 0.0 }
 0xd03   :  { %4792 = vrot.lane.b32.xlu0 %v4528_v57, %s7595_s9  ;;  %v3748_v57 = vmul.f32 %v11449_v7, %v11449_v7  ;;  %v11475_v9 = vpop.permute.xlu0 %5581 }
 0xd04   :  { %14256 = vst [vmem:[#allocation154_spill] sm:$0xff] %v11475_v9  ;;  %v11488_v9 = vpop.permute.xlu1 %4882 }
 0xd05   :  { %v3868_v10 = vsub.f32 %v3628_v12, %v3748_v57  ;;  %v3933_v12 = vmax.f32 %v3813_v14, 0.0  ;;  %v14258_v57 = vld [vmem:[#allocation93_spill] sm:$0xff]  ;;  %14259 = vst [vmem:[#allocation155_spill] sm:$0xff] %v11488_v9 }
 0xd06   :  { %v3574_v61 = vmul.f32 0.020408163, %v14258_v57  ;;  %v4051_v57 = vld [vmem:[%s13682_s4 + $0xd8] sm:$0xff] }
 0xd07   :  { %5351 = vperm.xlu0 %7066, %v11455_v37   ;;  %v3988_v17 = vmax.f32 %v3868_v10, 0.0  ;;  %v11494_v56 = vpop.xlane.xlu0 %3408  ;;  %v4173_v14 = vadd.f32 1e-05, %v3933_v12  ;;  %v7333_v10 = vpop.eup %7332  ;;  %v4106_v12 = vld [vmem:[%s13682_s4 + $0x290] sm:$0xff] }
 0xd08   :  { %14260 = vst [vmem:[#allocation102_spill] sm:$0xff] %v11494_v56  ;;  %v3814_v29 = vsub.f32 %v3574_v61, %v3694_v58  ;;  %v11501_v23 = vpop.xlane.xlu1 %3046  ;;  %v7335_v6 = vpop.eup %7334  ;;  %v11514_v4 = vmul.f32 %v7333_v10, %v4051_v57  ;;  %v4107_v10 = vld [vmem:[%s13682_s4 + $0x298] sm:$0xff]  ;;  %v14267_v57 = vld [vmem:[#allocation158_spill] sm:$0xff] }
 0xd09   :  { %14261 = vst [vmem:[#allocation93_spill] sm:$0xff] %v11501_v23  ;;  %7340 = vrsqrt.f32 %v4173_v14  ;;  %v11516_v36 = vmul.f32 %v7335_v6, %v4106_v12  ;;  %v7337_v56 = vpop.eup %7336  ;;  %v11538_v12 = vmul.f32 0.020408163, %v14267_v57 }
 0xd0a   :  { %v7339_v34 = vpop.eup %7338 }
 0xd0b   :  { %4904 = vrot.lane.b32.xlu0 %v4584_v8, %s7595_s9  ;;  %v4228_v8 = vadd.f32 1e-05, %v3988_v17  ;;  %v11512_v61 = vpop.permute.xlu0 %4776  ;;  %v3934_v17 = vmax.f32 %v3814_v29, 0.0  ;;  %v4586_v14 = vmul.f32 %v11516_v36, %v11388_v59  ;;  %v14265_v29 = vld [vmem:[#allocation157_spill] sm:$0xff]  ;;  %v14268_v59 = vld [vmem:[#allocation159_spill] sm:$0xff] }
 0xd0c   :  { %14262 = vst [vmem:[#allocation266_spill] sm:$0xff] %v11512_v61  ;;  %v11518_v58 = vpop.permute.xlu1 %5576 }
 0xd0d   :  { %7342 = vrsqrt.f32 %v4228_v8  ;;  %14263 = vst [vmem:[#allocation267_spill] sm:$0xff] %v11518_v58  ;;  %v4174_v23 = vadd.f32 1e-05, %v3934_v17  ;;  %v4052_v8 = vld [vmem:[%s13682_s4 + $0xe0] sm:$0xff]  ;;  %v11541_v17 = vmul.f32 %v7337_v56, %v4107_v10  ;;  %v14269_v58 = vld [vmem:[#allocation160_spill] sm:$0xff]  ;;  %v4527_v56 = vmul.f32 %v11393_v0, %v11306_v51  ;;  %v14273_v51 = vld [vmem:[#allocation106_spill] sm:$0xff] }
 0xd0e   :  { %v3630_v9 = vmul.f32 0.020408163, %v14269_v58  ;;  %v11573_v0 = vmul.f32 0.020408163, %v14273_v51 }
 0xd0f   :  { %5631 = vperm.xlu0 %7066, %v11485_v3   ;;  %v11521_v5 = vpop.permute.xlu0 %5311 }
 0xd10   :  { %14264 = vst [vmem:[#allocation268_spill] sm:$0xff] %v11521_v5  ;;  %v11534_v6 = vpop.xlane.xlu1 %3406  ;;  %v11543_v5 = vmul.f32 %v7339_v34, %v4052_v8  ;;  %v4053_v8 = vld [vmem:[%s13682_s4 + $0xe8] sm:$0xff] }
 0xd11   :  { %14266 = vst [vmem:[#allocation157_spill] sm:$0xff] %v11534_v6 }
 0xd12   :  { %3422 = vadd.xlane.f32.xlu1 %v3183_v26  ;;  %v4229_v26 = vadd.f32 1e-05, %v3989_v50  ;;  %v3575_v50 = vmul.f32 0.020408163, %v14268_v59 }
 0xd13   :  { %4796 = vrot.lane.b32.xlu0 %v4530_v24, %s7595_s9  ;;  %v11532_v24 = vmul.f32 0.020408163, %v14265_v29  ;;  %v11546_v61 = vpop.permute.xlu0 %4888 }
 0xd14   :  { %7344 = vrsqrt.f32 %v4229_v26  ;;  %14270 = vst [vmem:[#allocation158_spill] sm:$0xff] %v11546_v61  ;;  %v3750_v26 = vmul.f32 %v11538_v12, %v11538_v12  ;;  %v11553_v59 = vpop.permute.xlu1 %4774  ;;  %v14275_v61 = vld [vmem:[#allocation162_spill] sm:$0xff] }
 0xd15   :  { %7346 = vrsqrt.f32 %v4174_v23  ;;  %v3695_v29 = vmul.f32 %v11532_v24, %v11532_v24  ;;  %14271 = vst [vmem:[#allocation159_spill] sm:$0xff] %v11553_v59  ;;  %v4532_v23 = vmul.f32 %v11543_v5, %v11417_v39  ;;  %v3576_v15 = vmul.f32 0.020408163, %v14275_v61 }
 0xd16   :  { %v3870_v34 = vsub.f32 %v3630_v9, %v3750_v26  ;;  %v14274_v9 = vld [vmem:[#allocation105_spill] sm:$0xff]  ;;  %v4583_v61 = vmul.f32 %v11423_v53, %v11318_v25 }
 0xd17   :  { %5361 = vperm.xlu0 %7066, %v11514_v4   ;;  %v3815_v57 = vsub.f32 %v3575_v50, %v3695_v29  ;;  %v11559_v10 = vpop.xlane.xlu0 %3052  ;;  %v4108_v50 = vld [vmem:[%s13682_s4 + $0x2a0] sm:$0xff]  ;;  %v11568_v29 = vmul.f32 0.020408163, %v10654_v49  ;;  %v3631_v26 = vmul.f32 0.020408163, %v14274_v9  ;;  %v4054_v9 = vld [vmem:[%s13682_s4 + $0xf0] sm:$0xff] }
 0xd18   :  { %14272 = vst [vmem:[#allocation160_spill] sm:$0xff] %v11559_v10  ;;  %v3990_v59 = vmax.f32 %v3870_v34, 0.0  ;;  %v11583_v28 = vpop.permute.xlu1 %5306 }
 0xd19   :  { %v3935_v39 = vmax.f32 %v3815_v57, 0.0  ;;  %v3751_v49 = vmul.f32 %v11568_v29, %v11568_v29  ;;  %14276 = vst [vmem:[#allocation106_spill] sm:$0xff] %v11583_v28  ;;  %v3696_v57 = vmul.f32 %v11573_v0, %v11573_v0 }
 0xd1b   :  { %4908 = vrot.lane.b32.xlu0 %v4586_v14, %s7595_s9  ;;  %v7341_v14 = vpop.eup %7340  ;;  %v3816_v51 = vsub.f32 %v3576_v15, %v3696_v57 }
 0xd1c   :  { %v7343_v58 = vpop.eup %7342  ;;  %v11576_v10 = vmul.f32 %v7341_v14, %v4053_v8  ;;  %v11605_v53 = vpop.permute.xlu1 %4886 }
 0xd1d   :  { %v11578_v6 = vmul.f32 %v7343_v58, %v4108_v50  ;;  %v3871_v58 = vsub.f32 %v3631_v26, %v3751_v49  ;;  %v4230_v50 = vadd.f32 1e-05, %v3990_v59  ;;  %v3936_v59 = vmax.f32 %v3816_v51, 0.0  ;;  %v14279_v26 = vld [vmem:[#allocation163_spill] sm:$0xff] }
 0xd1e   :  { %v11614_v49 = vmul.f32 0.020408163, %v14279_v26  ;;  %v14283_v26 = vmov 1  }
 0xd1f   :  { %5641 = vperm.xlu0 %7066, %v11541_v17   ;;  %v4588_v34 = vmul.f32 %v11578_v6, %v11449_v7  ;;  %v3991_v25 = vmax.f32 %v3871_v58, 0.0 }
 0xd21   :  { %v7345_v14 = vpop.eup %7344  ;;  %v4231_v57 = vadd.f32 1e-05, %v3991_v25  ;;  %v3697_v25 = vmul.f32 %v11614_v49, %v11614_v49 }
 0xd22   :  { %v7347_v8 = vpop.eup %7346 }
 0xd23   :  { %4790 = vrot.lane.b32.xlu1 %v4527_v56, %s7595_s9  ;;  %4800 = vrot.lane.b32.xlu0 %v4532_v23, %s7595_s9  ;;  %v11589_v56 = vpop.permute.xlu0 %5591  ;;  %v4175_v23 = vadd.f32 1e-05, %v3935_v39  ;;  %v11609_v15 = vmul.f32 %v7347_v8, %v4054_v9  ;;  %v14281_v8 = vld [vmem:[#allocation165_spill] sm:$0xff] }
 0xd24   :  { %14277 = vst [vmem:[#allocation105_spill] sm:$0xff] %v11589_v56  ;;  %v14289_v56 = vmov 0  }
 0xd25   :  { %7348 = vrsqrt.f32 %v4175_v23  ;;  %v11619_v23 = vpop.xlane.xlu1 %3050  ;;  %v4534_v58 = vmul.f32 %v11609_v15, %v11481_v40 }
 0xd26   :  { %7350 = vrsqrt.f32 %v4230_v50  ;;  %v3577_v50 = vmul.f32 0.020408163, %v14281_v8 }
 0xd27   :  { %5346 = vperm.xlu1 %7067, %v11426_v31   ;;  %5371 = vperm.xlu0 %7066, %v11576_v10   ;;  %v4109_v31 = vld [vmem:[%s13682_s4 + $0x2a8] sm:$0xff]  ;;  %v11603_v39 = vpop.xlane.xlu0 %3412  ;;  %7352 = vrsqrt.f32 %v4231_v57  ;;  %v7465_v57 = vld [vmem:[%s13682_s4 + $0x1c0] sm:$0xff] }
 0xd28   :  { %14278 = vst [vmem:[#allocation162_spill] sm:$0xff] %v11603_v39  ;;  %v11607_v7 = vmul.f32 %v7345_v14, %v4109_v31  ;;  %v4529_v14 = vmul.f32 %v11455_v37, %v11337_v21  ;;  %v14282_v31 = vld [vmem:[#allocation166_spill] sm:$0xff]  ;;  %v5160_v8 = vsub.f32 %v7465_v57, %v10976_v30  ;;  %v4110_v30 = vld [vmem:[%s13682_s4 + $0x2b0] sm:$0xff] }
 0xd29   :  { %v3632_v9 = vmul.f32 0.020408163, %v14282_v31  ;;  %v7464_v37 = vld [vmem:[%s13682_s4 + $0x8] sm:$0xff]  ;;  %v4585_v31 = vmul.f32 %v11485_v3, %v11360_v63  ;;  %v14286_v63 = vld [vmem:[#allocation167_spill] sm:$0xff] }
 0xd2a   :  { %v5105_v40 = vsub.f32 %v7464_v37, %v10958_v47  ;;  %v11663_v3 = vmul.f32 0.020408163, %v14286_v63  ;;  %v4111_v63 = vld [vmem:[%s13682_s4 + $0x2b8] sm:$0xff] }
 0xd2b   :  { %4902 = vrot.lane.b32.xlu1 %v4583_v61, %s7595_s9  ;;  %4912 = vrot.lane.b32.xlu0 %v4588_v34, %s7595_s9  ;;  %v14280_v61 = vld [vmem:[#allocation164_spill] sm:$0xff]  ;;  %v11626_v51 = vpop.permute.xlu0 %4780 }
 0xd2c   :  { %v11617_v34 = vmul.f32 0.020408163, %v14280_v61 }
 0xd2e   :  { %v3752_v21 = vmul.f32 %v11617_v34, %v11617_v34 }
 0xd2f   :  { %5626 = vperm.xlu1 %7067, %v11458_v45   ;;  %5651 = vperm.xlu0 %7066, %v11607_v7   ;;  %v4176_v45 = vadd.f32 1e-05, %v3936_v59  ;;  %v3817_v59 = vsub.f32 %v3577_v50, %v3697_v25  ;;  %v11640_v61 = vpop.permute.xlu0 %5321 }
 0xd30   :  { %14284 = vst [vmem:[#allocation163_spill] sm:$0xff] %v11640_v61 }
 0xd31   :  { %7354 = vrsqrt.f32 %v4176_v45  ;;  %v3937_v50 = vmax.f32 %v3817_v59, 0.0 }
 0xd32   :  { %v7349_v47 = vpop.eup %7348 }
 0xd33   :  { %4794 = vrot.lane.b32.xlu1 %v4529_v14, %s7595_s9  ;;  %4804 = vrot.lane.b32.xlu0 %v4534_v58, %s7595_s9  ;;  %v3872_v14 = vsub.f32 %v3632_v9, %v3752_v21  ;;  %v11642_v58 = vpop.permute.xlu1 %5586  ;;  %v7351_v45 = vpop.eup %7350  ;;  %v4177_v21 = vadd.f32 1e-05, %v3937_v50  ;;  %v3753_v50 = vmul.f32 %v11663_v3, %v11663_v3 }
 0xd34   :  { %7070 = vset.pattern.permute.xlu0 %v14283_v26  ;;  %14285 = vst [vmem:[#allocation164_spill] sm:$0xff] %v11642_v58  ;;  %v11660_v9 = vpop.permute.xlu0 %4892  ;;  %v11670_v57 = vmul.f32 %v7351_v45, %v4110_v30  ;;  %v14290_v58 = vld [vmem:[#allocation168_spill] sm:$0xff]  ;;  %v4531_v45 = vmul.f32 %v11514_v4, %v11382_v62  ;;  %v4056_v62 = vld [vmem:[%s13682_s4 + $0x100] sm:$0xff] }
 0xd35   :  { %v3992_v25 = vmax.f32 %v3872_v14, 0.0  ;;  %v3578_v28 = vmul.f32 0.020408163, %v14290_v58  ;;  %7356 = vrsqrt.f32 %v4177_v21 }
 0xd36   :  { %v4590_v58 = vmul.f32 %v11670_v57, %v11538_v12 }
 0xd37   :  { %5356 = vperm.xlu1 %7067, %v11490_v1   ;;  %5951 = vperm.xlu0 %7070, %v5105_v40   ;;  %v11651_v37 = vpop.xlane.xlu1 %3410  ;;  %v4055_v1 = vld [vmem:[%s13682_s4 + $0xf8] sm:$0xff]  ;;  %v14287_v40 = vld [vmem:[#allocation111_spill] sm:$0xff]  ;;  %v4232_v61 = vadd.f32 1e-05, %v3992_v25 }
 0xd38   :  { %v11666_v59 = vmul.f32 0.020408163, %v14287_v40  ;;  %v11668_v14 = vmul.f32 %v7349_v47, %v4055_v1  ;;  %v11676_v39 = vpop.xlane.xlu0 %3056  ;;  %v7353_v1 = vpop.eup %7352 }
 0xd39   :  { %7358 = vrsqrt.f32 %v4232_v61  ;;  %v11699_v40 = vmul.f32 %v7353_v1, %v4111_v63 }
 0xd3b   :  { %4906 = vrot.lane.b32.xlu1 %v4585_v31, %s7595_s9  ;;  %6226 = vperm.xlu0 %7070, %v5160_v8   ;;  %v14288_v8 = vld [vmem:[#allocation110_spill] sm:$0xff]  ;;  %v11681_v47 = vpop.permute.xlu1 %4778 }
 0xd3c   :  { %v3633_v31 = vmul.f32 0.020408163, %v14288_v8  ;;  %v11697_v21 = vpop.permute.xlu0 %5601 }
 0xd3d   :  { %14291 = vst [vmem:[#allocation165_spill] sm:$0xff] %v11697_v21 }
 0xd3e   :  { %v7355_v25 = vpop.eup %7354  ;;  %v3873_v30 = vsub.f32 %v3633_v31, %v3753_v50  ;;  %v4587_v50 = vmul.f32 %v11541_v17, %v11409_v35  ;;  %v14297_v35 = vld [vmem:[#allocation123_spill] sm:$0xff] }
 0xd3f   :  { %5636 = vperm.xlu1 %7067, %v11516_v36   ;;  %7071 = vset.pattern.permute.xlu0 %v14289_v56  ;;  %v3698_v36 = vmul.f32 %v11666_v59, %v11666_v59  ;;  %v11701_v12 = vmul.f32 %v7355_v25, %v4056_v62  ;;  %v11703_v8 = vpop.permute.xlu1 %5316  ;;  %v14295_v25 = vld [vmem:[#allocation170_spill] sm:$0xff]  ;;  %v3634_v17 = vmul.f32 0.020408163, %v14297_v35 }
 0xd40   :  { %5381 = vperm.xlu0 %7071, %v11668_v14   ;;  %v3993_v61 = vmax.f32 %v3873_v30, 0.0  ;;  %14292 = vst [vmem:[#allocation166_spill] sm:$0xff] %v11703_v8  ;;  %v11717_v30 = vmul.f32 0.020408163, %v14295_v25  ;;  %v4057_v35 = vld [vmem:[%s13682_s4 + $0x108] sm:$0xff] }
 0xd41   :  { %v3818_v4 = vsub.f32 %v3578_v28, %v3698_v36  ;;  %v14293_v28 = vld [vmem:[#allocation169_spill] sm:$0xff]  ;;  %v11712_v36 = vpop.xlane.xlu0 %3416  ;;  %v4536_v1 = vmul.f32 %v11701_v12, %v11573_v0 }
 0xd42   :  { %14294 = vst [vmem:[#allocation167_spill] sm:$0xff] %v11712_v36  ;;  %v4062_v36 = vld [vmem:[%s13682_s4 + $0x130] sm:$0xff] }
 0xd43   :  { %4798 = vrot.lane.b32.xlu1 %v4531_v45, %s7595_s9  ;;  %v3938_v31 = vmax.f32 %v3818_v4, 0.0  ;;  %v11710_v45 = vmul.f32 0.020408163, %v14293_v28  ;;  %v11723_v4 = vpop.permute.xlu1 %4890  ;;  %v7357_v28 = vpop.eup %7356 }
 0xd44   :  { %4916 = vrot.lane.b32.xlu0 %v4590_v58, %s7595_s9  ;;  %v4233_v58 = vadd.f32 1e-05, %v3993_v61  ;;  %v7466_v61 = vld [vmem:[%s13682_s4 + $0x1d0] sm:$0xff] }
 0xd45   :  { %v4178_v62 = vadd.f32 1e-05, %v3938_v31  ;;  %v3699_v0 = vmul.f32 %v11710_v45, %v11710_v45  ;;  %v3754_v31 = vmul.f32 %v11717_v30, %v11717_v30 }
 0xd46   :  { %7360 = vrsqrt.f32 %v4233_v58 }
 0xd47   :  { %5366 = vperm.xlu1 %7067, %v11543_v5   ;;  %v14296_v5 = vld [vmem:[#allocation171_spill] sm:$0xff]  ;;  %7362 = vrsqrt.f32 %v4178_v62  ;;  %v3874_v58 = vsub.f32 %v3634_v17, %v3754_v31  ;;  %v7467_v17 = vld [vmem:[%s13682_s4] sm:$0xff] }
 0xd48   :  { %5661 = vperm.xlu0 %7071, %v11699_v40   ;;  %v3579_v63 = vmul.f32 0.020408163, %v14296_v5  ;;  %v11735_v5 = vpop.permute.xlu0 %4784 }
 0xd49   :  { %v3994_v21 = vmax.f32 %v3874_v58, 0.0  ;;  %v14302_v58 = vld [vmem:[#allocation113_spill] sm:$0xff] }
 0xd4a   :  { %v3819_v25 = vsub.f32 %v3579_v63, %v3699_v0  ;;  %v11748_v63 = vmul.f32 %v7357_v28, %v4057_v35  ;;  %v14301_v35 = vld [vmem:[#allocation114_spill] sm:$0xff] }
 0xd4b   :  { %4910 = vrot.lane.b32.xlu1 %v4587_v50, %s7595_s9  ;;  %v5162_v50 = vsub.f32 %v7466_v61, %v11045_v18  ;;  %v4112_v18 = vld [vmem:[%s13682_s4 + $0x2c0] sm:$0xff]  ;;  %v11743_v61 = vpop.xlane.xlu1 %3054 }
 0xd4c   :  { %4808 = vrot.lane.b32.xlu0 %v4536_v1, %s7595_s9  ;;  %v7359_v1 = vpop.eup %7358  ;;  %v3939_v0 = vmax.f32 %v3819_v25, 0.0 }
 0xd4d   :  { %7075 = vset.pattern.permute.xlu0 %v14283_v26  ;;  %v11750_v62 = vmul.f32 %v7359_v1, %v4112_v18  ;;  %v11769_v18 = vmul.f32 0.020408163, %v14301_v35 }
 0xd4e   :  { %v4179_v25 = vadd.f32 1e-05, %v3939_v0 }
 0xd4f   :  { %5646 = vperm.xlu1 %7067, %v11578_v6   ;;  %v4533_v6 = vmul.f32 %v11576_v10, %v11443_v44  ;;  %v5104_v44 = vsub.f32 %v7467_v17, %v10933_v22  ;;  %v14299_v10 = vld [vmem:[#allocation172_spill] sm:$0xff]  ;;  %v11764_v31 = vpop.permute.xlu1 %5596  ;;  %v4592_v1 = vmul.f32 %v11750_v62, %v11617_v34 }
 0xd50   :  { %6236 = vperm.xlu0 %7075, %v5162_v50   ;;  %v11752_v50 = vpop.permute.xlu0 %5331  ;;  %v11762_v28 = vmul.f32 0.020408163, %v14299_v10  ;;  %14300 = vst [vmem:[#allocation110_spill] sm:$0xff] %v11764_v31  ;;  %v7468_v22 = vld [vmem:[%s13682_s4 + $0x1b8] sm:$0xff]  ;;  %v14303_v10 = vld [vmem:[#allocation173_spill] sm:$0xff]  ;;  %7364 = vrsqrt.f32 %v4179_v25 }
 0xd51   :  { %14298 = vst [vmem:[#allocation111_spill] sm:$0xff] %v11752_v50  ;;  %v4234_v50 = vadd.f32 1e-05, %v3994_v21  ;;  %v5159_v17 = vsub.f32 %v7468_v22, %v10902_v55  ;;  %v7469_v21 = vld [vmem:[%s13682_s4 + $0x20] sm:$0xff] }
 0xd52   :  { %v3755_v34 = vmul.f32 %v11762_v28, %v11762_v28  ;;  %v5108_v0 = vsub.f32 %v7469_v21, %v11082_v38  ;;  %v4058_v38 = vld [vmem:[%s13682_s4 + $0x110] sm:$0xff] }
 0xd53   :  { %4802 = vrot.lane.b32.xlu1 %v4533_v6, %s7595_s9  ;;  %v3635_v6 = vmul.f32 0.020408163, %v14302_v58  ;;  %v11787_v35 = vpop.xlane.xlu1 %3414  ;;  %v7361_v55 = vpop.eup %7360  ;;  %7366 = vrsqrt.f32 %v4234_v50 }
 0xd54   :  { %7076 = vset.pattern.permute.xlu0 %v14289_v56  ;;  %7068 = vset.pattern.permute.xlu1 %v14283_v26  ;;  %v11778_v31 = vpop.permute.xlu0 %4896  ;;  %v7363_v58 = vpop.eup %7362 }
 0xd55   :  { %5391 = vperm.xlu0 %7076, %v11748_v63   ;;  %v3875_v22 = vsub.f32 %v3635_v6, %v3755_v34  ;;  %v11803_v6 = vmul.f32 %v7363_v58, %v4058_v38  ;;  %v14307_v58 = vld [vmem:[#allocation175_spill] sm:$0xff] }
 0xd57   :  { %5946 = vperm.xlu1 %7068, %v5104_v44   ;;  %v3580_v44 = vmul.f32 0.020408163, %v14303_v10  ;;  %v4113_v10 = vld [vmem:[%s13682_s4 + $0x2c8] sm:$0xff]  ;;  %v3995_v50 = vmax.f32 %v3875_v22, 0.0  ;;  %v11820_v22 = vmul.f32 0.020408163, %v14307_v58 }
 0xd58   :  { %v11797_v8 = vpop.xlane.xlu0 %3060  ;;  %v11801_v25 = vmul.f32 %v7361_v55, %v4113_v10  ;;  %v14308_v10 = vld [vmem:[#allocation176_spill] sm:$0xff] }
 0xd59   :  { %4920 = vrot.lane.b32.xlu0 %v4592_v1, %s7595_s9  ;;  %v3700_v1 = vmul.f32 %v11769_v18, %v11769_v18  ;;  %14304 = vst [vmem:[#allocation168_spill] sm:$0xff] %v11797_v8  ;;  %v4235_v55 = vadd.f32 1e-05, %v3995_v50  ;;  %v3581_v38 = vmul.f32 0.020408163, %v14308_v10 }
 0xd5a   :  { %7078 = vset.pattern.permute.xlu0 %v14283_v26 }
 0xd5b   :  { %6221 = vperm.xlu1 %7068, %v5159_v17   ;;  %v3820_v21 = vsub.f32 %v3580_v44, %v3700_v1  ;;  %v11805_v17 = vpop.permute.xlu1 %4782  ;;  %v4589_v44 = vmul.f32 %v11607_v7, %v11473_v41  ;;  %v14309_v41 = vld [vmem:[#allocation127_spill] sm:$0xff]  ;;  %7368 = vrsqrt.f32 %v4235_v55 }
 0xd5c   :  { %v11814_v8 = vpop.permute.xlu0 %5611  ;;  %v3636_v7 = vmul.f32 0.020408163, %v14309_v41 }
 0xd5d   :  { %5966 = vperm.xlu0 %7078, %v5108_v0   ;;  %v3940_v34 = vmax.f32 %v3820_v21, 0.0  ;;  %v14305_v0 = vld [vmem:[#allocation174_spill] sm:$0xff]  ;;  %14306 = vst [vmem:[#allocation169_spill] sm:$0xff] %v11814_v8  ;;  %v4535_v8 = vmul.f32 %v11668_v14, %v11532_v24  ;;  %v7471_v14 = vld [vmem:[%s13682_s4 + $0x10] sm:$0xff] }
 0xd5e   :  { %v11812_v1 = vmul.f32 0.020408163, %v14305_v0 }
 0xd5f   :  { %7069 = vset.pattern.permute.xlu1 %v14289_v56  ;;  %v4180_v21 = vadd.f32 1e-05, %v3940_v34  ;;  %v11825_v0 = vpop.permute.xlu1 %5326  ;;  %v7365_v34 = vpop.eup %7364 }
 0xd60   :  { %5376 = vperm.xlu1 %7069, %v11609_v15   ;;  %v4538_v15 = vmul.f32 %v11803_v6, %v11666_v59  ;;  %14310 = vst [vmem:[#allocation170_spill] sm:$0xff] %v11825_v0  ;;  %v7470_v59 = vld [vmem:[%s13682_s4 + $0x1e0] sm:$0xff]  ;;  %v7367_v10 = vpop.eup %7366 }
 0xd61   :  { %7081 = vset.pattern.permute.xlu0 %v14289_v56  ;;  %v5164_v50 = vsub.f32 %v7470_v59, %v11126_v48  ;;  %7370 = vrsqrt.f32 %v4180_v21  ;;  %v4059_v48 = vld [vmem:[%s13682_s4 + $0x118] sm:$0xff] }
 0xd62   :  { %5671 = vperm.xlu0 %7081, %v11801_v25  }
 0xd63   :  { %v11848_v55 = vpop.permute.xlu1 %4894 }
 0xd64   :  { %4914 = vrot.lane.b32.xlu1 %v4589_v44, %s7595_s9  ;;  %v3701_v44 = vmul.f32 %v11812_v1, %v11812_v1 }
 0xd66   :  { %4812 = vrot.lane.b32.xlu0 %v4538_v15, %s7595_s9  ;;  %v11834_v58 = vpop.xlane.xlu0 %3420  ;;  %v3756_v15 = vmul.f32 %v11820_v22, %v11820_v22  ;;  %v3821_v41 = vsub.f32 %v3581_v38, %v3701_v44  ;;  %v11851_v38 = vmul.f32 %v7365_v34, %v4059_v48  ;;  %v5106_v44 = vsub.f32 %v7471_v14, %v10988_v52  ;;  %v14314_v48 = vld [vmem:[#allocation117_spill] sm:$0xff]  ;;  %v7472_v52 = vld [vmem:[%s13682_s4 + $0x1c8] sm:$0xff] }
 0xd67   :  { %7083 = vset.pattern.permute.xlu0 %v14283_v26  ;;  %14311 = vst [vmem:[#allocation171_spill] sm:$0xff] %v11834_v58  ;;  %v14317_v58 = vld [vmem:[#allocation178_spill] sm:$0xff] }
 0xd68   :  { %5656 = vperm.xlu1 %7069, %v11670_v57   ;;  %v4114_v57 = vld [vmem:[%s13682_s4 + $0x2d0] sm:$0xff]  ;;  %v3876_v59 = vsub.f32 %v3636_v7, %v3756_v15  ;;  %v3941_v24 = vmax.f32 %v3821_v41, 0.0  ;;  %v14312_v7 = vld [vmem:[#allocation177_spill] sm:$0xff]  ;;  %v11866_v15 = vpop.xlane.xlu1 %3058 }
 0xd69   :  { %v11853_v21 = vmul.f32 %v7367_v10, %v4114_v57  ;;  %v11864_v34 = vmul.f32 0.020408163, %v14312_v7  ;;  %14313 = vst [vmem:[#allocation123_spill] sm:$0xff] %v11866_v15  ;;  %v11871_v57 = vmul.f32 0.020408163, %v14314_v48  ;;  %v7369_v48 = vpop.eup %7368 }
 0xd6a   :  { %6246 = vperm.xlu0 %7083, %v5164_v50   ;;  %v11859_v50 = vpop.permute.xlu0 %4788  ;;  %v4181_v41 = vadd.f32 1e-05, %v3941_v24  ;;  %v3582_v15 = vmul.f32 0.020408163, %v14317_v58  ;;  %v7473_v24 = vld [vmem:[%s13682_s4 + $0x30] sm:$0xff] }
 0xd6b   :  { %v4594_v10 = vmul.f32 %v11853_v21, %v11717_v30  ;;  %v3757_v30 = vmul.f32 %v11864_v34, %v11864_v34 }
 0xd6c   :  { %4806 = vrot.lane.b32.xlu1 %v4535_v8, %s7595_s9  ;;  %v3996_v8 = vmax.f32 %v3876_v59, 0.0  ;;  %v5161_v59 = vsub.f32 %v7472_v52, %v11013_v42  ;;  %v5110_v42 = vsub.f32 %v7473_v24, %v11164_v27  ;;  %7372 = vrsqrt.f32 %v4181_v41  ;;  %v4060_v27 = vld [vmem:[%s13682_s4 + $0x120] sm:$0xff] }
 0xd6d   :  { %7072 = vset.pattern.permute.xlu1 %v14283_v26 }
 0xd6e   :  { %7084 = vset.pattern.permute.xlu0 %v14289_v56  ;;  %v4236_v0 = vadd.f32 1e-05, %v3996_v8  ;;  %v3702_v8 = vmul.f32 %v11871_v57, %v11871_v57  ;;  %v7371_v58 = vpop.eup %7370 }
 0xd6f   :  { %5401 = vperm.xlu0 %7084, %v11851_v38  }
 0xd70   :  { %5956 = vperm.xlu1 %7072, %v5106_v44   ;;  %v14316_v44 = vld [vmem:[#allocation116_spill] sm:$0xff]  ;;  %7374 = vrsqrt.f32 %v4236_v0  ;;  %v3822_v41 = vsub.f32 %v3582_v15, %v3702_v8  ;;  %v11907_v0 = vmul.f32 %v7371_v58, %v4060_v27 }
 0xd71   :  { %v3637_v7 = vmul.f32 0.020408163, %v14316_v44  ;;  %v4115_v44 = vld [vmem:[%s13682_s4 + $0x2d8] sm:$0xff] }
 0xd72   :  { %v11877_v14 = vpop.permute.xlu0 %5341  ;;  %v4540_v8 = vmul.f32 %v11907_v0, %v11769_v18 }
 0xd73   :  { %14315 = vst [vmem:[#allocation172_spill] sm:$0xff] %v11877_v14  ;;  %4924 = vrot.lane.b32.xlu0 %v4594_v10, %s7595_s9  ;;  %v3877_v52 = vsub.f32 %v3637_v7, %v3757_v30  ;;  %v11905_v7 = vmul.f32 %v7369_v48, %v4115_v44  ;;  %v4591_v14 = vmul.f32 %v11699_v40, %v11568_v29  ;;  %v7474_v29 = vld [vmem:[%s13682_s4 + $0x18] sm:$0xff] }
 0xd74   :  { %6231 = vperm.xlu1 %7072, %v5161_v59   ;;  %7086 = vset.pattern.permute.xlu0 %v14283_v26  ;;  %v11893_v59 = vpop.permute.xlu1 %5606  ;;  %v5107_v40 = vsub.f32 %v7474_v29, %v11047_v32 }
 0xd75   :  { %14318 = vst [vmem:[#allocation114_spill] sm:$0xff] %v11893_v59  ;;  %v3997_v30 = vmax.f32 %v3877_v52, 0.0  ;;  %v3942_v59 = vmax.f32 %v3822_v41, 0.0  ;;  %v14322_v52 = vld [vmem:[#allocation180_spill] sm:$0xff] }
 0xd76   :  { %v11891_v10 = vpop.permute.xlu0 %4900  ;;  %v11925_v44 = vmul.f32 0.020408163, %v14322_v52 }
 0xd77   :  { %5976 = vperm.xlu0 %7086, %v5110_v42   ;;  %v4237_v58 = vadd.f32 1e-05, %v3997_v30  ;;  %v4182_v41 = vadd.f32 1e-05, %v3942_v59  ;;  %v7475_v30 = vld [vmem:[%s13682_s4 + $0x1f0] sm:$0xff] }
 0xd78   :  { %7073 = vset.pattern.permute.xlu1 %v14289_v56  ;;  %v11909_v42 = vpop.xlane.xlu1 %3418  ;;  %v5166_v32 = vsub.f32 %v7475_v30, %v11184_v46 }
 0xd79   :  { %5386 = vperm.xlu1 %7073, %v11701_v12   ;;  %14320 = vst [vmem:[#allocation173_spill] sm:$0xff] %v11909_v42  ;;  %v14321_v12 = vld [vmem:[#allocation179_spill] sm:$0xff]  ;;  %v7373_v59 = vpop.eup %7372  ;;  %7376 = vrsqrt.f32 %v4237_v58 }
 0xd7a   :  { %v11903_v24 = vpop.permute.xlu0 %5621  ;;  %v11917_v15 = vmul.f32 0.020408163, %v14321_v12  ;;  %v14324_v12 = vld [vmem:[#allocation130_spill] sm:$0xff]  ;;  %7378 = vrsqrt.f32 %v4182_v41 }
 0xd7b   :  { %14319 = vst [vmem:[#allocation113_spill] sm:$0xff] %v11903_v24  ;;  %7089 = vset.pattern.permute.xlu0 %v14289_v56  ;;  %v3638_v24 = vmul.f32 0.020408163, %v14324_v12  ;;  %v4116_v12 = vld [vmem:[%s13682_s4 + $0x2e0] sm:$0xff] }
 0xd7c   :  { %5681 = vperm.xlu0 %7089, %v11905_v7   ;;  %v11934_v42 = vpop.permute.xlu1 %4786  ;;  %v3703_v18 = vmul.f32 %v11917_v15, %v11917_v15 }
 0xd7d   :  { %4918 = vrot.lane.b32.xlu1 %v4591_v14, %s7595_s9  ;;  %v14323_v14 = vld [vmem:[#allocation181_spill] sm:$0xff]  ;;  %v7375_v29 = vpop.eup %7374 }
 0xd7e   :  { %v11919_v48 = vpop.permute.xlu0 %4792  ;;  %7074 = vset.pattern.permute.xlu1 %v14283_v26  ;;  %v3583_v27 = vmul.f32 0.020408163, %v14323_v14  ;;  %v4061_v14 = vld [vmem:[%s13682_s4 + $0x128] sm:$0xff]  ;;  %v11961_v41 = vmul.f32 %v7375_v29, %v4116_v12  ;;  %v14330_v12 = vld [vmem:[#allocation119_spill] sm:$0xff] }
 0xd80   :  { %4816 = vrot.lane.b32.xlu0 %v4540_v8, %s7595_s9  ;;  %v3758_v8 = vmul.f32 %v11925_v44, %v11925_v44  ;;  %v11957_v30 = vpop.permute.xlu1 %5336 }
 0xd81   :  { %5961 = vperm.xlu1 %7074, %v5107_v40   ;;  %7091 = vset.pattern.permute.xlu0 %v14283_v26  ;;  %v3823_v40 = vsub.f32 %v3583_v27, %v3703_v18  ;;  %14326 = vst [vmem:[#allocation175_spill] sm:$0xff] %v11957_v30  ;;  %v11959_v27 = vmul.f32 %v7373_v59, %v4061_v14 }
 0xd82   :  { %v11943_v52 = vpop.permute.xlu0 %5351  ;;  %v3878_v46 = vsub.f32 %v3638_v24, %v3758_v8  ;;  %v14328_v24 = vld [vmem:[#allocation182_spill] sm:$0xff]  ;;  %v4596_v59 = vmul.f32 %v11961_v41, %v11820_v22 }
 0xd83   :  { %14325 = vst [vmem:[#allocation174_spill] sm:$0xff] %v11943_v52  ;;  %v3943_v18 = vmax.f32 %v3823_v40, 0.0  ;;  %v11971_v8 = vmul.f32 0.020408163, %v14328_v24  ;;  %v14329_v40 = vld [vmem:[#allocation120_spill] sm:$0xff] }
 0xd84   :  { %6256 = vperm.xlu0 %7091, %v5166_v32   ;;  %v4537_v32 = vmul.f32 %v11748_v63, %v11614_v49  ;;  %v3998_v52 = vmax.f32 %v3878_v46, 0.0  ;;  %v11977_v14 = vmul.f32 0.020408163, %v14329_v40  ;;  %v7476_v49 = vld [vmem:[%s13682_s4 + $0x1d8] sm:$0xff]  ;;  %v3639_v46 = vmul.f32 0.020408163, %v14330_v12  ;;  %v11984_v24 = vpop.permute.xlu1 %4898 }
 0xd85   :  { %7077 = vset.pattern.permute.xlu1 %v14289_v56  ;;  %v4183_v29 = vadd.f32 1e-05, %v3943_v18  ;;  %v5163_v63 = vsub.f32 %v7476_v49, %v11095_v60  ;;  %v3759_v18 = vmul.f32 %v11971_v8, %v11971_v8  ;;  %v7477_v60 = vld [vmem:[%s13682_s4 + $0x40] sm:$0xff]  ;;  %v4117_v12 = vld [vmem:[%s13682_s4 + $0x2e8] sm:$0xff] }
 0xd86   :  { %5666 = vperm.xlu1 %7077, %v11750_v62   ;;  %v11955_v58 = vpop.permute.xlu0 %4904  ;;  %v7377_v40 = vpop.eup %7376 }
 0xd87   :  { %7380 = vrsqrt.f32 %v4183_v29  ;;  %v3879_v49 = vsub.f32 %v3639_v46, %v3759_v18  ;;  %v12011_v46 = vmul.f32 %v7377_v40, %v4117_v12 }
 0xd88   :  { %7092 = vset.pattern.permute.xlu0 %v14289_v56 }
 0xd89   :  { %5411 = vperm.xlu0 %7092, %v11959_v27   ;;  %v3999_v18 = vmax.f32 %v3879_v49, 0.0  ;;  %v14336_v49 = vld [vmem:[#allocation185_spill] sm:$0xff] }
 0xd8a   :  { %4810 = vrot.lane.b32.xlu1 %v4537_v32, %s7595_s9  ;;  %v11968_v62 = vpop.permute.xlu0 %5631  ;;  %v4238_v32 = vadd.f32 1e-05, %v3998_v52  ;;  %v5112_v52 = vsub.f32 %v7477_v60, %v11200_v13  ;;  %v4593_v60 = vmul.f32 %v11801_v25, %v11663_v3  ;;  %v12031_v3 = vmul.f32 0.020408163, %v14336_v49  ;;  %v7478_v25 = vld [vmem:[%s13682_s4 + $0x28] sm:$0xff] }
 0xd8b   :  { %14327 = vst [vmem:[#allocation176_spill] sm:$0xff] %v11968_v62  ;;  %7079 = vset.pattern.permute.xlu1 %v14283_v26  ;;  %v14331_v62 = vld [vmem:[#allocation183_spill] sm:$0xff]  ;;  %v5109_v12 = vsub.f32 %v7478_v25, %v11143_v33  ;;  %v7479_v33 = vld [vmem:[%s13682_s4 + $0x200] sm:$0xff] }
 0xd8c   :  { %v3584_v30 = vmul.f32 0.020408163, %v14331_v62  ;;  %v7379_v62 = vpop.eup %7378  ;;  %7382 = vrsqrt.f32 %v4238_v32 }
 0xd8d   :  { %4928 = vrot.lane.b32.xlu0 %v4596_v59, %s7595_s9  ;;  %v3704_v59 = vmul.f32 %v11977_v14, %v11977_v14  ;;  %v12013_v32 = vmul.f32 %v7379_v62, %v4062_v36  ;;  %v4239_v62 = vadd.f32 1e-05, %v3999_v18 }
 0xd8e   :  { %6241 = vperm.xlu1 %7079, %v5163_v63   ;;  %v11988_v22 = vpop.permute.xlu0 %4796  ;;  %7094 = vset.pattern.permute.xlu0 %v14283_v26  ;;  %v11999_v63 = vpop.xlane.xlu1 %3062 }
 0xd8f   :  { %14332 = vst [vmem:[#allocation127_spill] sm:$0xff] %v11999_v63  ;;  %v3824_v13 = vsub.f32 %v3584_v30, %v3704_v59  ;;  %v4542_v36 = vmul.f32 %v12013_v32, %v11871_v57  ;;  %7384 = vrsqrt.f32 %v4239_v62  ;;  %v14355_v63 = vld [vmem:[#allocation8_spill] sm:$0xff] }
 0xd91   :  { %5986 = vperm.xlu0 %7094, %v5112_v52   ;;  %v3944_v52 = vmax.f32 %v3824_v13, 0.0  ;;  %v14337_v13 = vld [vmem:[#allocation186_spill] sm:$0xff] }
 0xd92   :  { %7080 = vset.pattern.permute.xlu1 %v14289_v56  ;;  %v12008_v29 = vpop.permute.xlu0 %5361  ;;  %v12021_v59 = vpop.permute.xlu1 %5616 }
 0xd93   :  { %14333 = vst [vmem:[#allocation177_spill] sm:$0xff] %v12008_v29  ;;  %5396 = vperm.xlu1 %7080, %v11803_v6   ;;  %14334 = vst [vmem:[#allocation117_spill] sm:$0xff] %v12021_v59  ;;  %v14335_v6 = vld [vmem:[#allocation184_spill] sm:$0xff]  ;;  %v4184_v29 = vadd.f32 1e-05, %v3944_v52  ;;  %v5168_v52 = vsub.f32 %v7479_v33, %v11227_v20 }
 0xd94   :  { %v12025_v40 = vmul.f32 0.020408163, %v14335_v6  ;;  %v3640_v59 = vmul.f32 0.020408163, %v10924_v11  ;;  %v7381_v49 = vpop.eup %7380 }
 0xd95   :  { %7097 = vset.pattern.permute.xlu0 %v14289_v56  ;;  %7386 = vrsqrt.f32 %v4184_v29 }
 0xd96   :  { %5691 = vperm.xlu0 %7097, %v12011_v46   ;;  %v12019_v30 = vpop.permute.xlu0 %4908  ;;  %v3705_v18 = vmul.f32 %v12025_v40, %v12025_v40 }
 0xd97   :  { %4922 = vrot.lane.b32.xlu1 %v4593_v60, %s7595_s9  ;;  %v3585_v60 = vmul.f32 0.020408163, %v14337_v13  ;;  %v4063_v13 = vld [vmem:[%s13682_s4 + $0x138] sm:$0xff] }
 0xd98   :  { %7082 = vset.pattern.permute.xlu1 %v14283_v26 }
 0xd99   :  { %v7383_v11 = vpop.eup %7382  ;;  %v3825_v25 = vsub.f32 %v3585_v60, %v3705_v18  ;;  %v12065_v60 = vmul.f32 %v7381_v49, %v4063_v13 }
 0xd9a   :  { %4820 = vrot.lane.b32.xlu0 %v4542_v36, %s7595_s9  ;;  %v12039_v6 = vpop.permute.xlu0 %5641  ;;  %v3760_v36 = vmul.f32 %v12031_v3, %v12031_v3 }
 0xd9b   :  { %14338 = vst [vmem:[#allocation116_spill] sm:$0xff] %v12039_v6  ;;  %5971 = vperm.xlu1 %7082, %v5109_v12   ;;  %v12042_v57 = vpop.xlane.xlu1 %3422  ;;  %7099 = vset.pattern.permute.xlu0 %v14283_v26  ;;  %v4118_v6 = vld [vmem:[%s13682_s4 + $0x2f0] sm:$0xff]  ;;  %v3945_v18 = vmax.f32 %v3825_v25, 0.0  ;;  %v3641_v25 = vmul.f32 0.020408163, %v10953_v54  ;;  %v14343_v54 = vld [vmem:[#allocation246_spill] sm:$0xff] }
 0xd9c   :  { %14339 = vst [vmem:[#allocation178_spill] sm:$0xff] %v12042_v57  ;;  %v3880_v20 = vsub.f32 %v3640_v59, %v3760_v36  ;;  %v12067_v29 = vmul.f32 %v7383_v11, %v4118_v6  ;;  %v12078_v36 = vmul.f32 0.020408163, %v10945_v16 }
 0xd9d   :  { %v4185_v49 = vadd.f32 1e-05, %v3945_v18  ;;  %v7385_v18 = vpop.eup %7384 }
 0xd9e   :  { %6266 = vperm.xlu0 %7099, %v5168_v52   ;;  %v12053_v12 = vpop.permute.xlu0 %4800  ;;  %v4539_v52 = vmul.f32 %v11851_v38, %v11710_v45  ;;  %v4000_v57 = vmax.f32 %v3880_v20, 0.0  ;;  %v4598_v6 = vmul.f32 %v12067_v29, %v11925_v44  ;;  %v7480_v45 = vld [vmem:[%s13682_s4 + $0x1e8] sm:$0xff]  ;;  %v3586_v44 = vmul.f32 0.020408163, %v10955_v19 }
 0xd9f   :  { %7085 = vset.pattern.permute.xlu1 %v14289_v56  ;;  %v12062_v62 = vpop.permute.xlu1 %4790  ;;  %v5165_v38 = vsub.f32 %v7480_v45, %v11186_v43  ;;  %7388 = vrsqrt.f32 %v4185_v49 }
 0xda0   :  { %5676 = vperm.xlu1 %7085, %v11853_v21   ;;  %v12082_v21 = vmul.f32 0.020408163, %v10911_v2  ;;  %v4240_v16 = vadd.f32 1e-05, %v4000_v57  ;;  %v3706_v2 = vmul.f32 %v12078_v36, %v12078_v36  ;;  %v7481_v57 = vld [vmem:[%s13682_s4 + $0x50] sm:$0xff] }
 0xda1   :  { %v5114_v20 = vsub.f32 %v7481_v57, %v14343_v54  ;;  %v4595_v54 = vmul.f32 %v11905_v7, %v11762_v28 }
 0xda2   :  { %7100 = vset.pattern.permute.xlu0 %v14289_v56  ;;  %v12070_v33 = vpop.permute.xlu0 %5371  ;;  %v3761_v43 = vmul.f32 %v12082_v21, %v12082_v21  ;;  %7390 = vrsqrt.f32 %v4240_v16 }
 0xda3   :  { %14340 = vst [vmem:[#allocation179_spill] sm:$0xff] %v12070_v33  ;;  %v12074_v59 = vpop.permute.xlu1 %5346  ;;  %5421 = vperm.xlu0 %7100, %v12065_v60   ;;  %v4064_v33 = vld [vmem:[%s13682_s4 + $0x140] sm:$0xff] }
 0xda4   :  { %14341 = vst [vmem:[#allocation180_spill] sm:$0xff] %v12074_v59  ;;  %4814 = vrot.lane.b32.xlu1 %v4539_v52, %s7595_s9  ;;  %v3881_v45 = vsub.f32 %v3641_v25, %v3761_v43  ;;  %v3826_v59 = vsub.f32 %v3586_v44, %v3706_v2  ;;  %v14348_v2 = vld [vmem:[#allocation7_spill] sm:$0xff]  ;;  %v14349_v44 = vld [vmem:[#allocation118_spill] sm:$0xff] }
 0xda5   :  { %7087 = vset.pattern.permute.xlu1 %v14283_v26 }
 0xda6   :  { %v12091_v11 = vpop.permute.xlu0 %4912  ;;  %v4001_v43 = vmax.f32 %v3881_v45, 0.0  ;;  %v14352_v45 = vld [vmem:[#allocation236_spill] sm:$0xff] }
 0xda7   :  { %v12094_v13 = vpop.permute.xlu1 %4902  ;;  %4932 = vrot.lane.b32.xlu0 %v4598_v6, %s7595_s9  ;;  %v7387_v6 = vpop.eup %7386 }
 0xda8   :  { %14342 = vst [vmem:[#allocation181_spill] sm:$0xff] %v12094_v13  ;;  %6251 = vperm.xlu1 %7087, %v5165_v38   ;;  %7102 = vset.pattern.permute.xlu0 %v14283_v26  ;;  %v4119_v38 = vld [vmem:[%s13682_s4 + $0x2f8] sm:$0xff]  ;;  %v12123_v25 = vmul.f32 %v7387_v6, %v4064_v33  ;;  %v14351_v33 = vld [vmem:[#allocation122_spill] sm:$0xff]  ;;  %v4241_v7 = vadd.f32 1e-05, %v4001_v43 }
 0xda9   :  { %v12121_v16 = vmul.f32 %v7385_v18, %v4119_v38  ;;  %v12138_v18 = vmul.f32 0.020408163, %v14351_v33  ;;  %v14357_v43 = vld [vmem:[#allocation194_spill] sm:$0xff] }
 0xdaa   :  { %v12107_v52 = vpop.permute.xlu0 %5651  ;;  %v4544_v28 = vmul.f32 %v12123_v25, %v11977_v14  ;;  %v3642_v13 = vmul.f32 0.020408163, %v14357_v43  ;;  %7392 = vrsqrt.f32 %v4241_v7  ;;  %v4120_v43 = vld [vmem:[%s13682_s4 + $0x300] sm:$0xff] }
 0xdab   :  { %14344 = vst [vmem:[#allocation130_spill] sm:$0xff] %v12107_v52  ;;  %v12109_v19 = vpop.permute.xlu1 %5626  ;;  %5996 = vperm.xlu0 %7102, %v5114_v20   ;;  %v3946_v20 = vmax.f32 %v3826_v59, 0.0  ;;  %v14350_v52 = vld [vmem:[#allocation191_spill] sm:$0xff]  ;;  %v7482_v59 = vld [vmem:[%s13682_s4 + $0x38] sm:$0xff] }
 0xdac   :  { %14345 = vst [vmem:[#allocation182_spill] sm:$0xff] %v12109_v19  ;;  %7088 = vset.pattern.permute.xlu1 %v14289_v56  ;;  %v12134_v19 = vmul.f32 0.020408163, %v14350_v52  ;;  %v5111_v38 = vsub.f32 %v7482_v59, %v14352_v45 }
 0xdad   :  { %5406 = vperm.xlu1 %7088, %v11907_v0   ;;  %v5825_v0 = vmul.f32 %v14349_v44, %v14348_v2  ;;  %v14354_v44 = vld [vmem:[#allocation192_spill] sm:$0xff] }
 0xdae   :  { %v12119_v49 = vpop.permute.xlu0 %4804  ;;  %v3587_v33 = vmul.f32 0.020408163, %v14354_v44  ;;  %v3762_v14 = vmul.f32 %v12134_v19, %v12134_v19 }
 0xdaf   :  { %14346 = vst [vmem:[#allocation120_spill] sm:$0xff] %v12119_v49  ;;  %v12125_v57 = vpop.permute.xlu1 %4794  ;;  %7105 = vset.pattern.permute.xlu0 %v14289_v56 }
 0xdb0   :  { %14347 = vst [vmem:[#allocation119_spill] sm:$0xff] %v12125_v57  ;;  %5701 = vperm.xlu0 %7105, %v12121_v16   ;;  %v14356_v57 = vld [vmem:[#allocation187_spill] sm:$0xff] }
 0xdb1   :  { %4926 = vrot.lane.b32.xlu1 %v4595_v54, %s7595_s9  ;;  %v4186_v54 = vadd.f32 1e-05, %v3946_v20  ;;  %v5880_v49 = vmul.f32 %v14356_v57, %v14355_v63  ;;  %v7483_v20 = vld [vmem:[%s13682_s4 + $0x210] sm:$0xff]  ;;  %v7389_v63 = vpop.eup %7388 }
 0xdb2   :  { %v5952_v6 = vpop.permute.xlu0 %5951  ;;  %7090 = vset.pattern.permute.xlu1 %v14283_v26  ;;  %v7391_v44 = vpop.eup %7390 }
 0xdb3   :  { %v6545_v52 = vadd.f32 %v5952_v6, %v5825_v0  ;;  %v12147_v2 = vpop.permute.xlu1 %5356  ;;  %v3707_v0 = vmul.f32 %v12138_v18, %v12138_v18  ;;  %v14358_v6 = vld [vmem:[#allocation254_spill] sm:$0xff]  ;;  %7394 = vrsqrt.f32 %v4186_v54 }
 0xdb4   :  { %14353 = vst [vmem:[#allocation183_spill] sm:$0xff] %v12147_v2  ;;  %4824 = vrot.lane.b32.xlu0 %v4544_v28, %s7595_s9  ;;  %v5170_v28 = vsub.f32 %v7483_v20, %v14358_v6  ;;  %v3882_v2 = vsub.f32 %v3642_v13, %v3762_v14  ;;  %v4541_v20 = vmul.f32 %v11959_v27, %v11812_v1  ;;  %v14362_v14 = vld [vmem:[#allocation195_spill] sm:$0xff]  ;;  %v7484_v27 = vld [vmem:[%s13682_s4 + $0x1f8] sm:$0xff] }
 0xdb5   :  { %6665 = vst [vmem:[#allocation2 + $0x8] sm:$0xff] %v6545_v52  ;;  %5981 = vperm.xlu1 %7090, %v5111_v38   ;;  %7107 = vset.pattern.permute.xlu0 %v14283_v26  ;;  %v3827_v38 = vsub.f32 %v3587_v33, %v3707_v0  ;;  %v4065_v52 = vld [vmem:[%s13682_s4 + $0x148] sm:$0xff]  ;;  %v12179_v33 = vmul.f32 %v7391_v44, %v4120_v43  ;;  %v12185_v6 = vmul.f32 0.020408163, %v14362_v14  ;;  %v14367_v43 = vld [vmem:[#allocation201_spill] sm:$0xff]  ;;  %v14368_v14 = vld [vmem:[#allocation200_spill] sm:$0xff] }
 0xdb6   :  { %v6227_v59 = vpop.permute.xlu0 %6226  ;;  %v12177_v54 = vmul.f32 %v7389_v63, %v4065_v52  ;;  %v4002_v13 = vmax.f32 %v3882_v2, 0.0  ;;  %v14366_v2 = vld [vmem:[#allocation243_spill] sm:$0xff] }
 0xdb7   :  { %v6600_v57 = vadd.f32 %v6227_v59, %v5880_v49  ;;  %v12163_v45 = vpop.permute.xlu1 %4906  ;;  %v3947_v0 = vmax.f32 %v3827_v38, 0.0  ;;  %v4600_v59 = vmul.f32 %v12179_v33, %v12031_v3  ;;  %v5167_v44 = vsub.f32 %v7484_v27, %v14366_v2  ;;  %v7393_v2 = vpop.eup %7392 }
 0xdb8   :  { %14359 = vst [vmem:[#allocation184_spill] sm:$0xff] %v12163_v45  ;;  %6276 = vperm.xlu0 %7107, %v5170_v28   ;;  %v4242_v38 = vadd.f32 1e-05, %v4002_v13  ;;  %v3708_v52 = vmul.f32 %v12185_v6, %v12185_v6  ;;  %v3643_v3 = vmul.f32 0.020408163, %v14368_v14  ;;  %v4121_v14 = vld [vmem:[%s13682_s4 + $0x308] sm:$0xff] }
 0xdb9   :  { %6720 = vst [vmem:[#allocation2 + $0x1c0] sm:$0xff] %v6600_v57  ;;  %7093 = vset.pattern.permute.xlu1 %v14289_v56  ;;  %v4187_v63 = vadd.f32 1e-05, %v3947_v0  ;;  %v14365_v57 = vld [vmem:[#allocation198_spill] sm:$0xff]  ;;  %v7485_v0 = vld [vmem:[%s13682_s4 + $0x60] sm:$0xff] }
 0xdba   :  { %5686 = vperm.xlu1 %7093, %v11961_v41   ;;  %v12197_v1 = vmul.f32 0.020408163, %v14365_v57  ;;  %v14369_v57 = vld [vmem:[#allocation140_spill] sm:$0xff] }
 0xdbb   :  { %v12173_v49 = vpop.permute.xlu1 %5636  ;;  %v12175_v7 = vpop.permute.xlu0 %5381  ;;  %7396 = vrsqrt.f32 %v4187_v63 }
 0xdbc   :  { %14360 = vst [vmem:[#allocation185_spill] sm:$0xff] %v12173_v49  ;;  %14361 = vst [vmem:[#allocation186_spill] sm:$0xff] %v12175_v7  ;;  %7108 = vset.pattern.permute.xlu0 %v14289_v56  ;;  %v5116_v7 = vsub.f32 %v7485_v0, %v14369_v57  ;;  %7398 = vrsqrt.f32 %v4242_v38  ;;  %v4066_v0 = vld [vmem:[%s13682_s4 + $0x150] sm:$0xff]  ;;  %v12231_v38 = vmul.f32 %v7393_v2, %v4121_v14 }
 0xdbd   :  { %5431 = vperm.xlu0 %7108, %v12177_v54   ;;  %v14378_v14 = vld [vmem:[#allocation203_spill] sm:$0xff] }
 0xdbe   :  { %4818 = vrot.lane.b32.xlu1 %v4541_v20, %s7595_s9  ;;  %v3588_v20 = vmul.f32 0.020408163, %v14367_v43 }
 0xdbf   :  { %v12189_v41 = vpop.permute.xlu1 %4798  ;;  %v12191_v28 = vpop.permute.xlu0 %4916  ;;  %7095 = vset.pattern.permute.xlu1 %v14283_v26 }
 0xdc0   :  { %14363 = vst [vmem:[#allocation246_spill] sm:$0xff] %v12189_v41  ;;  %14364 = vst [vmem:[#allocation7_spill] sm:$0xff] %v12191_v28  ;;  %v7395_v43 = vpop.eup %7394  ;;  %v14376_v41 = vld [vmem:[#allocation204_spill] sm:$0xff]  ;;  %v14392_v28 = vld [vmem:[#allocation211_spill] sm:$0xff] }
 0xdc1   :  { %4936 = vrot.lane.b32.xlu0 %v4600_v59, %s7595_s9  ;;  %v3763_v59 = vmul.f32 %v12197_v1, %v12197_v1 }
 0xdc2   :  { %6261 = vperm.xlu1 %7095, %v5167_v44   ;;  %7110 = vset.pattern.permute.xlu0 %v14283_v26  ;;  %v3828_v44 = vsub.f32 %v3588_v20, %v3708_v52  ;;  %v4597_v20 = vmul.f32 %v12011_v46, %v11864_v34 }
 0xdc3   :  { %v12213_v27 = vpop.permute.xlu1 %5366  ;;  %v12215_v13 = vpop.permute.xlu0 %5661  ;;  %v3883_v57 = vsub.f32 %v3643_v3, %v3763_v59  ;;  %v14375_v3 = vld [vmem:[#allocation199_spill] sm:$0xff] }
 0xdc4   :  { %14370 = vst [vmem:[#allocation118_spill] sm:$0xff] %v12213_v27  ;;  %14371 = vst [vmem:[#allocation191_spill] sm:$0xff] %v12215_v13  ;;  %v3948_v52 = vmax.f32 %v3828_v44, 0.0  ;;  %v14374_v27 = vld [vmem:[#allocation12_spill] sm:$0xff] }
 0xdc5   :  { %6006 = vperm.xlu0 %7110, %v5116_v7   ;;  %v12233_v7 = vmul.f32 %v7395_v43, %v4066_v0  ;;  %v5882_v59 = vmul.f32 %v14375_v3, %v14374_v27  ;;  %v4003_v49 = vmax.f32 %v3883_v57, 0.0  ;;  %v12251_v27 = vmul.f32 0.020408163, %v14378_v14  ;;  %v14379_v0 = vld [vmem:[#allocation251_spill] sm:$0xff] }
 0xdc6   :  { %7096 = vset.pattern.permute.xlu1 %v14289_v56  ;;  %v4188_v46 = vadd.f32 1e-05, %v3948_v52 }
 0xdc7   :  { %5416 = vperm.xlu1 %7096, %v12013_v32   ;;  %v12227_v63 = vpop.permute.xlu1 %4910  ;;  %v12229_v13 = vpop.permute.xlu0 %4808  ;;  %v12241_v32 = vmul.f32 0.020408163, %v14376_v41  ;;  %v4546_v34 = vmul.f32 %v12233_v7, %v12078_v36  ;;  %v7486_v41 = vld [vmem:[%s13682_s4 + $0x48] sm:$0xff]  ;;  %v14381_v36 = vld [vmem:[#allocation209_spill] sm:$0xff] }
 0xdc8   :  { %14372 = vst [vmem:[#allocation122_spill] sm:$0xff] %v12227_v63  ;;  %14373 = vst [vmem:[#allocation236_spill] sm:$0xff] %v12229_v13  ;;  %v5113_v57 = vsub.f32 %v7486_v41, %v14379_v0  ;;  %v3589_v52 = vmul.f32 0.020408163, %v14381_v36  ;;  %v7487_v41 = vld [vmem:[%s13682_s4 + $0x220] sm:$0xff]  ;;  %v7397_v63 = vpop.eup %7396  ;;  %7400 = vrsqrt.f32 %v4188_v46  ;;  %v4067_v13 = vld [vmem:[%s13682_s4 + $0x158] sm:$0xff] }
 0xdc9   :  { %7113 = vset.pattern.permute.xlu0 %v14289_v56  ;;  %v3764_v3 = vmul.f32 %v12241_v32, %v12241_v32 }
 0xdca   :  { %5711 = vperm.xlu0 %7113, %v12231_v38  }
 0xdcb   :  { %4930 = vrot.lane.b32.xlu1 %v4597_v20, %s7595_s9  ;;  %v12245_v2 = vpop.permute.xlu1 %5646  ;;  %v6237_v43 = vpop.permute.xlu0 %6236  ;;  %v4243_v20 = vadd.f32 1e-05, %v4003_v49  ;;  %v14383_v49 = vld [vmem:[#allocation142_spill] sm:$0xff] }
 0xdcc   :  { %14377 = vst [vmem:[#allocation192_spill] sm:$0xff] %v12245_v2  ;;  %v6602_v44 = vadd.f32 %v6237_v43, %v5882_v59  ;;  %7098 = vset.pattern.permute.xlu1 %v14283_v26  ;;  %v14380_v59 = vld [vmem:[#allocation206_spill] sm:$0xff]  ;;  %v5172_v0 = vsub.f32 %v7487_v41, %v14383_v49  ;;  %v4122_v41 = vld [vmem:[%s13682_s4 + $0x310] sm:$0xff] }
 0xdcd   :  { %v3644_v43 = vmul.f32 0.020408163, %v14380_v59  ;;  %v14385_v59 = vld [vmem:[#allocation6_spill] sm:$0xff]  ;;  %7402 = vrsqrt.f32 %v4243_v20  ;;  %v12285_v20 = vmul.f32 %v7397_v63, %v4067_v13 }
 0xdce   :  { %6722 = vst [vmem:[#allocation2 + $0x1d0] sm:$0xff] %v6602_v44  ;;  %4828 = vrot.lane.b32.xlu0 %v4546_v34, %s7595_s9  ;;  %v3709_v44 = vmul.f32 %v12251_v27, %v12251_v27  ;;  %v7399_v34 = vpop.eup %7398 }
 0xdcf   :  { %5991 = vperm.xlu1 %7098, %v5113_v57   ;;  %v12262_v14 = vpop.permute.xlu1 %4802  ;;  %7115 = vset.pattern.permute.xlu0 %v14283_v26  ;;  %v14386_v57 = vld [vmem:[#allocation132_spill] sm:$0xff] }
 0xdd0   :  { %14382 = vst [vmem:[#allocation8_spill] sm:$0xff] %v12262_v14  ;;  %v12269_v2 = vpop.permute.xlu0 %5391  ;;  %v5824_v36 = vmul.f32 %v14386_v57, %v14385_v59  ;;  %v3884_v14 = vsub.f32 %v3644_v43, %v3764_v3  ;;  %v3829_v49 = vsub.f32 %v3589_v52, %v3709_v44  ;;  %v12287_v3 = vmul.f32 %v7399_v34, %v4122_v41  ;;  %v14388_v43 = vld [vmem:[#allocation5_spill] sm:$0xff]  ;;  %v14390_v44 = vld [vmem:[#allocation14_spill] sm:$0xff] }
 0xdd1   :  { %14384 = vst [vmem:[#allocation187_spill] sm:$0xff] %v12269_v2  ;;  %v4543_v52 = vmul.f32 %v12065_v60, %v11917_v15  ;;  %v14393_v34 = vld [vmem:[#allocation210_spill] sm:$0xff] }
 0xdd2   :  { %6286 = vperm.xlu0 %7115, %v5172_v0   ;;  %v14389_v0 = vld [vmem:[#allocation125_spill] sm:$0xff]  ;;  %v4004_v57 = vmax.f32 %v3884_v14, 0.0  ;;  %v4602_v15 = vmul.f32 %v12287_v3, %v12134_v19  ;;  %v12305_v41 = vmul.f32 0.020408163, %v14393_v34  ;;  %v14397_v19 = vld [vmem:[#allocation215_spill] sm:$0xff] }
 0xdd3   :  { %7101 = vset.pattern.permute.xlu1 %v14289_v56  ;;  %v5947_v46 = vpop.permute.xlu1 %5946  ;;  %v5879_v59 = vmul.f32 %v14389_v0, %v14388_v43 }
 0xdd4   :  { %v6544_v2 = vadd.f32 %v5947_v46, %v5824_v36  ;;  %5696 = vperm.xlu1 %7101, %v12067_v29   ;;  %v12283_v45 = vpop.permute.xlu0 %4920  ;;  %v14391_v36 = vld [vmem:[#allocation208_spill] sm:$0xff]  ;;  %v3949_v29 = vmax.f32 %v3829_v49, 0.0  ;;  %v4244_v60 = vadd.f32 1e-05, %v4004_v57  ;;  %v14394_v49 = vld [vmem:[#allocation259_spill] sm:$0xff] }
 0xdd5   :  { %14387 = vst [vmem:[#allocation194_spill] sm:$0xff] %v12283_v45  ;;  %v5828_v46 = vmul.f32 %v14391_v36, %v14390_v44  ;;  %v12297_v45 = vmul.f32 0.020408163, %v14392_v28  ;;  %v7488_v28 = vld [vmem:[%s13682_s4 + $0x208] sm:$0xff]  ;;  %v3645_v57 = vmul.f32 0.020408163, %v14397_v19 }
 0xdd6   :  { %6664 = vst [vmem:[#allocation2] sm:$0xff] %v6544_v2  ;;  %7116 = vset.pattern.permute.xlu0 %v14289_v56  ;;  %v5169_v43 = vsub.f32 %v7488_v28, %v14394_v49  ;;  %v4189_v0 = vadd.f32 1e-05, %v3949_v29  ;;  %v14398_v29 = vld [vmem:[#allocation147_spill] sm:$0xff]  ;;  %7404 = vrsqrt.f32 %v4244_v60  ;;  %v4123_v49 = vld [vmem:[%s13682_s4 + $0x318] sm:$0xff] }
 0xdd7   :  { %v6222_v13 = vpop.permute.xlu1 %6221  ;;  %5441 = vperm.xlu0 %7116, %v12285_v20  }
 0xdd8   :  { %v6599_v63 = vadd.f32 %v6222_v13, %v5879_v59  ;;  %4822 = vrot.lane.b32.xlu1 %v4543_v52, %s7595_s9  ;;  %v5967_v14 = vpop.permute.xlu0 %5966  ;;  %v3710_v59 = vmul.f32 %v12297_v45, %v12297_v45  ;;  %v14395_v52 = vld [vmem:[#allocation216_spill] sm:$0xff]  ;;  %7406 = vrsqrt.f32 %v4189_v0 }
 0xdd9   :  { %v6548_v2 = vadd.f32 %v5967_v14, %v5828_v46  ;;  %7103 = vset.pattern.permute.xlu1 %v14283_v26  ;;  %v3590_v44 = vmul.f32 0.020408163, %v14395_v52  ;;  %v7489_v46 = vld [vmem:[%s13682_s4 + $0x70] sm:$0xff]  ;;  %v7401_v14 = vpop.eup %7400 }
 0xdda   :  { %6719 = vst [vmem:[#allocation2 + $0x1b8] sm:$0xff] %v6599_v63  ;;  %v5118_v13 = vsub.f32 %v7489_v46, %v14398_v29  ;;  %v7403_v34 = vpop.eup %7402  ;;  %v4599_v46 = vmul.f32 %v12121_v16, %v11971_v8  ;;  %v14403_v29 = vld [vmem:[#allocation16_spill] sm:$0xff] }
 0xddb   :  { %6668 = vst [vmem:[#allocation2 + $0x20] sm:$0xff] %v6548_v2  ;;  %v12314_v36 = vpop.permute.xlu1 %5376  ;;  %4940 = vrot.lane.b32.xlu0 %v4602_v15, %s7595_s9  ;;  %v3765_v2 = vmul.f32 %v12305_v41, %v12305_v41  ;;  %v3830_v15 = vsub.f32 %v3590_v44, %v3710_v59  ;;  %v12339_v0 = vmul.f32 %v7403_v34, %v4123_v49  ;;  %v14406_v8 = vld [vmem:[#allocation220_spill] sm:$0xff] }
 0xddc   :  { %14396 = vst [vmem:[#allocation254_spill] sm:$0xff] %v12314_v36  ;;  %6271 = vperm.xlu1 %7103, %v5169_v43   ;;  %7118 = vset.pattern.permute.xlu0 %v14283_v26  ;;  %v4068_v43 = vld [vmem:[%s13682_s4 + $0x160] sm:$0xff]  ;;  %v12359_v16 = vmul.f32 0.020408163, %v14406_v8 }
 0xddd   :  { %v12323_v63 = vpop.permute.xlu0 %5671  ;;  %v3885_v52 = vsub.f32 %v3645_v57, %v3765_v2  ;;  %v12341_v59 = vmul.f32 %v7401_v14, %v4068_v43  ;;  %v3950_v44 = vmax.f32 %v3830_v15, 0.0  ;;  %v14404_v57 = vld [vmem:[#allocation214_spill] sm:$0xff]  ;;  %v14407_v43 = vld [vmem:[#allocation264_spill] sm:$0xff]  ;;  %v14411_v8 = vld [vmem:[#allocation9_spill] sm:$0xff] }
 0xdde   :  { %14399 = vst [vmem:[#allocation195_spill] sm:$0xff] %v12323_v63  ;;  %v14405_v63 = vld [vmem:[#allocation217_spill] sm:$0xff] }
 0xddf   :  { %v12327_v28 = vpop.permute.xlu1 %4914  ;;  %6016 = vperm.xlu0 %7118, %v5118_v13   ;;  %v5884_v13 = vmul.f32 %v14404_v57, %v14403_v29  ;;  %v4005_v2 = vmax.f32 %v3885_v52, 0.0  ;;  %v4548_v15 = vmul.f32 %v12341_v59, %v12185_v6  ;;  %v4190_v49 = vadd.f32 1e-05, %v3950_v44  ;;  %v14410_v6 = vld [vmem:[#allocation222_spill] sm:$0xff] }
 0xde0   :  { %14400 = vst [vmem:[#allocation198_spill] sm:$0xff] %v12327_v28  ;;  %7104 = vset.pattern.permute.xlu1 %v14289_v56  ;;  %v3591_v44 = vmul.f32 0.020408163, %v14410_v6 }
 0xde1   :  { %5426 = vperm.xlu1 %7104, %v12123_v25   ;;  %v12337_v60 = vpop.permute.xlu0 %4812  ;;  %v12351_v25 = vmul.f32 0.020408163, %v14405_v63  ;;  %v7490_v63 = vld [vmem:[%s13682_s4 + $0x58] sm:$0xff]  ;;  %7408 = vrsqrt.f32 %v4190_v49  ;;  %v14415_v49 = vld [vmem:[#allocation10_spill] sm:$0xff] }
 0xde2   :  { %14401 = vst [vmem:[#allocation243_spill] sm:$0xff] %v12337_v60  ;;  %v5115_v52 = vsub.f32 %v7490_v63, %v14407_v43  ;;  %v14413_v63 = vld [vmem:[#allocation97_spill] sm:$0xff] }
 0xde3   :  { %v12343_v19 = vpop.permute.xlu1 %5656  ;;  %7121 = vset.pattern.permute.xlu0 %v14289_v56  ;;  %v3766_v57 = vmul.f32 %v12351_v25, %v12351_v25  ;;  %v14419_v60 = vld [vmem:[#allocation221_spill] sm:$0xff] }
 0xde4   :  { %14402 = vst [vmem:[#allocation201_spill] sm:$0xff] %v12343_v19  ;;  %5721 = vperm.xlu0 %7121, %v12339_v0   ;;  %v14412_v19 = vld [vmem:[#allocation189_spill] sm:$0xff] }
 0xde5   :  { %4934 = vrot.lane.b32.xlu1 %v4599_v46, %s7595_s9  ;;  %v6247_v14 = vpop.permute.xlu0 %6246  ;;  %v4245_v46 = vadd.f32 1e-05, %v4005_v2  ;;  %v5826_v36 = vmul.f32 %v14412_v19, %v14411_v8  ;;  %v7491_v2 = vld [vmem:[%s13682_s4 + $0x230] sm:$0xff]  ;;  %v4069_v19 = vld [vmem:[%s13682_s4 + $0x168] sm:$0xff]  ;;  %v4124_v8 = vld [vmem:[%s13682_s4 + $0x320] sm:$0xff] }
 0xde6   :  { %v6604_v34 = vadd.f32 %v6247_v14, %v5884_v13  ;;  %7106 = vset.pattern.permute.xlu1 %v14283_v26  ;;  %v14409_v13 = vld [vmem:[#allocation223_spill] sm:$0xff]  ;;  %v5174_v43 = vsub.f32 %v7491_v2, %v14413_v63  ;;  %v14416_v63 = vld [vmem:[#allocation193_spill] sm:$0xff] }
 0xde7   :  { %v12365_v29 = vpop.permute.xlu1 %4806  ;;  %v3646_v14 = vmul.f32 0.020408163, %v14409_v13  ;;  %v7405_v13 = vpop.eup %7404  ;;  %7410 = vrsqrt.f32 %v4245_v46 }
 0xde8   :  { %14408 = vst [vmem:[#allocation200_spill] sm:$0xff] %v12365_v29  ;;  %6724 = vst [vmem:[#allocation2 + $0x1e0] sm:$0xff] %v6604_v34  ;;  %4832 = vrot.lane.b32.xlu0 %v4548_v15, %s7595_s9  ;;  %v3711_v34 = vmul.f32 %v12359_v16, %v12359_v16 }
 0xde9   :  { %6001 = vperm.xlu1 %7106, %v5115_v52   ;;  %7123 = vset.pattern.permute.xlu0 %v14283_v26  ;;  %v7407_v52 = vpop.eup %7406  ;;  %v3886_v6 = vsub.f32 %v3646_v14, %v3766_v57  ;;  %v12397_v14 = vmul.f32 %v7405_v13, %v4124_v8 }
 0xdea   :  { %v12379_v29 = vpop.permute.xlu0 %5401  ;;  %v3831_v2 = vsub.f32 %v3591_v44, %v3711_v34  ;;  %v12395_v57 = vmul.f32 %v7407_v52, %v4069_v19  ;;  %v4545_v44 = vmul.f32 %v12177_v54, %v12025_v40  ;;  %v14418_v34 = vld [vmem:[#allocation18_spill] sm:$0xff]  ;;  %v14421_v54 = vld [vmem:[#allocation231_spill] sm:$0xff] }
 0xdeb   :  { %14414 = vst [vmem:[#allocation140_spill] sm:$0xff] %v12379_v29  ;;  %v5957_v15 = vpop.permute.xlu1 %5956  ;;  %v5881_v29 = vmul.f32 %v14416_v63, %v14415_v49  ;;  %v5830_v49 = vmul.f32 %v14419_v60, %v14418_v34  ;;  %v14420_v63 = vld [vmem:[#allocation224_spill] sm:$0xff]  ;;  %v14422_v19 = vld [vmem:[#allocation91_spill] sm:$0xff] }
 0xdec   :  { %v6546_v28 = vadd.f32 %v5957_v15, %v5826_v36  ;;  %6296 = vperm.xlu0 %7123, %v5174_v43   ;;  %v4006_v43 = vmax.f32 %v3886_v6, 0.0  ;;  %v12413_v6 = vmul.f32 0.020408163, %v14421_v54  ;;  %v7492_v60 = vld [vmem:[%s13682_s4 + $0x218] sm:$0xff] }
 0xded   :  { %7109 = vset.pattern.permute.xlu1 %v14289_v56  ;;  %v5171_v8 = vsub.f32 %v7492_v60, %v14422_v19 }
 0xdee   :  { %6666 = vst [vmem:[#allocation2 + $0x10] sm:$0xff] %v6546_v28  ;;  %5706 = vperm.xlu1 %7109, %v12179_v33   ;;  %v12393_v46 = vpop.permute.xlu0 %4924  ;;  %v3951_v28 = vmax.f32 %v3831_v2, 0.0  ;;  %v12405_v33 = vmul.f32 0.020408163, %v14420_v63  ;;  %v4246_v40 = vadd.f32 1e-05, %v4006_v43  ;;  %v7409_v54 = vpop.eup %7408 }
 0xdef   :  { %14417 = vst [vmem:[#allocation12_spill] sm:$0xff] %v12393_v46  ;;  %v6232_v36 = vpop.permute.xlu1 %6231  ;;  %v14426_v63 = vld [vmem:[#allocation266_spill] sm:$0xff] }
 0xdf0   :  { %v6601_v15 = vadd.f32 %v6232_v36, %v5881_v29  ;;  %7124 = vset.pattern.permute.xlu0 %v14289_v56  ;;  %v4604_v29 = vmul.f32 %v12397_v14, %v12241_v32  ;;  %v4191_v36 = vadd.f32 1e-05, %v3951_v28  ;;  %v14425_v32 = vld [vmem:[#allocation234_spill] sm:$0xff]  ;;  %7412 = vrsqrt.f32 %v4246_v40  ;;  %v14429_v40 = vld [vmem:[#allocation11_spill] sm:$0xff] }
 0xdf1   :  { %5451 = vperm.xlu0 %7124, %v12395_v57   ;;  %v3647_v43 = vmul.f32 0.020408163, %v14425_v32 }
 0xdf2   :  { %6721 = vst [vmem:[#allocation2 + $0x1c8] sm:$0xff] %v6601_v15  ;;  %4826 = vrot.lane.b32.xlu1 %v4545_v44, %s7595_s9  ;;  %v5977_v13 = vpop.permute.xlu0 %5976  ;;  %v3712_v15 = vmul.f32 %v12405_v33, %v12405_v33  ;;  %v14424_v44 = vld [vmem:[#allocation227_spill] sm:$0xff]  ;;  %7414 = vrsqrt.f32 %v4191_v36 }
 0xdf3   :  { %v6550_v52 = vadd.f32 %v5977_v13, %v5830_v49  ;;  %7111 = vset.pattern.permute.xlu1 %v14283_v26  ;;  %v3592_v34 = vmul.f32 0.020408163, %v14424_v44  ;;  %v7493_v49 = vld [vmem:[%s13682_s4 + $0x80] sm:$0xff]  ;;  %v4070_v44 = vld [vmem:[%s13682_s4 + $0x170] sm:$0xff] }
 0xdf4   :  { %v12419_v2 = vpop.permute.xlu1 %5386  ;;  %v5120_v13 = vsub.f32 %v7493_v49, %v14426_v63  ;;  %v14430_v49 = vld [vmem:[#allocation197_spill] sm:$0xff] }
 0xdf5   :  { %14423 = vst [vmem:[#allocation199_spill] sm:$0xff] %v12419_v2  ;;  %6670 = vst [vmem:[#allocation2 + $0x30] sm:$0xff] %v6550_v52  ;;  %4944 = vrot.lane.b32.xlu0 %v4604_v29, %s7595_s9  ;;  %v3767_v52 = vmul.f32 %v12413_v6, %v12413_v6  ;;  %v7411_v29 = vpop.eup %7410  ;;  %v3832_v19 = vsub.f32 %v3592_v34, %v3712_v15  ;;  %v5827_v63 = vmul.f32 %v14430_v49, %v14429_v40  ;;  %v14434_v49 = vld [vmem:[#allocation228_spill] sm:$0xff] }
 0xdf6   :  { %6281 = vperm.xlu1 %7111, %v5171_v8   ;;  %7126 = vset.pattern.permute.xlu0 %v14283_v26  ;;  %v4125_v8 = vld [vmem:[%s13682_s4 + $0x328] sm:$0xff]  ;;  %v12451_v34 = vmul.f32 %v7409_v54, %v4070_v44  ;;  %v14436_v44 = vld [vmem:[#allocation88_spill] sm:$0xff] }
 0xdf7   :  { %v12431_v28 = vpop.permute.xlu0 %5681  ;;  %v3887_v32 = vsub.f32 %v3647_v43, %v3767_v52  ;;  %v12449_v15 = vmul.f32 %v7411_v29, %v4125_v8  ;;  %v4601_v43 = vmul.f32 %v12231_v38, %v12082_v21  ;;  %v14432_v52 = vld [vmem:[#allocation20_spill] sm:$0xff]  ;;  %v14435_v38 = vld [vmem:[#allocation238_spill] sm:$0xff] }
 0xdf8   :  { %14427 = vst [vmem:[#allocation204_spill] sm:$0xff] %v12431_v28  ;;  %v12435_v60 = vpop.permute.xlu1 %4918  ;;  %v12467_v8 = vmul.f32 0.020408163, %v14435_v38 }
 0xdf9   :  { %14428 = vst [vmem:[#allocation203_spill] sm:$0xff] %v12435_v60  ;;  %6026 = vperm.xlu0 %7126, %v5120_v13   ;;  %v3952_v13 = vmax.f32 %v3832_v19, 0.0  ;;  %v14433_v60 = vld [vmem:[#allocation232_spill] sm:$0xff]  ;;  %v4007_v40 = vmax.f32 %v3887_v32, 0.0  ;;  %v4550_v19 = vmul.f32 %v12451_v34, %v12297_v45  ;;  %v14439_v45 = vld [vmem:[#allocation241_spill] sm:$0xff] }
 0xdfa   :  { %7112 = vset.pattern.permute.xlu1 %v14289_v56  ;;  %v5886_v46 = vmul.f32 %v14433_v60, %v14432_v52  ;;  %v7494_v60 = vld [vmem:[%s13682_s4 + $0x68] sm:$0xff]  ;;  %v7495_v52 = vld [vmem:[%s13682_s4 + $0x240] sm:$0xff] }
 0xdfb   :  { %5436 = vperm.xlu1 %7112, %v12233_v7   ;;  %v12447_v28 = vpop.permute.xlu0 %4816  ;;  %v12459_v7 = vmul.f32 0.020408163, %v14434_v49  ;;  %v4192_v21 = vadd.f32 1e-05, %v3952_v13  ;;  %v5117_v32 = vsub.f32 %v7494_v60, %v14436_v44  ;;  %v3593_v13 = vmul.f32 0.020408163, %v14439_v45 }
 0xdfc   :  { %14431 = vst [vmem:[#allocation251_spill] sm:$0xff] %v12447_v28  ;;  %v5962_v36 = vpop.permute.xlu1 %5961  ;;  %v14440_v49 = vld [vmem:[#allocation158_spill] sm:$0xff] }
 0xdfd   :  { %v6547_v2 = vadd.f32 %v5962_v36, %v5827_v63  ;;  %7129 = vset.pattern.permute.xlu0 %v14289_v56  ;;  %v4247_v63 = vadd.f32 1e-05, %v4007_v40  ;;  %v14438_v36 = vld [vmem:[#allocation230_spill] sm:$0xff]  ;;  %v7413_v38 = vpop.eup %7412  ;;  %7416 = vrsqrt.f32 %v4192_v21  ;;  %v14443_v21 = vld [vmem:[#allocation13_spill] sm:$0xff] }
 0xdfe   :  { %5731 = vperm.xlu0 %7129, %v12449_v15  }
 0xdff   :  { %6667 = vst [vmem:[#allocation2 + $0x18] sm:$0xff] %v6547_v2  ;;  %4938 = vrot.lane.b32.xlu1 %v4601_v43, %s7595_s9  ;;  %v6257_v54 = vpop.permute.xlu0 %6256  ;;  %v3648_v43 = vmul.f32 0.020408163, %v14438_v36  ;;  %7418 = vrsqrt.f32 %v4247_v63  ;;  %v4126_v36 = vld [vmem:[%s13682_s4 + $0x330] sm:$0xff] }
 0xe00   :  { %v6606_v29 = vadd.f32 %v6257_v54, %v5886_v46  ;;  %7114 = vset.pattern.permute.xlu1 %v14283_v26  ;;  %v3768_v46 = vmul.f32 %v12459_v7, %v12459_v7  ;;  %v5176_v54 = vsub.f32 %v7495_v52, %v14440_v49  ;;  %v14444_v52 = vld [vmem:[#allocation205_spill] sm:$0xff] }
 0xe01   :  { %v12473_v2 = vpop.permute.xlu1 %5666  ;;  %v5883_v49 = vmul.f32 %v14444_v52, %v14443_v21  ;;  %v14447_v52 = vld [vmem:[#allocation233_spill] sm:$0xff] }
 0xe02   :  { %14437 = vst [vmem:[#allocation206_spill] sm:$0xff] %v12473_v2  ;;  %6726 = vst [vmem:[#allocation2 + $0x1f0] sm:$0xff] %v6606_v29  ;;  %4836 = vrot.lane.b32.xlu0 %v4550_v19, %s7595_s9  ;;  %v3713_v29 = vmul.f32 %v12467_v8, %v12467_v8  ;;  %v7415_v19 = vpop.eup %7414  ;;  %v3888_v44 = vsub.f32 %v3648_v43, %v3768_v46  ;;  %v12505_v43 = vmul.f32 %v7413_v38, %v4126_v36  ;;  %v14449_v36 = vld [vmem:[#allocation155_spill] sm:$0xff] }
 0xe03   :  { %6011 = vperm.xlu1 %7114, %v5117_v32   ;;  %7131 = vset.pattern.permute.xlu0 %v14283_v26  ;;  %v4071_v32 = vld [vmem:[%s13682_s4 + $0x178] sm:$0xff] }
 0xe04   :  { %v12485_v40 = vpop.permute.xlu0 %5411  ;;  %v3833_v45 = vsub.f32 %v3593_v13, %v3713_v29  ;;  %v12503_v46 = vmul.f32 %v7415_v19, %v4071_v32  ;;  %v4547_v13 = vmul.f32 %v12285_v20, %v12138_v18  ;;  %v14445_v29 = vld [vmem:[#allocation22_spill] sm:$0xff]  ;;  %v14448_v20 = vld [vmem:[#allocation245_spill] sm:$0xff] }
 0xe05   :  { %14441 = vst [vmem:[#allocation209_spill] sm:$0xff] %v12485_v40  ;;  %v12489_v60 = vpop.permute.xlu1 %4810  ;;  %v12521_v32 = vmul.f32 0.020408163, %v14448_v20 }
 0xe06   :  { %14442 = vst [vmem:[#allocation142_spill] sm:$0xff] %v12489_v60  ;;  %6306 = vperm.xlu0 %7131, %v5176_v54   ;;  %v4008_v54 = vmax.f32 %v3888_v44, 0.0  ;;  %v14446_v60 = vld [vmem:[#allocation239_spill] sm:$0xff]  ;;  %v3953_v21 = vmax.f32 %v3833_v45, 0.0  ;;  %v4606_v44 = vmul.f32 %v12505_v43, %v12351_v25  ;;  %v14452_v25 = vld [vmem:[#allocation249_spill] sm:$0xff] }
 0xe07   :  { %7117 = vset.pattern.permute.xlu1 %v14289_v56  ;;  %v5832_v28 = vmul.f32 %v14446_v60, %v14445_v29  ;;  %v7496_v60 = vld [vmem:[%s13682_s4 + $0x228] sm:$0xff]  ;;  %v7497_v29 = vld [vmem:[%s13682_s4 + $0x90] sm:$0xff] }
 0xe08   :  { %5716 = vperm.xlu1 %7117, %v12287_v3   ;;  %v12501_v40 = vpop.permute.xlu0 %4928  ;;  %v12513_v3 = vmul.f32 0.020408163, %v14447_v52  ;;  %v4248_v18 = vadd.f32 1e-05, %v4008_v54  ;;  %v5173_v45 = vsub.f32 %v7496_v60, %v14449_v36  ;;  %v3649_v54 = vmul.f32 0.020408163, %v14452_v25 }
 0xe09   :  { %v6242_v63 = vpop.permute.xlu1 %6241  ;;  %v5122_v52 = vsub.f32 %v7497_v29, %v11626_v51  ;;  %v4127_v36 = vld [vmem:[%s13682_s4 + $0x338] sm:$0xff]  ;;  %v4072_v51 = vld [vmem:[%s13682_s4 + $0x180] sm:$0xff] }
 0xe0a   :  { %v6603_v2 = vadd.f32 %v6242_v63, %v5883_v49  ;;  %7132 = vset.pattern.permute.xlu0 %v14289_v56  ;;  %v4193_v49 = vadd.f32 1e-05, %v3953_v21  ;;  %v14451_v63 = vld [vmem:[#allocation237_spill] sm:$0xff]  ;;  %7420 = vrsqrt.f32 %v4248_v18  ;;  %v14455_v18 = vld [vmem:[#allocation15_spill] sm:$0xff] }
 0xe0b   :  { %5461 = vperm.xlu0 %7132, %v12503_v46  }
 0xe0c   :  { %6723 = vst [vmem:[#allocation2 + $0x1d8] sm:$0xff] %v6603_v2  ;;  %4830 = vrot.lane.b32.xlu1 %v4547_v13, %s7595_s9  ;;  %v5987_v38 = vpop.permute.xlu0 %5986  ;;  %v3594_v13 = vmul.f32 0.020408163, %v14451_v63  ;;  %7422 = vrsqrt.f32 %v4193_v49  ;;  %v14456_v63 = vld [vmem:[#allocation213_spill] sm:$0xff] }
 0xe0d   :  { %v6552_v19 = vadd.f32 %v5987_v38, %v5832_v28  ;;  %7119 = vset.pattern.permute.xlu1 %v14283_v26  ;;  %v3714_v28 = vmul.f32 %v12513_v3, %v12513_v3  ;;  %v7417_v38 = vpop.eup %7416  ;;  %v5829_v25 = vmul.f32 %v14456_v63, %v14455_v18  ;;  %v14459_v63 = vld [vmem:[#allocation240_spill] sm:$0xff] }
 0xe0e   :  { %v12527_v2 = vpop.permute.xlu1 %5396 }
 0xe0f   :  { %14450 = vst [vmem:[#allocation6_spill] sm:$0xff] %v12527_v2  ;;  %6672 = vst [vmem:[#allocation2 + $0x40] sm:$0xff] %v6552_v19  ;;  %4948 = vrot.lane.b32.xlu0 %v4606_v44, %s7595_s9  ;;  %v3769_v19 = vmul.f32 %v12521_v32, %v12521_v32  ;;  %v7419_v44 = vpop.eup %7418  ;;  %v3834_v60 = vsub.f32 %v3594_v13, %v3714_v28  ;;  %v12559_v13 = vmul.f32 %v7417_v38, %v4072_v51  ;;  %v14458_v2 = vld [vmem:[#allocation247_spill] sm:$0xff] }
 0xe10   :  { %6291 = vperm.xlu1 %7119, %v5173_v45   ;;  %7134 = vset.pattern.permute.xlu0 %v14283_v26  ;;  %v12557_v28 = vmul.f32 %v7419_v44, %v4127_v36  ;;  %v14461_v51 = vld [vmem:[#allocation159_spill] sm:$0xff] }
 0xe11   :  { %v12539_v21 = vpop.permute.xlu0 %5691  ;;  %v3889_v45 = vsub.f32 %v3649_v54, %v3769_v19  ;;  %v4603_v54 = vmul.f32 %v12339_v0, %v12197_v1  ;;  %v14457_v19 = vld [vmem:[#allocation24_spill] sm:$0xff]  ;;  %v14460_v0 = vld [vmem:[#allocation253_spill] sm:$0xff] }
 0xe12   :  { %14453 = vst [vmem:[#allocation132_spill] sm:$0xff] %v12539_v21  ;;  %v12543_v20 = vpop.permute.xlu1 %4922  ;;  %v12575_v36 = vmul.f32 0.020408163, %v14460_v0 }
 0xe13   :  { %14454 = vst [vmem:[#allocation5_spill] sm:$0xff] %v12543_v20  ;;  %6036 = vperm.xlu0 %7134, %v5122_v52   ;;  %v3954_v52 = vmax.f32 %v3834_v60, 0.0  ;;  %v5888_v20 = vmul.f32 %v14458_v2, %v14457_v19  ;;  %v4009_v18 = vmax.f32 %v3889_v45, 0.0  ;;  %v4552_v60 = vmul.f32 %v12559_v13, %v12405_v33  ;;  %v7498_v2 = vld [vmem:[%s13682_s4 + $0x78] sm:$0xff]  ;;  %v14464_v33 = vld [vmem:[#allocation257_spill] sm:$0xff]  ;;  %v7499_v19 = vld [vmem:[%s13682_s4 + $0x250] sm:$0xff] }
 0xe14   :  { %7120 = vset.pattern.permute.xlu1 %v14289_v56  ;;  %v5119_v45 = vsub.f32 %v7498_v2, %v14461_v51  ;;  %v4073_v51 = vld [vmem:[%s13682_s4 + $0x188] sm:$0xff] }
 0xe15   :  { %5446 = vperm.xlu1 %7120, %v12341_v59   ;;  %v12555_v29 = vpop.permute.xlu0 %4820  ;;  %v12567_v59 = vmul.f32 0.020408163, %v14459_v63  ;;  %v4194_v1 = vadd.f32 1e-05, %v3954_v52  ;;  %v3595_v52 = vmul.f32 0.020408163, %v14464_v33  ;;  %v5178_v63 = vsub.f32 %v7499_v19, %v11660_v9 }
 0xe16   :  { %v5972_v49 = vpop.permute.xlu1 %5971  ;;  %v4128_v9 = vld [vmem:[%s13682_s4 + $0x340] sm:$0xff] }
 0xe17   :  { %v6549_v21 = vadd.f32 %v5972_v49, %v5829_v25  ;;  %7137 = vset.pattern.permute.xlu0 %v14289_v56  ;;  %v4249_v25 = vadd.f32 1e-05, %v4009_v18  ;;  %v14463_v49 = vld [vmem:[#allocation244_spill] sm:$0xff]  ;;  %7424 = vrsqrt.f32 %v4194_v1  ;;  %v14467_v1 = vld [vmem:[#allocation17_spill] sm:$0xff] }
 0xe18   :  { %5741 = vperm.xlu0 %7137, %v12557_v28  }
 0xe19   :  { %6669 = vst [vmem:[#allocation2 + $0x28] sm:$0xff] %v6549_v21  ;;  %4942 = vrot.lane.b32.xlu1 %v4603_v54, %s7595_s9  ;;  %v6267_v38 = vpop.permute.xlu0 %6266  ;;  %v3650_v54 = vmul.f32 0.020408163, %v14463_v49  ;;  %7426 = vrsqrt.f32 %v4249_v25  ;;  %v14468_v49 = vld [vmem:[#allocation219_spill] sm:$0xff] }
 0xe1a   :  { %v6608_v44 = vadd.f32 %v6267_v38, %v5888_v20  ;;  %7122 = vset.pattern.permute.xlu1 %v14283_v26  ;;  %v3770_v20 = vmul.f32 %v12567_v59, %v12567_v59  ;;  %v7421_v38 = vpop.eup %7420  ;;  %v5885_v33 = vmul.f32 %v14468_v49, %v14467_v1  ;;  %v14471_v49 = vld [vmem:[#allocation248_spill] sm:$0xff] }
 0xe1b   :  { %v12581_v21 = vpop.permute.xlu1 %5676 }
 0xe1c   :  { %14462 = vst [vmem:[#allocation125_spill] sm:$0xff] %v12581_v21  ;;  %6728 = vst [vmem:[#allocation2 + $0x200] sm:$0xff] %v6608_v44  ;;  %4840 = vrot.lane.b32.xlu0 %v4552_v60, %s7595_s9  ;;  %v3715_v44 = vmul.f32 %v12575_v36, %v12575_v36  ;;  %v7423_v60 = vpop.eup %7422  ;;  %v3890_v2 = vsub.f32 %v3650_v54, %v3770_v20  ;;  %v12613_v54 = vmul.f32 %v7421_v38, %v4128_v9  ;;  %v14470_v21 = vld [vmem:[#allocation255_spill] sm:$0xff] }
 0xe1d   :  { %6021 = vperm.xlu1 %7122, %v5119_v45   ;;  %7139 = vset.pattern.permute.xlu0 %v14283_v26  ;;  %v12611_v20 = vmul.f32 %v7423_v60, %v4073_v51 }
 0xe1e   :  { %v12593_v18 = vpop.permute.xlu0 %5421  ;;  %v3835_v45 = vsub.f32 %v3595_v52, %v3715_v44  ;;  %v4549_v52 = vmul.f32 %v12395_v57, %v12251_v27  ;;  %v14469_v44 = vld [vmem:[#allocation26_spill] sm:$0xff]  ;;  %v14472_v57 = vld [vmem:[#allocation261_spill] sm:$0xff] }
 0xe1f   :  { %14465 = vst [vmem:[#allocation14_spill] sm:$0xff] %v12593_v18  ;;  %v12597_v0 = vpop.permute.xlu1 %4814  ;;  %v12629_v51 = vmul.f32 0.020408163, %v14472_v57  ;;  %v4129_v57 = vld [vmem:[%s13682_s4 + $0x348] sm:$0xff] }
 0xe20   :  { %14466 = vst [vmem:[#allocation208_spill] sm:$0xff] %v12597_v0  ;;  %6316 = vperm.xlu0 %7139, %v5178_v63   ;;  %v4010_v63 = vmax.f32 %v3890_v2, 0.0  ;;  %v5834_v0 = vmul.f32 %v14470_v21, %v14469_v44  ;;  %v3955_v1 = vmax.f32 %v3835_v45, 0.0  ;;  %v4608_v2 = vmul.f32 %v12613_v54, %v12459_v7  ;;  %v7500_v21 = vld [vmem:[%s13682_s4 + $0x238] sm:$0xff]  ;;  %v14475_v7 = vld [vmem:[#allocation82_spill] sm:$0xff] }
 0xe21   :  { %7125 = vset.pattern.permute.xlu1 %v14289_v56  ;;  %v5175_v9 = vsub.f32 %v7500_v21, %v11605_v53  ;;  %v7501_v53 = vld [vmem:[%s13682_s4 + $0xa0] sm:$0xff] }
 0xe22   :  { %5726 = vperm.xlu1 %7125, %v12397_v14   ;;  %v12609_v19 = vpop.permute.xlu0 %4932  ;;  %v12621_v14 = vmul.f32 0.020408163, %v14471_v49  ;;  %v4250_v27 = vadd.f32 1e-05, %v4010_v63  ;;  %v4195_v45 = vadd.f32 1e-05, %v3955_v1  ;;  %v3771_v49 = vmul.f32 %v12629_v51, %v12629_v51 }
 0xe23   :  { %v6252_v25 = vpop.permute.xlu1 %6251  ;;  %v3651_v63 = vmul.f32 0.020408163, %v14475_v7 }
 0xe24   :  { %v6605_v18 = vadd.f32 %v6252_v25, %v5885_v33  ;;  %7140 = vset.pattern.permute.xlu0 %v14289_v56  ;;  %v14474_v33 = vld [vmem:[#allocation252_spill] sm:$0xff]  ;;  %v7425_v1 = vpop.eup %7424  ;;  %7428 = vrsqrt.f32 %v4250_v27  ;;  %v14477_v27 = vld [vmem:[#allocation19_spill] sm:$0xff] }
 0xe25   :  { %5471 = vperm.xlu0 %7140, %v12611_v20   ;;  %v3596_v25 = vmul.f32 0.020408163, %v14474_v33  ;;  %7430 = vrsqrt.f32 %v4195_v45  ;;  %v3891_v21 = vsub.f32 %v3651_v63, %v3771_v49  ;;  %v4605_v63 = vmul.f32 %v12449_v15, %v12305_v41  ;;  %v14479_v49 = vld [vmem:[#allocation28_spill] sm:$0xff]  ;;  %v14482_v15 = vld [vmem:[#allocation85_spill] sm:$0xff] }
 0xe26   :  { %6725 = vst [vmem:[#allocation2 + $0x1e8] sm:$0xff] %v6605_v18  ;;  %4834 = vrot.lane.b32.xlu1 %v4549_v52, %s7595_s9  ;;  %v5997_v38 = vpop.permute.xlu0 %5996  ;;  %v5124_v52 = vsub.f32 %v7501_v53, %v11735_v5  ;;  %v4074_v5 = vld [vmem:[%s13682_s4 + $0x190] sm:$0xff] }
 0xe27   :  { %v6554_v60 = vadd.f32 %v5997_v38, %v5834_v0  ;;  %7127 = vset.pattern.permute.xlu1 %v14283_v26  ;;  %v3716_v0 = vmul.f32 %v12621_v14, %v12621_v14 }
 0xe28   :  { %v12635_v18 = vpop.permute.xlu1 %5406 }
 0xe29   :  { %14473 = vst [vmem:[#allocation211_spill] sm:$0xff] %v12635_v18  ;;  %6674 = vst [vmem:[#allocation2 + $0x50] sm:$0xff] %v6554_v60  ;;  %4952 = vrot.lane.b32.xlu0 %v4608_v2, %s7595_s9  ;;  %v7427_v60 = vpop.eup %7426  ;;  %v3836_v2 = vsub.f32 %v3596_v25, %v3716_v0  ;;  %v12667_v25 = vmul.f32 %v7425_v1, %v4074_v5 }
 0xe2a   :  { %6301 = vperm.xlu1 %7127, %v5175_v9   ;;  %7142 = vset.pattern.permute.xlu0 %v14283_v26  ;;  %v14478_v9 = vld [vmem:[#allocation226_spill] sm:$0xff]  ;;  %v12665_v0 = vmul.f32 %v7427_v60, %v4129_v57  ;;  %v12683_v57 = vmul.f32 0.020408163, %v14482_v15  ;;  %v4075_v15 = vld [vmem:[%s13682_s4 + $0x198] sm:$0xff] }
 0xe2b   :  { %v12647_v44 = vpop.permute.xlu0 %5701  ;;  %v5831_v33 = vmul.f32 %v14478_v9, %v14477_v27  ;;  %v3956_v53 = vmax.f32 %v3836_v2, 0.0  ;;  %v4011_v27 = vmax.f32 %v3891_v21, 0.0  ;;  %v14481_v9 = vld [vmem:[#allocation256_spill] sm:$0xff]  ;;  %v4554_v2 = vmul.f32 %v12667_v25, %v12513_v3  ;;  %v14485_v3 = vld [vmem:[#allocation145_spill] sm:$0xff] }
 0xe2c   :  { %14476 = vst [vmem:[#allocation210_spill] sm:$0xff] %v12647_v44  ;;  %v12651_v38 = vpop.permute.xlu1 %4926  ;;  %v14480_v44 = vld [vmem:[#allocation262_spill] sm:$0xff] }
 0xe2d   :  { %6046 = vperm.xlu0 %7142, %v5124_v52   ;;  %v5890_v18 = vmul.f32 %v14480_v44, %v14479_v49  ;;  %v4196_v41 = vadd.f32 1e-05, %v3956_v53  ;;  %v7502_v44 = vld [vmem:[%s13682_s4 + $0x88] sm:$0xff]  ;;  %v3597_v53 = vmul.f32 0.020408163, %v14485_v3 }
 0xe2e   :  { %7128 = vset.pattern.permute.xlu1 %v14289_v56  ;;  %v5121_v5 = vsub.f32 %v7502_v44, %v11681_v47  ;;  %v7503_v47 = vld [vmem:[%s13682_s4 + $0x260] sm:$0xff] }
 0xe2f   :  { %5456 = vperm.xlu1 %7128, %v12451_v34   ;;  %v12663_v7 = vpop.permute.xlu0 %4824  ;;  %v12675_v34 = vmul.f32 0.020408163, %v14481_v9  ;;  %7432 = vrsqrt.f32 %v4196_v41  ;;  %v3717_v9 = vmul.f32 %v12683_v57, %v12683_v57  ;;  %v14487_v41 = vld [vmem:[#allocation21_spill] sm:$0xff] }
 0xe30   :  { %v5982_v45 = vpop.permute.xlu1 %5981 }
 0xe31   :  { %v6551_v52 = vadd.f32 %v5982_v45, %v5831_v33  ;;  %7145 = vset.pattern.permute.xlu0 %v14289_v56  ;;  %v4251_v33 = vadd.f32 1e-05, %v4011_v27  ;;  %v14484_v45 = vld [vmem:[#allocation260_spill] sm:$0xff]  ;;  %v7429_v27 = vpop.eup %7428  ;;  %v3837_v44 = vsub.f32 %v3597_v53, %v3717_v9  ;;  %v4551_v53 = vmul.f32 %v12503_v46, %v12359_v16  ;;  %v14489_v9 = vld [vmem:[#allocation30_spill] sm:$0xff]  ;;  %v14492_v46 = vld [vmem:[#allocation265_spill] sm:$0xff] }
 0xe32   :  { %5751 = vperm.xlu0 %7145, %v12665_v0  }
 0xe33   :  { %6671 = vst [vmem:[#allocation2 + $0x38] sm:$0xff] %v6551_v52  ;;  %4946 = vrot.lane.b32.xlu1 %v4605_v63, %s7595_s9  ;;  %v6277_v1 = vpop.permute.xlu0 %6276  ;;  %v3652_v52 = vmul.f32 0.020408163, %v14484_v45  ;;  %v5180_v63 = vsub.f32 %v7503_v47, %v11778_v31  ;;  %7434 = vrsqrt.f32 %v4251_v33  ;;  %v4130_v31 = vld [vmem:[%s13682_s4 + $0x350] sm:$0xff] }
 0xe34   :  { %v6610_v60 = vadd.f32 %v6277_v1, %v5890_v18  ;;  %7130 = vset.pattern.permute.xlu1 %v14283_v26  ;;  %v3772_v18 = vmul.f32 %v12675_v34, %v12675_v34 }
 0xe35   :  { %v12689_v21 = vpop.permute.xlu1 %5686 }
 0xe36   :  { %14483 = vst [vmem:[#allocation259_spill] sm:$0xff] %v12689_v21  ;;  %6730 = vst [vmem:[#allocation2 + $0x210] sm:$0xff] %v6610_v60  ;;  %4844 = vrot.lane.b32.xlu0 %v4554_v2, %s7595_s9  ;;  %v7431_v60 = vpop.eup %7430  ;;  %v3892_v2 = vsub.f32 %v3652_v52, %v3772_v18  ;;  %v12721_v52 = vmul.f32 %v7429_v27, %v4130_v31 }
 0xe37   :  { %6031 = vperm.xlu1 %7130, %v5121_v5   ;;  %7147 = vset.pattern.permute.xlu0 %v14283_v26  ;;  %v14488_v5 = vld [vmem:[#allocation229_spill] sm:$0xff]  ;;  %v12719_v18 = vmul.f32 %v7431_v60, %v4075_v15  ;;  %v12737_v15 = vmul.f32 0.020408163, %v14492_v46  ;;  %v4131_v46 = vld [vmem:[%s13682_s4 + $0x358] sm:$0xff] }
 0xe38   :  { %v12701_v49 = vpop.permute.xlu0 %5431  ;;  %v5887_v45 = vmul.f32 %v14488_v5, %v14487_v41  ;;  %v4012_v47 = vmax.f32 %v3892_v2, 0.0  ;;  %v3957_v41 = vmax.f32 %v3837_v44, 0.0  ;;  %v14491_v5 = vld [vmem:[#allocation263_spill] sm:$0xff]  ;;  %v4610_v2 = vmul.f32 %v12721_v52, %v12567_v59  ;;  %v14495_v59 = vld [vmem:[#allocation150_spill] sm:$0xff] }
 0xe39   :  { %14486 = vst [vmem:[#allocation216_spill] sm:$0xff] %v12701_v49  ;;  %v12705_v1 = vpop.permute.xlu1 %4818  ;;  %v14490_v49 = vld [vmem:[#allocation143_spill] sm:$0xff] }
 0xe3a   :  { %6326 = vperm.xlu0 %7147, %v5180_v63   ;;  %v5836_v21 = vmul.f32 %v14490_v49, %v14489_v9  ;;  %v4252_v16 = vadd.f32 1e-05, %v4012_v47  ;;  %v7504_v49 = vld [vmem:[%s13682_s4 + $0x248] sm:$0xff]  ;;  %v3653_v47 = vmul.f32 0.020408163, %v14495_v59 }
 0xe3b   :  { %7133 = vset.pattern.permute.xlu1 %v14289_v56  ;;  %v5177_v31 = vsub.f32 %v7504_v49, %v11723_v4  ;;  %v7505_v4 = vld [vmem:[%s13682_s4 + $0xb0] sm:$0xff] }
 0xe3c   :  { %5736 = vperm.xlu1 %7133, %v12505_v43   ;;  %v12717_v3 = vpop.permute.xlu0 %4936  ;;  %v12729_v43 = vmul.f32 0.020408163, %v14491_v5  ;;  %7436 = vrsqrt.f32 %v4252_v16  ;;  %v3773_v5 = vmul.f32 %v12737_v15, %v12737_v15  ;;  %v14498_v16 = vld [vmem:[#allocation23_spill] sm:$0xff] }
 0xe3d   :  { %v6262_v33 = vpop.permute.xlu1 %6261 }
 0xe3e   :  { %v6607_v63 = vadd.f32 %v6262_v33, %v5887_v45  ;;  %7148 = vset.pattern.permute.xlu0 %v14289_v56  ;;  %v4197_v45 = vadd.f32 1e-05, %v3957_v41  ;;  %v14494_v33 = vld [vmem:[#allocation86_spill] sm:$0xff]  ;;  %v7433_v41 = vpop.eup %7432  ;;  %v3893_v49 = vsub.f32 %v3653_v47, %v3773_v5  ;;  %v4607_v5 = vmul.f32 %v12557_v28, %v12413_v6 }
 0xe3f   :  { %5481 = vperm.xlu0 %7148, %v12719_v18  }
 0xe40   :  { %6727 = vst [vmem:[#allocation2 + $0x1f8] sm:$0xff] %v6607_v63  ;;  %4838 = vrot.lane.b32.xlu1 %v4551_v53, %s7595_s9  ;;  %v6007_v27 = vpop.permute.xlu0 %6006  ;;  %v3598_v63 = vmul.f32 0.020408163, %v14494_v33  ;;  %v5126_v53 = vsub.f32 %v7505_v4, %v11859_v50  ;;  %7438 = vrsqrt.f32 %v4197_v45  ;;  %v12767_v50 = vld [vmem:[%s13682_s4 + $0x1a0] sm:$0xff] }
 0xe41   :  { %v6556_v60 = vadd.f32 %v6007_v27, %v5836_v21  ;;  %7135 = vset.pattern.permute.xlu1 %v14283_v26  ;;  %v3718_v21 = vmul.f32 %v12729_v43, %v12729_v43 }
 0xe42   :  { %v12743_v44 = vpop.permute.xlu1 %5416 }
 0xe43   :  { %14493 = vst [vmem:[#allocation215_spill] sm:$0xff] %v12743_v44  ;;  %6676 = vst [vmem:[#allocation2 + $0x60] sm:$0xff] %v6556_v60  ;;  %4956 = vrot.lane.b32.xlu0 %v4610_v2, %s7595_s9  ;;  %v7435_v60 = vpop.eup %7434  ;;  %v3838_v2 = vsub.f32 %v3598_v63, %v3718_v21  ;;  %v14500_v21 = vld [vmem:[#allocation144_spill] sm:$0xff]  ;;  %v4013_v44 = vmax.f32 %v3893_v49, 0.0 }
 0xe44   :  { %6311 = vperm.xlu1 %7135, %v5177_v31   ;;  %7150 = vset.pattern.permute.xlu0 %v14283_v26  ;;  %v14499_v31 = vld [vmem:[#allocation235_spill] sm:$0xff]  ;;  %v12776_v63 = vmul.f32 0.020408163, %v14500_v21  ;;  %v12778_v4 = vmul.f32 %v7435_v60, %v4131_v46 }
 0xe45   :  { %v12755_v9 = vpop.permute.xlu0 %5711  ;;  %v5833_v33 = vmul.f32 %v14499_v31, %v14498_v16  ;;  %v14501_v16 = vld [vmem:[#allocation32_spill] sm:$0xff] }
 0xe46   :  { %14496 = vst [vmem:[#allocation147_spill] sm:$0xff] %v12755_v9  ;;  %v12759_v27 = vpop.permute.xlu1 %4930  ;;  %v3958_v9 = vmax.f32 %v3838_v2, 0.0  ;;  %v3774_v60 = vmul.f32 %v12776_v63, %v12776_v63 }
 0xe47   :  { %14497 = vst [vmem:[#allocation16_spill] sm:$0xff] %v12759_v27  ;;  %6056 = vperm.xlu0 %7150, %v5126_v53   ;;  %v12781_v53 = vmul.f32 %v7433_v41, %v12767_v50  ;;  %v14503_v27 = vld [vmem:[#allocation83_spill] sm:$0xff] }
 0xe48   :  { %7136 = vset.pattern.permute.xlu1 %v14289_v56  ;;  %v3654_v21 = vmul.f32 0.020408163, %v14503_v27  ;;  %v4198_v28 = vadd.f32 1e-05, %v3958_v9  ;;  %v7506_v27 = vld [vmem:[%s13682_s4 + $0x98] sm:$0xff] }
 0xe49   :  { %5466 = vperm.xlu1 %7136, %v12559_v13   ;;  %v12773_v45 = vpop.permute.xlu0 %4828  ;;  %v14502_v13 = vld [vmem:[#allocation148_spill] sm:$0xff]  ;;  %v4556_v6 = vmul.f32 %v12781_v53, %v12621_v14  ;;  %v5123_v46 = vsub.f32 %v7506_v27, %v11805_v17  ;;  %v7507_v14 = vld [vmem:[%s13682_s4 + $0x270] sm:$0xff] }
 0xe4a   :  { %v5992_v59 = vpop.permute.xlu1 %5991  ;;  %v5892_v31 = vmul.f32 %v14502_v13, %v14501_v16  ;;  %v5182_v9 = vsub.f32 %v7507_v14, %v11891_v10  ;;  %7440 = vrsqrt.f32 %v4198_v28  ;;  %v4077_v13 = vld [vmem:[%s13682_s4 + $0x1a8] sm:$0xff]  ;;  %v14505_v10 = vld [vmem:[#allocation25_spill] sm:$0xff]  ;;  %v4553_v14 = vmul.f32 %v12611_v20, %v12467_v8  ;;  %v14511_v20 = vld [vmem:[#allocation152_spill] sm:$0xff] }
 0xe4b   :  { %v6553_v47 = vadd.f32 %v5992_v59, %v5833_v33  ;;  %7153 = vset.pattern.permute.xlu0 %v14289_v56  ;;  %v4253_v33 = vadd.f32 1e-05, %v4013_v44  ;;  %v3894_v59 = vsub.f32 %v3654_v21, %v3774_v60  ;;  %v14506_v21 = vld [vmem:[#allocation242_spill] sm:$0xff] }
 0xe4c   :  { %5761 = vperm.xlu0 %7153, %v12778_v4  }
 0xe4d   :  { %6673 = vst [vmem:[#allocation2 + $0x48] sm:$0xff] %v6553_v47  ;;  %4950 = vrot.lane.b32.xlu1 %v4607_v5, %s7595_s9  ;;  %v6287_v41 = vpop.permute.xlu0 %6286  ;;  %v7437_v5 = vpop.eup %7436  ;;  %7442 = vrsqrt.f32 %v4253_v33  ;;  %v4014_v16 = vmax.f32 %v3894_v59, 0.0 }
 0xe4e   :  { %v6612_v2 = vadd.f32 %v6287_v41, %v5892_v31  ;;  %7138 = vset.pattern.permute.xlu1 %v14283_v26  ;;  %v7439_v44 = vpop.eup %7438  ;;  %v12818_v31 = vld [vmem:[%s13682_s4 + $0x360] sm:$0xff]  ;;  %v5889_v41 = vmul.f32 %v14506_v21, %v14505_v10 }
 0xe4f   :  { %v12800_v49 = vpop.permute.xlu1 %5696  ;;  %v12829_v27 = vmul.f32 %v7439_v44, %v4077_v13  ;;  %v4254_v33 = vadd.f32 1e-05, %v4014_v16  ;;  %v14510_v21 = vld [vmem:[#allocation157_spill] sm:$0xff]  ;;  %v12848_v13 = vmul.f32 0.020408163, %v14511_v20  ;;  %v14516_v20 = vld [vmem:[#allocation250_spill] sm:$0xff] }
 0xe50   :  { %6732 = vst [vmem:[#allocation2 + $0x220] sm:$0xff] %v6612_v2  ;;  %4848 = vrot.lane.b32.xlu0 %v4556_v6, %s7595_s9  ;;  %v14507_v2 = vld [vmem:[#allocation93_spill] sm:$0xff] }
 0xe51   :  { %6041 = vperm.xlu1 %7138, %v5123_v46   ;;  %7155 = vset.pattern.permute.xlu0 %v14283_v26  ;;  %v12827_v6 = vmul.f32 0.020408163, %v14507_v2  ;;  %v12832_v46 = vmul.f32 %v7437_v5, %v12818_v31  ;;  %7444 = vrsqrt.f32 %v4254_v33 }
 0xe52   :  { %v12808_v47 = vpop.permute.xlu0 %5441 }
 0xe53   :  { %14504 = vst [vmem:[#allocation214_spill] sm:$0xff] %v12808_v47  ;;  %v12810_v17 = vpop.permute.xlu1 %4822  ;;  %v3655_v47 = vmul.f32 0.020408163, %v14510_v21  ;;  %v3775_v5 = vmul.f32 %v12827_v6, %v12827_v6  ;;  %v4612_v8 = vmul.f32 %v12832_v46, %v12675_v34  ;;  %v7509_v34 = vld [vmem:[%s13682_s4 + $0xc0] sm:$0xff] }
 0xe54   :  { %6336 = vperm.xlu0 %7155, %v5182_v9   ;;  %v14508_v9 = vld [vmem:[#allocation34_spill] sm:$0xff]  ;;  %v5128_v33 = vsub.f32 %v7509_v34, %v11919_v48 }
 0xe55   :  { %7141 = vset.pattern.permute.xlu1 %v14289_v56 }
 0xe56   :  { %5746 = vperm.xlu1 %7141, %v12613_v54   ;;  %v12824_v60 = vpop.permute.xlu0 %4940  ;;  %v14509_v54 = vld [vmem:[#allocation153_spill] sm:$0xff] }
 0xe57   :  { %v6272_v28 = vpop.permute.xlu1 %6271  ;;  %v5838_v10 = vmul.f32 %v14509_v54, %v14508_v9 }
 0xe58   :  { %v6609_v59 = vadd.f32 %v6272_v28, %v5889_v41  ;;  %7156 = vset.pattern.permute.xlu0 %v14289_v56  ;;  %v7508_v41 = vld [vmem:[%s13682_s4 + $0x258] sm:$0xff] }
 0xe59   :  { %5491 = vperm.xlu0 %7156, %v12829_v27   ;;  %v5179_v2 = vsub.f32 %v7508_v41, %v11848_v55  ;;  %v7441_v55 = vpop.eup %7440 }
 0xe5a   :  { %6729 = vst [vmem:[#allocation2 + $0x208] sm:$0xff] %v6609_v59  ;;  %4842 = vrot.lane.b32.xlu1 %v4553_v14, %s7595_s9  ;;  %v6017_v44 = vpop.permute.xlu0 %6016  ;;  %v3895_v59 = vsub.f32 %v3655_v47, %v3775_v5  ;;  %v14513_v14 = vld [vmem:[#allocation102_spill] sm:$0xff]  ;;  %v3776_v47 = vmul.f32 %v12848_v13, %v12848_v13  ;;  %v7443_v21 = vpop.eup %7442 }
 0xe5b   :  { %v6558_v16 = vadd.f32 %v6017_v44, %v5838_v10  ;;  %7143 = vset.pattern.permute.xlu1 %v14283_v26  ;;  %v3656_v9 = vmul.f32 0.020408163, %v14513_v14  ;;  %v4133_v5 = vld [vmem:[%s13682_s4 + $0x368] sm:$0xff] }
 0xe5c   :  { %v12854_v28 = vpop.permute.xlu1 %5426  ;;  %v4015_v44 = vmax.f32 %v3895_v59, 0.0  ;;  %v12883_v14 = vmul.f32 %v7443_v21, %v4133_v5  ;;  %v12910_v5 = vld [vmem:[%s13682_s4 + $0x370] sm:$0xff] }
 0xe5d   :  { %14512 = vst [vmem:[#allocation217_spill] sm:$0xff] %v12854_v28  ;;  %6678 = vst [vmem:[#allocation2 + $0x70] sm:$0xff] %v6558_v16  ;;  %4960 = vrot.lane.b32.xlu0 %v4612_v8, %s7595_s9  ;;  %v12875_v16 = vld [vmem:[%s13682_s4 + $0x1b0] sm:$0xff]  ;;  %v3896_v48 = vsub.f32 %v3656_v9, %v3776_v47  ;;  %v4609_v9 = vmul.f32 %v12665_v0, %v12521_v32  ;;  %v14517_v47 = vld [vmem:[#allocation36_spill] sm:$0xff]  ;;  %v12899_v32 = vmul.f32 0.020408163, %v11619_v23 }
 0xe5e   :  { %6321 = vperm.xlu1 %7143, %v5179_v2   ;;  %7158 = vset.pattern.permute.xlu0 %v14283_v26  ;;  %v14515_v8 = vld [vmem:[#allocation27_spill] sm:$0xff]  ;;  %v12886_v34 = vmul.f32 %v7441_v55, %v12875_v16  ;;  %v7510_v0 = vld [vmem:[%s13682_s4 + $0xa8] sm:$0xff]  ;;  %v3657_v23 = vmul.f32 0.020408163, %v11651_v37  ;;  %v14521_v37 = vld [vmem:[#allocation160_spill] sm:$0xff] }
 0xe5f   :  { %v12863_v54 = vpop.permute.xlu0 %5721  ;;  %v5835_v41 = vmul.f32 %v14516_v20, %v14515_v8  ;;  %v14518_v28 = vld [vmem:[#allocation267_spill] sm:$0xff]  ;;  %v4016_v20 = vmax.f32 %v3896_v48, 0.0 }
 0xe60   :  { %14514 = vst [vmem:[#allocation220_spill] sm:$0xff] %v12863_v54  ;;  %v12867_v10 = vpop.permute.xlu1 %4934  ;;  %v5894_v8 = vmul.f32 %v14518_v28, %v14517_v47  ;;  %v4558_v55 = vmul.f32 %v12886_v34, %v12729_v43  ;;  %v5125_v28 = vsub.f32 %v7510_v0, %v11934_v42  ;;  %v7511_v42 = vld [vmem:[%s13682_s4 + $0x280] sm:$0xff]  ;;  %v12929_v47 = vmul.f32 0.020408163, %v14521_v37 }
 0xe61   :  { %6066 = vperm.xlu0 %7158, %v5128_v33   ;;  %v4255_v33 = vadd.f32 1e-05, %v4015_v44  ;;  %v7445_v44 = vpop.eup %7444  ;;  %v4256_v48 = vadd.f32 1e-05, %v4016_v20  ;;  %v5184_v43 = vsub.f32 %v7511_v42, %v11955_v58  ;;  %v14522_v20 = vld [vmem:[#allocation29_spill] sm:$0xff]  ;;  %v14523_v58 = vld [vmem:[#allocation258_spill] sm:$0xff] }
 0xe62   :  { %7144 = vset.pattern.permute.xlu1 %v14289_v56 }
 0xe63   :  { %5476 = vperm.xlu1 %7144, %v12667_v25   ;;  %v12881_v2 = vpop.permute.xlu0 %4832  ;;  %7446 = vrsqrt.f32 %v4255_v33  ;;  %v3777_v33 = vmul.f32 %v12899_v32, %v12899_v32 }
 0xe64   :  { %v6002_v59 = vpop.permute.xlu1 %6001  ;;  %7448 = vrsqrt.f32 %v4256_v48  ;;  %v3778_v48 = vmul.f32 %v12929_v47, %v12929_v47 }
 0xe65   :  { %v6555_v54 = vadd.f32 %v6002_v59, %v5835_v41  ;;  %7161 = vset.pattern.permute.xlu0 %v14289_v56  ;;  %v12922_v59 = vmul.f32 %v7445_v44, %v12910_v5 }
 0xe66   :  { %5771 = vperm.xlu0 %7161, %v12883_v14  }
 0xe67   :  { %6675 = vst [vmem:[#allocation2 + $0x58] sm:$0xff] %v6555_v54  ;;  %4954 = vrot.lane.b32.xlu1 %v4609_v9, %s7595_s9  ;;  %v6297_v25 = vpop.permute.xlu0 %6296  ;;  %v4614_v0 = vmul.f32 %v12922_v59, %v12776_v63 }
 0xe68   :  { %v6614_v21 = vadd.f32 %v6297_v25, %v5894_v8  ;;  %7146 = vset.pattern.permute.xlu1 %v14283_v26  ;;  %v3897_v8 = vsub.f32 %v3657_v23, %v3777_v33  ;;  %v5891_v25 = vmul.f32 %v14523_v58, %v14522_v20  ;;  %v4555_v23 = vmul.f32 %v12719_v18, %v12575_v36  ;;  %v14526_v33 = vld [vmem:[#allocation106_spill] sm:$0xff]  ;;  %v7512_v58 = vld [vmem:[%s13682_s4 + $0xd0] sm:$0xff] }
 0xe69   :  { %v12905_v54 = vpop.permute.xlu1 %5706  ;;  %v5130_v63 = vsub.f32 %v7512_v58, %v11988_v22  ;;  %v7513_v36 = vld [vmem:[%s13682_s4 + $0x268] sm:$0xff]  ;;  %v12962_v22 = vld [vmem:[%s13682_s4 + $0x378] sm:$0xff] }
 0xe6a   :  { %14519 = vst [vmem:[#allocation264_spill] sm:$0xff] %v12905_v54  ;;  %6734 = vst [vmem:[#allocation2 + $0x230] sm:$0xff] %v6614_v21  ;;  %4852 = vrot.lane.b32.xlu0 %v4558_v55, %s7595_s9  ;;  %v14524_v21 = vld [vmem:[#allocation162_spill] sm:$0xff]  ;;  %v4017_v20 = vmax.f32 %v3897_v8, 0.0  ;;  %v5181_v18 = vsub.f32 %v7513_v36, %v11984_v24 }
 0xe6b   :  { %6051 = vperm.xlu1 %7146, %v5125_v28   ;;  %7163 = vset.pattern.permute.xlu0 %v14283_v26  ;;  %v3658_v55 = vmul.f32 0.020408163, %v14524_v21  ;;  %v7522_v54 = vld [vmem:[%s13682_s4 + $0x288] sm:$0xff] }
 0xe6c   :  { %v12919_v41 = vpop.permute.xlu0 %5451 }
 0xe6d   :  { %14520 = vst [vmem:[#allocation223_spill] sm:$0xff] %v12919_v41  ;;  %v12926_v9 = vpop.permute.xlu1 %4826 }
 0xe6e   :  { %6346 = vperm.xlu0 %7163, %v5184_v43   ;;  %v14525_v43 = vld [vmem:[#allocation38_spill] sm:$0xff] }
 0xe6f   :  { %7149 = vset.pattern.permute.xlu1 %v14289_v56  ;;  %v5840_v37 = vmul.f32 %v14526_v33, %v14525_v43  ;;  %v12973_v43 = vmul.f32 0.020408163, %v11743_v61  ;;  %v12979_v33 = vld [vmem:[%s13682_s4 + $0x380] sm:$0xff]  ;;  %v7514_v61 = vld [vmem:[%s13682_s4 + $0x290] sm:$0xff] }
 0xe70   :  { %5756 = vperm.xlu1 %7149, %v12721_v52   ;;  %v12936_v44 = vpop.permute.xlu0 %4944  ;;  %v3898_v52 = vsub.f32 %v3658_v55, %v3778_v48  ;;  %v4257_v55 = vadd.f32 1e-05, %v4017_v20  ;;  %v14529_v20 = vld [vmem:[#allocation31_spill] sm:$0xff] }
 0xe71   :  { %v6282_v28 = vpop.permute.xlu1 %6281 }
 0xe72   :  { %v6611_v42 = vadd.f32 %v6282_v28, %v5891_v25  ;;  %4964 = vrot.lane.b32.xlu0 %v4614_v0, %s7595_s9  ;;  %v7447_v0 = vpop.eup %7446  ;;  %v4018_v28 = vmax.f32 %v3898_v52, 0.0  ;;  %7450 = vrsqrt.f32 %v4257_v55  ;;  %v14530_v52 = vld [vmem:[#allocation95_spill] sm:$0xff] }
 0xe73   :  { %v7449_v24 = vpop.eup %7448  ;;  %v5837_v58 = vmul.f32 %v14530_v52, %v14529_v20  ;;  %v13003_v52 = vmul.f32 0.020408163, %v11676_v39 }
 0xe74   :  { %6731 = vst [vmem:[#allocation2 + $0x218] sm:$0xff] %v6611_v42  ;;  %4846 = vrot.lane.b32.xlu1 %v4555_v23, %s7595_s9  ;;  %v6027_v25 = vpop.permute.xlu0 %6026  ;;  %v12967_v42 = vmul.f32 %v7447_v0, %v12962_v22  ;;  %v12993_v36 = vmul.f32 %v7449_v24, %v12979_v33 }
 0xe75   :  { %v6560_v21 = vadd.f32 %v6027_v25, %v5840_v37  ;;  %7151 = vset.pattern.permute.xlu1 %v14283_v26  ;;  %v4258_v37 = vadd.f32 1e-05, %v4018_v28  ;;  %v14532_v28 = vld [vmem:[#allocation164_spill] sm:$0xff] }
 0xe76   :  { %v12957_v8 = vpop.permute.xlu1 %5436  ;;  %6076 = vperm.xlu0 %7163, %v5130_v63   ;;  %v3659_v63 = vmul.f32 0.020408163, %v11787_v35  ;;  %v4611_v35 = vmul.f32 %v12778_v4, %v12629_v51  ;;  %v4616_v51 = vmul.f32 %v12993_v36, %v12848_v13  ;;  %v7515_v4 = vld [vmem:[%s13682_s4 + $0xb8] sm:$0xff]  ;;  %v7516_v13 = vld [vmem:[%s13682_s4 + $0xe0] sm:$0xff] }
 0xe77   :  { %14527 = vst [vmem:[#allocation222_spill] sm:$0xff] %v12957_v8  ;;  %6680 = vst [vmem:[#allocation2 + $0x80] sm:$0xff] %v6560_v21  ;;  %v5186_v21 = vsub.f32 %v7514_v61, %v12019_v30  ;;  %7452 = vrsqrt.f32 %v4258_v37  ;;  %v14533_v61 = vld [vmem:[#allocation167_spill] sm:$0xff]  ;;  %v5127_v39 = vsub.f32 %v7515_v4, %v12062_v62 }
 0xe78   :  { %6331 = vperm.xlu1 %7151, %v5181_v18   ;;  %v3779_v18 = vmul.f32 %v12973_v43, %v12973_v43 }
 0xe79   :  { %v12964_v48 = vpop.permute.xlu0 %5731 }
 0xe7a   :  { %14528 = vst [vmem:[#allocation9_spill] sm:$0xff] %v12964_v48  ;;  %v12969_v23 = vpop.permute.xlu1 %4938  ;;  %7166 = vset.pattern.permute.xlu0 %v14289_v56  ;;  %v3899_v30 = vsub.f32 %v3659_v63, %v3779_v18  ;;  %v3780_v63 = vmul.f32 %v13003_v52, %v13003_v52 }
 0xe7b   :  { %5781 = vperm.xlu0 %7166, %v12967_v42  }
 0xe7c   :  { %7152 = vset.pattern.permute.xlu1 %v14289_v56 }
 0xe7d   :  { %5486 = vperm.xlu1 %7152, %v12781_v53   ;;  %v12986_v25 = vpop.permute.xlu0 %4836  ;;  %v14531_v53 = vld [vmem:[#allocation40_spill] sm:$0xff] }
 0xe7e   :  { %v6012_v0 = vpop.permute.xlu1 %6011  ;;  %v5896_v20 = vmul.f32 %v14532_v28, %v14531_v53  ;;  %v13030_v28 = vld [vmem:[%s13682_s4 + $0x388] sm:$0xff] }
 0xe7f   :  { %v6557_v55 = vadd.f32 %v6012_v0, %v5837_v58  ;;  %7167 = vset.pattern.permute.xlu0 %v14283_v26  ;;  %v3660_v58 = vmul.f32 0.020408163, %v14533_v61  ;;  %v7451_v53 = vpop.eup %7450 }
 0xe80   :  { %6356 = vperm.xlu0 %7167, %v5186_v21   ;;  %v4019_v21 = vmax.f32 %v3899_v30, 0.0  ;;  %v14536_v30 = vld [vmem:[#allocation33_spill] sm:$0xff] }
 0xe81   :  { %6677 = vst [vmem:[#allocation2 + $0x68] sm:$0xff] %v6557_v55  ;;  %4958 = vrot.lane.b32.xlu1 %v4611_v35, %s7595_s9  ;;  %v6307_v24 = vpop.permute.xlu0 %6306  ;;  %v3900_v18 = vsub.f32 %v3660_v58, %v3780_v63  ;;  %v5132_v55 = vsub.f32 %v7516_v13, %v12053_v12  ;;  %v14539_v13 = vld [vmem:[#allocation166_spill] sm:$0xff] }
 0xe82   :  { %v6616_v0 = vadd.f32 %v6307_v24, %v5896_v20  ;;  %7154 = vset.pattern.permute.xlu1 %v14283_v26  ;;  %v4259_v20 = vadd.f32 1e-05, %v4019_v21  ;;  %v14537_v24 = vld [vmem:[#allocation146_spill] sm:$0xff] }
 0xe83   :  { %v13014_v37 = vpop.permute.xlu1 %5716  ;;  %v5893_v61 = vmul.f32 %v14537_v24, %v14536_v30  ;;  %v4020_v58 = vmax.f32 %v3900_v18, 0.0  ;;  %v14538_v21 = vld [vmem:[#allocation42_spill] sm:$0xff]  ;;  %v14540_v18 = vld [vmem:[#allocation123_spill] sm:$0xff] }
 0xe84   :  { %14534 = vst [vmem:[#allocation189_spill] sm:$0xff] %v13014_v37  ;;  %6736 = vst [vmem:[#allocation2 + $0x240] sm:$0xff] %v6616_v0  ;;  %4968 = vrot.lane.b32.xlu0 %v4616_v51, %s7595_s9  ;;  %v13039_v51 = vmul.f32 %v7451_v53, %v13030_v28  ;;  %v7453_v63 = vpop.eup %7452  ;;  %7454 = vrsqrt.f32 %v4259_v20  ;;  %v13047_v30 = vmul.f32 0.020408163, %v14540_v18  ;;  %v7517_v20 = vld [vmem:[%s13682_s4 + $0x2a0] sm:$0xff]  ;;  %v14544_v18 = vld [vmem:[#allocation168_spill] sm:$0xff] }
 0xe85   :  { %6061 = vperm.xlu1 %7154, %v5127_v39   ;;  %v4557_v39 = vmul.f32 %v12829_v27, %v12683_v57  ;;  %v4260_v53 = vadd.f32 1e-05, %v4020_v58  ;;  %v14541_v27 = vld [vmem:[#allocation173_spill] sm:$0xff]  ;;  %v14561_v37 = vld [vmem:[#allocation170_spill] sm:$0xff] }
 0xe86   :  { %v13023_v35 = vpop.permute.xlu0 %5461  ;;  %v3661_v24 = vmul.f32 0.020408163, %v14541_v27  ;;  %v14542_v58 = vld [vmem:[#allocation181_spill] sm:$0xff] }
 0xe87   :  { %14535 = vst [vmem:[#allocation97_spill] sm:$0xff] %v13023_v35  ;;  %v13025_v62 = vpop.permute.xlu1 %4830  ;;  %7456 = vrsqrt.f32 %v4260_v53  ;;  %v14547_v53 = vld [vmem:[#allocation35_spill] sm:$0xff] }
 0xe88   :  { %6086 = vperm.xlu0 %7167, %v5132_v55   ;;  %v5842_v55 = vmul.f32 %v14539_v13, %v14538_v21  ;;  %v7518_v21 = vld [vmem:[%s13682_s4 + $0x278] sm:$0xff] }
 0xe89   :  { %7157 = vset.pattern.permute.xlu1 %v14289_v56 }
 0xe8a   :  { %5766 = vperm.xlu1 %7157, %v12832_v46   ;;  %v13036_v12 = vpop.permute.xlu0 %4948  ;;  %v13053_v46 = vld [vmem:[%s13682_s4 + $0x390] sm:$0xff] }
 0xe8b   :  { %v6292_v0 = vpop.permute.xlu1 %6291 }
 0xe8c   :  { %v6613_v4 = vadd.f32 %v6292_v0, %v5893_v61  ;;  %7170 = vset.pattern.permute.xlu0 %v14289_v56  ;;  %v5188_v0 = vsub.f32 %v7517_v20, %v12091_v11  ;;  %v13075_v11 = vmul.f32 0.020408163, %v14544_v18  ;;  %v14546_v20 = vld [vmem:[#allocation171_spill] sm:$0xff] }
 0xe8d   :  { %5791 = vperm.xlu0 %7170, %v13039_v51  }
 0xe8e   :  { %6733 = vst [vmem:[#allocation2 + $0x228] sm:$0xff] %v6613_v4  ;;  %4850 = vrot.lane.b32.xlu1 %v4557_v39, %s7595_s9  ;;  %v6037_v57 = vpop.permute.xlu0 %6036  ;;  %v5183_v4 = vsub.f32 %v7518_v21, %v14542_v58  ;;  %v13069_v39 = vmul.f32 %v7453_v63, %v13053_v46  ;;  %v3662_v21 = vmul.f32 0.020408163, %v14546_v20  ;;  %v14549_v20 = vld [vmem:[#allocation120_spill] sm:$0xff] }
 0xe8f   :  { %v6562_v61 = vadd.f32 %v6037_v57, %v5842_v55  ;;  %7159 = vset.pattern.permute.xlu1 %v14283_v26  ;;  %v3781_v55 = vmul.f32 %v13047_v30, %v13047_v30 }
 0xe90   :  { %v13066_v13 = vpop.permute.xlu1 %5446  ;;  %v4618_v63 = vmul.f32 %v13069_v39, %v12929_v47  ;;  %v7519_v47 = vld [vmem:[%s13682_s4 + $0xf0] sm:$0xff] }
 0xe91   :  { %14543 = vst [vmem:[#allocation10_spill] sm:$0xff] %v13066_v13  ;;  %6682 = vst [vmem:[#allocation2 + $0x90] sm:$0xff] %v6562_v61  ;;  %7171 = vset.pattern.permute.xlu0 %v14283_v26  ;;  %v3901_v57 = vsub.f32 %v3661_v24, %v3781_v55  ;;  %v3782_v61 = vmul.f32 %v13075_v11, %v13075_v11  ;;  %v7455_v41 = vpop.eup %7454  ;;  %v14550_v13 = vld [vmem:[#allocation44_spill] sm:$0xff] }
 0xe92   :  { %6341 = vperm.xlu1 %7159, %v5183_v4   ;;  %6366 = vperm.xlu0 %7171, %v5188_v0   ;;  %v14548_v4 = vld [vmem:[#allocation149_spill] sm:$0xff] }
 0xe93   :  { %v13077_v27 = vpop.permute.xlu0 %5741  ;;  %v5839_v0 = vmul.f32 %v14548_v4, %v14547_v53  ;;  %v4021_v24 = vmax.f32 %v3901_v57, 0.0  ;;  %v3902_v18 = vsub.f32 %v3662_v21, %v3782_v61  ;;  %v14551_v53 = vld [vmem:[#allocation110_spill] sm:$0xff] }
 0xe94   :  { %14545 = vst [vmem:[#allocation193_spill] sm:$0xff] %v13077_v27  ;;  %v13080_v58 = vpop.permute.xlu1 %4942  ;;  %v5134_v27 = vsub.f32 %v7519_v47, %v14549_v20  ;;  %v5898_v57 = vmul.f32 %v14551_v53, %v14550_v13  ;;  %v13125_v47 = vld [vmem:[%s13682_s4 + $0x3a0] sm:$0xff] }
 0xe95   :  { %v4261_v21 = vadd.f32 1e-05, %v4021_v24  ;;  %v4022_v4 = vmax.f32 %v3902_v18, 0.0  ;;  %v14554_v24 = vld [vmem:[#allocation127_spill] sm:$0xff] }
 0xe96   :  { %7160 = vset.pattern.permute.xlu1 %v14289_v56  ;;  %4972 = vrot.lane.b32.xlu0 %v4618_v63, %s7595_s9  ;;  %v4613_v63 = vmul.f32 %v12883_v14, %v12737_v15  ;;  %v7520_v15 = vld [vmem:[%s13682_s4 + $0xc8] sm:$0xff]  ;;  %v14552_v14 = vld [vmem:[#allocation119_spill] sm:$0xff]  ;;  %v13119_v18 = vmul.f32 0.020408163, %v14554_v24 }
 0xe97   :  { %5496 = vperm.xlu1 %7160, %v12886_v34   ;;  %v13091_v55 = vpop.permute.xlu0 %4840  ;;  %v13104_v34 = vld [vmem:[%s13682_s4 + $0x398] sm:$0xff]  ;;  %v5129_v13 = vsub.f32 %v7520_v15, %v14552_v14  ;;  %7458 = vrsqrt.f32 %v4261_v21  ;;  %v4262_v20 = vadd.f32 1e-05, %v4022_v4  ;;  %v7521_v21 = vld [vmem:[%s13682_s4 + $0x2b0] sm:$0xff]  ;;  %v14558_v4 = vld [vmem:[#allocation37_spill] sm:$0xff] }
 0xe98   :  { %v6022_v35 = vpop.permute.xlu1 %6021  ;;  %v3783_v14 = vmul.f32 %v13119_v18, %v13119_v18 }
 0xe99   :  { %v6559_v48 = vadd.f32 %v6022_v35, %v5839_v0  ;;  %v13115_v0 = vmul.f32 %v7455_v41, %v13104_v34  ;;  %v14556_v41 = vld [vmem:[#allocation178_spill] sm:$0xff]  ;;  %7460 = vrsqrt.f32 %v4262_v20 }
 0xe9a   :  { %6096 = vperm.xlu0 %7171, %v5134_v27   ;;  %v3663_v53 = vmul.f32 0.020408163, %v14556_v41 }
 0xe9b   :  { %6679 = vst [vmem:[#allocation2 + $0x78] sm:$0xff] %v6559_v48  ;;  %4962 = vrot.lane.b32.xlu1 %v4613_v63, %s7595_s9  ;;  %v6317_v61 = vpop.permute.xlu0 %6316  ;;  %v7457_v48 = vpop.eup %7456 }
 0xe9c   :  { %v6618_v35 = vadd.f32 %v6317_v61, %v5898_v57  ;;  %7162 = vset.pattern.permute.xlu1 %v14283_v26  ;;  %v14557_v61 = vld [vmem:[#allocation7_spill] sm:$0xff]  ;;  %v13137_v15 = vmul.f32 %v7457_v48, %v13125_v47 }
 0xe9d   :  { %v13112_v27 = vpop.permute.xlu1 %5726 }
 0xe9e   :  { %14553 = vst [vmem:[#allocation18_spill] sm:$0xff] %v13112_v27  ;;  %6738 = vst [vmem:[#allocation2 + $0x250] sm:$0xff] %v6618_v35  ;;  %7174 = vset.pattern.permute.xlu0 %v14289_v56  ;;  %v5190_v35 = vsub.f32 %v7521_v21, %v14557_v61  ;;  %v3903_v21 = vsub.f32 %v3663_v53, %v3783_v14  ;;  %v14560_v27 = vld [vmem:[#allocation46_spill] sm:$0xff] }
 0xe9f   :  { %6071 = vperm.xlu1 %7162, %v5129_v13   ;;  %5801 = vperm.xlu0 %7174, %v13115_v0   ;;  %v14559_v13 = vld [vmem:[#allocation154_spill] sm:$0xff]  ;;  %v5844_v8 = vmul.f32 %v14561_v37, %v14560_v27  ;;  %v14563_v37 = vld [vmem:[#allocation236_spill] sm:$0xff] }
 0xea0   :  { %v13127_v63 = vpop.permute.xlu0 %5471  ;;  %v5895_v24 = vmul.f32 %v14559_v13, %v14558_v4  ;;  %v14562_v4 = vld [vmem:[#allocation184_spill] sm:$0xff]  ;;  %v4023_v53 = vmax.f32 %v3903_v21, 0.0 }
 0xea1   :  { %14555 = vst [vmem:[#allocation221_spill] sm:$0xff] %v13127_v63  ;;  %v13130_v57 = vpop.permute.xlu1 %4834  ;;  %v4620_v63 = vmul.f32 %v13137_v15, %v13003_v52  ;;  %v5185_v20 = vsub.f32 %v7522_v54, %v14562_v4  ;;  %v7523_v52 = vld [vmem:[%s13682_s4 + $0x100] sm:$0xff]  ;;  %v4615_v54 = vmul.f32 %v12967_v42, %v12827_v6 }
 0xea2   :  { %v5136_v27 = vsub.f32 %v7523_v52, %v14563_v37  ;;  %v13192_v52 = vld [vmem:[%s13682_s4 + $0x3b0] sm:$0xff] }
 0xea3   :  { %7164 = vset.pattern.permute.xlu1 %v14289_v56  ;;  %7175 = vset.pattern.permute.xlu0 %v14283_v26 }
 0xea4   :  { %5776 = vperm.xlu1 %7164, %v12922_v59   ;;  %6376 = vperm.xlu0 %7175, %v5190_v35   ;;  %v13146_v41 = vpop.permute.xlu0 %4952  ;;  %v7459_v13 = vpop.eup %7458 }
 0xea5   :  { %v6302_v61 = vpop.permute.xlu1 %6301 }
 0xea6   :  { %v6615_v48 = vadd.f32 %v6302_v61, %v5895_v24  ;;  %v7524_v61 = vld [vmem:[%s13682_s4 + $0xd8] sm:$0xff]  ;;  %v7461_v4 = vpop.eup %7460 }
 0xea8   :  { %6735 = vst [vmem:[#allocation2 + $0x238] sm:$0xff] %v6615_v48  ;;  %7165 = vset.pattern.permute.xlu1 %v14283_v26  ;;  %4976 = vrot.lane.b32.xlu0 %v4620_v63, %s7595_s9  ;;  %v6047_v59 = vpop.permute.xlu0 %6046  ;;  %v13169_v63 = vld [vmem:[%s13682_s4 + $0x3a8] sm:$0xff] }
 0xea9   :  { %v6564_v35 = vadd.f32 %v6047_v59, %v5844_v8  ;;  %6351 = vperm.xlu1 %7165, %v5185_v20   ;;  %14565 = vst [vmem:[#allocation231_spill] sm:$0xff] %v13169_v63  ;;  %v4263_v8 = vadd.f32 1e-05, %v4023_v53  ;;  %v14567_v48 = vld [vmem:[#allocation246_spill] sm:$0xff]  ;;  %v13181_v42 = vmul.f32 %v7459_v13, %v13169_v63  ;;  %v14568_v20 = vld [vmem:[#allocation39_spill] sm:$0xff]  ;;  %v14569_v59 = vld [vmem:[#allocation268_spill] sm:$0xff] }
 0xeaa   :  { %v13162_v14 = vpop.permute.xlu1 %5456  ;;  %v5131_v6 = vsub.f32 %v7524_v61, %v14567_v48  ;;  %v5841_v53 = vmul.f32 %v14569_v59, %v14568_v20  ;;  %v14571_v13 = vld [vmem:[#allocation114_spill] sm:$0xff]  ;;  %v7525_v48 = vld [vmem:[%s13682_s4 + $0x2c0] sm:$0xff]  ;;  %v13201_v20 = vmul.f32 %v7461_v4, %v13192_v52  ;;  %v7526_v4 = vld [vmem:[%s13682_s4 + $0x298] sm:$0xff] }
 0xeab   :  { %14564 = vst [vmem:[#allocation224_spill] sm:$0xff] %v13162_v14  ;;  %6684 = vst [vmem:[#allocation2 + $0xa0] sm:$0xff] %v6564_v35  ;;  %7462 = vrsqrt.f32 %v4263_v8  ;;  %v14572_v8 = vld [vmem:[#allocation194_spill] sm:$0xff] }
 0xeac   :  { %6106 = vperm.xlu0 %7175, %v5136_v27  }
 0xead   :  { %4966 = vrot.lane.b32.xlu1 %v4615_v54, %s7595_s9  ;;  %v13172_v24 = vpop.permute.xlu0 %5751  ;;  %v14570_v54 = vld [vmem:[#allocation48_spill] sm:$0xff] }
 0xeae   :  { %14566 = vst [vmem:[#allocation91_spill] sm:$0xff] %v13172_v24  ;;  %v13174_v21 = vpop.permute.xlu1 %4946  ;;  %v5900_v61 = vmul.f32 %v14571_v13, %v14570_v54 }
 0xeb0   :  { %7178 = vset.pattern.permute.xlu0 %v14289_v56 }
 0xeb1   :  { %6081 = vperm.xlu1 %7165, %v5131_v6   ;;  %5811 = vperm.xlu0 %7178, %v13181_v42   ;;  %v13187_v35 = vpop.permute.xlu0 %4844  ;;  %v5192_v6 = vsub.f32 %v7525_v48, %v14572_v8  ;;  %v4617_v48 = vmul.f32 %v13039_v51, %v12899_v32  ;;  %v7528_v32 = vld [vmem:[%s13682_s4 + $0xe8] sm:$0xff]  ;;  %v14582_v51 = vld [vmem:[#allocation8_spill] sm:$0xff] }
 0xeb2   :  { %v6032_v37 = vpop.permute.xlu1 %6031 }
 0xeb3   :  { %v6561_v27 = vadd.f32 %v6032_v37, %v5841_v53  ;;  %v4622_v37 = vmul.f32 %v13201_v20, %v13075_v11  ;;  %v14576_v11 = vld [vmem:[#allocation243_spill] sm:$0xff] }
 0xeb5   :  { %6681 = vst [vmem:[#allocation2 + $0x88] sm:$0xff] %v6561_v27  ;;  %7168 = vset.pattern.permute.xlu1 %v14289_v56  ;;  %7179 = vset.pattern.permute.xlu0 %v14283_v26  ;;  %v6327_v59 = vpop.permute.xlu0 %6326  ;;  %v14574_v27 = vld [vmem:[#allocation122_spill] sm:$0xff] }
 0xeb6   :  { %v6620_v24 = vadd.f32 %v6327_v59, %v5900_v61  ;;  %5786 = vperm.xlu1 %7168, %v12993_v36   ;;  %6386 = vperm.xlu0 %7179, %v5192_v6   ;;  %v5187_v54 = vsub.f32 %v7526_v4, %v14574_v27  ;;  %v14577_v6 = vld [vmem:[#allocation41_spill] sm:$0xff]  ;;  %v13233_v27 = vld [vmem:[%s13682_s4 + $0x3b8] sm:$0xff] }
 0xeb7   :  { %v13206_v53 = vpop.permute.xlu1 %5736  ;;  %v14578_v59 = vld [vmem:[#allocation105_spill] sm:$0xff]  ;;  %14579 = vst [vmem:[#allocation266_spill] sm:$0xff] %v13233_v27 }
 0xeb8   :  { %14573 = vst [vmem:[#allocation227_spill] sm:$0xff] %v13206_v53  ;;  %6740 = vst [vmem:[#allocation2 + $0x260] sm:$0xff] %v6620_v24  ;;  %v7527_v24 = vld [vmem:[%s13682_s4 + $0x110] sm:$0xff]  ;;  %v7463_v8 = vpop.eup %7462  ;;  %v5897_v4 = vmul.f32 %v14578_v59, %v14577_v6 }
 0xeb9   :  { %v5138_v61 = vsub.f32 %v7527_v24, %v14576_v11  ;;  %v14580_v24 = vld [vmem:[#allocation50_spill] sm:$0xff]  ;;  %v14581_v11 = vld [vmem:[#allocation175_spill] sm:$0xff]  ;;  %v13243_v6 = vmul.f32 %v7463_v8, %v13233_v27  ;;  %v14591_v27 = vld [vmem:[#allocation117_spill] sm:$0xff] }
 0xeba   :  { %7169 = vset.pattern.permute.xlu1 %v14283_v26  ;;  %4980 = vrot.lane.b32.xlu0 %v4622_v37, %s7595_s9  ;;  %v13216_v13 = vpop.permute.xlu0 %5481  ;;  %v5846_v53 = vmul.f32 %v14581_v11, %v14580_v24 }
 0xebb   :  { %14575 = vst [vmem:[#allocation234_spill] sm:$0xff] %v13216_v13  ;;  %v13218_v36 = vpop.permute.xlu1 %4838  ;;  %6361 = vperm.xlu1 %7169, %v5187_v54  }
 0xebe   :  { %6116 = vperm.xlu0 %7179, %v5138_v61   ;;  %v13228_v37 = vpop.permute.xlu0 %4956  ;;  %v5133_v61 = vsub.f32 %v7528_v32, %v14582_v51  ;;  %v14587_v32 = vld [vmem:[#allocation43_spill] sm:$0xff] }
 0xebf   :  { %v6312_v54 = vpop.permute.xlu1 %6311  ;;  %4970 = vrot.lane.b32.xlu1 %v4617_v48, %s7595_s9  ;;  %v14588_v51 = vld [vmem:[#allocation163_spill] sm:$0xff] }
 0xec0   :  { %v6617_v13 = vadd.f32 %v6312_v54, %v5897_v4  ;;  %v7529_v4 = vld [vmem:[%s13682_s4 + $0x2d0] sm:$0xff]  ;;  %v14584_v54 = vld [vmem:[#allocation12_spill] sm:$0xff] }
 0xec1   :  { %v5194_v24 = vsub.f32 %v7529_v4, %v14584_v54  ;;  %v14589_v4 = vld [vmem:[#allocation198_spill] sm:$0xff] }
 0xec2   :  { %6737 = vst [vmem:[#allocation2 + $0x248] sm:$0xff] %v6617_v13  ;;  %7182 = vset.pattern.permute.xlu0 %v14289_v56  ;;  %v6057_v59 = vpop.permute.xlu0 %6056 }
 0xec3   :  { %v6566_v14 = vadd.f32 %v6057_v59, %v5846_v53  ;;  %6091 = vperm.xlu1 %7169, %v5133_v61   ;;  %5821 = vperm.xlu0 %7182, %v13243_v6   ;;  %v14586_v53 = vld [vmem:[#allocation251_spill] sm:$0xff]  ;;  %v5843_v61 = vmul.f32 %v14588_v51, %v14587_v32  ;;  %v7531_v59 = vld [vmem:[%s13682_s4 + $0x2a8] sm:$0xff] }
 0xec4   :  { %v13247_v48 = vpop.permute.xlu1 %5466  ;;  %v5189_v54 = vsub.f32 %v7531_v59, %v14589_v4  ;;  %v4619_v59 = vmul.f32 %v13115_v0, %v12973_v43 }
 0xec5   :  { %14583 = vst [vmem:[#allocation11_spill] sm:$0xff] %v13247_v48  ;;  %6686 = vst [vmem:[#allocation2 + $0xb0] sm:$0xff] %v6566_v14  ;;  %v7530_v14 = vld [vmem:[%s13682_s4 + $0x120] sm:$0xff] }
 0xec6   :  { %v5140_v11 = vsub.f32 %v7530_v14, %v14586_v53  ;;  %v7532_v53 = vld [vmem:[%s13682_s4 + $0x2e0] sm:$0xff] }
 0xec7   :  { %7172 = vset.pattern.permute.xlu1 %v14289_v56  ;;  %7183 = vset.pattern.permute.xlu0 %v14283_v26  ;;  %v13255_v13 = vpop.permute.xlu0 %5761  ;;  %v5196_v32 = vsub.f32 %v7532_v53, %v12501_v40  ;;  %v7534_v40 = vld [vmem:[%s13682_s4 + $0xf8] sm:$0xff] }
 0xec8   :  { %14585 = vst [vmem:[#allocation197_spill] sm:$0xff] %v13255_v13  ;;  %v13257_v8 = vpop.permute.xlu1 %4950  ;;  %5796 = vperm.xlu1 %7172, %v13069_v39   ;;  %6396 = vperm.xlu0 %7183, %v5194_v24   ;;  %v14590_v24 = vld [vmem:[#allocation52_spill] sm:$0xff] }
 0xec9   :  { %v5902_v14 = vmul.f32 %v14591_v27, %v14590_v24  ;;  %v7533_v27 = vld [vmem:[%s13682_s4 + $0x130] sm:$0xff]  ;;  %v14594_v24 = vld [vmem:[#allocation165_spill] sm:$0xff] }
 0xecb   :  { %v13270_v13 = vpop.permute.xlu0 %4848 }
 0xecc   :  { %v6042_v48 = vpop.permute.xlu1 %6041  ;;  %7173 = vset.pattern.permute.xlu1 %v14283_v26  ;;  %6126 = vperm.xlu0 %7183, %v5140_v11   ;;  %v14592_v11 = vld [vmem:[#allocation200_spill] sm:$0xff] }
 0xecd   :  { %v6563_v39 = vadd.f32 %v6042_v48, %v5843_v61  ;;  %6371 = vperm.xlu1 %7173, %v5189_v54   ;;  %v5142_v48 = vsub.f32 %v7533_v27, %v12555_v29  ;;  %v5135_v61 = vsub.f32 %v7534_v40, %v14592_v11  ;;  %v7535_v54 = vld [vmem:[%s13682_s4 + $0x2f0] sm:$0xff]  ;;  %v14593_v29 = vld [vmem:[#allocation45_spill] sm:$0xff]  ;;  %v14595_v27 = vld [vmem:[#allocation54_spill] sm:$0xff] }
 0xece   :  { %v7537_v11 = vld [vmem:[%s13682_s4 + $0x2b8] sm:$0xff] }
 0xecf   :  { %6683 = vst [vmem:[#allocation2 + $0x98] sm:$0xff] %v6563_v39  ;;  %v6337_v51 = vpop.permute.xlu0 %6336  ;;  %v5198_v39 = vsub.f32 %v7535_v54, %v12609_v19  ;;  %v14596_v19 = vld [vmem:[#allocation180_spill] sm:$0xff] }
 0xed0   :  { %v6622_v4 = vadd.f32 %v6337_v51, %v5902_v14  ;;  %6406 = vperm.xlu0 %7183, %v5196_v32   ;;  %v5899_v14 = vmul.f32 %v14594_v24, %v14593_v29  ;;  %v7536_v51 = vld [vmem:[%s13682_s4 + $0x140] sm:$0xff] }
 0xed1   :  { %v13281_v63 = vpop.permute.xlu1 %5746  ;;  %4974 = vrot.lane.b32.xlu1 %v4619_v59, %s7595_s9  ;;  %v5144_v59 = vsub.f32 %v7536_v51, %v12663_v7  ;;  %v7538_v7 = vld [vmem:[%s13682_s4 + $0x300] sm:$0xff] }
 0xed2   :  { %6742 = vst [vmem:[#allocation2 + $0x270] sm:$0xff] %v6622_v4  ;;  %v5200_v29 = vsub.f32 %v7538_v7, %v12717_v3  ;;  %v14598_v3 = vld [vmem:[#allocation47_spill] sm:$0xff] }
 0xed4   :  { %6136 = vperm.xlu0 %7183, %v5142_v48   ;;  %v13292_v43 = vpop.permute.xlu0 %5491  ;;  %v5848_v48 = vmul.f32 %v14596_v19, %v14595_v27  ;;  %v7540_v19 = vld [vmem:[%s13682_s4 + $0x108] sm:$0xff] }
 0xed5   :  { %v13294_v0 = vpop.permute.xlu1 %4842  ;;  %6101 = vperm.xlu1 %7173, %v5135_v61   ;;  %v14597_v61 = vld [vmem:[#allocation203_spill] sm:$0xff] }
 0xed6   :  { %v5191_v54 = vsub.f32 %v7537_v11, %v14597_v61 }
 0xed8   :  { %6416 = vperm.xlu0 %7183, %v5198_v39   ;;  %v13302_v53 = vpop.permute.xlu0 %4960 }
 0xed9   :  { %v6322_v32 = vpop.permute.xlu1 %6321  ;;  %7176 = vset.pattern.permute.xlu1 %v14289_v56 }
 0xeda   :  { %v6619_v4 = vadd.f32 %v6322_v32, %v5899_v14  ;;  %5806 = vperm.xlu1 %7176, %v13137_v15   ;;  %v4621_v14 = vmul.f32 %v13181_v42, %v13047_v30  ;;  %v7539_v32 = vld [vmem:[%s13682_s4 + $0x150] sm:$0xff] }
 0xedb   :  { %v5146_v51 = vsub.f32 %v7539_v32, %v12773_v45  ;;  %v7541_v45 = vld [vmem:[%s13682_s4 + $0x310] sm:$0xff] }
 0xedc   :  { %6739 = vst [vmem:[#allocation2 + $0x258] sm:$0xff] %v6619_v4  ;;  %6146 = vperm.xlu0 %7183, %v5144_v59   ;;  %v6067_v40 = vpop.permute.xlu0 %6066  ;;  %v14599_v4 = vld [vmem:[#allocation111_spill] sm:$0xff] }
 0xedd   :  { %v6568_v39 = vadd.f32 %v6067_v40, %v5848_v48  ;;  %v5845_v27 = vmul.f32 %v14599_v4, %v14598_v3  ;;  %v14600_v48 = vld [vmem:[#allocation142_spill] sm:$0xff]  ;;  %v5202_v40 = vsub.f32 %v7541_v45, %v12824_v60  ;;  %v7543_v4 = vld [vmem:[%s13682_s4 + $0x320] sm:$0xff]  ;;  %v14605_v45 = vld [vmem:[#allocation183_spill] sm:$0xff] }
 0xede   :  { %v13320_v15 = vpop.permute.xlu1 %5476  ;;  %7177 = vset.pattern.permute.xlu1 %v14283_v26  ;;  %v5137_v30 = vsub.f32 %v7540_v19, %v14600_v48  ;;  %v14603_v19 = vld [vmem:[#allocation5_spill] sm:$0xff] }
 0xedf   :  { %6688 = vst [vmem:[#allocation2 + $0xc0] sm:$0xff] %v6568_v39  ;;  %6381 = vperm.xlu1 %7177, %v5191_v54   ;;  %v14601_v54 = vld [vmem:[#allocation56_spill] sm:$0xff]  ;;  %v14602_v39 = vld [vmem:[#allocation182_spill] sm:$0xff] }
 0xee0   :  { %6426 = vperm.xlu0 %7183, %v5200_v29   ;;  %v5904_v7 = vmul.f32 %v14602_v39, %v14601_v54 }
 0xee1   :  { %v13323_v24 = vpop.permute.xlu0 %5771 }
 0xee2   :  { %v13331_v59 = vpop.permute.xlu1 %4954 }
 0xee3   :  { %4978 = vrot.lane.b32.xlu1 %v4621_v14, %s7595_s9  ;;  %v7542_v14 = vld [vmem:[%s13682_s4 + $0x160] sm:$0xff] }
 0xee4   :  { %6156 = vperm.xlu0 %7183, %v5146_v51   ;;  %v5148_v32 = vsub.f32 %v7542_v14, %v12881_v2  ;;  %v7544_v2 = vld [vmem:[%s13682_s4 + $0x2c8] sm:$0xff]  ;;  %v4623_v14 = vmul.f32 %v13243_v6, %v13119_v18 }
 0xee5   :  { %v13340_v42 = vpop.permute.xlu0 %4852  ;;  %v5193_v48 = vsub.f32 %v7544_v2, %v14603_v19  ;;  %v14609_v2 = vld [vmem:[#allocation60_spill] sm:$0xff]  ;;  %v14610_v19 = vld [vmem:[#allocation185_spill] sm:$0xff] }
 0xee6   :  { %v6052_v11 = vpop.permute.xlu1 %6051 }
 0xee7   :  { %v6565_v61 = vadd.f32 %v6052_v11, %v5845_v27  ;;  %6111 = vperm.xlu1 %7177, %v5137_v30   ;;  %v5204_v27 = vsub.f32 %v7543_v4, %v12936_v44  ;;  %v14606_v11 = vld [vmem:[#allocation49_spill] sm:$0xff]  ;;  %v7545_v44 = vld [vmem:[%s13682_s4 + $0x170] sm:$0xff] }
 0xee8   :  { %6436 = vperm.xlu0 %7183, %v5202_v40   ;;  %v5150_v39 = vsub.f32 %v7545_v44, %v12986_v25  ;;  %v7547_v25 = vld [vmem:[%s13682_s4 + $0x118] sm:$0xff] }
 0xee9   :  { %6685 = vst [vmem:[#allocation2 + $0xa8] sm:$0xff] %v6565_v61  ;;  %v6347_v29 = vpop.permute.xlu0 %6346  ;;  %v14607_v61 = vld [vmem:[#allocation169_spill] sm:$0xff] }
 0xeea   :  { %v6624_v51 = vadd.f32 %v6347_v29, %v5904_v7  ;;  %v5901_v54 = vmul.f32 %v14607_v61, %v14606_v11 }
 0xeeb   :  { %v13352_v3 = vpop.permute.xlu1 %5756  ;;  %7180 = vset.pattern.permute.xlu1 %v14289_v56  ;;  %v14604_v56 = vld [vmem:[#allocation58_spill] sm:$0xff] }
 0xeec   :  { %6744 = vst [vmem:[#allocation2 + $0x280] sm:$0xff] %v6624_v51  ;;  %5816 = vperm.xlu1 %7180, %v13201_v20   ;;  %6166 = vperm.xlu0 %7183, %v5148_v32   ;;  %v5850_v20 = vmul.f32 %v14605_v45, %v14604_v56  ;;  %v7549_v45 = vld [vmem:[%s13682_s4 + $0x2d8] sm:$0xff] }
 0xeed   :  { %v13356_v60 = vpop.permute.xlu0 %4964 }
 0xeef   :  { %v13366_v30 = vpop.permute.xlu1 %4846 }
 0xef0   :  { %7181 = vset.pattern.permute.xlu1 %v14283_v26  ;;  %6446 = vperm.xlu0 %7183, %v5204_v27   ;;  %v7546_v26 = vld [vmem:[%s13682_s4 + $0x330] sm:$0xff]  ;;  %v14608_v27 = vld [vmem:[#allocation208_spill] sm:$0xff] }
 0xef1   :  { %6391 = vperm.xlu1 %7181, %v5193_v48   ;;  %v6077_v40 = vpop.permute.xlu0 %6076  ;;  %v5206_v51 = vsub.f32 %v7546_v26, %v13036_v12  ;;  %v5139_v18 = vsub.f32 %v7547_v25, %v14608_v27  ;;  %v5906_v48 = vmul.f32 %v14610_v19, %v14609_v2  ;;  %v7548_v12 = vld [vmem:[%s13682_s4 + $0x180] sm:$0xff]  ;;  %v14614_v25 = vld [vmem:[#allocation118_spill] sm:$0xff] }
 0xef2   :  { %v6570_v7 = vadd.f32 %v6077_v40, %v5850_v20  ;;  %v5152_v56 = vsub.f32 %v7548_v12, %v13091_v55  ;;  %v5195_v20 = vsub.f32 %v7549_v45, %v12651_v38  ;;  %v14611_v55 = vld [vmem:[#allocation51_spill] sm:$0xff]  ;;  %v7551_v38 = vld [vmem:[%s13682_s4 + $0x128] sm:$0xff] }
 0xef3   :  { %v6332_v29 = vpop.permute.xlu1 %6331  ;;  %v7553_v2 = vld [vmem:[%s13682_s4 + $0x2e8] sm:$0xff]  ;;  %v7554_v45 = vld [vmem:[%s13682_s4 + $0x350] sm:$0xff] }
 0xef4   :  { %6690 = vst [vmem:[#allocation2 + $0xd0] sm:$0xff] %v6570_v7  ;;  %v6621_v32 = vadd.f32 %v6332_v29, %v5901_v54  ;;  %6176 = vperm.xlu0 %7183, %v5150_v39   ;;  %v7550_v54 = vld [vmem:[%s13682_s4 + $0x340] sm:$0xff]  ;;  %v14612_v39 = vld [vmem:[#allocation172_spill] sm:$0xff]  ;;  %v5141_v29 = vsub.f32 %v7551_v38, %v12705_v1 }
 0xef5   :  { %4982 = vrot.lane.b32.xlu1 %v4623_v14, %s7595_s9  ;;  %v5208_v44 = vsub.f32 %v7550_v54, %v13146_v41  ;;  %v5847_v7 = vmul.f32 %v14612_v39, %v14611_v55  ;;  %v7552_v41 = vld [vmem:[%s13682_s4 + $0x190] sm:$0xff]  ;;  %v14615_v1 = vld [vmem:[#allocation16_spill] sm:$0xff]  ;;  %v14616_v39 = vld [vmem:[#allocation53_spill] sm:$0xff] }
 0xef6   :  { %6741 = vst [vmem:[#allocation2 + $0x268] sm:$0xff] %v6621_v32  ;;  %v13384_v4 = vpop.permute.xlu0 %5781  ;;  %v5197_v19 = vsub.f32 %v7553_v2, %v14615_v1  ;;  %v14620_v1 = vld [vmem:[#allocation66_spill] sm:$0xff] }
 0xef8   :  { %v13390_v6 = vpop.permute.xlu1 %5486  ;;  %6456 = vperm.xlu0 %7183, %v5206_v51   ;;  %v14613_v51 = vld [vmem:[#allocation62_spill] sm:$0xff] }
 0xef9   :  { %6121 = vperm.xlu1 %7181, %v5139_v18   ;;  %v5852_v27 = vmul.f32 %v14614_v25, %v14613_v51  ;;  %v5154_v18 = vsub.f32 %v7552_v41, %v13187_v35  ;;  %v7555_v35 = vld [vmem:[%s13682_s4 + $0x138] sm:$0xff]  ;;  %v5212_v25 = vsub.f32 %v12818_v31, %v13302_v53  ;;  %v7558_v31 = vld [vmem:[%s13682_s4 + $0x308] sm:$0xff] }
 0xefa   :  { %v5201_v53 = vsub.f32 %v7558_v31, %v12969_v23  ;;  %v14622_v23 = vld [vmem:[#allocation55_spill] sm:$0xff] }
 0xefb   :  { %v6357_v40 = vpop.permute.xlu0 %6356 }
 0xefc   :  { %v6626_v11 = vadd.f32 %v6357_v40, %v5906_v48  ;;  %v13402_v61 = vpop.permute.xlu1 %4958  ;;  %6186 = vperm.xlu0 %7183, %v5152_v56   ;;  %v5143_v40 = vsub.f32 %v7555_v35, %v12810_v17  ;;  %v14619_v17 = vld [vmem:[#allocation192_spill] sm:$0xff]  ;;  %v14623_v35 = vld [vmem:[#allocation174_spill] sm:$0xff] }
 0xefd   :  { %6401 = vperm.xlu1 %7181, %v5195_v20   ;;  %v5210_v20 = vsub.f32 %v7554_v45, %v13228_v37  ;;  %v7556_v37 = vld [vmem:[%s13682_s4 + $0x2f8] sm:$0xff] }
 0xefe   :  { %6746 = vst [vmem:[#allocation2 + $0x290] sm:$0xff] %v6626_v11  ;;  %v5199_v55 = vsub.f32 %v7556_v37, %v12867_v10 }
 0xeff   :  { %v13414_v14 = vpop.permute.xlu0 %4968 }
 0xf00   :  { %v6062_v32 = vpop.permute.xlu1 %6061  ;;  %6466 = vperm.xlu0 %7183, %v5208_v44   ;;  %v5156_v44 = vsub.f32 %v12767_v50, %v13270_v13 }
 0xf01   :  { %v6567_v26 = vadd.f32 %v6062_v32, %v5847_v7  ;;  %6131 = vperm.xlu1 %7181, %v5141_v29   ;;  %v14617_v7 = vld [vmem:[#allocation113_spill] sm:$0xff]  ;;  %v14618_v29 = vld [vmem:[#allocation64_spill] sm:$0xff] }
 0xf02   :  { %v5903_v38 = vmul.f32 %v14617_v7, %v14616_v39  ;;  %v5908_v32 = vmul.f32 %v14619_v17, %v14618_v29  ;;  %v14625_v7 = vld [vmem:[#allocation201_spill] sm:$0xff] }
 0xf03   :  { %6687 = vst [vmem:[#allocation2 + $0xb8] sm:$0xff] %v6567_v26  ;;  %v6087_v48 = vpop.permute.xlu0 %6086 }
 0xf04   :  { %v6572_v12 = vadd.f32 %v6087_v48, %v5852_v27  ;;  %6196 = vperm.xlu0 %7183, %v5154_v18   ;;  %v7557_v27 = vld [vmem:[%s13682_s4 + $0x148] sm:$0xff]  ;;  %v5158_v18 = vsub.f32 %v12875_v16, %v13340_v42  ;;  %v7559_v16 = vld [vmem:[%s13682_s4 + $0x158] sm:$0xff] }
 0xf05   :  { %v13426_v56 = vpop.permute.xlu1 %5766  ;;  %6411 = vperm.xlu1 %7181, %v5197_v19   ;;  %v5145_v10 = vsub.f32 %v7557_v27, %v12926_v9  ;;  %v14621_v19 = vld [vmem:[#allocation254_spill] sm:$0xff]  ;;  %v5147_v42 = vsub.f32 %v7559_v16, %v13025_v62  ;;  %v14624_v62 = vld [vmem:[#allocation68_spill] sm:$0xff] }
 0xf06   :  { %6692 = vst [vmem:[#allocation2 + $0xe0] sm:$0xff] %v6572_v12  ;;  %v5854_v48 = vmul.f32 %v14621_v19, %v14620_v1  ;;  %v5214_v12 = vsub.f32 %v12910_v5, %v13356_v60  ;;  %v7560_v60 = vld [vmem:[%s13682_s4 + $0x318] sm:$0xff] }
 0xf08   :  { %6476 = vperm.xlu0 %7183, %v5210_v20   ;;  %v13436_v11 = vpop.permute.xlu0 %5791 }
 0xf09   :  { %v13438_v54 = vpop.permute.xlu1 %4850  ;;  %6141 = vperm.xlu1 %7181, %v5143_v40   ;;  %v5849_v40 = vmul.f32 %v14623_v35, %v14622_v23  ;;  %v7565_v35 = vld [vmem:[%s13682_s4 + $0x188] sm:$0xff] }
 0xf0c   :  { %6206 = vperm.xlu0 %7183, %v5156_v44   ;;  %v5216_v44 = vsub.f32 %v12979_v33, %v13414_v14  ;;  %v7561_v33 = vld [vmem:[%s13682_s4 + $0x168] sm:$0xff] }
 0xf0d   :  { %v6342_v26 = vpop.permute.xlu1 %6341  ;;  %6421 = vperm.xlu1 %7181, %v5199_v55   ;;  %v6367_v51 = vpop.permute.xlu0 %6366  ;;  %v5203_v55 = vsub.f32 %v7560_v60, %v13080_v58  ;;  %v5149_v14 = vsub.f32 %v7561_v33, %v13130_v57  ;;  %v14626_v58 = vld [vmem:[#allocation57_spill] sm:$0xff] }
 0xf0e   :  { %v6623_v50 = vadd.f32 %v6342_v26, %v5903_v38  ;;  %v6628_v13 = vadd.f32 %v6367_v51, %v5908_v32  ;;  %v5910_v38 = vmul.f32 %v14625_v7, %v14624_v62  ;;  %v14627_v51 = vld [vmem:[#allocation176_spill] sm:$0xff]  ;;  %v7566_v62 = vld [vmem:[%s13682_s4 + $0x348] sm:$0xff] }
 0xf0f   :  { %v5209_v7 = vsub.f32 %v7566_v62, %v13331_v59 }
 0xf10   :  { %6743 = vst [vmem:[#allocation2 + $0x278] sm:$0xff] %v6623_v50  ;;  %6748 = vst [vmem:[#allocation2 + $0x2a0] sm:$0xff] %v6628_v13  ;;  %6486 = vperm.xlu0 %7183, %v5212_v25   ;;  %v5905_v25 = vmul.f32 %v14627_v51, %v14626_v58 }
 0xf11   :  { %6151 = vperm.xlu1 %7181, %v5145_v10   ;;  %v4973_v41 = vpop.permute.xlu0 %4972 }
 0xf12   :  { %v13458_v2 = vpop.permute.xlu1 %5496  ;;  %v5218_v29 = vsub.f32 %v13053_v46, %v4973_v41  ;;  %v7562_v46 = vld [vmem:[%s13682_s4 + $0x328] sm:$0xff] }
 0xf13   :  { %v5205_v50 = vsub.f32 %v7562_v46, %v13174_v21  ;;  %v14628_v41 = vld [vmem:[#allocation70_spill] sm:$0xff] }
 0xf14   :  { %6216 = vperm.xlu0 %7183, %v5158_v18   ;;  %v14629_v18 = vld [vmem:[#allocation199_spill] sm:$0xff]  ;;  %v14637_v46 = vld [vmem:[#allocation6_spill] sm:$0xff] }
 0xf15   :  { %6431 = vperm.xlu1 %7181, %v5201_v53   ;;  %v6097_v9 = vpop.permute.xlu0 %6096  ;;  %v5856_v31 = vmul.f32 %v14629_v18, %v14628_v41  ;;  %v7563_v53 = vld [vmem:[%s13682_s4 + $0x178] sm:$0xff]  ;;  %v14639_v41 = vld [vmem:[#allocation179_spill] sm:$0xff] }
 0xf16   :  { %v6574_v45 = vadd.f32 %v6097_v9, %v5854_v48  ;;  %v13468_v20 = vpop.permute.xlu1 %4962  ;;  %v5151_v1 = vsub.f32 %v7563_v53, %v13218_v36  ;;  %v14631_v9 = vld [vmem:[#allocation177_spill] sm:$0xff]  ;;  %v7569_v53 = vld [vmem:[%s13682_s4 + $0x1a8] sm:$0xff] }
 0xf18   :  { %6694 = vst [vmem:[#allocation2 + $0xf0] sm:$0xff] %v6574_v45  ;;  %6496 = vperm.xlu0 %7183, %v5214_v12   ;;  %v7564_v45 = vld [vmem:[%s13682_s4 + $0x338] sm:$0xff] }
 0xf19   :  { %6161 = vperm.xlu1 %7181, %v5147_v42   ;;  %v5207_v16 = vsub.f32 %v7564_v45, %v13257_v8 }
 0xf1a   :  { %v6072_v37 = vpop.permute.xlu1 %6071  ;;  %v13478_v5 = vpop.permute.xlu0 %5801 }
 0xf1b   :  { %v6569_v39 = vadd.f32 %v6072_v37, %v5849_v40  ;;  %v5153_v40 = vsub.f32 %v7565_v35, %v13294_v0  ;;  %v14633_v37 = vld [vmem:[#allocation206_spill] sm:$0xff]  ;;  %v14643_v35 = vld [vmem:[#allocation211_spill] sm:$0xff] }
 0xf1c   :  { %6506 = vperm.xlu0 %7183, %v5216_v44   ;;  %v14632_v44 = vld [vmem:[#allocation72_spill] sm:$0xff] }
 0xf1d   :  { %6689 = vst [vmem:[#allocation2 + $0xc8] sm:$0xff] %v6569_v39  ;;  %6441 = vperm.xlu1 %7181, %v5203_v55   ;;  %v5912_v60 = vmul.f32 %v14633_v37, %v14632_v44  ;;  %v14645_v44 = vld [vmem:[#allocation130_spill] sm:$0xff] }
 0xf1f   :  { %v13491_v17 = vpop.permute.xlu1 %5776  ;;  %v6377_v32 = vpop.permute.xlu0 %6376 }
 0xf20   :  { %v6630_v26 = vadd.f32 %v6377_v32, %v5910_v38  ;;  %6516 = vperm.xlu0 %7183, %v5218_v29   ;;  %v14634_v38 = vld [vmem:[#allocation61_spill] sm:$0xff]  ;;  %v14635_v29 = vld [vmem:[#allocation116_spill] sm:$0xff] }
 0xf21   :  { %6171 = vperm.xlu1 %7181, %v5149_v14   ;;  %v5907_v33 = vmul.f32 %v14635_v29, %v14634_v38  ;;  %v14647_v38 = vld [vmem:[#allocation259_spill] sm:$0xff] }
 0xf22   :  { %6750 = vst [vmem:[#allocation2 + $0x2b0] sm:$0xff] %v6630_v26  ;;  %v7567_v26 = vld [vmem:[%s13682_s4 + $0x198] sm:$0xff] }
 0xf23   :  { %v4977_v13 = vpop.permute.xlu0 %4976  ;;  %v5155_v58 = vsub.f32 %v7567_v26, %v13366_v30  ;;  %v14648_v26 = vld [vmem:[#allocation89_spill] sm:$0xff] }
 0xf24   :  { %v5220_v27 = vsub.f32 %v13125_v47, %v4977_v13  ;;  %v6352_v57 = vpop.permute.xlu1 %6351  ;;  %v14630_v47 = vld [vmem:[#allocation59_spill] sm:$0xff] }
 0xf25   :  { %v6625_v10 = vadd.f32 %v6352_v57, %v5905_v25  ;;  %6451 = vperm.xlu1 %7181, %v5205_v50   ;;  %v5851_v12 = vmul.f32 %v14631_v9, %v14630_v47  ;;  %v14636_v25 = vld [vmem:[#allocation74_spill] sm:$0xff]  ;;  %v14641_v47 = vld [vmem:[#allocation125_spill] sm:$0xff] }
 0xf26   :  { %6526 = vperm.xlu0 %7183, %v5220_v27   ;;  %v5858_v50 = vmul.f32 %v14637_v46, %v14636_v25  ;;  %v7570_v9 = vld [vmem:[%s13682_s4 + $0x368] sm:$0xff] }
 0xf27   :  { %6745 = vst [vmem:[#allocation2 + $0x288] sm:$0xff] %v6625_v10  ;;  %v6107_v19 = vpop.permute.xlu0 %6106  ;;  %v14638_v10 = vld [vmem:[#allocation63_spill] sm:$0xff] }
 0xf28   :  { %v6576_v48 = vadd.f32 %v6107_v19, %v5856_v31  ;;  %v13506_v21 = vpop.permute.xlu1 %4966  ;;  %v5853_v30 = vmul.f32 %v14639_v41, %v14638_v10 }
 0xf29   :  { %6181 = vperm.xlu1 %7181, %v5151_v1   ;;  %v5157_v1 = vsub.f32 %v7569_v53, %v13438_v54 }
 0xf2a   :  { %6696 = vst [vmem:[#allocation2 + $0x100] sm:$0xff] %v6576_v48  ;;  %v14640_v48 = vld [vmem:[#allocation76_spill] sm:$0xff] }
 0xf2c   :  { %v6082_v42 = vpop.permute.xlu1 %6081  ;;  %v13514_v23 = vpop.permute.xlu0 %5811 }
 0xf2d   :  { %v6571_v36 = vadd.f32 %v6082_v42, %v5851_v12  ;;  %6461 = vperm.xlu1 %7181, %v5207_v16   ;;  %v5213_v12 = vsub.f32 %v7570_v9, %v13468_v20  ;;  %v14646_v20 = vld [vmem:[#allocation84_spill] sm:$0xff] }
 0xf2e   :  { %v5916_v29 = vmul.f32 %v14647_v38, %v14646_v20  ;;  %v14658_v9 = vld [vmem:[#allocation264_spill] sm:$0xff] }
 0xf2f   :  { %6691 = vst [vmem:[#allocation2 + $0xd8] sm:$0xff] %v6571_v36  ;;  %v14642_v36 = vld [vmem:[#allocation78_spill] sm:$0xff]  ;;  %v14664_v38 = vld [vmem:[#allocation136_spill] sm:$0xff] }
 0xf30   :  { %v5860_v54 = vmul.f32 %v14643_v35, %v14642_v36  ;;  %v14659_v35 = vld [vmem:[#allocation134_spill] sm:$0xff] }
 0xf31   :  { %v13522_v55 = vpop.permute.xlu1 %5786  ;;  %6191 = vperm.xlu1 %7181, %v5153_v40   ;;  %v6387_v39 = vpop.permute.xlu0 %6386  ;;  %v14644_v40 = vld [vmem:[#allocation65_spill] sm:$0xff] }
 0xf32   :  { %v6632_v8 = vadd.f32 %v6387_v39, %v5912_v60  ;;  %v5909_v37 = vmul.f32 %v14645_v44, %v14644_v40  ;;  %v5215_v60 = vsub.f32 %v12962_v22, %v13506_v21  ;;  %v14650_v22 = vld [vmem:[#allocation67_spill] sm:$0xff]  ;;  %v14651_v21 = vld [vmem:[#allocation186_spill] sm:$0xff] }
 0xf33   :  { %v5855_v25 = vmul.f32 %v14651_v21, %v14650_v22 }
 0xf34   :  { %6752 = vst [vmem:[#allocation2 + $0x2c0] sm:$0xff] %v6632_v8 }
 0xf35   :  { %6471 = vperm.xlu1 %7181, %v5209_v7   ;;  %v4981_v0 = vpop.permute.xlu0 %4980 }
 0xf36   :  { %v5222_v14 = vsub.f32 %v13192_v52, %v4981_v0  ;;  %v6362_v32 = vpop.permute.xlu1 %6361  ;;  %v7568_v52 = vld [vmem:[%s13682_s4 + $0x358] sm:$0xff]  ;;  %s7597_s4 = smov [#allocation2]  }
 0xf37   :  { %v6627_v51 = vadd.f32 %v6362_v32, %v5907_v33  ;;  %v5211_v57 = vsub.f32 %v7568_v52, %v13402_v61  ;;  %v5914_v61 = vmul.f32 %v14641_v47, %v14640_v48  ;;  %v14656_v48 = vld [vmem:[#allocation191_spill] sm:$0xff]  ;;  %s6789_s2 = sshll.u32 %s7597_s4, 4  ;;  %s6790_s2 = int_to_ptr.vmem [resolvable:$true] %s6789_s2 }
 0xf38   :  { %6536 = vperm.xlu0 %7183, %v5222_v14   ;;  %s7571_s20 = scalar_lea.vmem %s6790_s2, 15360  ;;  %p7576_p1 = scmp.lt.s32.totalorder %s6790_s2, %s6790_s2 }
 0xf39   :  { %6747 = vst [vmem:[#allocation2 + $0x298] sm:$0xff] %v6627_v51  ;;  %6201 = vperm.xlu1 %7181, %v5155_v58   ;;  %v6117_v59 = vpop.permute.xlu0 %6116  ;;  %v14649_v58 = vld [vmem:[#allocation215_spill] sm:$0xff]  ;;  %p7572_p0 = scmp.ne.s32.totalorder %s6790_s2, %s7571_s20  ;;  %p7577_p2 = scmp.lt.s32.totalorder %s7571_s20, %s7571_s20 }
 0xf3a   :  { %v6578_v13 = vadd.f32 %v6117_v59, %v5858_v50  ;;  %v4971_v27 = vpop.permute.xlu1 %4970  ;;  %v5862_v51 = vmul.f32 %v14649_v58, %v14648_v26  ;;  %v14666_v58 = vld [vmem:[#allocation137_spill] sm:$0xff] }
 0xf3b   :  { %v5217_v33 = vsub.f32 %v13030_v28, %v4971_v27  ;;  %v14652_v28 = vld [vmem:[#allocation94_spill] sm:$0xff]  ;;  %p7578_p3 = por %p7577_p2, %p7576_p1 }
 0xf3c   :  { %6698 = vst [vmem:[#allocation2 + $0x110] sm:$0xff] %v6578_v13  ;;  %v5918_v27 = vmul.f32 %v12800_v49, %v14652_v28  ;;  %v14671_v28 = vld [vmem:[#allocation195_spill] sm:$0xff] }
 0xf3d   :  { %6481 = vperm.xlu1 %7181, %v5211_v57   ;;  %p7579_p4 = pnand %p7578_p3, %p7572_p0 }
 0xf3e   :  { %v6092_v18 = vpop.permute.xlu1 %6091  ;;  %v13543_v31 = vpop.permute.xlu0 %5821 }
 0xf3f   :  { %v6573_v19 = vadd.f32 %v6092_v18, %v5853_v30  ;;  %v14653_v30 = vld [vmem:[#allocation100_spill] sm:$0xff]  ;;  %v14654_v18 = vld [vmem:[#allocation217_spill] sm:$0xff] }
 0xf40   :  { %v5864_v53 = vmul.f32 %v14654_v18, %v14653_v30 }
 0xf41   :  { %6693 = vst [vmem:[#allocation2 + $0xe8] sm:$0xff] %v6573_v19  ;;  %6211 = vperm.xlu1 %7181, %v5157_v1   ;;  %v14655_v19 = vld [vmem:[#allocation69_spill] sm:$0xff] }
 0xf42   :  { %v5911_v47 = vmul.f32 %v14656_v48, %v14655_v19 }
 0xf43   :  { %v13555_v45 = vpop.permute.xlu1 %5796  ;;  %v6397_v16 = vpop.permute.xlu0 %6396 }
 0xf44   :  { %v6634_v42 = vadd.f32 %v6397_v16, %v5914_v61  ;;  %v14657_v61 = vld [vmem:[#allocation108_spill] sm:$0xff] }
 0xf45   :  { %6491 = vperm.xlu1 %7181, %v5213_v12   ;;  %v5920_v12 = vmul.f32 %v14658_v9, %v14657_v61  ;;  %v14674_v61 = vld [vmem:[#allocation266_spill] sm:$0xff] }
 0xf46   :  { %6754 = vst [vmem:[#allocation2 + $0x2d0] sm:$0xff] %v6634_v42 }
 0xf47   :  { %v6127_v39 = vpop.permute.xlu0 %6126 }
 0xf48   :  { %v6580_v8 = vadd.f32 %v6127_v39, %v5860_v54  ;;  %v6372_v62 = vpop.permute.xlu1 %6371  ;;  %v14660_v54 = vld [vmem:[#allocation222_spill] sm:$0xff] }
 0xf49   :  { %v6629_v7 = vadd.f32 %v6372_v62, %v5909_v37  ;;  %6501 = vperm.xlu1 %7181, %v5215_v60   ;;  %v5866_v40 = vmul.f32 %v14660_v54, %v14659_v35  ;;  %v14661_v37 = vld [vmem:[#allocation231_spill] sm:$0xff] }
 0xf4a   :  { %6700 = vst [vmem:[#allocation2 + $0x120] sm:$0xff] %v6580_v8  ;;  %v14662_v62 = vld [vmem:[#allocation71_spill] sm:$0xff] }
 0xf4b   :  { %6749 = vst [vmem:[#allocation2 + $0x2a8] sm:$0xff] %v6629_v7  ;;  %v6407_v0 = vpop.permute.xlu0 %6406  ;;  %v14663_v7 = vld [vmem:[#allocation187_spill] sm:$0xff] }
 0xf4c   :  { %v6636_v14 = vadd.f32 %v6407_v0, %v5916_v29  ;;  %v4975_v32 = vpop.permute.xlu1 %4974  ;;  %v5857_v20 = vmul.f32 %v14663_v7, %v14662_v62  ;;  %v14665_v29 = vld [vmem:[#allocation189_spill] sm:$0xff]  ;;  %v14682_v7 = vld [vmem:[#allocation204_spill] sm:$0xff] }
 0xf4d   :  { %6511 = vperm.xlu1 %7181, %v5217_v33   ;;  %v5219_v46 = vsub.f32 %v13104_v34, %v4975_v32  ;;  %v5922_v33 = vmul.f32 %v14665_v29, %v14664_v38  ;;  %v14681_v62 = vld [vmem:[#allocation77_spill] sm:$0xff] }
 0xf4e   :  { %6756 = vst [vmem:[#allocation2 + $0x2e0] sm:$0xff] %v6636_v14 }
 0xf4f   :  { %v6137_v50 = vpop.permute.xlu0 %6136 }
 0xf50   :  { %v6582_v59 = vadd.f32 %v6137_v50, %v5862_v51  ;;  %v6102_v13 = vpop.permute.xlu1 %6101  ;;  %v14667_v51 = vld [vmem:[#allocation10_spill] sm:$0xff]  ;;  %v14668_v50 = vld [vmem:[#allocation139_spill] sm:$0xff] }
 0xf51   :  { %v6575_v52 = vadd.f32 %v6102_v13, %v5855_v25  ;;  %6521 = vperm.xlu1 %7181, %v5219_v46   ;;  %v5868_v22 = vmul.f32 %v14667_v51, %v14666_v58  ;;  %v14685_v58 = vld [vmem:[#allocation209_spill] sm:$0xff] }
 0xf52   :  { %6702 = vst [vmem:[#allocation2 + $0x130] sm:$0xff] %v6582_v59  ;;  %v14669_v59 = vld [vmem:[#allocation18_spill] sm:$0xff] }
 0xf53   :  { %6695 = vst [vmem:[#allocation2 + $0xf8] sm:$0xff] %v6575_v52  ;;  %v6417_v57 = vpop.permute.xlu0 %6416  ;;  %v5924_v13 = vmul.f32 %v14669_v59, %v14668_v50  ;;  %v14670_v52 = vld [vmem:[#allocation73_spill] sm:$0xff] }
 0xf54   :  { %v6638_v10 = vadd.f32 %v6417_v57, %v5918_v27  ;;  %v5913_v27 = vmul.f32 %v14671_v28, %v14670_v52  ;;  %v14686_v59 = vld [vmem:[#allocation161_spill] sm:$0xff]  ;;  %v14687_v52 = vld [vmem:[#allocation87_spill] sm:$0xff]  ;;  %v14688_v28 = vld [vmem:[#allocation132_spill] sm:$0xff] }
 0xf55   :  { %v13573_v41 = vpop.permute.xlu1 %5806 }
 0xf56   :  { %6758 = vst [vmem:[#allocation2 + $0x2f0] sm:$0xff] %v6638_v10 }
 0xf57   :  { %v6147_v1 = vpop.permute.xlu0 %6146 }
 0xf58   :  { %v6584_v34 = vadd.f32 %v6147_v1, %v5864_v53  ;;  %v14672_v53 = vld [vmem:[#allocation141_spill] sm:$0xff]  ;;  %v14673_v1 = vld [vmem:[#allocation224_spill] sm:$0xff] }
 0xf5a   :  { %6704 = vst [vmem:[#allocation2 + $0x140] sm:$0xff] %v6584_v34  ;;  %v6382_v49 = vpop.permute.xlu1 %6381  ;;  %v5870_v34 = vmul.f32 %v14673_v1, %v14672_v53  ;;  %v14690_v1 = vld [vmem:[#allocation92_spill] sm:$0xff] }
 0xf5b   :  { %v6631_v16 = vadd.f32 %v6382_v49, %v5911_v47  ;;  %v6427_v42 = vpop.permute.xlu0 %6426  ;;  %v14676_v49 = vld [vmem:[#allocation227_spill] sm:$0xff] }
 0xf5c   :  { %v6640_v36 = vadd.f32 %v6427_v42, %v5920_v12  ;;  %v14675_v12 = vld [vmem:[#allocation107_spill] sm:$0xff] }
 0xf5d   :  { %6751 = vst [vmem:[#allocation2 + $0x2b8] sm:$0xff] %v6631_v16  ;;  %v5926_v16 = vmul.f32 %v14676_v49, %v14675_v12  ;;  %v14677_v42 = vld [vmem:[#allocation75_spill] sm:$0xff]  ;;  %v14693_v49 = vld [vmem:[#allocation98_spill] sm:$0xff] }
 0xf5e   :  { %6760 = vst [vmem:[#allocation2 + $0x300] sm:$0xff] %v6640_v36  ;;  %v4979_v44 = vpop.permute.xlu1 %4978  ;;  %v14678_v36 = vld [vmem:[#allocation140_spill] sm:$0xff] }
 0xf5f   :  { %v5221_v60 = vsub.f32 %v14661_v37, %v4979_v44  ;;  %v6157_v39 = vpop.permute.xlu0 %6156  ;;  %v5859_v35 = vmul.f32 %v14678_v36, %v14677_v42 }
 0xf60   :  { %v6586_v8 = vadd.f32 %v6157_v39, %v5866_v40  ;;  %v14680_v39 = vld [vmem:[#allocation11_spill] sm:$0xff] }
 0xf61   :  { %6531 = vperm.xlu1 %7181, %v5221_v60   ;;  %v14679_v60 = vld [vmem:[#allocation151_spill] sm:$0xff] }
 0xf62   :  { %6706 = vst [vmem:[#allocation2 + $0x150] sm:$0xff] %v6586_v8  ;;  %v6112_v0 = vpop.permute.xlu1 %6111  ;;  %v5872_v8 = vmul.f32 %v14680_v39, %v14679_v60  ;;  %v14697_v60 = vld [vmem:[#allocation216_spill] sm:$0xff] }
 0xf63   :  { %v6577_v14 = vadd.f32 %v6112_v0, %v5857_v20  ;;  %v6437_v32 = vpop.permute.xlu0 %6436  ;;  %v5915_v20 = vmul.f32 %v14682_v7, %v14681_v62 }
 0xf64   :  { %v6642_v26 = vadd.f32 %v6437_v32, %v5922_v33 }
 0xf65   :  { %6697 = vst [vmem:[#allocation2 + $0x108] sm:$0xff] %v6577_v14  ;;  %v14683_v14 = vld [vmem:[#allocation156_spill] sm:$0xff] }
 0xf66   :  { %6762 = vst [vmem:[#allocation2 + $0x310] sm:$0xff] %v6642_v26  ;;  %v5928_v32 = vmul.f32 %v13281_v63, %v14683_v14  ;;  %v14684_v26 = vld [vmem:[#allocation80_spill] sm:$0xff] }
 0xf67   :  { %v13590_v21 = vpop.permute.xlu1 %5816  ;;  %v6167_v25 = vpop.permute.xlu0 %6166  ;;  %v5861_v51 = vmul.f32 %v14685_v58, %v14684_v26  ;;  %v14701_v58 = vld [vmem:[#allocation133_spill] sm:$0xff] }
 0xf68   :  { %v6588_v46 = vadd.f32 %v6167_v25, %v5868_v22 }
 0xf6a   :  { %6708 = vst [vmem:[#allocation2 + $0x160] sm:$0xff] %v6588_v46 }
 0xf6b   :  { %v6447_v57 = vpop.permute.xlu0 %6446 }
 0xf6c   :  { %v6644_v10 = vadd.f32 %v6447_v57, %v5924_v13  ;;  %v6392_v30 = vpop.permute.xlu1 %6391  ;;  %v5874_v13 = vmul.f32 %v13320_v15, %v14686_v59 }
 0xf6d   :  { %v6633_v18 = vadd.f32 %v6392_v30, %v5913_v27  ;;  %v5917_v27 = vmul.f32 %v14688_v28, %v14687_v52  ;;  %v14704_v52 = vld [vmem:[#allocation188_spill] sm:$0xff] }
 0xf6e   :  { %6764 = vst [vmem:[#allocation2 + $0x320] sm:$0xff] %v6644_v10  ;;  %v5936_v28 = vmul.f32 %v13522_v55, %v14704_v52  ;;  %v14724_v52 = vld [vmem:[#allocation109_spill] sm:$0xff] }
 0xf6f   :  { %6753 = vst [vmem:[#allocation2 + $0x2c8] sm:$0xff] %v6633_v18  ;;  %v6177_v19 = vpop.permute.xlu0 %6176  ;;  %v14689_v18 = vld [vmem:[#allocation121_spill] sm:$0xff] }
 0xf70   :  { %v6590_v48 = vadd.f32 %v6177_v19, %v5870_v34  ;;  %v4983_v47 = vpop.permute.xlu1 %4982  ;;  %v5930_v53 = vmul.f32 %v13352_v3, %v14689_v18  ;;  %v14691_v34 = vld [vmem:[#allocation14_spill] sm:$0xff] }
 0xf71   :  { %v5223_v9 = vsub.f32 %v14674_v61, %v4983_v47  ;;  %v5863_v19 = vmul.f32 %v14691_v34, %v14690_v1  ;;  %v14708_v34 = vld [vmem:[#allocation81_spill] sm:$0xff] }
 0xf72   :  { %6710 = vst [vmem:[#allocation2 + $0x170] sm:$0xff] %v6590_v48 }
 0xf73   :  { %6541 = vperm.xlu1 %7181, %v5223_v9   ;;  %v6457_v54 = vpop.permute.xlu0 %6456  ;;  %v14692_v9 = vld [vmem:[#allocation126_spill] sm:$0xff] }
 0xf74   :  { %v6646_v40 = vadd.f32 %v6457_v54, %v5926_v16  ;;  %v6122_v44 = vpop.permute.xlu1 %6121  ;;  %v5876_v12 = vmul.f32 %v13390_v6, %v14692_v9  ;;  %v14694_v16 = vld [vmem:[#allocation210_spill] sm:$0xff]  ;;  %v14710_v9 = vld [vmem:[#allocation79_spill] sm:$0xff] }
 0xf75   :  { %v6579_v37 = vadd.f32 %v6122_v44, %v5859_v35  ;;  %v5919_v42 = vmul.f32 %v14694_v16, %v14693_v49  ;;  %v14712_v16 = vld [vmem:[#allocation207_spill] sm:$0xff] }
 0xf76   :  { %6766 = vst [vmem:[#allocation2 + $0x330] sm:$0xff] %v6646_v40  ;;  %v14695_v40 = vld [vmem:[#allocation129_spill] sm:$0xff] }
 0xf77   :  { %6699 = vst [vmem:[#allocation2 + $0x118] sm:$0xff] %v6579_v37  ;;  %v6187_v38 = vpop.permute.xlu0 %6186  ;;  %v5932_v44 = vmul.f32 %v13426_v56, %v14695_v40  ;;  %v14696_v37 = vld [vmem:[#allocation103_spill] sm:$0xff]  ;;  %v14714_v40 = vld [vmem:[#allocation97_spill] sm:$0xff] }
 0xf78   :  { %v6592_v29 = vadd.f32 %v6187_v38, %v5872_v8  ;;  %v6402_v33 = vpop.permute.xlu1 %6401  ;;  %v5865_v39 = vmul.f32 %v14697_v60, %v14696_v37 }
 0xf79   :  { %v6635_v0 = vadd.f32 %v6402_v33, %v5915_v20  ;;  %v14698_v20 = vld [vmem:[#allocation131_spill] sm:$0xff] }
 0xf7a   :  { %6712 = vst [vmem:[#allocation2 + $0x180] sm:$0xff] %v6592_v29  ;;  %v5878_v38 = vmul.f32 %v13458_v2, %v14698_v20  ;;  %v14699_v29 = vld [vmem:[#allocation128_spill] sm:$0xff]  ;;  %v14700_v33 = vld [vmem:[#allocation147_spill] sm:$0xff]  ;;  %v14717_v20 = vld [vmem:[#allocation101_spill] sm:$0xff] }
 0xf7b   :  { %6755 = vst [vmem:[#allocation2 + $0x2d8] sm:$0xff] %v6635_v0  ;;  %v6467_v22 = vpop.permute.xlu0 %6466  ;;  %v5921_v0 = vmul.f32 %v14700_v33, %v14699_v29 }
 0xf7c   :  { %v6648_v25 = vadd.f32 %v6467_v22, %v5928_v32  ;;  %v6132_v46 = vpop.permute.xlu1 %6131  ;;  %v14702_v22 = vld [vmem:[#allocation135_spill] sm:$0xff] }
 0xf7d   :  { %v6581_v50 = vadd.f32 %v6132_v46, %v5861_v51  ;;  %v5934_v51 = vmul.f32 %v13491_v17, %v14701_v58  ;;  %v14721_v58 = vld [vmem:[#allocation218_spill] sm:$0xff] }
 0xf7e   :  { %6768 = vst [vmem:[#allocation2 + $0x340] sm:$0xff] %v6648_v25  ;;  %v14703_v25 = vld [vmem:[#allocation214_spill] sm:$0xff] }
 0xf7f   :  { %6701 = vst [vmem:[#allocation2 + $0x128] sm:$0xff] %v6581_v50  ;;  %v6197_v57 = vpop.permute.xlu0 %6196  ;;  %v5867_v46 = vmul.f32 %v14703_v25, %v14702_v22  ;;  %v14722_v22 = vld [vmem:[#allocation104_spill] sm:$0xff]  ;;  %v14723_v25 = vld [vmem:[#allocation234_spill] sm:$0xff] }
 0xf80   :  { %v6594_v10 = vadd.f32 %v6197_v57, %v5874_v13  ;;  %v6412_v63 = vpop.permute.xlu1 %6411  ;;  %v14706_v57 = vld [vmem:[#allocation220_spill] sm:$0xff] }
 0xf81   :  { %v6637_v30 = vadd.f32 %v6412_v63, %v5917_v27  ;;  %v14705_v27 = vld [vmem:[#allocation138_spill] sm:$0xff] }
 0xf82   :  { %6714 = vst [vmem:[#allocation2 + $0x190] sm:$0xff] %v6594_v10  ;;  %v5923_v10 = vmul.f32 %v14706_v57, %v14705_v27 }
 0xf83   :  { %6757 = vst [vmem:[#allocation2 + $0x2e8] sm:$0xff] %v6637_v30  ;;  %v6477_v48 = vpop.permute.xlu0 %6476 }
 0xf84   :  { %v6650_v47 = vadd.f32 %v6477_v48, %v5930_v53  ;;  %v6142_v15 = vpop.permute.xlu1 %6141  ;;  %v14707_v53 = vld [vmem:[#allocation196_spill] sm:$0xff] }
 0xf85   :  { %v6583_v61 = vadd.f32 %v6142_v15, %v5863_v19  ;;  %v5938_v1 = vmul.f32 %v13555_v45, %v14707_v53  ;;  %v14709_v19 = vld [vmem:[#allocation223_spill] sm:$0xff] }
 0xf86   :  { %6770 = vst [vmem:[#allocation2 + $0x350] sm:$0xff] %v6650_v47  ;;  %v5869_v48 = vmul.f32 %v14709_v19, %v14708_v34  ;;  %v14728_v19 = vld [vmem:[#allocation124_spill] sm:$0xff] }
 0xf87   :  { %6703 = vst [vmem:[#allocation2 + $0x138] sm:$0xff] %v6583_v61  ;;  %v6207_v36 = vpop.permute.xlu0 %6206 }
 0xf88   :  { %v6596_v35 = vadd.f32 %v6207_v36, %v5876_v12  ;;  %v6422_v3 = vpop.permute.xlu1 %6421  ;;  %v14711_v12 = vld [vmem:[#allocation9_spill] sm:$0xff] }
 0xf89   :  { %v6639_v54 = vadd.f32 %v6422_v3, %v5919_v42  ;;  %v5925_v49 = vmul.f32 %v14711_v12, %v14710_v9  ;;  %v5940_v42 = vmul.f32 %v13573_v41, %v14712_v16  ;;  %v14730_v12 = vld [vmem:[#allocation202_spill] sm:$0xff] }
 0xf8a   :  { %6716 = vst [vmem:[#allocation2 + $0x1a0] sm:$0xff] %v6596_v35 }
 0xf8b   :  { %6759 = vst [vmem:[#allocation2 + $0x2f8] sm:$0xff] %v6639_v54  ;;  %v6487_v8 = vpop.permute.xlu0 %6486  ;;  %v14713_v54 = vld [vmem:[#allocation90_spill] sm:$0xff] }
 0xf8c   :  { %v6652_v62 = vadd.f32 %v6487_v8, %v5932_v44  ;;  %v6152_v6 = vpop.permute.xlu1 %6151  ;;  %v5871_v44 = vmul.f32 %v14714_v40, %v14713_v54  ;;  %v14716_v8 = vld [vmem:[#allocation193_spill] sm:$0xff] }
 0xf8d   :  { %v6585_v7 = vadd.f32 %v6152_v6, %v5865_v39  ;;  %v14715_v39 = vld [vmem:[#allocation96_spill] sm:$0xff] }
 0xf8e   :  { %6772 = vst [vmem:[#allocation2 + $0x360] sm:$0xff] %v6652_v62  ;;  %v5927_v62 = vmul.f32 %v14716_v8, %v14715_v39 }
 0xf8f   :  { %6705 = vst [vmem:[#allocation2 + $0x148] sm:$0xff] %v6585_v7  ;;  %v6217_v14 = vpop.permute.xlu0 %6216 }
 0xf90   :  { %v6598_v32 = vadd.f32 %v6217_v14, %v5878_v38  ;;  %v6432_v56 = vpop.permute.xlu1 %6431  ;;  %v14718_v38 = vld [vmem:[#allocation221_spill] sm:$0xff]  ;;  %v14720_v14 = vld [vmem:[#allocation91_spill] sm:$0xff] }
 0xf91   :  { %v6641_v26 = vadd.f32 %v6432_v56, %v5921_v0  ;;  %v5873_v41 = vmul.f32 %v14718_v38, %v14717_v20  ;;  %v14719_v0 = vld [vmem:[#allocation99_spill] sm:$0xff] }
 0xf92   :  { %6718 = vst [vmem:[#allocation2 + $0x1b0] sm:$0xff] %v6598_v32  ;;  %v5929_v32 = vmul.f32 %v14720_v14, %v14719_v0 }
 0xf93   :  { %6761 = vst [vmem:[#allocation2 + $0x308] sm:$0xff] %v6641_v26  ;;  %v6497_v50 = vpop.permute.xlu0 %6496 }
 0xf94   :  { %v6654_v59 = vadd.f32 %v6497_v50, %v5934_v51  ;;  %v6162_v2 = vpop.permute.xlu1 %6161  ;;  %v5942_v51 = vmul.f32 %v13590_v21, %v14721_v58 }
 0xf95   :  { %v6587_v13 = vadd.f32 %v6162_v2, %v5867_v46  ;;  %v5875_v46 = vmul.f32 %v14723_v25, %v14722_v22 }
 0xf96   :  { %6774 = vst [vmem:[#allocation2 + $0x370] sm:$0xff] %v6654_v59 }
 0xf97   :  { %6707 = vst [vmem:[#allocation2 + $0x158] sm:$0xff] %v6587_v13  ;;  %v6507_v63 = vpop.permute.xlu0 %6506 }
 0xf98   :  { %v6656_v30 = vadd.f32 %v6507_v63, %v5936_v28  ;;  %v6442_v17 = vpop.permute.xlu1 %6441  ;;  %v14725_v28 = vld [vmem:[#allocation197_spill] sm:$0xff]  ;;  %v14726_v63 = vld [vmem:[#allocation112_spill] sm:$0xff] }
 0xf99   :  { %v6643_v18 = vadd.f32 %v6442_v17, %v5923_v10  ;;  %v5931_v27 = vmul.f32 %v14725_v28, %v14724_v52 }
 0xf9a   :  { %6776 = vst [vmem:[#allocation2 + $0x380] sm:$0xff] %v6656_v30  ;;  %v5877_v30 = vmul.f32 %v13292_v43, %v14726_v63 }
 0xf9b   :  { %6763 = vst [vmem:[#allocation2 + $0x318] sm:$0xff] %v6643_v18  ;;  %v6517_v47 = vpop.permute.xlu0 %6516  ;;  %v14727_v18 = vld [vmem:[#allocation115_spill] sm:$0xff] }
 0xf9c   :  { %v6658_v15 = vadd.f32 %v6517_v47, %v5938_v1  ;;  %v6172_v55 = vpop.permute.xlu1 %6171  ;;  %v5933_v53 = vmul.f32 %v13323_v24, %v14727_v18 }
 0xf9d   :  { %v6589_v61 = vadd.f32 %v6172_v55, %v5869_v48  ;;  %v5935_v48 = vmul.f32 %v13384_v4, %v14728_v19  ;;  %v14729_v55 = vld [vmem:[#allocation190_spill] sm:$0xff] }
 0xf9e   :  { %6778 = vst [vmem:[#allocation2 + $0x390] sm:$0xff] %v6658_v15 }
 0xf9f   :  { %6709 = vst [vmem:[#allocation2 + $0x168] sm:$0xff] %v6589_v61  ;;  %v5937_v61 = vmul.f32 %v13436_v11, %v14729_v55 }
 0xfa0   :  { %v6452_v36 = vpop.permute.xlu1 %6451 }
 0xfa1   :  { %v6645_v35 = vadd.f32 %v6452_v36, %v5925_v49  ;;  %v6527_v45 = vpop.permute.xlu0 %6526  ;;  %v5939_v49 = vmul.f32 %v13478_v5, %v14730_v12 }
 0xfa2   :  { %v6660_v3 = vadd.f32 %v6527_v45, %v5940_v42  ;;  %v14731_v42 = vld [vmem:[#allocation212_spill] sm:$0xff]  ;;  %v14732_v45 = vld [vmem:[#allocation225_spill] sm:$0xff] }
 0xfa3   :  { %6765 = vst [vmem:[#allocation2 + $0x328] sm:$0xff] %v6645_v35  ;;  %v5941_v36 = vmul.f32 %v13514_v23, %v14731_v42  ;;  %v5943_v11 = vmul.f32 %v13543_v31, %v14732_v45 }
 0xfa4   :  { %6780 = vst [vmem:[#allocation2 + $0x3a0] sm:$0xff] %v6660_v3  ;;  %v6182_v37 = vpop.permute.xlu1 %6181 }
 0xfa5   :  { %v6591_v60 = vadd.f32 %v6182_v37, %v5871_v44 }
 0xfa7   :  { %6711 = vst [vmem:[#allocation2 + $0x178] sm:$0xff] %v6591_v60 }
 0xfa8   :  { %v6462_v6 = vpop.permute.xlu1 %6461 }
 0xfa9   :  { %v6647_v7 = vadd.f32 %v6462_v6, %v5927_v62 }
 0xfab   :  { %6767 = vst [vmem:[#allocation2 + $0x338] sm:$0xff] %v6647_v7 }
 0xfac   :  { %v6192_v29 = vpop.permute.xlu1 %6191 }
 0xfad   :  { %v6593_v33 = vadd.f32 %v6192_v29, %v5873_v41 }
 0xfaf   :  { %6713 = vst [vmem:[#allocation2 + $0x188] sm:$0xff] %v6593_v33 }
 0xfb0   :  { %v6472_v56 = vpop.permute.xlu1 %6471 }
 0xfb1   :  { %v6649_v26 = vadd.f32 %v6472_v56, %v5929_v32 }
 0xfb3   :  { %6769 = vst [vmem:[#allocation2 + $0x348] sm:$0xff] %v6649_v26  ;;  %v6537_v50 = vpop.permute.xlu0 %6536 }
 0xfb4   :  { %v6662_v59 = vadd.f32 %v6537_v50, %v5942_v51  ;;  %v6202_v2 = vpop.permute.xlu1 %6201 }
 0xfb5   :  { %v6595_v13 = vadd.f32 %v6202_v2, %v5875_v46 }
 0xfb6   :  { %6782 = vst [vmem:[#allocation2 + $0x3b0] sm:$0xff] %v6662_v59 }
 0xfb7   :  { %6715 = vst [vmem:[#allocation2 + $0x198] sm:$0xff] %v6595_v13 }
 0xfb8   :  { %v6482_v57 = vpop.permute.xlu1 %6481 }
 0xfb9   :  { %v6651_v10 = vadd.f32 %v6482_v57, %v5931_v27 }
 0xfbb   :  { %6771 = vst [vmem:[#allocation2 + $0x358] sm:$0xff] %v6651_v10 }
 0xfbc   :  { %v6212_v21 = vpop.permute.xlu1 %6211 }
 0xfbd   :  { %v6597_v17 = vadd.f32 %v6212_v21, %v5877_v30 }
 0xfbf   :  { %6717 = vst [vmem:[#allocation2 + $0x1a8] sm:$0xff] %v6597_v17 }
 0xfc0   :  { %v6492_v1 = vpop.permute.xlu1 %6491 }
 0xfc1   :  { %v6653_v34 = vadd.f32 %v6492_v1, %v5933_v53 }
 0xfc3   :  { %6773 = vst [vmem:[#allocation2 + $0x368] sm:$0xff] %v6653_v34 }
 0xfc4   :  { %v6502_v47 = vpop.permute.xlu1 %6501 }
 0xfc5   :  { %v6655_v15 = vadd.f32 %v6502_v47, %v5935_v48 }
 0xfc7   :  { %6775 = vst [vmem:[#allocation2 + $0x378] sm:$0xff] %v6655_v15 }
 0xfc8   :  { %v6512_v43 = vpop.permute.xlu1 %6511 }
 0xfc9   :  { %v6657_v9 = vadd.f32 %v6512_v43, %v5937_v61 }
 0xfcb   :  { %6777 = vst [vmem:[#allocation2 + $0x388] sm:$0xff] %v6657_v9 }
 0xfcc   :  { %v6522_v24 = vpop.permute.xlu1 %6521 }
 0xfcd   :  { %v6659_v16 = vadd.f32 %v6522_v24, %v5939_v49 }
 0xfcf   :  { %6779 = vst [vmem:[#allocation2 + $0x398] sm:$0xff] %v6659_v16 }
 0xfdc   :  { %v6532_v4 = vpop.permute.xlu1 %6531 }
 0xfdd   :  { %v6661_v35 = vadd.f32 %v6532_v4, %v5941_v36 }
 0xfdf   :  { %6781 = vst [vmem:[#allocation2 + $0x3a8] sm:$0xff] %v6661_v35 }
 0xfee   :  { %v6542_v3 = vpop.permute.xlu1 %6541 }
 0xfef   :  { %v6663_v54 = vadd.f32 %v6542_v3, %v5943_v11 }
 0xff1   :  { %6783 = vst [vmem:[#allocation2 + $0x3b8] sm:$0xff] %v6663_v54 }
 0xff2   :  { %7582 = shalt.err (!%p7579_p4)
}
 0xff3   :  { %s7598_s21 = smov 128   ;;  %s7599_s0 = smov 8  }
 0xff4   :  { %6795 = dma.vmem_to_hbm [thread:$0]  %s6790_s2, 15360, %s13683_s5, [#allocation3], %s7598_s21, %s7598_s21, %s7599_s0  }
 0xff5   :  { %7591 = dma.done.wait [#allocation3], 15360  }
 0xff6   :  { %7592 = vsyncadd [#allocation3], 4294951936 }
 0xff7   :  { %6799 = vsyncpa [#allocation3], 1 }

</bundles_post_ra>
